<compile_context>
chip_gen: v7x
topology: tpu7x:2x2x1
jax: 0.10.0
libtpu: 0.0.40
codegen_flags: <defaults>
</compile_context>

<pallas_src>
import jax
import jax.numpy as jnp
import numpy as np
from jax import lax
from jax.experimental import pallas as pl
from jax.experimental.pallas import tpu as pltpu

# ------------------------------------------------------------------ model config
DIM_INPUT = 2
DIM_HIDDEN = (8, 8, 16, 16)
NCLASS = 5
KSIZES = (5, 5, 3, 3)
H_IN = 132          # conv/pool chain: 132->128->64->60->30->28->14->12->6  (matches Linear(6*16))
BATCH = 2
BN_EPS = 1e-5

LANES = 128
HP0 = 160           # padded per-batch height (>= H_IN, multiple of 8)
ROWS = BATCH * HP0  # 320 : the activation slab is [ROWS, C] for the whole forward pass


def _layer_dims():
    layers = []
    h, cin, stride = H_IN, DIM_INPUT, 1
    for k, cout in zip(KSIZES, DIM_HIDDEN):
        ho = h - k + 1
        layers.append(dict(k=k, cin=cin, cout=cout, h=h, ho=ho, s=stride))
        h, cin, stride = ho // 2, cout, stride * 2
    return layers, h, stride


LAYERS, H_FINAL, S_FINAL = _layer_dims()
assert H_FINAL == 6
assert H_IN <= HP0 and (H_IN - 1) < HP0 and (H_FINAL - 1) * S_FINAL < HP0
C_LAST = DIM_HIDDEN[-1]
JW = H_FINAL * NCLASS           # 30: head products laid out as (h, n) on lanes
NSEL = 16                       # padded row count of the head selection block (>= BATCH*H_FINAL)


# ------------------------------------------------------------------ packed params (blob, 128 lanes)
def _build_param_layout():
    off, row = {}, 0

    def add(name, nrows):
        nonlocal row
        off[name] = row
        row += -(-nrows // 8) * 8           # 8-row align every piece

    for l, s in enumerate(LAYERS):
        for dk in range(s["k"]):
            add(f"w{l}_{dk}", s["cin"])     # per-tap conv weight [cin, cout]
    add("gb", 8)                            # rows l: gamma_l ; rows 4+l: beta_l
    add("wcat", C_LAST)                     # [C_LAST, JW]  head weight, lane = h*NCLASS+n
    add("mdiag", NSEL)                      # [NSEL, JW]    (row h == lane-block h) mask
    add("psum", BATCH)                      # [BATCH, NSEL] per-batch row-sum matrix
    add("gsel", JW)                         # [JW, LANES]   (h,n) -> n lane collapse
    add("bias", 1)                          # [1, LANES]    linear bias (lane-padded)
    off["_rows"] = row
    return off


P_OFF = _build_param_layout()


def pack_params(params):
    """Pack all transformed parameters + head constants into one [rows,128] f32 blob."""
    blob = jnp.zeros((P_OFF["_rows"], LANES), jnp.float32)
    for l, s in enumerate(LAYERS):
        w, _bias_dead, gamma, beta = params["conv"][l]      # conv bias is dead under BN
        for dk in range(s["k"]):
            r0 = P_OFF[f"w{l}_{dk}"]
            blob = blob.at[r0:r0 + s["cin"], :s["cout"]].set(w[dk])
        blob = blob.at[P_OFF["gb"] + l, :s["cout"]].set(gamma)
        blob = blob.at[P_OFF["gb"] + 4 + l, :s["cout"]].set(beta)

    # Head weight: PyTorch flatten index is c*H_FINAL + h  ->  wcat[c, h*NCLASS + n].
    wl = params["lin_w"]                                    # [NCLASS, H_FINAL*C_LAST]
    wcat = jnp.transpose(wl.reshape(NCLASS, C_LAST, H_FINAL), (1, 2, 0)).reshape(C_LAST, JW)
    blob = blob.at[P_OFF["wcat"]:P_OFF["wcat"] + C_LAST, :JW].set(wcat)

    i = np.arange(NSEL)
    j = np.arange(JW)
    mdiag = ((i[:, None] < BATCH * H_FINAL) &
             ((j[None, :] // NCLASS) == (i[:, None] % H_FINAL))).astype(np.float32)
    psum = np.zeros((BATCH, NSEL), np.float32)
    for ii in range(BATCH * H_FINAL):
        psum[ii // H_FINAL, ii] = 1.0
    gsel = np.zeros((JW, LANES), np.float32)
    gsel[j, j % NCLASS] = 1.0
    blob = blob.at[P_OFF["mdiag"]:P_OFF["mdiag"] + NSEL, :JW].set(jnp.asarray(mdiag))
    blob = blob.at[P_OFF["psum"]:P_OFF["psum"] + BATCH, :NSEL].set(jnp.asarray(psum))
    blob = blob.at[P_OFF["gsel"]:P_OFF["gsel"] + JW, :].set(jnp.asarray(gsel))
    blob = blob.at[P_OFF["bias"], :NCLASS].set(params["lin_b"])
    return blob


# ------------------------------------------------------------------ host-built masks (320 lanes)
def _build_smask():
    """Row l (l<4): masked-ones over layer-l conv-output rows (BN stats on the MXU).
       Rows 8..19: head row-selection S[i, b*HP0 + h*16] = 1 for i = b*6 + h."""
    m = np.zeros((24, ROWS), np.float32)
    for l, s in enumerate(LAYERS):
        for b in range(BATCH):
            for jj in range(s["ho"]):
                m[l, b * HP0 + jj * s["s"]] = 1.0
    for ii in range(BATCH * H_FINAL):
        b, h = divmod(ii, H_FINAL)
        m[8 + ii, b * HP0 + h * S_FINAL] = 1.0
    return m


SMASK_NP = _build_smask()


# ------------------------------------------------------------------ kernel
def net_kernel(x_ref, p_ref, m_ref, out_ref):
    """Entire forward pass, fully VMEM-resident, single grid point."""
    rows = ROWS
    y = x_ref[...]                                          # [ROWS, DIM_INPUT] f32

    for l, s in enumerate(LAYERS):
        k, cin, cout = s["k"], s["cin"], s["cout"]
        stride, ho = s["s"], s["ho"]

        # ---- Conv(k,1): k accumulated per-tap matmuls (no lane concat).
        # Valid data for this layer lives at rows j*stride inside each per-batch
        # block; tap dk is the slab rolled up by dk*stride sublanes.  Roll
        # wrap-around only lands in rows that are masked out of the statistics
        # and never selected downstream.
        acc = None
        for dk in range(k):
            ytap = y if dk == 0 else pltpu.roll(y, shift=rows - dk * stride, axis=0)
            r0 = P_OFF[f"w{l}_{dk}"]
            w = p_ref[r0:r0 + cin, 0:cout]                  # [cin, cout]
            part = jnp.dot(ytap, w, preferred_element_type=jnp.float32)
            acc = part if acc is None else acc + part       # [ROWS, cout]

        # ---- BatchNorm2d (training-mode batch stats) on the MXU:
        # host-packed masked-ones row vector contracts away the row axis.
        # (Conv bias omitted: exactly cancelled by the mean subtraction.)
        mask_row = m_ref[l:l + 1, :]                        # [1, ROWS]
        ssum = jnp.dot(mask_row, acc, preferred_element_type=jnp.float32)        # [1, cout]
        sqsum = jnp.dot(mask_row, acc * acc, preferred_element_type=jnp.float32)  # [1, cout]
        inv_n = 1.0 / float(BATCH * ho)
        mean = ssum * inv_n
        var = jnp.maximum(sqsum * inv_n - mean * mean, 0.0)
        g0 = P_OFF["gb"] + l
        b0 = P_OFF["gb"] + 4 + l
        gamma = p_ref[g0:g0 + 1, 0:cout]
        beta = p_ref[b0:b0 + 1, 0:cout]
        scale = gamma * lax.rsqrt(var + BN_EPS)             # rsqrt -> EUP
        shift = beta - mean * scale
        yn = acc * scale + shift                            # [ROWS, cout]

        # ---- MaxPool2d((2,1)) before ReLU (they commute): one sublane roll +
        # two maxes, NO compaction — pooled data now lives at row stride 2*stride.
        y = jnp.maximum(jnp.maximum(yn, pltpu.roll(yn, shift=rows - stride, axis=0)), 0.0)

    # ---- Linear head on the PyTorch flatten order (index = c*6 + h), as four
    # tiny matmuls (row selection, per-(h,n) products, per-batch row sum,
    # (h,n)->n lane collapse) — no in-kernel transposes/flattens.
    sel = m_ref[8:8 + NSEL, :]                              # [16, ROWS] row selection
    ysel = jnp.dot(sel, y, preferred_element_type=jnp.float32)        # [16, C_LAST]
    wcat = p_ref[P_OFF["wcat"]:P_OFF["wcat"] + C_LAST, 0:JW]          # [16, 30]
    mdiag = p_ref[P_OFF["mdiag"]:P_OFF["mdiag"] + NSEL, 0:JW]         # [16, 30]
    psum = p_ref[P_OFF["psum"]:P_OFF["psum"] + BATCH, 0:NSEL]         # [2, 16]
    gsel = p_ref[P_OFF["gsel"]:P_OFF["gsel"] + JW, :]                 # [30, 128]
    bias = p_ref[P_OFF["bias"]:P_OFF["bias"] + 1, :]                  # [1, 128]

    q = jnp.dot(ysel, wcat, preferred_element_type=jnp.float32) * mdiag
    t = jnp.dot(psum, q, preferred_element_type=jnp.float32)          # [2, 30]
    out_ref[...] = jnp.dot(t, gsel, preferred_element_type=jnp.float32) + bias


# ------------------------------------------------------------------ host wrapper
@jax.jit
def net_forward(x_nchw, params):
    assert x_nchw.shape == (BATCH, DIM_INPUT, H_IN, 1)
    x = jnp.transpose(x_nchw[..., 0], (0, 2, 1)).astype(jnp.float32)   # [B, H, C]
    x = jnp.pad(x, ((0, 0), (0, HP0 - H_IN), (0, 0)))                  # [B, HP0, C]
    x2d = x.reshape(ROWS, DIM_INPUT)
    blob = pack_params(params)
    smask = jnp.asarray(SMASK_NP)                                      # trace-time constant

    vmem = pl.BlockSpec(memory_space=pltpu.MemorySpace.VMEM)
    out = pl.pallas_call(
        net_kernel,
        out_shape=jax.ShapeDtypeStruct((BATCH, LANES), jnp.float32),   # lane-dense output
        in_specs=[vmem, vmem, vmem],
        out_specs=vmem,
    )(x2d, blob, smask)
    return out[:, :NCLASS]


# ------------------------------------------------------------------ init + reference
def init_params(key):
    keys = jax.random.split(key, 4 * 4 + 2)
    convs, cin, ki = [], DIM_INPUT, 0
    for cout, k in zip(DIM_HIDDEN, KSIZES):
        w = 0.1 * jax.random.normal(keys[ki], (k, cin, cout), jnp.float32)
        b = 0.1 * jax.random.normal(keys[ki + 1], (cout,), jnp.float32)     # dead under BN
        gamma = 1.0 + 0.05 * jax.random.normal(keys[ki + 2], (cout,), jnp.float32)
        beta = 0.05 * jax.random.normal(keys[ki + 3], (cout,), jnp.float32)
        convs.append((w, b, gamma, beta))
        cin, ki = cout, ki + 4
    lin_w = 0.1 * jax.random.normal(keys[ki], (NCLASS, 6 * DIM_HIDDEN[3]), jnp.float32)
    lin_b = 0.1 * jax.random.normal(keys[ki + 1], (NCLASS,), jnp.float32)
    return {"conv": convs, "lin_w": lin_w, "lin_b": lin_b}


def net_reference(x_nchw, params):
    """Pure-JAX reference mirroring the PyTorch module literally (NCHW, conv bias
    included, two-pass training-mode BatchNorm)."""
    x = x_nchw[..., 0].astype(jnp.float32)                  # [B, C, H]
    hi = lax.Precision.HIGHEST
    for w, cb, gamma, beta in params["conv"]:
        k = w.shape[0]
        ho = x.shape[2] - k + 1
        acc = jnp.zeros((x.shape[0], w.shape[2], ho), jnp.float32)
        for dk in range(k):
            acc = acc + jnp.einsum("bch,cd->bdh", x[:, :, dk:dk + ho], w[dk], precision=hi)
        acc = acc + cb[None, :, None]
        mean = jnp.mean(acc, axis=(0, 2), keepdims=True)
        var = jnp.mean((acc - mean) ** 2, axis=(0, 2), keepdims=True)
        y = (acc - mean) * lax.rsqrt(var + BN_EPS) * gamma[None, :, None] + beta[None, :, None]
        y = jnp.maximum(y, 0.0)
        hpool = ho // 2
        x = jnp.max(y[:, :, :2 * hpool].reshape(y.shape[0], y.shape[1], hpool, 2), axis=3)
    flat = x.reshape(x.shape[0], -1)                        # PyTorch view: index = c*H + h
    return jnp.dot(flat, params["lin_w"].T, precision=hi) + params["lin_b"]


# ------------------------------------------------------------------ main
if __name__ == "__main__":
    key = jax.random.PRNGKey(0)
    kx, kp = jax.random.split(key)
    x = jax.random.normal(kx, (BATCH, DIM_INPUT, H_IN, 1), jnp.float32)
    params = init_params(kp)

    out = jax.block_until_ready(net_forward(x, params))
    assert out.shape == (BATCH, NCLASS) and out.dtype == jnp.float32

    ref = jax.block_until_ready(net_reference(x, params))
    assert bool(jnp.allclose(out, ref, atol=1e-2, rtol=1e-2)), (out, ref)
    print("KERNEL_OK")
</pallas_src>

<mosaic_0001>
module attributes {stable_mosaic.version = 11 : i64} {
  func.func @net_kernel(%arg0: memref<320x2xf32, #tpu.memory_space<vmem>>, %arg1: memref<240x128xf32, #tpu.memory_space<vmem>>, %arg2: memref<24x320xf32, #tpu.memory_space<vmem>>, %arg3: memref<2x128xf32, #tpu.memory_space<vmem>>) attributes {dimension_semantics = [], scalar_prefetch = 0 : i64, scratch_operands = 0 : i64, tpu.core_type = #tpu.core_type<tc>} {
    %c0 = arith.constant 0 : index
    %c0_0 = arith.constant 0 : index
    %0 = vector.load %arg0[%c0, %c0_0] : memref<320x2xf32, #tpu.memory_space<vmem>>, vector<320x2xf32>
    %c0_1 = arith.constant 0 : index
    %c0_2 = arith.constant 0 : index
    %1 = vector.load %arg1[%c0_1, %c0_2] : memref<240x128xf32, #tpu.memory_space<vmem>>, vector<2x8xf32>
    %cst = arith.constant dense<0.000000e+00> : vector<320x8xf32>
    %2 = tpu.matmul %0, %1, %cst {dimension_numbers = #tpu.dot_dimension_numbers<[1], [0], [0], [1], [0, 0, 1, 1], [], []>} : vector<320x2xf32>, vector<2x8xf32>, vector<320x8xf32> -> vector<320x8xf32>
    %c319_i32 = arith.constant 319 : i32
    %3 = tpu.dynamic_rotate %0 by %c319_i32 dim 0 : vector<320x2xf32>, i32 -> vector<320x2xf32>
    %c8 = arith.constant 8 : index
    %c0_3 = arith.constant 0 : index
    %4 = vector.load %arg1[%c8, %c0_3] : memref<240x128xf32, #tpu.memory_space<vmem>>, vector<2x8xf32>
    %cst_4 = arith.constant dense<0.000000e+00> : vector<320x8xf32>
    %5 = tpu.matmul %3, %4, %cst_4 {dimension_numbers = #tpu.dot_dimension_numbers<[1], [0], [0], [1], [0, 0, 1, 1], [], []>} : vector<320x2xf32>, vector<2x8xf32>, vector<320x8xf32> -> vector<320x8xf32>
    %6 = arith.addf %2, %5 : vector<320x8xf32>
    %c318_i32 = arith.constant 318 : i32
    %7 = tpu.dynamic_rotate %0 by %c318_i32 dim 0 : vector<320x2xf32>, i32 -> vector<320x2xf32>
    %c16 = arith.constant 16 : index
    %c0_5 = arith.constant 0 : index
    %8 = vector.load %arg1[%c16, %c0_5] : memref<240x128xf32, #tpu.memory_space<vmem>>, vector<2x8xf32>
    %cst_6 = arith.constant dense<0.000000e+00> : vector<320x8xf32>
    %9 = tpu.matmul %7, %8, %cst_6 {dimension_numbers = #tpu.dot_dimension_numbers<[1], [0], [0], [1], [0, 0, 1, 1], [], []>} : vector<320x2xf32>, vector<2x8xf32>, vector<320x8xf32> -> vector<320x8xf32>
    %10 = arith.addf %6, %9 : vector<320x8xf32>
    %c317_i32 = arith.constant 317 : i32
    %11 = tpu.dynamic_rotate %0 by %c317_i32 dim 0 : vector<320x2xf32>, i32 -> vector<320x2xf32>
    %c24 = arith.constant 24 : index
    %c0_7 = arith.constant 0 : index
    %12 = vector.load %arg1[%c24, %c0_7] : memref<240x128xf32, #tpu.memory_space<vmem>>, vector<2x8xf32>
    %cst_8 = arith.constant dense<0.000000e+00> : vector<320x8xf32>
    %13 = tpu.matmul %11, %12, %cst_8 {dimension_numbers = #tpu.dot_dimension_numbers<[1], [0], [0], [1], [0, 0, 1, 1], [], []>} : vector<320x2xf32>, vector<2x8xf32>, vector<320x8xf32> -> vector<320x8xf32>
    %14 = arith.addf %10, %13 : vector<320x8xf32>
    %c316_i32 = arith.constant 316 : i32
    %15 = tpu.dynamic_rotate %0 by %c316_i32 dim 0 : vector<320x2xf32>, i32 -> vector<320x2xf32>
    %c32 = arith.constant 32 : index
    %c0_9 = arith.constant 0 : index
    %16 = vector.load %arg1[%c32, %c0_9] : memref<240x128xf32, #tpu.memory_space<vmem>>, vector<2x8xf32>
    %cst_10 = arith.constant dense<0.000000e+00> : vector<320x8xf32>
    %17 = tpu.matmul %15, %16, %cst_10 {dimension_numbers = #tpu.dot_dimension_numbers<[1], [0], [0], [1], [0, 0, 1, 1], [], []>} : vector<320x2xf32>, vector<2x8xf32>, vector<320x8xf32> -> vector<320x8xf32>
    %18 = arith.addf %14, %17 : vector<320x8xf32>
    %c0_11 = arith.constant 0 : index
    %c0_12 = arith.constant 0 : index
    %19 = vector.load %arg2[%c0_11, %c0_12] : memref<24x320xf32, #tpu.memory_space<vmem>>, vector<1x320xf32>
    %cst_13 = arith.constant dense<0.000000e+00> : vector<1x8xf32>
    %20 = tpu.matmul %19, %18, %cst_13 {dimension_numbers = #tpu.dot_dimension_numbers<[1], [0], [0], [1], [0, 0, 1, 1], [], []>} : vector<1x320xf32>, vector<320x8xf32>, vector<1x8xf32> -> vector<1x8xf32>
    %21 = arith.mulf %18, %18 : vector<320x8xf32>
    %cst_14 = arith.constant dense<0.000000e+00> : vector<1x8xf32>
    %22 = tpu.matmul %19, %21, %cst_14 {dimension_numbers = #tpu.dot_dimension_numbers<[1], [0], [0], [1], [0, 0, 1, 1], [], []>} : vector<1x320xf32>, vector<320x8xf32>, vector<1x8xf32> -> vector<1x8xf32>
    %cst_15 = arith.constant 3.906250e-03 : f32
    %23 = vector.broadcast %cst_15 : f32 to vector<1x8xf32>
    %24 = arith.mulf %20, %23 : vector<1x8xf32>
    %cst_16 = arith.constant 3.906250e-03 : f32
    %25 = vector.broadcast %cst_16 : f32 to vector<1x8xf32>
    %26 = arith.mulf %22, %25 : vector<1x8xf32>
    %27 = arith.mulf %24, %24 : vector<1x8xf32>
    %28 = arith.subf %26, %27 : vector<1x8xf32>
    %cst_17 = arith.constant 0.000000e+00 : f32
    %29 = vector.broadcast %cst_17 : f32 to vector<1x8xf32>
    %30 = arith.maximumf %28, %29 : vector<1x8xf32>
    %c152 = arith.constant 152 : index
    %c0_18 = arith.constant 0 : index
    %31 = vector.load %arg1[%c152, %c0_18] : memref<240x128xf32, #tpu.memory_space<vmem>>, vector<1x8xf32>
    %c156 = arith.constant 156 : index
    %c0_19 = arith.constant 0 : index
    %32 = vector.load %arg1[%c156, %c0_19] : memref<240x128xf32, #tpu.memory_space<vmem>>, vector<1x8xf32>
    %cst_20 = arith.constant 9.99999974E-6 : f32
    %33 = vector.broadcast %cst_20 : f32 to vector<1x8xf32>
    %34 = arith.addf %30, %33 : vector<1x8xf32>
    %35 = math.rsqrt %34 : vector<1x8xf32>
    %36 = arith.mulf %31, %35 : vector<1x8xf32>
    %37 = arith.mulf %24, %36 : vector<1x8xf32>
    %38 = arith.subf %32, %37 : vector<1x8xf32>
    %39 = vector.broadcast %36 : vector<1x8xf32> to vector<320x8xf32>
    %40 = arith.mulf %18, %39 : vector<320x8xf32>
    %41 = vector.broadcast %38 : vector<1x8xf32> to vector<320x8xf32>
    %42 = arith.addf %40, %41 : vector<320x8xf32>
    %c319_i32_21 = arith.constant 319 : i32
    %43 = tpu.dynamic_rotate %42 by %c319_i32_21 dim 0 : vector<320x8xf32>, i32 -> vector<320x8xf32>
    %44 = arith.maximumf %42, %43 : vector<320x8xf32>
    %cst_22 = arith.constant 0.000000e+00 : f32
    %45 = vector.broadcast %cst_22 : f32 to vector<320x8xf32>
    %46 = arith.maximumf %44, %45 : vector<320x8xf32>
    %c40 = arith.constant 40 : index
    %c0_23 = arith.constant 0 : index
    %47 = vector.load %arg1[%c40, %c0_23] : memref<240x128xf32, #tpu.memory_space<vmem>>, vector<8x8xf32>
    %cst_24 = arith.constant dense<0.000000e+00> : vector<320x8xf32>
    %48 = tpu.matmul %46, %47, %cst_24 {dimension_numbers = #tpu.dot_dimension_numbers<[1], [0], [0], [1], [0, 0, 1, 1], [], []>} : vector<320x8xf32>, vector<8x8xf32>, vector<320x8xf32> -> vector<320x8xf32>
    %c318_i32_25 = arith.constant 318 : i32
    %49 = tpu.dynamic_rotate %46 by %c318_i32_25 dim 0 : vector<320x8xf32>, i32 -> vector<320x8xf32>
    %c48 = arith.constant 48 : index
    %c0_26 = arith.constant 0 : index
    %50 = vector.load %arg1[%c48, %c0_26] : memref<240x128xf32, #tpu.memory_space<vmem>>, vector<8x8xf32>
    %cst_27 = arith.constant dense<0.000000e+00> : vector<320x8xf32>
    %51 = tpu.matmul %49, %50, %cst_27 {dimension_numbers = #tpu.dot_dimension_numbers<[1], [0], [0], [1], [0, 0, 1, 1], [], []>} : vector<320x8xf32>, vector<8x8xf32>, vector<320x8xf32> -> vector<320x8xf32>
    %52 = arith.addf %48, %51 : vector<320x8xf32>
    %c316_i32_28 = arith.constant 316 : i32
    %53 = tpu.dynamic_rotate %46 by %c316_i32_28 dim 0 : vector<320x8xf32>, i32 -> vector<320x8xf32>
    %c56 = arith.constant 56 : index
    %c0_29 = arith.constant 0 : index
    %54 = vector.load %arg1[%c56, %c0_29] : memref<240x128xf32, #tpu.memory_space<vmem>>, vector<8x8xf32>
    %cst_30 = arith.constant dense<0.000000e+00> : vector<320x8xf32>
    %55 = tpu.matmul %53, %54, %cst_30 {dimension_numbers = #tpu.dot_dimension_numbers<[1], [0], [0], [1], [0, 0, 1, 1], [], []>} : vector<320x8xf32>, vector<8x8xf32>, vector<320x8xf32> -> vector<320x8xf32>
    %56 = arith.addf %52, %55 : vector<320x8xf32>
    %c314_i32 = arith.constant 314 : i32
    %57 = tpu.dynamic_rotate %46 by %c314_i32 dim 0 : vector<320x8xf32>, i32 -> vector<320x8xf32>
    %c64 = arith.constant 64 : index
    %c0_31 = arith.constant 0 : index
    %58 = vector.load %arg1[%c64, %c0_31] : memref<240x128xf32, #tpu.memory_space<vmem>>, vector<8x8xf32>
    %cst_32 = arith.constant dense<0.000000e+00> : vector<320x8xf32>
    %59 = tpu.matmul %57, %58, %cst_32 {dimension_numbers = #tpu.dot_dimension_numbers<[1], [0], [0], [1], [0, 0, 1, 1], [], []>} : vector<320x8xf32>, vector<8x8xf32>, vector<320x8xf32> -> vector<320x8xf32>
    %60 = arith.addf %56, %59 : vector<320x8xf32>
    %c312_i32 = arith.constant 312 : i32
    %61 = tpu.dynamic_rotate %46 by %c312_i32 dim 0 : vector<320x8xf32>, i32 -> vector<320x8xf32>
    %c72 = arith.constant 72 : index
    %c0_33 = arith.constant 0 : index
    %62 = vector.load %arg1[%c72, %c0_33] : memref<240x128xf32, #tpu.memory_space<vmem>>, vector<8x8xf32>
    %cst_34 = arith.constant dense<0.000000e+00> : vector<320x8xf32>
    %63 = tpu.matmul %61, %62, %cst_34 {dimension_numbers = #tpu.dot_dimension_numbers<[1], [0], [0], [1], [0, 0, 1, 1], [], []>} : vector<320x8xf32>, vector<8x8xf32>, vector<320x8xf32> -> vector<320x8xf32>
    %64 = arith.addf %60, %63 : vector<320x8xf32>
    %c1 = arith.constant 1 : index
    %c0_35 = arith.constant 0 : index
    %65 = vector.load %arg2[%c1, %c0_35] : memref<24x320xf32, #tpu.memory_space<vmem>>, vector<1x320xf32>
    %cst_36 = arith.constant dense<0.000000e+00> : vector<1x8xf32>
    %66 = tpu.matmul %65, %64, %cst_36 {dimension_numbers = #tpu.dot_dimension_numbers<[1], [0], [0], [1], [0, 0, 1, 1], [], []>} : vector<1x320xf32>, vector<320x8xf32>, vector<1x8xf32> -> vector<1x8xf32>
    %67 = arith.mulf %64, %64 : vector<320x8xf32>
    %cst_37 = arith.constant dense<0.000000e+00> : vector<1x8xf32>
    %68 = tpu.matmul %65, %67, %cst_37 {dimension_numbers = #tpu.dot_dimension_numbers<[1], [0], [0], [1], [0, 0, 1, 1], [], []>} : vector<1x320xf32>, vector<320x8xf32>, vector<1x8xf32> -> vector<1x8xf32>
    %cst_38 = arith.constant 0.00833333377 : f32
    %69 = vector.broadcast %cst_38 : f32 to vector<1x8xf32>
    %70 = arith.mulf %66, %69 : vector<1x8xf32>
    %cst_39 = arith.constant 0.00833333377 : f32
    %71 = vector.broadcast %cst_39 : f32 to vector<1x8xf32>
    %72 = arith.mulf %68, %71 : vector<1x8xf32>
    %73 = arith.mulf %70, %70 : vector<1x8xf32>
    %74 = arith.subf %72, %73 : vector<1x8xf32>
    %cst_40 = arith.constant 0.000000e+00 : f32
    %75 = vector.broadcast %cst_40 : f32 to vector<1x8xf32>
    %76 = arith.maximumf %74, %75 : vector<1x8xf32>
    %c153 = arith.constant 153 : index
    %c0_41 = arith.constant 0 : index
    %77 = vector.load %arg1[%c153, %c0_41] : memref<240x128xf32, #tpu.memory_space<vmem>>, vector<1x8xf32>
    %c157 = arith.constant 157 : index
    %c0_42 = arith.constant 0 : index
    %78 = vector.load %arg1[%c157, %c0_42] : memref<240x128xf32, #tpu.memory_space<vmem>>, vector<1x8xf32>
    %cst_43 = arith.constant 9.99999974E-6 : f32
    %79 = vector.broadcast %cst_43 : f32 to vector<1x8xf32>
    %80 = arith.addf %76, %79 : vector<1x8xf32>
    %81 = math.rsqrt %80 : vector<1x8xf32>
    %82 = arith.mulf %77, %81 : vector<1x8xf32>
    %83 = arith.mulf %70, %82 : vector<1x8xf32>
    %84 = arith.subf %78, %83 : vector<1x8xf32>
    %85 = vector.broadcast %82 : vector<1x8xf32> to vector<320x8xf32>
    %86 = arith.mulf %64, %85 : vector<320x8xf32>
    %87 = vector.broadcast %84 : vector<1x8xf32> to vector<320x8xf32>
    %88 = arith.addf %86, %87 : vector<320x8xf32>
    %c318_i32_44 = arith.constant 318 : i32
    %89 = tpu.dynamic_rotate %88 by %c318_i32_44 dim 0 : vector<320x8xf32>, i32 -> vector<320x8xf32>
    %90 = arith.maximumf %88, %89 : vector<320x8xf32>
    %cst_45 = arith.constant 0.000000e+00 : f32
    %91 = vector.broadcast %cst_45 : f32 to vector<320x8xf32>
    %92 = arith.maximumf %90, %91 : vector<320x8xf32>
    %c80 = arith.constant 80 : index
    %c0_46 = arith.constant 0 : index
    %93 = vector.load %arg1[%c80, %c0_46] : memref<240x128xf32, #tpu.memory_space<vmem>>, vector<8x16xf32>
    %cst_47 = arith.constant dense<0.000000e+00> : vector<320x16xf32>
    %94 = tpu.matmul %92, %93, %cst_47 {dimension_numbers = #tpu.dot_dimension_numbers<[1], [0], [0], [1], [0, 0, 1, 1], [], []>} : vector<320x8xf32>, vector<8x16xf32>, vector<320x16xf32> -> vector<320x16xf32>
    %c316_i32_48 = arith.constant 316 : i32
    %95 = tpu.dynamic_rotate %92 by %c316_i32_48 dim 0 : vector<320x8xf32>, i32 -> vector<320x8xf32>
    %c88 = arith.constant 88 : index
    %c0_49 = arith.constant 0 : index
    %96 = vector.load %arg1[%c88, %c0_49] : memref<240x128xf32, #tpu.memory_space<vmem>>, vector<8x16xf32>
    %cst_50 = arith.constant dense<0.000000e+00> : vector<320x16xf32>
    %97 = tpu.matmul %95, %96, %cst_50 {dimension_numbers = #tpu.dot_dimension_numbers<[1], [0], [0], [1], [0, 0, 1, 1], [], []>} : vector<320x8xf32>, vector<8x16xf32>, vector<320x16xf32> -> vector<320x16xf32>
    %98 = arith.addf %94, %97 : vector<320x16xf32>
    %c312_i32_51 = arith.constant 312 : i32
    %99 = tpu.dynamic_rotate %92 by %c312_i32_51 dim 0 : vector<320x8xf32>, i32 -> vector<320x8xf32>
    %c96 = arith.constant 96 : index
    %c0_52 = arith.constant 0 : index
    %100 = vector.load %arg1[%c96, %c0_52] : memref<240x128xf32, #tpu.memory_space<vmem>>, vector<8x16xf32>
    %cst_53 = arith.constant dense<0.000000e+00> : vector<320x16xf32>
    %101 = tpu.matmul %99, %100, %cst_53 {dimension_numbers = #tpu.dot_dimension_numbers<[1], [0], [0], [1], [0, 0, 1, 1], [], []>} : vector<320x8xf32>, vector<8x16xf32>, vector<320x16xf32> -> vector<320x16xf32>
    %102 = arith.addf %98, %101 : vector<320x16xf32>
    %c2 = arith.constant 2 : index
    %c0_54 = arith.constant 0 : index
    %103 = vector.load %arg2[%c2, %c0_54] : memref<24x320xf32, #tpu.memory_space<vmem>>, vector<1x320xf32>
    %cst_55 = arith.constant dense<0.000000e+00> : vector<1x16xf32>
    %104 = tpu.matmul %103, %102, %cst_55 {dimension_numbers = #tpu.dot_dimension_numbers<[1], [0], [0], [1], [0, 0, 1, 1], [], []>} : vector<1x320xf32>, vector<320x16xf32>, vector<1x16xf32> -> vector<1x16xf32>
    %105 = arith.mulf %102, %102 : vector<320x16xf32>
    %cst_56 = arith.constant dense<0.000000e+00> : vector<1x16xf32>
    %106 = tpu.matmul %103, %105, %cst_56 {dimension_numbers = #tpu.dot_dimension_numbers<[1], [0], [0], [1], [0, 0, 1, 1], [], []>} : vector<1x320xf32>, vector<320x16xf32>, vector<1x16xf32> -> vector<1x16xf32>
    %cst_57 = arith.constant 0.0178571437 : f32
    %107 = vector.broadcast %cst_57 : f32 to vector<1x16xf32>
    %108 = arith.mulf %104, %107 : vector<1x16xf32>
    %cst_58 = arith.constant 0.0178571437 : f32
    %109 = vector.broadcast %cst_58 : f32 to vector<1x16xf32>
    %110 = arith.mulf %106, %109 : vector<1x16xf32>
    %111 = arith.mulf %108, %108 : vector<1x16xf32>
    %112 = arith.subf %110, %111 : vector<1x16xf32>
    %cst_59 = arith.constant 0.000000e+00 : f32
    %113 = vector.broadcast %cst_59 : f32 to vector<1x16xf32>
    %114 = arith.maximumf %112, %113 : vector<1x16xf32>
    %c154 = arith.constant 154 : index
    %c0_60 = arith.constant 0 : index
    %115 = vector.load %arg1[%c154, %c0_60] : memref<240x128xf32, #tpu.memory_space<vmem>>, vector<1x16xf32>
    %c158 = arith.constant 158 : index
    %c0_61 = arith.constant 0 : index
    %116 = vector.load %arg1[%c158, %c0_61] : memref<240x128xf32, #tpu.memory_space<vmem>>, vector<1x16xf32>
    %cst_62 = arith.constant 9.99999974E-6 : f32
    %117 = vector.broadcast %cst_62 : f32 to vector<1x16xf32>
    %118 = arith.addf %114, %117 : vector<1x16xf32>
    %119 = math.rsqrt %118 : vector<1x16xf32>
    %120 = arith.mulf %115, %119 : vector<1x16xf32>
    %121 = arith.mulf %108, %120 : vector<1x16xf32>
    %122 = arith.subf %116, %121 : vector<1x16xf32>
    %123 = vector.broadcast %120 : vector<1x16xf32> to vector<320x16xf32>
    %124 = arith.mulf %102, %123 : vector<320x16xf32>
    %125 = vector.broadcast %122 : vector<1x16xf32> to vector<320x16xf32>
    %126 = arith.addf %124, %125 : vector<320x16xf32>
    %c316_i32_63 = arith.constant 316 : i32
    %127 = tpu.dynamic_rotate %126 by %c316_i32_63 dim 0 : vector<320x16xf32>, i32 -> vector<320x16xf32>
    %128 = arith.maximumf %126, %127 : vector<320x16xf32>
    %cst_64 = arith.constant 0.000000e+00 : f32
    %129 = vector.broadcast %cst_64 : f32 to vector<320x16xf32>
    %130 = arith.maximumf %128, %129 : vector<320x16xf32>
    %c104 = arith.constant 104 : index
    %c0_65 = arith.constant 0 : index
    %131 = vector.load %arg1[%c104, %c0_65] : memref<240x128xf32, #tpu.memory_space<vmem>>, vector<16x16xf32>
    %cst_66 = arith.constant dense<0.000000e+00> : vector<320x16xf32>
    %132 = tpu.matmul %130, %131, %cst_66 {dimension_numbers = #tpu.dot_dimension_numbers<[1], [0], [0], [1], [0, 0, 1, 1], [], []>} : vector<320x16xf32>, vector<16x16xf32>, vector<320x16xf32> -> vector<320x16xf32>
    %c312_i32_67 = arith.constant 312 : i32
    %133 = tpu.dynamic_rotate %130 by %c312_i32_67 dim 0 : vector<320x16xf32>, i32 -> vector<320x16xf32>
    %c120 = arith.constant 120 : index
    %c0_68 = arith.constant 0 : index
    %134 = vector.load %arg1[%c120, %c0_68] : memref<240x128xf32, #tpu.memory_space<vmem>>, vector<16x16xf32>
    %cst_69 = arith.constant dense<0.000000e+00> : vector<320x16xf32>
    %135 = tpu.matmul %133, %134, %cst_69 {dimension_numbers = #tpu.dot_dimension_numbers<[1], [0], [0], [1], [0, 0, 1, 1], [], []>} : vector<320x16xf32>, vector<16x16xf32>, vector<320x16xf32> -> vector<320x16xf32>
    %136 = arith.addf %132, %135 : vector<320x16xf32>
    %c304_i32 = arith.constant 304 : i32
    %137 = tpu.dynamic_rotate %130 by %c304_i32 dim 0 : vector<320x16xf32>, i32 -> vector<320x16xf32>
    %c136 = arith.constant 136 : index
    %c0_70 = arith.constant 0 : index
    %138 = vector.load %arg1[%c136, %c0_70] : memref<240x128xf32, #tpu.memory_space<vmem>>, vector<16x16xf32>
    %cst_71 = arith.constant dense<0.000000e+00> : vector<320x16xf32>
    %139 = tpu.matmul %137, %138, %cst_71 {dimension_numbers = #tpu.dot_dimension_numbers<[1], [0], [0], [1], [0, 0, 1, 1], [], []>} : vector<320x16xf32>, vector<16x16xf32>, vector<320x16xf32> -> vector<320x16xf32>
    %140 = arith.addf %136, %139 : vector<320x16xf32>
    %c3 = arith.constant 3 : index
    %c0_72 = arith.constant 0 : index
    %141 = vector.load %arg2[%c3, %c0_72] : memref<24x320xf32, #tpu.memory_space<vmem>>, vector<1x320xf32>
    %cst_73 = arith.constant dense<0.000000e+00> : vector<1x16xf32>
    %142 = tpu.matmul %141, %140, %cst_73 {dimension_numbers = #tpu.dot_dimension_numbers<[1], [0], [0], [1], [0, 0, 1, 1], [], []>} : vector<1x320xf32>, vector<320x16xf32>, vector<1x16xf32> -> vector<1x16xf32>
    %143 = arith.mulf %140, %140 : vector<320x16xf32>
    %cst_74 = arith.constant dense<0.000000e+00> : vector<1x16xf32>
    %144 = tpu.matmul %141, %143, %cst_74 {dimension_numbers = #tpu.dot_dimension_numbers<[1], [0], [0], [1], [0, 0, 1, 1], [], []>} : vector<1x320xf32>, vector<320x16xf32>, vector<1x16xf32> -> vector<1x16xf32>
    %cst_75 = arith.constant 0.0416666679 : f32
    %145 = vector.broadcast %cst_75 : f32 to vector<1x16xf32>
    %146 = arith.mulf %142, %145 : vector<1x16xf32>
    %cst_76 = arith.constant 0.0416666679 : f32
    %147 = vector.broadcast %cst_76 : f32 to vector<1x16xf32>
    %148 = arith.mulf %144, %147 : vector<1x16xf32>
    %149 = arith.mulf %146, %146 : vector<1x16xf32>
    %150 = arith.subf %148, %149 : vector<1x16xf32>
    %cst_77 = arith.constant 0.000000e+00 : f32
    %151 = vector.broadcast %cst_77 : f32 to vector<1x16xf32>
    %152 = arith.maximumf %150, %151 : vector<1x16xf32>
    %c155 = arith.constant 155 : index
    %c0_78 = arith.constant 0 : index
    %153 = vector.load %arg1[%c155, %c0_78] : memref<240x128xf32, #tpu.memory_space<vmem>>, vector<1x16xf32>
    %c159 = arith.constant 159 : index
    %c0_79 = arith.constant 0 : index
    %154 = vector.load %arg1[%c159, %c0_79] : memref<240x128xf32, #tpu.memory_space<vmem>>, vector<1x16xf32>
    %cst_80 = arith.constant 9.99999974E-6 : f32
    %155 = vector.broadcast %cst_80 : f32 to vector<1x16xf32>
    %156 = arith.addf %152, %155 : vector<1x16xf32>
    %157 = math.rsqrt %156 : vector<1x16xf32>
    %158 = arith.mulf %153, %157 : vector<1x16xf32>
    %159 = arith.mulf %146, %158 : vector<1x16xf32>
    %160 = arith.subf %154, %159 : vector<1x16xf32>
    %161 = vector.broadcast %158 : vector<1x16xf32> to vector<320x16xf32>
    %162 = arith.mulf %140, %161 : vector<320x16xf32>
    %163 = vector.broadcast %160 : vector<1x16xf32> to vector<320x16xf32>
    %164 = arith.addf %162, %163 : vector<320x16xf32>
    %c312_i32_81 = arith.constant 312 : i32
    %165 = tpu.dynamic_rotate %164 by %c312_i32_81 dim 0 : vector<320x16xf32>, i32 -> vector<320x16xf32>
    %166 = arith.maximumf %164, %165 : vector<320x16xf32>
    %cst_82 = arith.constant 0.000000e+00 : f32
    %167 = vector.broadcast %cst_82 : f32 to vector<320x16xf32>
    %168 = arith.maximumf %166, %167 : vector<320x16xf32>
    %c8_83 = arith.constant 8 : index
    %c0_84 = arith.constant 0 : index
    %169 = vector.load %arg2[%c8_83, %c0_84] : memref<24x320xf32, #tpu.memory_space<vmem>>, vector<16x320xf32>
    %cst_85 = arith.constant dense<0.000000e+00> : vector<16x16xf32>
    %170 = tpu.matmul %169, %168, %cst_85 {dimension_numbers = #tpu.dot_dimension_numbers<[1], [0], [0], [1], [0, 0, 1, 1], [], []>} : vector<16x320xf32>, vector<320x16xf32>, vector<16x16xf32> -> vector<16x16xf32>
    %c160 = arith.constant 160 : index
    %c0_86 = arith.constant 0 : index
    %171 = vector.load %arg1[%c160, %c0_86] : memref<240x128xf32, #tpu.memory_space<vmem>>, vector<16x30xf32>
    %c176 = arith.constant 176 : index
    %c0_87 = arith.constant 0 : index
    %172 = vector.load %arg1[%c176, %c0_87] : memref<240x128xf32, #tpu.memory_space<vmem>>, vector<16x30xf32>
    %c192 = arith.constant 192 : index
    %c0_88 = arith.constant 0 : index
    %173 = vector.load %arg1[%c192, %c0_88] : memref<240x128xf32, #tpu.memory_space<vmem>>, vector<2x16xf32>
    %c200 = arith.constant 200 : index
    %c0_89 = arith.constant 0 : index
    %174 = vector.load %arg1[%c200, %c0_89] : memref<240x128xf32, #tpu.memory_space<vmem>>, vector<30x128xf32>
    %c232 = arith.constant 232 : index
    %c0_90 = arith.constant 0 : index
    %175 = vector.load %arg1[%c232, %c0_90] : memref<240x128xf32, #tpu.memory_space<vmem>>, vector<1x128xf32>
    %cst_91 = arith.constant dense<0.000000e+00> : vector<16x30xf32>
    %176 = tpu.matmul %170, %171, %cst_91 {dimension_numbers = #tpu.dot_dimension_numbers<[1], [0], [0], [1], [0, 0, 1, 1], [], []>} : vector<16x16xf32>, vector<16x30xf32>, vector<16x30xf32> -> vector<16x30xf32>
    %177 = arith.mulf %176, %172 : vector<16x30xf32>
    %cst_92 = arith.constant dense<0.000000e+00> : vector<2x30xf32>
    %178 = tpu.matmul %173, %177, %cst_92 {dimension_numbers = #tpu.dot_dimension_numbers<[1], [0], [0], [1], [0, 0, 1, 1], [], []>} : vector<2x16xf32>, vector<16x30xf32>, vector<2x30xf32> -> vector<2x30xf32>
    %cst_93 = arith.constant dense<0.000000e+00> : vector<2x128xf32>
    %179 = tpu.matmul %178, %174, %cst_93 {dimension_numbers = #tpu.dot_dimension_numbers<[1], [0], [0], [1], [0, 0, 1, 1], [], []>} : vector<2x30xf32>, vector<30x128xf32>, vector<2x128xf32> -> vector<2x128xf32>
    %180 = vector.broadcast %175 : vector<1x128xf32> to vector<2x128xf32>
    %181 = arith.addf %179, %180 : vector<2x128xf32>
    %c0_94 = arith.constant 0 : index
    %c0_95 = arith.constant 0 : index
    %182 = vector.load %arg3[%c0_94, %c0_95] : memref<2x128xf32, #tpu.memory_space<vmem>>, vector<2x128xf32>
    tpu.vector_store %arg3[%c0_94, %c0_95], %181 {strides = array<i32>} : memref<2x128xf32, #tpu.memory_space<vmem>>, vector<2x128xf32>,
    return
  }
}

</mosaic_0001>

<bundles_post_ra>
// kernel: net_forward.1
= control target key start
LH: loop header
LB: loop body
LE: loop exit
PB: predicated region body
PF: predicated region fallthrough
CT: control target
= control target key end

     0   :  { %vm261_vm0 = vcmask 1041408   ;;  %v96_v3 = vlaneseq  ;;  %vm140_vm1 = vcmask 15360   ;;  %s19321_s0 = inlined_call_operand.vmem [shape: f32[320,2], index: 0, kind: input, shape index: {}]   ;;  %s19322_s1 = inlined_call_operand.vmem [shape: f32[240,128], index: 1, kind: input, shape index: {}]   ;;  %s19323_s2 = inlined_call_operand.vmem [shape: f32[24,320], index: 2, kind: input, shape index: {}]   ;;  %s19324_s3 = inlined_call_operand.hbm [shape: f32[2,128], index: 3, kind: output, shape index: {}]  }
   0x1   :  { %v139_v0 = vld [vmem:[%s19322_s1 + $0x8] sm:$0x3]  ;;  %v13384_v1 = vld [vmem:[%s19321_s0] sm:$0xff]  ;;  %v13397_v6 = vld [vmem:[%s19321_s0 + $0x10] sm:$0xff] }
   0x2   :  { %v13389_v2 = vld [vmem:[%s19321_s0 + $0x8] sm:$0xff]  ;;  %11216 = vmatprep.subr.msk.mxu0 %vm261_vm0, %v139_v0  ;;  %v56_v4 = vrot.slane %v13384_v1, 1  ;;  %v13402_v7 = vld [vmem:[%s19321_s0 + $0x18] sm:$0xff]  ;;  %v13407_v8 = vld [vmem:[%s19321_s0 + $0x20] sm:$0xff]  ;;  %v13410_v9 = vshrl.u32 %v96_v3, 7  ;;  %v58_v10 = vrot.slane %v13397_v6, 1 }
   0x3   :  { %v57_v5 = vrot.slane %v13389_v2, 1  ;;  %11217 = vmatpush3.msk.msra.mxu0 %vm261_vm0, %v139_v0  ;;  %v59_v11 = vrot.slane %v13402_v7, 1  ;;  %v13417_v12 = vld [vmem:[%s19321_s0 + $0x28] sm:$0xff]  ;;  %v60_v13 = vrot.slane %v13407_v8, 1  ;;  %v13433_v18 = vld [vmem:[%s19321_s0 + $0x30] sm:$0xff]  ;;  %v13439_v19 = vld [vmem:[%s19321_s0 + $0x38] sm:$0xff] }
   0x4   :  { %19578 = vst [vmem:[#allocation5_spill] sm:$0xff] %v13410_v9  ;;  %vm98_vm2 = vcmp.lt.s32.totalorder %v13410_v9, 7  ;;  %v61_v17 = vrot.slane %v13417_v12, 1  ;;  %v62_v21 = vrot.slane %v13433_v18, 1  ;;  %v63_v23 = vrot.slane %v13439_v19, 1  ;;  %v13452_v24 = vld [vmem:[%s19321_s0 + $0x40] sm:$0xff] }
   0x5   :  { %v137_v14 = vsel %vm98_vm2, %v56_v4, %v57_v5  ;;  %v136_v15 = vsel %vm98_vm2, %v57_v5, %v58_v10  ;;  %v135_v16 = vsel %vm98_vm2, %v58_v10, %v59_v11  ;;  %v134_v20 = vsel %vm98_vm2, %v59_v11, %v60_v13  ;;  %v13457_v25 = vld [vmem:[%s19321_s0 + $0x48] sm:$0xff]  ;;  %v55_v26 = vld [vmem:[%s19322_s1] sm:$0x3]  ;;  %v13475_v31 = vld [vmem:[%s19321_s0 + $0x50] sm:$0xff] }
   0x6   :  { %11218 = vmatprep.mubr.msk.f32.mxu0 %vm140_vm1, %v137_v14  ;;  %v133_v22 = vsel %vm98_vm2, %v60_v13, %v61_v17  ;;  %11278 = vmatprep.subr.msk.mxu0 %vm261_vm0, %v55_v26  ;;  %v132_v27 = vsel %vm98_vm2, %v61_v17, %v62_v21  ;;  %v64_v28 = vrot.slane %v13452_v24, 1  ;;  %v131_v29 = vsel %vm98_vm2, %v62_v21, %v63_v23  ;;  %v13480_v32 = vld [vmem:[%s19321_s0 + $0x58] sm:$0xff]  ;;  %v13490_v35 = vld [vmem:[%s19322_s1 + $0x10] sm:$0x3]  ;;  %v13498_v38 = vld [vmem:[%s19321_s0 + $0x60] sm:$0xff] }
   0x7   :  { %11219 = vmatmul.mubr.msk.f32.vlgmr.msra.gmra.mrb[0].mxu0 %vm140_vm1, %v136_v15  ;;  %v65_v30 = vrot.slane %v13457_v25, 1  ;;  %v66_v34 = vrot.slane %v13475_v31, 1  ;;  %v67_v37 = vrot.slane %v13480_v32, 1 }
   0x8   :  { %11221 = vmatprep.mubr.msk.f32.mxu0 %vm140_vm1, %v135_v16  ;;  %11279 = vmatpush3.msk.msra.mxu0 %vm261_vm0, %v55_v26  ;;  %v130_v33 = vsel %vm98_vm2, %v63_v23, %v64_v28 }
   0x9   :  { %v129_v36 = vsel %vm98_vm2, %v64_v28, %v65_v30  ;;  %11340 = vmatprep.subr.msk.mxu0 %vm261_vm0, %v13490_v35 }
   0xb   :  { %11222 = vmatmul.mubr.msk.f32.gmra.mrb[2].mxu0 %vm140_vm1, %v134_v20 }
   0xc   :  { %11224 = vmatprep.mubr.msk.f32.mxu0 %vm140_vm1, %v133_v22 }
   0xf   :  { %11225 = vmatmul.mubr.msk.f32.gmra.mrb[4].mxu0 %vm140_vm1, %v132_v27 }
  0x10   :  { %11227 = vmatprep.mubr.msk.f32.mxu0 %vm140_vm1, %v131_v29 }
  0x11   :  { %8 = vsyncpa [#allocation3], 0  ;;  %v13505_v39 = vld [vmem:[%s19321_s0 + $0x68] sm:$0xff]  ;;  %v128_v40 = vsel %vm98_vm2, %v65_v30, %v66_v34  ;;  %v68_v41 = vrot.slane %v13498_v38, 1  ;;  %v127_v42 = vsel %vm98_vm2, %v66_v34, %v67_v37  ;;  %v13518_v44 = vld [vmem:[%s19321_s0 + $0x70] sm:$0xff]  ;;  %vm958_vm3 = vcmp.lt.s32.totalorder %v13410_v9, 6 }
  0x12   :  { %v69_v43 = vrot.slane %v13505_v39, 1  ;;  %v13523_v45 = vld [vmem:[%s19321_s0 + $0x78] sm:$0xff]  ;;  %v70_v47 = vrot.slane %v13518_v44, 1  ;;  %v13536_v50 = vld [vmem:[%s19321_s0 + $0x80] sm:$0xff]  ;;  %v13541_v51 = vld [vmem:[%s19321_s0 + $0x88] sm:$0xff]  ;;  %vm1468_vm4 = vcmp.lt.s32.totalorder %v13410_v9, 5 }
  0x13   :  { %11228 = vmatmul.mubr.msk.f32.gmra.mrb[6].mxu0 %vm140_vm1, %v130_v33  ;;  %v126_v46 = vsel %vm98_vm2, %v67_v37, %v68_v41  ;;  %v71_v49 = vrot.slane %v13523_v45, 1  ;;  %v72_v53 = vrot.slane %v13536_v50, 1  ;;  %v73_v55 = vrot.slane %v13541_v51, 1  ;;  %v13554_v56 = vld [vmem:[%s19321_s0 + $0x90] sm:$0xff]  ;;  %v13559_v57 = vld [vmem:[%s19321_s0 + $0x98] sm:$0xff]  ;;  %v13572_v62 = vld [vmem:[%s19321_s0 + $0xa0] sm:$0xff] }
  0x14   :  { %11230 = vmatprep.mubr.msk.f32.mxu0 %vm140_vm1, %v129_v36  ;;  %v125_v48 = vsel %vm98_vm2, %v68_v41, %v69_v43  ;;  %v124_v52 = vsel %vm98_vm2, %v69_v43, %v70_v47  ;;  %v74_v59 = vrot.slane %v13554_v56, 1  ;;  %v75_v61 = vrot.slane %v13559_v57, 1  ;;  %v13577_v63 = vld [vmem:[%s19321_s0 + $0xa8] sm:$0xff]  ;;  %v13590_v11 = vld [vmem:[%s19321_s0 + $0xb0] sm:$0xff]  ;;  %v13595_v13 = vld [vmem:[%s19321_s0 + $0xb8] sm:$0xff]  ;;  %s13357_s19 = smov [#allocation2]  }
  0x15   :  { %v123_v54 = vsel %vm98_vm2, %v70_v47, %v71_v49  ;;  %v122_v58 = vsel %vm98_vm2, %v71_v49, %v72_v53  ;;  %v121_v60 = vsel %vm98_vm2, %v72_v53, %v73_v55  ;;  %v76_v3 = vrot.slane %v13572_v62, 1  ;;  %v13608_v20 = vld [vmem:[%s19321_s0 + $0xc0] sm:$0xff]  ;;  %v13613_v21 = vld [vmem:[%s19321_s0 + $0xc8] sm:$0xff]  ;;  %v13626_v28 = vld [vmem:[%s19321_s0 + $0xd0] sm:$0xff]  ;;  %s9473_s20 = sshll.u32 %s13357_s19, 4  ;;  %s9474_s20 = int_to_ptr.vmem [resolvable:$true] %s9473_s20 }
  0x16   :  { %v120_v0 = vsel %vm98_vm2, %v73_v55, %v74_v59  ;;  %v119_v5 = vsel %vm98_vm2, %v74_v59, %v75_v61  ;;  %v77_v10 = vrot.slane %v13577_v63, 1  ;;  %v78_v15 = vrot.slane %v13590_v11, 1  ;;  %v13631_v29 = vld [vmem:[%s19321_s0 + $0xd8] sm:$0xff]  ;;  %v13644_v37 = vld [vmem:[%s19321_s0 + $0xe0] sm:$0xff]  ;;  %v13662_v47 = vld [vmem:[%s19321_s0 + $0xf0] sm:$0xff]  ;;  %s13329_s21 = scalar_lea.vmem %s9474_s20, 32  ;;  %p13334_p1 = scmp.lt.s32.totalorder %s9474_s20, %s9474_s20 }
  0x17   :  { %11231 = vmatmul.mubr.msk.f32.gmra.mrb[8].mxu0 %vm140_vm1, %v128_v40  ;;  %v118_v14 = vsel %vm98_vm2, %v75_v61, %v76_v3  ;;  %v79_v17 = vrot.slane %v13595_v13, 1  ;;  %v80_v23 = vrot.slane %v13608_v20, 1  ;;  %v81_v27 = vrot.slane %v13613_v21, 1  ;;  %v13649_v40 = vld [vmem:[%s19321_s0 + $0xe8] sm:$0xff]  ;;  %v13680_v55 = vld [vmem:[%s19321_s0 + $0x100] sm:$0xff]  ;;  %p13330_p0 = scmp.ne.s32.totalorder %s9474_s20, %s13329_s21  ;;  %p13335_p2 = scmp.lt.s32.totalorder %s13329_s21, %s13329_s21 }
  0x18   :  { %11233 = vmatprep.mubr.msk.f32.mxu0 %vm140_vm1, %v127_v42  ;;  %v117_v16 = vsel %vm98_vm2, %v76_v3, %v77_v10  ;;  %v116_v22 = vsel %vm98_vm2, %v77_v10, %v78_v15  ;;  %v82_v33 = vrot.slane %v13626_v28, 1  ;;  %v83_v36 = vrot.slane %v13631_v29, 1  ;;  %v13698_v3 = vld [vmem:[%s19321_s0 + $0x110] sm:$0xff] }
  0x19   :  { %v115_v26 = vsel %vm98_vm2, %v78_v15, %v79_v17  ;;  %v114_v30 = vsel %vm98_vm2, %v79_v17, %v80_v23  ;;  %v113_v34 = vsel %vm98_vm2, %v80_v23, %v81_v27  ;;  %v84_v42 = vrot.slane %v13644_v37, 1  ;;  %v13716_v17 = vld [vmem:[%s19321_s0 + $0x120] sm:$0xff]  ;;  %p13336_p3 = por %p13335_p2, %p13334_p1 }
  0x1a   :  { %v112_v41 = vsel %vm98_vm2, %v81_v27, %v82_v33  ;;  %v111_v43 = vsel %vm98_vm2, %v82_v33, %v83_v36  ;;  %v13734_v33 = vld [vmem:[%s19321_s0 + $0x130] sm:$0xff]  ;;  %vm1978_vm5 = vcmp.lt.s32.totalorder %v13410_v9, 4  ;;  %vm13354_vm6 = vmmov 0  }
  0x1b   :  { %11234 = vmatmul.mubr.msk.f32.gmra.mrb[10].mxu0 %vm140_vm1, %v126_v46  ;;  %v85_v46 = vrot.slane %v13649_v40, 1  ;;  %v110_v49 = vsel %vm98_vm2, %v83_v36, %v84_v42  ;;  %vm2464_vm7 = vcmask 523264   ;;  %vm3129_vm8 = vcmask 64512   ;;  %p13337_p4 = pnand %p13336_p3, %p13330_p0 }
  0x1c   :  { %11236 = vmatprep.mubr.msk.f32.mxu0 %vm140_vm1, %v125_v48  ;;  %v13667_v48 = vld [vmem:[%s19321_s0 + $0xf8] sm:$0xff]  ;;  %vm7579_vm10 = vcmask 130048   ;;  %vm9392_vm11 = vcmask 1045504   ;;  %vm13356_vm12 = vmmov 1   ;;  %vm9388_vm14 = vcmask 244736  }
  0x1d   :  { %v109_v53 = vsel %vm98_vm2, %v84_v42, %v85_v46  ;;  %vm12834_vm13 = vmpackc.low %vm9392_vm11, %vm13356_vm12 }
  0x1f   :  { %11237 = vmatmul.mubr.msk.f32.gmra.mrb[12].mxu0 %vm140_vm1, %v124_v52  ;;  %v86_v52 = vrot.slane %v13662_v47, 1 }
  0x20   :  { %11239 = vmatprep.mubr.msk.f32.mxu0 %vm140_vm1, %v123_v54  ;;  %v87_v54 = vrot.slane %v13667_v48, 1 }
  0x21   :  { %v108_v59 = vsel %vm98_vm2, %v85_v46, %v86_v52 }
  0x22   :  { %v107_v61 = vsel %vm98_vm2, %v86_v52, %v87_v54 }
  0x23   :  { %11240 = vmatmul.mubr.msk.f32.gmra.mrb[14].mxu0 %vm140_vm1, %v122_v58  ;;  %v13685_v58 = vld [vmem:[%s19321_s0 + $0x108] sm:$0xff] }
  0x24   :  { %11242 = vmatprep.mubr.msk.f32.mxu0 %vm140_vm1, %v121_v60  ;;  %v88_v60 = vrot.slane %v13680_v55, 1 }
  0x26   :  { %v106_v10 = vsel %vm98_vm2, %v87_v54, %v88_v60  ;;  %v920_v54 = vrot.slane %v13397_v6, 2 }
  0x27   :  { %11243 = vmatmul.mubr.msk.f32.gmra.mrb[16].mxu0 %vm140_vm1, %v120_v0  ;;  %v89_v0 = vrot.slane %v13685_v58, 1 }
  0x28   :  { %11245 = vmatprep.mubr.msk.f32.mxu0 %vm140_vm1, %v119_v5  ;;  %v13703_v5 = vld [vmem:[%s19321_s0 + $0x118] sm:$0xff] }
  0x29   :  { %v105_v15 = vsel %vm98_vm2, %v88_v60, %v89_v0  ;;  %v921_v60 = vrot.slane %v13402_v7, 2 }
  0x2b   :  { %11246 = vmatmul.mubr.msk.f32.gmra.mrb[18].mxu0 %vm140_vm1, %v118_v14  ;;  %v90_v14 = vrot.slane %v13698_v3, 1 }
  0x2c   :  { %11248 = vmatprep.mubr.msk.f32.mxu0 %vm140_vm1, %v117_v16  ;;  %v91_v16 = vrot.slane %v13703_v5, 1 }
  0x2d   :  { %v104_v23 = vsel %vm98_vm2, %v89_v0, %v90_v14  ;;  %v922_v0 = vrot.slane %v13407_v8, 2 }
  0x2e   :  { %v103_v27 = vsel %vm98_vm2, %v90_v14, %v91_v16  ;;  %v923_v14 = vrot.slane %v13417_v12, 2 }
  0x2f   :  { %11249 = vmatmul.mubr.msk.f32.gmra.mrb[20].mxu0 %vm140_vm1, %v116_v22  ;;  %v13721_v22 = vld [vmem:[%s19321_s0 + $0x128] sm:$0xff] }
  0x30   :  { %11251 = vmatprep.mubr.msk.f32.mxu0 %vm140_vm1, %v115_v26  ;;  %v92_v26 = vrot.slane %v13716_v17, 1 }
  0x32   :  { %v102_v36 = vsel %vm98_vm2, %v91_v16, %v92_v26  ;;  %v994_v16 = vsel %vm958_vm3, %v921_v60, %v922_v0 }
  0x33   :  { %11252 = vmatmul.mubr.msk.f32.gmra.mrb[22].mxu0 %vm140_vm1, %v114_v30  ;;  %v93_v30 = vrot.slane %v13721_v22, 1 }
  0x34   :  { %11254 = vmatprep.mubr.msk.f32.mxu0 %vm140_vm1, %v113_v34  ;;  %v13739_v34 = vld [vmem:[%s19321_s0 + $0x138] sm:$0xff] }
  0x35   :  { %v101_v42 = vsel %vm98_vm2, %v92_v26, %v93_v30  ;;  %v993_v26 = vsel %vm958_vm3, %v922_v0, %v923_v14 }
  0x37   :  { %11255 = vmatmul.mubr.msk.f32.gmra.mrb[24].mxu0 %vm140_vm1, %v112_v41  ;;  %v94_v41 = vrot.slane %v13734_v33, 1 }
  0x38   :  { %11257 = vmatprep.mubr.msk.f32.mxu0 %vm140_vm1, %v111_v43  ;;  %v95_v43 = vrot.slane %v13739_v34, 1 }
  0x39   :  { %v100_v46 = vsel %vm98_vm2, %v93_v30, %v94_v41 }
  0x3a   :  { %v138_v52 = vsel %vm98_vm2, %v95_v43, %v56_v4  ;;  %v918_v4 = vrot.slane %v13384_v1, 2 }
  0x3b   :  { %11258 = vmatmul.mubr.msk.f32.gmra.mrb[26].mxu0 %vm140_vm1, %v110_v49  ;;  %v99_v49 = vsel %vm98_vm2, %v94_v41, %v95_v43 }
  0x3c   :  { %11260 = vmatprep.mubr.msk.f32.mxu0 %vm140_vm1, %v109_v53  ;;  %v1509_v53 = vld [vmem:[%s19322_s1 + $0x18] sm:$0x3] }
  0x3f   :  { %11261 = vmatmul.mubr.msk.f32.gmra.mrb[28].mxu0 %vm140_vm1, %v108_v59 }
  0x40   :  { %11263 = vmatprep.mubr.msk.f32.mxu0 %vm140_vm1, %v107_v61 }
  0x43   :  { %11264 = vmatmul.mubr.msk.f32.gmra.mrb[30].mxu0 %vm140_vm1, %v106_v10  ;;  %v995_v10 = vsel %vm958_vm3, %v920_v54, %v921_v60 }
  0x44   :  { %11266 = vmatprep.mubr.msk.f32.mxu0 %vm140_vm1, %v105_v15  ;;  %v13867_v15 = vld [vmem:[%s19322_s1 + $0x20] sm:$0x3] }
  0x47   :  { %11267 = vmatmul.mubr.msk.f32.gmra.mrb[32].mxu0 %vm140_vm1, %v104_v23  ;;  %v924_v23 = vrot.slane %v13433_v18, 2 }
  0x48   :  { %11269 = vmatprep.mubr.msk.f32.mxu0 %vm140_vm1, %v103_v27  ;;  %v925_v27 = vrot.slane %v13439_v19, 2 }
  0x49   :  { %v992_v30 = vsel %vm958_vm3, %v923_v14, %v924_v23 }
  0x4a   :  { %v991_v41 = vsel %vm958_vm3, %v924_v23, %v925_v27 }
  0x4b   :  { %11270 = vmatmul.mubr.msk.f32.gmra.mrb[34].mxu0 %vm140_vm1, %v102_v36  ;;  %v926_v36 = vrot.slane %v13452_v24, 2 }
  0x4c   :  { %11272 = vmatprep.mubr.msk.f32.mxu0 %vm140_vm1, %v101_v42  ;;  %v927_v42 = vrot.slane %v13457_v25, 2 }
  0x4d   :  { %v990_v43 = vsel %vm958_vm3, %v925_v27, %v926_v36 }
  0x4f   :  { %11273 = vmatmul.mubr.msk.f32.gmra.mrb[36].mxu0 %vm140_vm1, %v100_v46  ;;  %v928_v46 = vrot.slane %v13475_v31, 2 }
  0x50   :  { %11275 = vmatprep.mubr.msk.f32.mxu0 %vm140_vm1, %v99_v49  ;;  %v989_v49 = vsel %vm958_vm3, %v926_v36, %v927_v42 }
  0x53   :  { %11276 = vmatmul.mubr.msk.f32.gmra.mrb[38].mxu0 %vm140_vm1, %v138_v52  ;;  %v929_v52 = vrot.slane %v13480_v32, 2 }
  0x54   :  { %11280 = vmatprep.mubr.msk.f32.mxu0 %vm140_vm1, %v13384_v1 }
  0x57   :  { %11281 = vmatmul.mubr.msk.f32.vlgmr.msra.gmra.mrb[0].mxu0 %vm140_vm1, %v13389_v2 }
  0x58   :  { %11283 = vmatprep.mubr.msk.f32.mxu0 %vm140_vm1, %v13397_v6  ;;  %11341 = vmatpush3.msk.msra.mxu0 %vm261_vm0, %v13490_v35  ;;  %v919_v35 = vrot.slane %v13389_v2, 2 }
  0x59   :  { %11402 = vmatprep.subr.msk.mxu0 %vm261_vm0, %v1509_v53 }
  0x5a   :  { %v997_v59 = vsel %vm958_vm3, %v918_v4, %v919_v35  ;;  %v996_v61 = vsel %vm958_vm3, %v919_v35, %v920_v54  ;;  %v930_v35 = vrot.slane %v13498_v38, 2  ;;  %v987_v54 = vsel %vm958_vm3, %v928_v46, %v929_v52 }
  0x5b   :  { %11284 = vmatmul.mubr.msk.f32.gmra.mrb[2].mxu0 %vm140_vm1, %v13402_v7 }
  0x5c   :  { %11286 = vmatprep.mubr.msk.f32.mxu0 %vm140_vm1, %v13407_v8  ;;  %v986_v60 = vsel %vm958_vm3, %v929_v52, %v930_v35 }
  0x5f   :  { %11287 = vmatmul.mubr.msk.f32.gmra.mrb[4].mxu0 %vm140_vm1, %v13417_v12 }
  0x60   :  { %11289 = vmatprep.mubr.msk.f32.mxu0 %vm140_vm1, %v13433_v18 }
  0x63   :  { %11290 = vmatmul.mubr.msk.f32.gmra.mrb[6].mxu0 %vm140_vm1, %v13439_v19 }
  0x64   :  { %11292 = vmatprep.mubr.msk.f32.mxu0 %vm140_vm1, %v13452_v24 }
  0x67   :  { %11293 = vmatmul.mubr.msk.f32.gmra.mrb[8].mxu0 %vm140_vm1, %v13457_v25 }
  0x68   :  { %11295 = vmatprep.mubr.msk.f32.mxu0 %vm140_vm1, %v13475_v31 }
  0x6b   :  { %11296 = vmatmul.mubr.msk.f32.gmra.mrb[10].mxu0 %vm140_vm1, %v13480_v32 }
  0x6c   :  { %11298 = vmatprep.mubr.msk.f32.mxu0 %vm140_vm1, %v13498_v38 }
  0x6f   :  { %11299 = vmatmul.mubr.msk.f32.gmra.mrb[12].mxu0 %vm140_vm1, %v13505_v39 }
  0x70   :  { %11301 = vmatprep.mubr.msk.f32.mxu0 %vm140_vm1, %v13518_v44 }
  0x73   :  { %11302 = vmatmul.mubr.msk.f32.gmra.mrb[14].mxu0 %vm140_vm1, %v13523_v45 }
  0x74   :  { %11304 = vmatprep.mubr.msk.f32.mxu0 %vm140_vm1, %v13536_v50 }
  0x77   :  { %11305 = vmatmul.mubr.msk.f32.gmra.mrb[16].mxu0 %vm140_vm1, %v13541_v51 }
  0x78   :  { %11307 = vmatprep.mubr.msk.f32.mxu0 %vm140_vm1, %v13554_v56 }
  0x7b   :  { %11308 = vmatmul.mubr.msk.f32.gmra.mrb[18].mxu0 %vm140_vm1, %v13559_v57 }
  0x7c   :  { %11310 = vmatprep.mubr.msk.f32.mxu0 %vm140_vm1, %v13572_v62 }
  0x7f   :  { %11311 = vmatmul.mubr.msk.f32.gmra.mrb[20].mxu0 %vm140_vm1, %v13577_v63 }
  0x80   :  { %11313 = vmatprep.mubr.msk.f32.mxu0 %vm140_vm1, %v13590_v11 }
  0x83   :  { %11314 = vmatmul.mubr.msk.f32.gmra.mrb[22].mxu0 %vm140_vm1, %v13595_v13 }
  0x84   :  { %11316 = vmatprep.mubr.msk.f32.mxu0 %vm140_vm1, %v13608_v20 }
  0x87   :  { %11317 = vmatmul.mubr.msk.f32.gmra.mrb[24].mxu0 %vm140_vm1, %v13613_v21 }
  0x88   :  { %11319 = vmatprep.mubr.msk.f32.mxu0 %vm140_vm1, %v13626_v28 }
  0x8b   :  { %11320 = vmatmul.mubr.msk.f32.gmra.mrb[26].mxu0 %vm140_vm1, %v13631_v29 }
  0x8c   :  { %11322 = vmatprep.mubr.msk.f32.mxu0 %vm140_vm1, %v13644_v37 }
  0x8f   :  { %11323 = vmatmul.mubr.msk.f32.gmra.mrb[28].mxu0 %vm140_vm1, %v13649_v40 }
  0x90   :  { %11325 = vmatprep.mubr.msk.f32.mxu0 %vm140_vm1, %v13662_v47 }
  0x93   :  { %11326 = vmatmul.mubr.msk.f32.gmra.mrb[30].mxu0 %vm140_vm1, %v13667_v48 }
  0x94   :  { %11328 = vmatprep.mubr.msk.f32.mxu0 %vm140_vm1, %v13680_v55 }
  0x97   :  { %11329 = vmatmul.mubr.msk.f32.gmra.mrb[32].mxu0 %vm140_vm1, %v13685_v58 }
  0x98   :  { %11331 = vmatprep.mubr.msk.f32.mxu0 %vm140_vm1, %v13698_v3 }
  0x9b   :  { %11332 = vmatmul.mubr.msk.f32.gmra.mrb[34].mxu0 %vm140_vm1, %v13703_v5 }
  0x9c   :  { %11334 = vmatprep.mubr.msk.f32.mxu0 %vm140_vm1, %v13716_v17 }
  0x9f   :  { %11335 = vmatmul.mubr.msk.f32.gmra.mrb[36].mxu0 %vm140_vm1, %v13721_v22 }
  0xa0   :  { %11337 = vmatprep.mubr.msk.f32.mxu0 %vm140_vm1, %v13734_v33 }
  0xa3   :  { %11338 = vmatmul.mubr.msk.f32.gmra.mrb[38].mxu0 %vm140_vm1, %v13739_v34 }
  0xa4   :  { %11342 = vmatprep.mubr.msk.f32.mxu0 %vm140_vm1, %v997_v59  ;;  %v931_v59 = vrot.slane %v13505_v39, 2 }
  0xa6   :  { %v985_v0 = vsel %vm958_vm3, %v930_v35, %v931_v59 }
  0xa7   :  { %11343 = vmatmul.mubr.msk.f32.vlgmr.msra.gmra.mrb[0].mxu0 %vm140_vm1, %v996_v61  ;;  %v932_v61 = vrot.slane %v13518_v44, 2 }
  0xa8   :  { %11345 = vmatprep.mubr.msk.f32.mxu0 %vm140_vm1, %v995_v10  ;;  %11403 = vmatpush3.msk.msra.mxu0 %vm261_vm0, %v1509_v53  ;;  %v988_v53 = vsel %vm958_vm3, %v927_v42, %v928_v46  ;;  %v933_v10 = vrot.slane %v13523_v45, 2 }
  0xa9   :  { %11464 = vmatprep.subr.msk.mxu0 %vm261_vm0, %v13867_v15  ;;  %v984_v14 = vsel %vm958_vm3, %v931_v59, %v932_v61 }
  0xaa   :  { %v983_v23 = vsel %vm958_vm3, %v932_v61, %v933_v10 }
  0xab   :  { %11346 = vmatmul.mubr.msk.f32.gmra.mrb[2].mxu0 %vm140_vm1, %v994_v16  ;;  %v934_v16 = vrot.slane %v13536_v50, 2 }
  0xac   :  { %11348 = vmatprep.mubr.msk.f32.mxu0 %vm140_vm1, %v993_v26  ;;  %v935_v26 = vrot.slane %v13541_v51, 2 }
  0xad   :  { %v982_v27 = vsel %vm958_vm3, %v933_v10, %v934_v16 }
  0xae   :  { %v981_v36 = vsel %vm958_vm3, %v934_v16, %v935_v26 }
  0xaf   :  { %11349 = vmatmul.mubr.msk.f32.gmra.mrb[4].mxu0 %vm140_vm1, %v992_v30  ;;  %v936_v30 = vrot.slane %v13554_v56, 2 }
  0xb0   :  { %11351 = vmatprep.mubr.msk.f32.mxu0 %vm140_vm1, %v991_v41  ;;  %v937_v41 = vrot.slane %v13559_v57, 2 }
  0xb1   :  { %v980_v42 = vsel %vm958_vm3, %v935_v26, %v936_v30 }
  0xb2   :  { %v979_v46 = vsel %vm958_vm3, %v936_v30, %v937_v41 }
  0xb3   :  { %11352 = vmatmul.mubr.msk.f32.gmra.mrb[6].mxu0 %vm140_vm1, %v990_v43  ;;  %v938_v43 = vrot.slane %v13572_v62, 2 }
  0xb4   :  { %11354 = vmatprep.mubr.msk.f32.mxu0 %vm140_vm1, %v989_v49  ;;  %v939_v49 = vrot.slane %v13577_v63, 2 }
  0xb5   :  { %v978_v52 = vsel %vm958_vm3, %v937_v41, %v938_v43 }
  0xb6   :  { %v977_v35 = vsel %vm958_vm3, %v938_v43, %v939_v49 }
  0xb7   :  { %11355 = vmatmul.mubr.msk.f32.gmra.mrb[8].mxu0 %vm140_vm1, %v988_v53  ;;  %v940_v53 = vrot.slane %v13590_v11, 2 }
  0xb8   :  { %11357 = vmatprep.mubr.msk.f32.mxu0 %vm140_vm1, %v987_v54  ;;  %v941_v54 = vrot.slane %v13595_v13, 2 }
  0xb9   :  { %v976_v59 = vsel %vm958_vm3, %v939_v49, %v940_v53 }
  0xba   :  { %v975_v61 = vsel %vm958_vm3, %v940_v53, %v941_v54 }
  0xbb   :  { %11358 = vmatmul.mubr.msk.f32.gmra.mrb[10].mxu0 %vm140_vm1, %v986_v60  ;;  %v942_v60 = vrot.slane %v13608_v20, 2 }
  0xbc   :  { %11360 = vmatprep.mubr.msk.f32.mxu0 %vm140_vm1, %v985_v0  ;;  %v943_v0 = vrot.slane %v13613_v21, 2 }
  0xbd   :  { %v974_v10 = vsel %vm958_vm3, %v941_v54, %v942_v60 }
  0xbe   :  { %v973_v16 = vsel %vm958_vm3, %v942_v60, %v943_v0 }
  0xbf   :  { %11361 = vmatmul.mubr.msk.f32.gmra.mrb[12].mxu0 %vm140_vm1, %v984_v14  ;;  %v944_v14 = vrot.slane %v13626_v28, 2 }
  0xc0   :  { %11363 = vmatprep.mubr.msk.f32.mxu0 %vm140_vm1, %v983_v23  ;;  %v945_v23 = vrot.slane %v13631_v29, 2 }
  0xc1   :  { %v972_v26 = vsel %vm958_vm3, %v943_v0, %v944_v14 }
  0xc2   :  { %v971_v30 = vsel %vm958_vm3, %v944_v14, %v945_v23 }
  0xc3   :  { %11364 = vmatmul.mubr.msk.f32.gmra.mrb[14].mxu0 %vm140_vm1, %v982_v27  ;;  %v946_v27 = vrot.slane %v13644_v37, 2 }
  0xc4   :  { %11366 = vmatprep.mubr.msk.f32.mxu0 %vm140_vm1, %v981_v36  ;;  %v947_v36 = vrot.slane %v13649_v40, 2 }
  0xc5   :  { %v970_v41 = vsel %vm958_vm3, %v945_v23, %v946_v27 }
  0xc6   :  { %v969_v43 = vsel %vm958_vm3, %v946_v27, %v947_v36 }
  0xc7   :  { %11367 = vmatmul.mubr.msk.f32.gmra.mrb[16].mxu0 %vm140_vm1, %v980_v42  ;;  %v948_v42 = vrot.slane %v13662_v47, 2 }
  0xc8   :  { %11369 = vmatprep.mubr.msk.f32.mxu0 %vm140_vm1, %v979_v46  ;;  %v949_v46 = vrot.slane %v13667_v48, 2 }
  0xc9   :  { %v968_v49 = vsel %vm958_vm3, %v947_v36, %v948_v42 }
  0xca   :  { %v967_v53 = vsel %vm958_vm3, %v948_v42, %v949_v46  ;;  %v1428_v42 = vrot.slane %v13384_v1, 3 }
  0xcb   :  { %11370 = vmatmul.mubr.msk.f32.gmra.mrb[18].mxu0 %vm140_vm1, %v978_v52  ;;  %v950_v52 = vrot.slane %v13680_v55, 2 }
  0xcc   :  { %11372 = vmatprep.mubr.msk.f32.mxu0 %vm140_vm1, %v977_v35  ;;  %v951_v35 = vrot.slane %v13685_v58, 2 }
  0xcd   :  { %v966_v54 = vsel %vm958_vm3, %v949_v46, %v950_v52 }
  0xce   :  { %v965_v60 = vsel %vm958_vm3, %v950_v52, %v951_v35 }
  0xcf   :  { %11373 = vmatmul.mubr.msk.f32.gmra.mrb[20].mxu0 %vm140_vm1, %v976_v59  ;;  %v952_v59 = vrot.slane %v13698_v3, 2 }
  0xd0   :  { %11375 = vmatprep.mubr.msk.f32.mxu0 %vm140_vm1, %v975_v61  ;;  %v953_v61 = vrot.slane %v13703_v5, 2 }
  0xd1   :  { %v964_v0 = vsel %vm958_vm3, %v951_v35, %v952_v59 }
  0xd2   :  { %v963_v14 = vsel %vm958_vm3, %v952_v59, %v953_v61  ;;  %v1433_v59 = vrot.slane %v13417_v12, 3 }
  0xd3   :  { %11376 = vmatmul.mubr.msk.f32.gmra.mrb[22].mxu0 %vm140_vm1, %v974_v10  ;;  %v954_v10 = vrot.slane %v13716_v17, 2 }
  0xd4   :  { %11378 = vmatprep.mubr.msk.f32.mxu0 %vm140_vm1, %v973_v16  ;;  %v955_v16 = vrot.slane %v13721_v22, 2 }
  0xd5   :  { %v962_v23 = vsel %vm958_vm3, %v953_v61, %v954_v10  ;;  %v1434_v61 = vrot.slane %v13433_v18, 3 }
  0xd6   :  { %v961_v27 = vsel %vm958_vm3, %v954_v10, %v955_v16  ;;  %v1435_v10 = vrot.slane %v13439_v19, 3 }
  0xd7   :  { %11379 = vmatmul.mubr.msk.f32.gmra.mrb[24].mxu0 %vm140_vm1, %v972_v26  ;;  %v956_v26 = vrot.slane %v13734_v33, 2 }
  0xd8   :  { %11381 = vmatprep.mubr.msk.f32.mxu0 %vm140_vm1, %v971_v30  ;;  %v957_v30 = vrot.slane %v13739_v34, 2 }
  0xd9   :  { %v960_v36 = vsel %vm958_vm3, %v955_v16, %v956_v26  ;;  %v1436_v16 = vrot.slane %v13452_v24, 3 }
  0xda   :  { %v998_v46 = vsel %vm958_vm3, %v957_v30, %v918_v4 }
  0xdb   :  { %11382 = vmatmul.mubr.msk.f32.gmra.mrb[26].mxu0 %vm140_vm1, %v970_v41  ;;  %v959_v41 = vsel %vm958_vm3, %v956_v26, %v957_v30  ;;  %v1437_v26 = vrot.slane %v13457_v25, 3 }
  0xdc   :  { %11384 = vmatprep.mubr.msk.f32.mxu0 %vm140_vm1, %v969_v43  ;;  %v1429_v43 = vrot.slane %v13389_v2, 3 }
  0xdd   :  { %v1499_v30 = vsel %vm1468_vm4, %v1436_v16, %v1437_v26 }
  0xde   :  { %v1507_v52 = vsel %vm1468_vm4, %v1428_v42, %v1429_v43 }
  0xdf   :  { %11385 = vmatmul.mubr.msk.f32.gmra.mrb[28].mxu0 %vm140_vm1, %v968_v49  ;;  %v1430_v49 = vrot.slane %v13397_v6, 3 }
  0xe0   :  { %11387 = vmatprep.mubr.msk.f32.mxu0 %vm140_vm1, %v967_v53  ;;  %v1431_v53 = vrot.slane %v13402_v7, 3 }
  0xe1   :  { %v1506_v35 = vsel %vm1468_vm4, %v1429_v43, %v1430_v49  ;;  %v1440_v43 = vrot.slane %v13498_v38, 3 }
  0xe2   :  { %v1505_v4 = vsel %vm1468_vm4, %v1430_v49, %v1431_v53  ;;  %v1441_v49 = vrot.slane %v13505_v39, 3 }
  0xe3   :  { %11388 = vmatmul.mubr.msk.f32.gmra.mrb[30].mxu0 %vm140_vm1, %v966_v54  ;;  %v1432_v54 = vrot.slane %v13407_v8, 3 }
  0xe4   :  { %11390 = vmatprep.mubr.msk.f32.mxu0 %vm140_vm1, %v965_v60 }
  0xe5   :  { %v1504_v60 = vsel %vm1468_vm4, %v1431_v53, %v1432_v54  ;;  %v1442_v53 = vrot.slane %v13518_v44, 3 }
  0xe7   :  { %11391 = vmatmul.mubr.msk.f32.gmra.mrb[32].mxu0 %vm140_vm1, %v964_v0  ;;  %v1503_v0 = vsel %vm1468_vm4, %v1432_v54, %v1433_v59  ;;  %v1443_v54 = vrot.slane %v13523_v45, 3 }
  0xe8   :  { %11393 = vmatprep.mubr.msk.f32.mxu0 %vm140_vm1, %v963_v14  ;;  %v1502_v14 = vsel %vm1468_vm4, %v1433_v59, %v1434_v61  ;;  %v1444_v59 = vrot.slane %v13536_v50, 3 }
  0xeb   :  { %11394 = vmatmul.mubr.msk.f32.gmra.mrb[34].mxu0 %vm140_vm1, %v962_v23  ;;  %v1501_v23 = vsel %vm1468_vm4, %v1434_v61, %v1435_v10  ;;  %v1445_v61 = vrot.slane %v13541_v51, 3 }
  0xec   :  { %11396 = vmatprep.mubr.msk.f32.mxu0 %vm140_vm1, %v961_v27  ;;  %v1438_v27 = vrot.slane %v13475_v31, 3 }
  0xef   :  { %11397 = vmatmul.mubr.msk.f32.gmra.mrb[36].mxu0 %vm140_vm1, %v960_v36  ;;  %v1439_v36 = vrot.slane %v13480_v32, 3 }
  0xf0   :  { %11399 = vmatprep.mubr.msk.f32.mxu0 %vm140_vm1, %v959_v41  ;;  %v1498_v41 = vsel %vm1468_vm4, %v1437_v26, %v1438_v27  ;;  %v1448_v26 = vrot.slane %v13572_v62, 3 }
  0xf3   :  { %11400 = vmatmul.mubr.msk.f32.gmra.mrb[38].mxu0 %vm140_vm1, %v998_v46  ;;  %v1497_v46 = vsel %vm1468_vm4, %v1438_v27, %v1439_v36  ;;  %v1449_v27 = vrot.slane %v13577_v63, 3 }
  0xf4   :  { %11404 = vmatprep.mubr.msk.f32.mxu0 %vm140_vm1, %v1507_v52  ;;  %v1496_v52 = vsel %vm1468_vm4, %v1439_v36, %v1440_v43  ;;  %v1450_v36 = vrot.slane %v13590_v11, 3 }
  0xf7   :  { %11405 = vmatmul.mubr.msk.f32.vlgmr.msra.gmra.mrb[0].mxu0 %vm140_vm1, %v1506_v35  ;;  %v1495_v35 = vsel %vm1468_vm4, %v1440_v43, %v1441_v49  ;;  %v1451_v43 = vrot.slane %v13595_v13, 3 }
  0xf8   :  { %11407 = vmatprep.mubr.msk.f32.mxu0 %vm140_vm1, %v1505_v4  ;;  %11465 = vmatpush3.msk.msra.mxu0 %vm261_vm0, %v13867_v15  ;;  %v1500_v15 = vsel %vm1468_vm4, %v1435_v10, %v1436_v16  ;;  %v1494_v4 = vsel %vm1468_vm4, %v1441_v49, %v1442_v53  ;;  %v1446_v10 = vrot.slane %v13554_v56, 3  ;;  %v1447_v16 = vrot.slane %v13559_v57, 3 }
  0xf9   :  { %v1452_v49 = vrot.slane %v13608_v20, 3 }
  0xfb   :  { %11408 = vmatmul.mubr.msk.f32.gmra.mrb[2].mxu0 %vm140_vm1, %v1504_v60  ;;  %v1493_v60 = vsel %vm1468_vm4, %v1442_v53, %v1443_v54  ;;  %v1453_v53 = vrot.slane %v13613_v21, 3 }
  0xfc   :  { %11410 = vmatprep.mubr.msk.f32.mxu0 %vm140_vm1, %v1503_v0  ;;  %v1492_v0 = vsel %vm1468_vm4, %v1443_v54, %v1444_v59  ;;  %v1454_v54 = vrot.slane %v13626_v28, 3 }
  0xff   :  { %11411 = vmatmul.mubr.msk.f32.gmra.mrb[4].mxu0 %vm140_vm1, %v1502_v14  ;;  %v1491_v14 = vsel %vm1468_vm4, %v1444_v59, %v1445_v61  ;;  %v1455_v59 = vrot.slane %v13631_v29, 3 }
 0x100   :  { %11413 = vmatprep.mubr.msk.f32.mxu0 %vm140_vm1, %v1501_v23  ;;  %v1490_v23 = vsel %vm1468_vm4, %v1445_v61, %v1446_v10  ;;  %v1456_v61 = vrot.slane %v13644_v37, 3 }
 0x103   :  { %11414 = vmatmul.mubr.msk.f32.gmra.mrb[6].mxu0 %vm140_vm1, %v1500_v15  ;;  %v1489_v15 = vsel %vm1468_vm4, %v1446_v10, %v1447_v16  ;;  %v1457_v10 = vrot.slane %v13649_v40, 3 }
 0x104   :  { %11416 = vmatprep.mubr.msk.f32.mxu0 %vm140_vm1, %v1499_v30  ;;  %v1488_v30 = vsel %vm1468_vm4, %v1447_v16, %v1448_v26  ;;  %v1458_v16 = vrot.slane %v13662_v47, 3 }
 0x107   :  { %11417 = vmatmul.mubr.msk.f32.gmra.mrb[8].mxu0 %vm140_vm1, %v1498_v41  ;;  %v1487_v41 = vsel %vm1468_vm4, %v1448_v26, %v1449_v27  ;;  %v1459_v26 = vrot.slane %v13667_v48, 3 }
 0x108   :  { %11419 = vmatprep.mubr.msk.f32.mxu0 %vm140_vm1, %v1497_v46  ;;  %v1486_v46 = vsel %vm1468_vm4, %v1449_v27, %v1450_v36  ;;  %v1460_v27 = vrot.slane %v13680_v55, 3 }
 0x10b   :  { %11420 = vmatmul.mubr.msk.f32.gmra.mrb[10].mxu0 %vm140_vm1, %v1496_v52  ;;  %v1485_v52 = vsel %vm1468_vm4, %v1450_v36, %v1451_v43  ;;  %v1461_v36 = vrot.slane %v13685_v58, 3 }
 0x10c   :  { %11422 = vmatprep.mubr.msk.f32.mxu0 %vm140_vm1, %v1495_v35  ;;  %v1484_v35 = vsel %vm1468_vm4, %v1451_v43, %v1452_v49  ;;  %v1462_v43 = vrot.slane %v13698_v3, 3 }
 0x10f   :  { %11423 = vmatmul.mubr.msk.f32.gmra.mrb[12].mxu0 %vm140_vm1, %v1494_v4  ;;  %v1483_v4 = vsel %vm1468_vm4, %v1452_v49, %v1453_v53  ;;  %v1463_v49 = vrot.slane %v13703_v5, 3 }
 0x110   :  { %11425 = vmatprep.mubr.msk.f32.mxu0 %vm140_vm1, %v1493_v60  ;;  %v1482_v60 = vsel %vm1468_vm4, %v1453_v53, %v1454_v54  ;;  %v1464_v53 = vrot.slane %v13716_v17, 3 }
 0x113   :  { %11426 = vmatmul.mubr.msk.f32.gmra.mrb[14].mxu0 %vm140_vm1, %v1492_v0  ;;  %v1481_v0 = vsel %vm1468_vm4, %v1454_v54, %v1455_v59  ;;  %v1465_v54 = vrot.slane %v13721_v22, 3 }
 0x114   :  { %11428 = vmatprep.mubr.msk.f32.mxu0 %vm140_vm1, %v1491_v14  ;;  %v1480_v14 = vsel %vm1468_vm4, %v1455_v59, %v1456_v61  ;;  %v1466_v59 = vrot.slane %v13734_v33, 3 }
 0x117   :  { %11429 = vmatmul.mubr.msk.f32.gmra.mrb[16].mxu0 %vm140_vm1, %v1490_v23  ;;  %v1479_v23 = vsel %vm1468_vm4, %v1456_v61, %v1457_v10  ;;  %v1467_v61 = vrot.slane %v13739_v34, 3 }
 0x118   :  { %11431 = vmatprep.mubr.msk.f32.mxu0 %vm140_vm1, %v1489_v15  ;;  %v1478_v15 = vsel %vm1468_vm4, %v1457_v10, %v1458_v16 }
 0x119   :  { %v1469_v10 = vsel %vm1468_vm4, %v1466_v59, %v1467_v61 }
 0x11b   :  { %11432 = vmatmul.mubr.msk.f32.gmra.mrb[18].mxu0 %vm140_vm1, %v1488_v30  ;;  %v1477_v30 = vsel %vm1468_vm4, %v1458_v16, %v1459_v26  ;;  %v1939_v16 = vrot.slane %v13389_v2, 4  ;;  %v1941_v2 = vrot.slane %v13402_v7, 4 }
 0x11c   :  { %11434 = vmatprep.mubr.msk.f32.mxu0 %vm140_vm1, %v1487_v41  ;;  %v1476_v41 = vsel %vm1468_vm4, %v1459_v26, %v1460_v27  ;;  %v1940_v26 = vrot.slane %v13397_v6, 4  ;;  %v1943_v6 = vrot.slane %v13417_v12, 4  ;;  %v1946_v12 = vrot.slane %v13452_v24, 4 }
 0x11f   :  { %11435 = vmatmul.mubr.msk.f32.gmra.mrb[20].mxu0 %vm140_vm1, %v1486_v46  ;;  %v1475_v46 = vsel %vm1468_vm4, %v1460_v27, %v1461_v36  ;;  %v2016_v27 = vsel %vm1978_vm5, %v1939_v16, %v1940_v26 }
 0x120   :  { %11437 = vmatprep.mubr.msk.f32.mxu0 %vm140_vm1, %v1485_v52  ;;  %v1474_v52 = vsel %vm1468_vm4, %v1461_v36, %v1462_v43  ;;  %v1944_v36 = vrot.slane %v13433_v18, 4 }
 0x123   :  { %11438 = vmatmul.mubr.msk.f32.gmra.mrb[22].mxu0 %vm140_vm1, %v1484_v35  ;;  %v1473_v35 = vsel %vm1468_vm4, %v1462_v43, %v1463_v49  ;;  %v1945_v43 = vrot.slane %v13439_v19, 4  ;;  %v1948_v19 = vrot.slane %v13475_v31, 4 }
 0x124   :  { %11440 = vmatprep.mubr.msk.f32.mxu0 %vm140_vm1, %v1483_v4  ;;  %v1472_v4 = vsel %vm1468_vm4, %v1463_v49, %v1464_v53  ;;  %v1947_v49 = vrot.slane %v13457_v25, 4  ;;  %v1950_v25 = vrot.slane %v13498_v38, 4 }
 0x125   :  { %v2010_v18 = vsel %vm1978_vm5, %v1945_v43, %v1946_v12 }
 0x126   :  { %v2008_v24 = vsel %vm1978_vm5, %v1947_v49, %v1948_v19 }
 0x127   :  { %11441 = vmatmul.mubr.msk.f32.gmra.mrb[24].mxu0 %vm140_vm1, %v1482_v60  ;;  %v1471_v60 = vsel %vm1468_vm4, %v1464_v53, %v1465_v54  ;;  %v1949_v53 = vrot.slane %v13480_v32, 4  ;;  %v1952_v32 = vrot.slane %v13518_v44, 4 }
 0x128   :  { %11443 = vmatprep.mubr.msk.f32.mxu0 %vm140_vm1, %v1481_v0  ;;  %v1470_v0 = vsel %vm1468_vm4, %v1465_v54, %v1466_v59  ;;  %v1951_v54 = vrot.slane %v13505_v39, 4  ;;  %v1953_v59 = vrot.slane %v13523_v45, 4  ;;  %v1954_v39 = vrot.slane %v13536_v50, 4 }
 0x129   :  { %v2006_v31 = vsel %vm1978_vm5, %v1949_v53, %v1950_v25  ;;  %v1956_v45 = vrot.slane %v13554_v56, 4 }
 0x12a   :  { %v2004_v38 = vsel %vm1978_vm5, %v1951_v54, %v1952_v32  ;;  %v2002_v44 = vsel %vm1978_vm5, %v1953_v59, %v1954_v39 }
 0x12b   :  { %11444 = vmatmul.mubr.msk.f32.gmra.mrb[26].mxu0 %vm140_vm1, %v1480_v14  ;;  %v1938_v14 = vrot.slane %v13384_v1, 4 }
 0x12c   :  { %11446 = vmatprep.mubr.msk.f32.mxu0 %vm140_vm1, %v1479_v23  ;;  %v1508_v23 = vsel %vm1468_vm4, %v1467_v61, %v1428_v42  ;;  %v2015_v42 = vsel %vm1978_vm5, %v1940_v26, %v1941_v2  ;;  %v1955_v61 = vrot.slane %v13541_v51, 4  ;;  %v1958_v51 = vrot.slane %v13572_v62, 4 }
 0x12e   :  { %v2000_v50 = vsel %vm1978_vm5, %v1955_v61, %v1956_v45 }
 0x12f   :  { %11447 = vmatmul.mubr.msk.f32.gmra.mrb[28].mxu0 %vm140_vm1, %v1478_v15  ;;  %v2017_v15 = vsel %vm1978_vm5, %v1938_v14, %v1939_v16 }
 0x130   :  { %11449 = vmatprep.mubr.msk.f32.mxu0 %vm140_vm1, %v1477_v30  ;;  %v1942_v30 = vrot.slane %v13407_v8, 4  ;;  %v2012_v8 = vsel %vm1978_vm5, %v1943_v6, %v1944_v36 }
 0x132   :  { %v2014_v7 = vsel %vm1978_vm5, %v1941_v2, %v1942_v30 }
 0x133   :  { %11450 = vmatmul.mubr.msk.f32.gmra.mrb[30].mxu0 %vm140_vm1, %v1476_v41  ;;  %v2013_v41 = vsel %vm1978_vm5, %v1942_v30, %v1943_v6 }
 0x134   :  { %11452 = vmatprep.mubr.msk.f32.mxu0 %vm140_vm1, %v1475_v46  ;;  %v2011_v46 = vsel %vm1978_vm5, %v1944_v36, %v1945_v43 }
 0x137   :  { %11453 = vmatmul.mubr.msk.f32.gmra.mrb[32].mxu0 %vm140_vm1, %v1474_v52  ;;  %v2009_v52 = vsel %vm1978_vm5, %v1946_v12, %v1947_v49 }
 0x138   :  { %11455 = vmatprep.mubr.msk.f32.mxu0 %vm140_vm1, %v1473_v35  ;;  %v2007_v35 = vsel %vm1978_vm5, %v1948_v19, %v1949_v53  ;;  %v14359_v53 = vld [vmem:[%s19323_s2] ss:$8 sm:$0x7] }
 0x13b   :  { %11456 = vmatmul.mubr.msk.f32.gmra.mrb[34].mxu0 %vm140_vm1, %v1472_v4  ;;  %v2005_v4 = vsel %vm1978_vm5, %v1950_v25, %v1951_v54 }
 0x13c   :  { %11458 = vmatprep.mubr.msk.f32.mxu0 %vm140_vm1, %v1471_v60  ;;  %v2003_v60 = vsel %vm1978_vm5, %v1952_v32, %v1953_v59 }
 0x13f   :  { %11459 = vmatmul.mubr.msk.f32.gmra.mrb[36].mxu0 %vm140_vm1, %v1470_v0  ;;  %v2001_v0 = vsel %vm1978_vm5, %v1954_v39, %v1955_v61 }
 0x140   :  { %11461 = vmatprep.mubr.msk.f32.mxu0 %vm140_vm1, %v1469_v10  ;;  %v1957_v10 = vrot.slane %v13559_v57, 4  ;;  %v1960_v57 = vrot.slane %v13590_v11, 4 }
 0x142   :  { %v1999_v16 = vsel %vm1978_vm5, %v1956_v45, %v1957_v10  ;;  %v1998_v56 = vsel %vm1978_vm5, %v1957_v10, %v1958_v51 }
 0x143   :  { %11462 = vmatmul.mubr.msk.f32.gmra.mrb[38].mxu0 %vm140_vm1, %v1508_v23  ;;  %v1959_v23 = vrot.slane %v13577_v63, 4  ;;  %v1962_v63 = vrot.slane %v13608_v20, 4 }
 0x144   :  { %11466 = vmatprep.mubr.msk.f32.mxu0 %vm140_vm1, %v2017_v15  ;;  %v1961_v15 = vrot.slane %v13595_v13, 4  ;;  %v1964_v13 = vrot.slane %v13626_v28, 4 }
 0x145   :  { %v1997_v26 = vsel %vm1978_vm5, %v1958_v51, %v1959_v23  ;;  %v1996_v62 = vsel %vm1978_vm5, %v1959_v23, %v1960_v57 }
 0x146   :  { %v1995_v2 = vsel %vm1978_vm5, %v1960_v57, %v1961_v15  ;;  %v1994_v11 = vsel %vm1978_vm5, %v1961_v15, %v1962_v63 }
 0x147   :  { %11467 = vmatmul.mubr.msk.f32.vlgmr.msra.gmra.mrb[0].mxu0 %vm140_vm1, %v2016_v27  ;;  %v1963_v27 = vrot.slane %v13613_v21, 4  ;;  %v1966_v21 = vrot.slane %v13644_v37, 4 }
 0x148   :  { %11469 = vmatprep.mubr.msk.f32.mxu0 %vm140_vm1, %v2015_v42  ;;  %v1965_v42 = vrot.slane %v13631_v29, 4  ;;  %v1968_v29 = vrot.slane %v13662_v47, 4 }
 0x149   :  { %v1993_v30 = vsel %vm1978_vm5, %v1962_v63, %v1963_v27  ;;  %v1992_v20 = vsel %vm1978_vm5, %v1963_v27, %v1964_v13 }
 0x14a   :  { %v1991_v6 = vsel %vm1978_vm5, %v1964_v13, %v1965_v42  ;;  %v1990_v28 = vsel %vm1978_vm5, %v1965_v42, %v1966_v21 }
 0x14b   :  { %11470 = vmatmul.mubr.msk.f32.gmra.mrb[2].mxu0 %vm140_vm1, %v2014_v7  ;;  %v1967_v7 = vrot.slane %v13649_v40, 4  ;;  %v1970_v40 = vrot.slane %v13680_v55, 4 }
 0x14c   :  { %11472 = vmatprep.mubr.msk.f32.mxu0 %vm140_vm1, %v2013_v41  ;;  %v1969_v41 = vrot.slane %v13667_v48, 4  ;;  %v1972_v48 = vrot.slane %v13698_v3, 4 }
 0x14d   :  { %v1989_v36 = vsel %vm1978_vm5, %v1966_v21, %v1967_v7  ;;  %v1988_v37 = vsel %vm1978_vm5, %v1967_v7, %v1968_v29 }
 0x14e   :  { %v1987_v43 = vsel %vm1978_vm5, %v1968_v29, %v1969_v41  ;;  %v1986_v47 = vsel %vm1978_vm5, %v1969_v41, %v1970_v40 }
 0x14f   :  { %11473 = vmatmul.mubr.msk.f32.gmra.mrb[4].mxu0 %vm140_vm1, %v2012_v8  ;;  %v1971_v8 = vrot.slane %v13685_v58, 4  ;;  %v1974_v58 = vrot.slane %v13716_v17, 4 }
 0x150   :  { %11475 = vmatprep.mubr.msk.f32.mxu0 %vm140_vm1, %v2011_v46  ;;  %v1973_v46 = vrot.slane %v13703_v5, 4  ;;  %v1976_v5 = vrot.slane %v13734_v33, 4 }
 0x151   :  { %v1985_v12 = vsel %vm1978_vm5, %v1970_v40, %v1971_v8  ;;  %v1984_v55 = vsel %vm1978_vm5, %v1971_v8, %v1972_v48 }
 0x152   :  { %v1983_v49 = vsel %vm1978_vm5, %v1972_v48, %v1973_v46  ;;  %v1982_v3 = vsel %vm1978_vm5, %v1973_v46, %v1974_v58 }
 0x153   :  { %11476 = vmatmul.mubr.msk.f32.gmra.mrb[6].mxu0 %vm140_vm1, %v2010_v18  ;;  %v1975_v18 = vrot.slane %v13721_v22, 4 }
 0x154   :  { %11478 = vmatprep.mubr.msk.f32.mxu0 %vm140_vm1, %v2009_v52  ;;  %v1977_v52 = vrot.slane %v13739_v34, 4  ;;  %v14354_v34 = vsub.s32 1, %v13410_v9 }
 0x155   :  { %v1981_v19 = vsel %vm1978_vm5, %v1974_v58, %v1975_v18  ;;  %v1980_v17 = vsel %vm1978_vm5, %v1975_v18, %v1976_v5 }
 0x156   :  { %v1979_v22 = vsel %vm1978_vm5, %v1976_v5, %v1977_v52  ;;  %v2018_v33 = vsel %vm1978_vm5, %v1977_v52, %v1938_v14  ;;  %19579 = vst [vmem:[#allocation6_spill] sm:$0xff] %v14354_v34 }
 0x157   :  { %11479 = vmatmul.mubr.msk.f32.gmra.mrb[8].mxu0 %vm140_vm1, %v2008_v24  ;;  %v14363_v24 = vrot.slane %v14359_v53, %v14354_v34 }
 0x158   :  { %11481 = vmatprep.mubr.msk.f32.mxu0 %vm140_vm1, %v2007_v35 }
 0x159   :  { %2531 = vmatprep.mubr.f32.mxu1 %v14363_v24 }
 0x15b   :  { %11482 = vmatmul.mubr.msk.f32.gmra.mrb[10].mxu0 %vm140_vm1, %v2006_v31 }
 0x15c   :  { %11484 = vmatprep.mubr.msk.f32.mxu0 %vm140_vm1, %v2005_v4 }
 0x15f   :  { %11485 = vmatmul.mubr.msk.f32.gmra.mrb[12].mxu0 %vm140_vm1, %v2004_v38 }
 0x160   :  { %11487 = vmatprep.mubr.msk.f32.mxu0 %vm140_vm1, %v2003_v60 }
 0x163   :  { %11488 = vmatmul.mubr.msk.f32.gmra.mrb[14].mxu0 %vm140_vm1, %v2002_v44 }
 0x164   :  { %11490 = vmatprep.mubr.msk.f32.mxu0 %vm140_vm1, %v2001_v0 }
 0x167   :  { %11491 = vmatmul.mubr.msk.f32.gmra.mrb[16].mxu0 %vm140_vm1, %v2000_v50 }
 0x168   :  { %11493 = vmatprep.mubr.msk.f32.mxu0 %vm140_vm1, %v1999_v16 }
 0x16b   :  { %11494 = vmatmul.mubr.msk.f32.gmra.mrb[18].mxu0 %vm140_vm1, %v1998_v56 }
 0x16c   :  { %11496 = vmatprep.mubr.msk.f32.mxu0 %vm140_vm1, %v1997_v26 }
 0x16f   :  { %11497 = vmatmul.mubr.msk.f32.gmra.mrb[20].mxu0 %vm140_vm1, %v1996_v62 }
 0x170   :  { %11499 = vmatprep.mubr.msk.f32.mxu0 %vm140_vm1, %v1995_v2 }
 0x173   :  { %11500 = vmatmul.mubr.msk.f32.gmra.mrb[22].mxu0 %vm140_vm1, %v1994_v11 }
 0x174   :  { %11502 = vmatprep.mubr.msk.f32.mxu0 %vm140_vm1, %v1993_v30 }
 0x177   :  { %11503 = vmatmul.mubr.msk.f32.gmra.mrb[24].mxu0 %vm140_vm1, %v1992_v20 }
 0x178   :  { %11505 = vmatprep.mubr.msk.f32.mxu0 %vm140_vm1, %v1991_v6 }
 0x17b   :  { %11506 = vmatmul.mubr.msk.f32.gmra.mrb[26].mxu0 %vm140_vm1, %v1990_v28 }
 0x17c   :  { %11508 = vmatprep.mubr.msk.f32.mxu0 %vm140_vm1, %v1989_v36 }
 0x17f   :  { %11509 = vmatmul.mubr.msk.f32.gmra.mrb[28].mxu0 %vm140_vm1, %v1988_v37 }
 0x180   :  { %11511 = vmatprep.mubr.msk.f32.mxu0 %vm140_vm1, %v1987_v43 }
 0x183   :  { %11512 = vmatmul.mubr.msk.f32.gmra.mrb[30].mxu0 %vm140_vm1, %v1986_v47 }
 0x184   :  { %11514 = vmatprep.mubr.msk.f32.mxu0 %vm140_vm1, %v1985_v12 }
 0x187   :  { %11515 = vmatmul.mubr.msk.f32.gmra.mrb[32].mxu0 %vm140_vm1, %v1984_v55 }
 0x188   :  { %11517 = vmatprep.mubr.msk.f32.mxu0 %vm140_vm1, %v1983_v49 }
 0x18b   :  { %11518 = vmatmul.mubr.msk.f32.gmra.mrb[34].mxu0 %vm140_vm1, %v1982_v3 }
 0x18c   :  { %11520 = vmatprep.mubr.msk.f32.mxu0 %vm140_vm1, %v1981_v19 }
 0x18f   :  { %11521 = vmatmul.mubr.msk.f32.gmra.mrb[36].mxu0 %vm140_vm1, %v1980_v17 }
 0x190   :  { %11523 = vmatprep.mubr.msk.f32.mxu0 %vm140_vm1, %v1979_v22 }
 0x193   :  { %11524 = vmatmul.mubr.msk.f32.gmra.mrb[38].mxu0 %vm140_vm1, %v2018_v33 }
 0x21a   :  { %v14366_v1 = vpop.f32.mrb[0].mxu0 }
 0x21b   :  { %v14370_v14 = vmul.f32 %v14366_v1, %v14366_v1  ;;  %v14372_v25 = vpop.f32.mrb[1].mxu0 }
 0x21c   :  { %v14376_v35 = vmul.f32 %v14372_v25, %v14372_v25  ;;  %v12412_v54 = vpack.c.bf16 %v14366_v1, %v14372_v25 }
 0x21e   :  { %v14382_v32 = vpop.f32.mrb[2].mxu0 }
 0x21f   :  { %v14386_v4 = vmul.f32 %v14382_v32, %v14382_v32  ;;  %v14388_v59 = vpop.f32.mrb[3].mxu0 }
 0x220   :  { %v12416_v38 = vpack.c.bf16 %v14382_v32, %v14388_v59  ;;  %v14394_v39 = vmul.f32 %v14388_v59, %v14388_v59 }
 0x222   :  { %v14398_v61 = vpop.f32.mrb[4].mxu0 }
 0x223   :  { %v14402_v44 = vmul.f32 %v14398_v61, %v14398_v61  ;;  %v14404_v45 = vpop.f32.mrb[5].mxu0 }
 0x224   :  { %v12420_v0 = vpack.c.bf16 %v14398_v61, %v14404_v45  ;;  %v14410_v10 = vmul.f32 %v14404_v45, %v14404_v45 }
 0x226   :  { %v14414_v51 = vpop.f32.mrb[6].mxu0 }
 0x227   :  { %v14418_v16 = vmul.f32 %v14414_v51, %v14414_v51  ;;  %v14420_v23 = vpop.f32.mrb[7].mxu0 }
 0x228   :  { %v12424_v56 = vpack.c.bf16 %v14414_v51, %v14420_v23  ;;  %v14426_v57 = vmul.f32 %v14420_v23, %v14420_v23 }
 0x22a   :  { %v14430_v15 = vpop.f32.mrb[8].mxu0 }
 0x22b   :  { %v14434_v62 = vmul.f32 %v14430_v15, %v14430_v15  ;;  %v14436_v63 = vpop.f32.mrb[9].mxu0 }
 0x22c   :  { %v12428_v2 = vpack.c.bf16 %v14430_v15, %v14436_v63  ;;  %v14442_v27 = vmul.f32 %v14436_v63, %v14436_v63 }
 0x22e   :  { %v14446_v13 = vpop.f32.mrb[10].mxu0 }
 0x22f   :  { %v14450_v30 = vmul.f32 %v14446_v13, %v14446_v13  ;;  %v14452_v42 = vpop.f32.mrb[11].mxu0 }
 0x230   :  { %v14458_v21 = vmul.f32 %v14452_v42, %v14452_v42 }
 0x232   :  { %v14462_v7 = vpop.f32.mrb[12].mxu0 }
 0x233   :  { %v14466_v28 = vmul.f32 %v14462_v7, %v14462_v7  ;;  %v14468_v29 = vpop.f32.mrb[13].mxu0 }
 0x234   :  { %v14474_v41 = vmul.f32 %v14468_v29, %v14468_v29 }
 0x236   :  { %v14478_v40 = vpop.f32.mrb[14].mxu0 }
 0x237   :  { %19580 = vst [vmem:[#allocation7_spill] sm:$0xff] %v14478_v40  ;;  %v14482_v43 = vmul.f32 %v14478_v40, %v14478_v40  ;;  %v14484_v8 = vpop.f32.mrb[15].mxu0 }
 0x238   :  { %19581 = vst [vmem:[#allocation8_spill] sm:$0xff] %v14484_v8  ;;  %v14490_v48 = vmul.f32 %v14484_v8, %v14484_v8 }
 0x23a   :  { %v14494_v46 = vpop.f32.mrb[16].mxu0 }
 0x23b   :  { %19582 = vst [vmem:[#allocation9_spill] sm:$0xff] %v14494_v46  ;;  %v14498_v55 = vmul.f32 %v14494_v46, %v14494_v46  ;;  %v14500_v58 = vpop.f32.mrb[17].mxu0 }
 0x23c   :  { %19583 = vst [vmem:[#allocation10_spill] sm:$0xff] %v14500_v58  ;;  %v14504_v49 = vmul.f32 %v14500_v58, %v14500_v58  ;;  %v12410_v18 = vpack.c.bf16 %v14494_v46, %v14500_v58 }
 0x23e   :  { %v14508_v3 = vpop.f32.mrb[18].mxu0  ;;  %12411 = vmatprep.subr.bf16.mxu1 %v12410_v18 }
 0x23f   :  { %19584 = vst [vmem:[#allocation11_spill] sm:$0xff] %v14508_v3  ;;  %v14514_v19 = vmul.f32 %v14508_v3, %v14508_v3  ;;  %v14516_v52 = vpop.f32.mrb[19].mxu0  ;;  %12413 = vmatpush3.bf16.msra.mxu1 %v12412_v54 }
 0x240   :  { %19585 = vst [vmem:[#allocation12_spill] sm:$0xff] %v14516_v52  ;;  %v12414_v17 = vpack.c.bf16 %v14508_v3, %v14516_v52  ;;  %v14522_v22 = vmul.f32 %v14516_v52, %v14516_v52 }
 0x242   :  { %v14524_v33 = vpop.f32.mrb[20].mxu0  ;;  %12415 = vmatprep.subr.bf16.mxu1 %v12414_v17 }
 0x243   :  { %19586 = vst [vmem:[#allocation13_spill] sm:$0xff] %v14524_v33  ;;  %v14530_v12 = vmul.f32 %v14524_v33, %v14524_v33  ;;  %v14532_v37 = vpop.f32.mrb[21].mxu0  ;;  %12417 = vmatpush3.bf16.msra.mxu1 %v12416_v38 }
 0x244   :  { %19587 = vst [vmem:[#allocation14_spill] sm:$0xff] %v14532_v37  ;;  %v12418_v54 = vpack.c.bf16 %v14524_v33, %v14532_v37  ;;  %v14538_v6 = vmul.f32 %v14532_v37, %v14532_v37 }
 0x246   :  { %v14540_v11 = vpop.f32.mrb[22].mxu0  ;;  %12419 = vmatprep.subr.bf16.mxu1 %v12418_v54 }
 0x247   :  { %19588 = vst [vmem:[#allocation15_spill] sm:$0xff] %v14540_v11  ;;  %v14546_v26 = vmul.f32 %v14540_v11, %v14540_v11  ;;  %v14548_v50 = vpop.f32.mrb[23].mxu0  ;;  %12421 = vmatpush3.bf16.msra.mxu1 %v12420_v0 }
 0x248   :  { %19589 = vst [vmem:[#allocation16_spill] sm:$0xff] %v14548_v50  ;;  %v12422_v38 = vpack.c.bf16 %v14540_v11, %v14548_v50  ;;  %v14554_v60 = vmul.f32 %v14548_v50, %v14548_v50 }
 0x24a   :  { %v14556_v18 = vpop.f32.mrb[24].mxu0  ;;  %12423 = vmatprep.subr.bf16.mxu1 %v12422_v38 }
 0x24b   :  { %19590 = vst [vmem:[#allocation17_spill] sm:$0xff] %v14556_v18  ;;  %v14562_v17 = vmul.f32 %v14556_v18, %v14556_v18  ;;  %v14564_v31 = vpop.f32.mrb[25].mxu0  ;;  %12425 = vmatpush3.bf16.msra.mxu1 %v12424_v56 }
 0x24c   :  { %19591 = vst [vmem:[#allocation18_spill] sm:$0xff] %v14564_v31  ;;  %v12426_v0 = vpack.c.bf16 %v14556_v18, %v14564_v31  ;;  %v14570_v5 = vmul.f32 %v14564_v31, %v14564_v31 }
 0x24e   :  { %v14572_v47 = vpop.f32.mrb[26].mxu0  ;;  %12427 = vmatprep.subr.bf16.mxu1 %v12426_v0  ;;  %v14610_v0 = vsub.s32 0, %v13410_v9 }
 0x24f   :  { %19592 = vst [vmem:[#allocation19_spill] sm:$0xff] %v14572_v47  ;;  %v14578_v54 = vmul.f32 %v14572_v47, %v14572_v47  ;;  %v14580_v36 = vpop.f32.mrb[27].mxu0  ;;  %12429 = vmatpush3.bf16.msra.mxu1 %v12428_v2  ;;  %v19596_v2 = vpack.c.bf16 %v14446_v13, %v14452_v42 }
 0x250   :  { %19593 = vst [vmem:[#allocation20_spill] sm:$0xff] %v14580_v36  ;;  %v12430_v56 = vpack.c.bf16 %v14572_v47, %v14580_v36  ;;  %v14586_v20 = vmul.f32 %v14580_v36, %v14580_v36  ;;  %19598 = vst [vmem:[#allocation24_spill] sm:$0xff] %v14610_v0  ;;  %v2453_v31 = vrot.slane %v14359_v53, %v14610_v0 }
 0x252   :  { %v14588_v34 = vpop.f32.mrb[28].mxu0  ;;  %12431 = vmatprep.subr.bf16.mxu1 %v12430_v56 }
 0x253   :  { %19594 = vst [vmem:[#allocation21_spill] sm:$0xff] %v14588_v34  ;;  %v14594_v38 = vmul.f32 %v14588_v34, %v14588_v34  ;;  %v14596_v18 = vpop.f32.mrb[29].mxu0  ;;  %12433 = vmatpush3.bf16.msra.mxu1 %v19596_v2 }
 0x254   :  { %19595 = vst [vmem:[#allocation22_spill] sm:$0xff] %v14596_v18  ;;  %v12434_v47 = vpack.c.bf16 %v14588_v34, %v14596_v18  ;;  %v14605_v36 = vmul.f32 %v14596_v18, %v14596_v18  ;;  %v19600_v34 = vpack.c.bf16 %v14462_v7, %v14468_v29 }
 0x256   :  { %v14607_v56 = vpop.f32.mrb[30].mxu0  ;;  %12435 = vmatprep.subr.bf16.mxu1 %v12434_v47 }
 0x257   :  { %19597 = vst [vmem:[#allocation23_spill] sm:$0xff] %v14607_v56  ;;  %v14616_v11 = vmul.f32 %v14607_v56, %v14607_v56  ;;  %v14618_v2 = vpop.f32.mrb[31].mxu0  ;;  %12437 = vmatpush3.bf16.msra.mxu1 %v19600_v34  ;;  %v19603_v34 = vpack.c.bf16 %v14478_v40, %v14484_v8 }
 0x258   :  { %19599 = vst [vmem:[#allocation25_spill] sm:$0xff] %v14618_v2  ;;  %v12438_v18 = vpack.c.bf16 %v14607_v56, %v14618_v2  ;;  %v2637_v47 = vmul.f32 %v14618_v2, %v14618_v2  ;;  %v19354_v2 = vmov 0.0|0.0  }
 0x25a   :  { %v14627_v50 = vpop.f32.mrb[32].mxu0  ;;  %12439 = vmatprep.subr.bf16.mxu1 %v12438_v18  ;;  %v12482_v33 = vpack.c.bf16 %v14616_v11, %v2637_v47 }
 0x25b   :  { %19601 = vst [vmem:[#allocation26_spill] sm:$0xff] %v14627_v50  ;;  %v2640_v37 = vmul.f32 %v14627_v50, %v14627_v50  ;;  %v14634_v3 = vpop.f32.mrb[33].mxu0  ;;  %12441 = vmatpush3.bf16.msra.mxu1 %v19603_v34  ;;  %v19345_v34 = vmov 0.0  }
 0x25c   :  { %19602 = vst [vmem:[#allocation27_spill] sm:$0xff] %v14634_v3  ;;  %v12443_v56 = vpack.c.bf16 %v14627_v50, %v14634_v3  ;;  %v2639_v18 = vmul.f32 %v14634_v3, %v14634_v3  ;;  %12442 = vmatprep.subr.bf16.mxu1 %v19354_v2 }
 0x25e   :  { %v12487_v52 = vpack.c.bf16 %v2640_v37, %v2639_v18  ;;  %v14644_v11 = vpop.f32.mrb[34].mxu0  ;;  %2532 = vmatmul.mubr.f32.vlgmr.msra.gmra.mrb[0].mxu1 %v2453_v31 }
 0x25f   :  { %19604 = vst [vmem:[#allocation28_spill] sm:$0xff] %v14644_v11  ;;  %v2642_v47 = vmul.f32 %v14644_v11, %v14644_v11  ;;  %v14648_v46 = vpop.f32.mrb[35].mxu0  ;;  %12444 = vmatpush3.bf16.msra.mxu1 %v12443_v56  ;;  %11542 = vmatprep.mubr.msk.f32.mxu1 %vm13354_vm6, %v19345_v34 }
 0x260   :  { %19605 = vst [vmem:[#allocation29_spill] sm:$0xff] %v14648_v46  ;;  %v12446_v50 = vpack.c.bf16 %v14644_v11, %v14648_v46  ;;  %v2641_v37 = vmul.f32 %v14648_v46, %v14648_v46  ;;  %12445 = vmatprep.subr.bf16.mxu1 %v19354_v2  ;;  %v14669_v46 = vsub.s32 2, %v13410_v9 }
 0x262   :  { %v12490_v18 = vpack.c.bf16 %v2642_v47, %v2641_v37  ;;  %v14657_v3 = vpop.f32.mrb[36].mxu0  ;;  %19607 = vst [vmem:[#allocation31_spill] sm:$0xff] %v14669_v46  ;;  %v2461_v9 = vrot.slane %v14359_v53, %v14669_v46  ;;  %v19611_v53 = vpack.c.bf16 %v14386_v4, %v14394_v39  ;;  %v19617_v4 = vpack.c.bf16 %v14434_v62, %v14442_v27 }
 0x263   :  { %19606 = vst [vmem:[#allocation30_spill] sm:$0xff] %v14657_v3  ;;  %v2644_v58 = vmul.f32 %v14657_v3, %v14657_v3  ;;  %v14661_v56 = vpop.f32.mrb[37].mxu0  ;;  %12447 = vmatpush3.bf16.msra.mxu1 %v12446_v50  ;;  %v19618_v39 = vpack.c.bf16 %v14578_v54, %v14586_v20 }
 0x264   :  { %v12449_v34 = vpack.c.bf16 %v14657_v3, %v14661_v56  ;;  %v2643_v11 = vmul.f32 %v14661_v56, %v14661_v56  ;;  %12448 = vmatprep.subr.bf16.mxu1 %v19354_v2 }
 0x266   :  { %v12493_v47 = vpack.c.bf16 %v2644_v58, %v2643_v11  ;;  %v14671_v37 = vpop.f32.mrb[38].mxu0  ;;  %v19608_v11 = vpack.c.bf16 %v14498_v55, %v14504_v49  ;;  %v19613_v55 = vpack.c.bf16 %v14402_v44, %v14410_v10  ;;  %v19620_v44 = vpack.c.bf16 %v14594_v38, %v14605_v36  ;;  %v2793_v38 = vld [vmem:[%s19322_s1 + $0x9c] sm:$0x1] }
 0x267   :  { %v2646_v40 = vmul.f32 %v14671_v37, %v14671_v37  ;;  %v14675_v8 = vpop.f32.mrb[39].mxu0  ;;  %12450 = vmatpush3.bf16.msra.mxu1 %v12449_v34  ;;  %v19609_v34 = vpack.c.bf16 %v14370_v14, %v14376_v35  ;;  %v19614_v14 = vpack.c.bf16 %v14546_v26, %v14554_v60  ;;  %v19616_v35 = vpack.c.bf16 %v14562_v17, %v14570_v5 }
 0x268   :  { %v12452_v50 = vpack.c.bf16 %v14671_v37, %v14675_v8  ;;  %v2645_v3 = vmul.f32 %v14675_v8, %v14675_v8  ;;  %12451 = vmatprep.subr.bf16.mxu1 %v19354_v2  ;;  %v19610_v2 = vpack.c.bf16 %v14514_v19, %v14522_v22  ;;  %v19619_v60 = vpack.c.bf16 %v14450_v30, %v14458_v21 }
 0x269   :  { %v19621_v10 = vpack.c.bf16 %v14466_v28, %v14474_v41  ;;  %v19624_v26 = vmov 0.0  }
 0x26a   :  { %v12496_v58 = vpack.c.bf16 %v2646_v40, %v2645_v3  ;;  %v19612_v40 = vpack.c.bf16 %v14530_v12, %v14538_v6  ;;  %v3128_v6 = vld [vmem:[%s19322_s1 + $0x30] sm:$0xff] }
 0x26b   :  { %12453 = vmatpush3.bf16.msra.mxu1 %v12452_v50 }
 0x26c   :  { %12455 = vmatprep.subr.bf16.mxu1 %v19608_v11 }
 0x26e   :  { %11543 = vmatmul.mubr.msk.f32.vlgmr.msra.gmra.mrb[2].mxu1 %vm2464_vm7, %v2461_v9 }
 0x26f   :  { %12457 = vmatpush3.bf16.msra.mxu1 %v19609_v34  ;;  %2711 = vmatprep.mubr.f32.mxu1 %v14363_v24  ;;  %v19615_v24 = vpack.c.bf16 %v14418_v16, %v14426_v57  ;;  %v19622_v16 = vpack.c.bf16 %v14482_v43, %v14490_v48  ;;  %v19623_v57 = vmov 0.0|0.0  }
 0x270   :  { %12459 = vmatprep.subr.bf16.mxu1 %v19610_v2 }
 0x273   :  { %12461 = vmatpush3.bf16.msra.mxu1 %v19611_v53 }
 0x274   :  { %12463 = vmatprep.subr.bf16.mxu1 %v19612_v40 }
 0x277   :  { %12465 = vmatpush3.bf16.msra.mxu1 %v19613_v55 }
 0x278   :  { %12467 = vmatprep.subr.bf16.mxu1 %v19614_v14 }
 0x27b   :  { %12469 = vmatpush3.bf16.msra.mxu1 %v19615_v24 }
 0x27c   :  { %12471 = vmatprep.subr.bf16.mxu1 %v19616_v35 }
 0x27f   :  { %12473 = vmatpush3.bf16.msra.mxu1 %v19617_v4 }
 0x280   :  { %12475 = vmatprep.subr.bf16.mxu1 %v19618_v39 }
 0x283   :  { %12477 = vmatpush3.bf16.msra.mxu1 %v19619_v60  ;;  %v19628_v60 = vld [vmem:[#allocation10_spill] sm:$0xff] }
 0x284   :  { %12479 = vmatprep.subr.bf16.mxu1 %v19620_v44 }
 0x287   :  { %12481 = vmatpush3.bf16.msra.mxu1 %v19621_v10  ;;  %v19629_v10 = vld [vmem:[#allocation9_spill] sm:$0xff] }
 0x288   :  { %12483 = vmatprep.subr.bf16.mxu1 %v12482_v33  ;;  %v2792_v33 = vld [vmem:[%s19322_s1 + $0x98] sm:$0x1] }
 0x28b   :  { %12485 = vmatpush3.bf16.msra.mxu1 %v19622_v16  ;;  %v19630_v16 = vld [vmem:[#allocation12_spill] sm:$0xff] }
 0x28c   :  { %12486 = vmatprep.subr.bf16.mxu1 %v19623_v57 }
 0x28e   :  { %2712 = vmatmul.mubr.f32.vlgmr.msra.gmra.mrb[4].mxu1 %v2453_v31 }
 0x28f   :  { %12488 = vmatpush3.bf16.msra.mxu1 %v12487_v52  ;;  %11561 = vmatprep.mubr.msk.f32.mxu1 %vm13354_vm6, %v19624_v26  ;;  %v14744_v52 = vld [vmem:[%s19322_s1 + $0x28] sm:$0xff] }
 0x290   :  { %12489 = vmatprep.subr.bf16.mxu1 %v19623_v57  ;;  %19625 = vst [vmem:[#allocation32_spill] sm:$0xff] %v14744_v52 }
 0x293   :  { %12491 = vmatpush3.bf16.msra.mxu1 %v12490_v18 }
 0x294   :  { %12492 = vmatprep.subr.bf16.mxu1 %v19623_v57 }
 0x297   :  { %12494 = vmatpush3.bf16.msra.mxu1 %v12493_v47 }
 0x298   :  { %12495 = vmatprep.subr.bf16.mxu1 %v19623_v57 }
 0x29b   :  { %12497 = vmatpush3.bf16.msra.mxu1 %v12496_v58 }
 0x29c   :  { %11564 = vmatprep.subr.mxu1 %v3128_v6 }
 0x29e   :  { %11562 = vmatmul.mubr.msk.f32.vlgmr.msra.gmra.mrb[6].mxu1 %vm2464_vm7, %v2461_v9 }
 0x29f   :  { %11565 = vmatpush3.msra.mxu1 %v3128_v6 }
 0x2a0   :  { %11626 = vmatprep.subr.mxu1 %v14744_v52 }
 0x331   :  { %v10382_v62 = vpop.f32.mrb[0].mxu1 }
 0x332   :  { %v10383_v27 = vpop.f32.mrb[1].mxu1 }
 0x333   :  { %v10384_v30 = vadd.f32 %v10383_v27, %v10382_v62  ;;  %v19631_v62 = vld [vmem:[#allocation11_spill] sm:$0xff]  ;;  %v19632_v27 = vld [vmem:[#allocation14_spill] sm:$0xff] }
 0x341   :  { %v2603_v20 = vpop.f32.mrb[2].mxu1 }
 0x342   :  { %v2604_v31 = vadd.f32 %v10384_v30, %v2603_v20  ;;  %v11544_v21 = vpop.f32.mrb[3].mxu1  ;;  %v19633_v30 = vld [vmem:[#allocation13_spill] sm:$0xff]  ;;  %v19634_v20 = vld [vmem:[#allocation16_spill] sm:$0xff] }
 0x343   :  { %v19636_v21 = vld [vmem:[#allocation18_spill] sm:$0xff] }
 0x344   :  { %v2787_v43 = vmul.f32 0.00390625, %v2604_v31  ;;  %v19635_v31 = vld [vmem:[#allocation15_spill] sm:$0xff] }
 0x346   :  { %v2789_v9 = vmul.f32 %v2787_v43, %v2787_v43 }
 0x361   :  { %v10426_v28 = vpop.f32.mrb[4].mxu1 }
 0x362   :  { %v10427_v36 = vpop.f32.mrb[5].mxu1 }
 0x363   :  { %v10428_v41 = vadd.f32 %v10427_v36, %v10426_v28  ;;  %v19637_v28 = vld [vmem:[#allocation17_spill] sm:$0xff] }
 0x371   :  { %v2783_v48 = vpop.f32.mrb[6].mxu1 }
 0x372   :  { %v2784_v12 = vadd.f32 %v10428_v41, %v2783_v48  ;;  %v11563_v49 = vpop.f32.mrb[7].mxu1  ;;  %v19638_v41 = vld [vmem:[#allocation20_spill] sm:$0xff]  ;;  %v19639_v48 = vld [vmem:[#allocation19_spill] sm:$0xff] }
 0x373   :  { %v19640_v49 = vld [vmem:[#allocation22_spill] sm:$0xff] }
 0x374   :  { %v2788_v3 = vmul.f32 0.00390625, %v2784_v12 }
 0x376   :  { %v2790_v5 = vsub.f32 %v2788_v3, %v2789_v9  ;;  %v19641_v3 = vld [vmem:[#allocation21_spill] sm:$0xff] }
 0x378   :  { %v2791_v19 = vmax.f32 %v2790_v5, 0.0 }
 0x37a   :  { %v2794_v22 = vadd.f32 1e-05, %v2791_v19  ;;  %v19642_v19 = vld [vmem:[#allocation25_spill] sm:$0xff] }
 0x37c   :  { %13321 = vrsqrt.f32 %v2794_v22 }
 0x386   :  { %v13322_v17 = vpop.eup %13321 }
 0x387   :  { %v2796_v54 = vmul.f32 %v13322_v17, %v2792_v33  ;;  %v19643_v33 = vld [vmem:[#allocation23_spill] sm:$0xff] }
 0x389   :  { %v2797_v2 = vmul.f32 %v2796_v54, %v2787_v43  ;;  %v2802_v18 = vrot.slane %v2796_v54, %v14610_v0  ;;  %v19644_v54 = vld [vmem:[#allocation27_spill] sm:$0xff] }
 0x38b   :  { %v2798_v47 = vsub.f32 %v2793_v38, %v2797_v2  ;;  %v2803_v50 = vmul.f32 %v2802_v18, %v14372_v25  ;;  %v2804_v58 = vmul.f32 %v14366_v1, %v2802_v18  ;;  %v2805_v11 = vmul.f32 %v2802_v18, %v14388_v59  ;;  %v19645_v2 = vld [vmem:[#allocation26_spill] sm:$0xff] }
 0x38c   :  { %v2806_v34 = vmul.f32 %v14382_v32, %v2802_v18  ;;  %v2807_v53 = vmul.f32 %v2802_v18, %v14404_v45  ;;  %v2808_v40 = vmul.f32 %v14398_v61, %v2802_v18  ;;  %v2809_v55 = vmul.f32 %v2802_v18, %v14420_v23  ;;  %v19626_v61 = vld [vmem:[#allocation8_spill] sm:$0xff]  ;;  %v19627_v23 = vld [vmem:[#allocation7_spill] sm:$0xff] }
 0x38d   :  { %v14762_v14 = vrot.slane %v2798_v47, %v14610_v0  ;;  %v2810_v24 = vmul.f32 %v14414_v51, %v2802_v18  ;;  %v2811_v35 = vmul.f32 %v2802_v18, %v14436_v63  ;;  %v2812_v25 = vmul.f32 %v14430_v15, %v2802_v18 }
 0x38e   :  { %v2813_v1 = vmul.f32 %v2802_v18, %v14452_v42  ;;  %v2814_v59 = vmul.f32 %v14446_v13, %v2802_v18  ;;  %v2815_v32 = vmul.f32 %v2802_v18, %v14468_v29  ;;  %v2816_v45 = vmul.f32 %v14462_v7, %v2802_v18 }
 0x38f   :  { %v2817_v4 = vmul.f32 %v2802_v18, %v19626_v61  ;;  %v2818_v39 = vmul.f32 %v19627_v23, %v2802_v18  ;;  %v2819_v44 = vmul.f32 %v2802_v18, %v19628_v60  ;;  %v2820_v51 = vmul.f32 %v19629_v10, %v2802_v18  ;;  %v19646_v61 = vld [vmem:[#allocation29_spill] sm:$0xff]  ;;  %v19647_v60 = vld [vmem:[#allocation28_spill] sm:$0xff] }
 0x390   :  { %v2821_v63 = vmul.f32 %v2802_v18, %v19630_v16  ;;  %v2822_v15 = vmul.f32 %v19631_v62, %v2802_v18  ;;  %v2823_v42 = vmul.f32 %v2802_v18, %v19632_v27  ;;  %v2824_v13 = vmul.f32 %v19633_v30, %v2802_v18  ;;  %v19648_v62 = vld [vmem:[#allocation30_spill] sm:$0xff] }
 0x391   :  { %v2825_v29 = vmul.f32 %v2802_v18, %v19634_v20  ;;  %v2826_v7 = vmul.f32 %v19635_v31, %v2802_v18  ;;  %v2827_v6 = vmul.f32 %v2802_v18, %v19636_v21  ;;  %v2828_v36 = vmul.f32 %v19637_v28, %v2802_v18 }
 0x392   :  { %v2829_v43 = vmul.f32 %v2802_v18, %v19638_v41  ;;  %v2830_v12 = vmul.f32 %v19639_v48, %v2802_v18  ;;  %v2831_v9 = vmul.f32 %v2802_v18, %v19640_v49  ;;  %v2832_v5 = vmul.f32 %v19641_v3, %v2802_v18 }
 0x393   :  { %v2833_v22 = vmul.f32 %v2802_v18, %v19642_v19  ;;  %v2834_v17 = vmul.f32 %v19643_v33, %v2802_v18  ;;  %v2835_v38 = vmul.f32 %v2802_v18, %v19644_v54  ;;  %v2836_v47 = vmul.f32 %v19645_v2, %v2802_v18 }
 0x394   :  { %v2837_v23 = vmul.f32 %v2802_v18, %v19646_v61  ;;  %v2838_v10 = vmul.f32 %v19647_v60, %v2802_v18  ;;  %v2839_v16 = vmul.f32 %v2802_v18, %v14661_v56  ;;  %v2840_v27 = vmul.f32 %v19648_v62, %v2802_v18 }
 0x395   :  { %v2841_v30 = vmul.f32 %v2802_v18, %v14675_v8  ;;  %v2842_v20 = vmul.f32 %v14671_v37, %v2802_v18  ;;  %v14798_v31 = vadd.f32 %v14762_v14, %v2803_v50  ;;  %v14801_v21 = vadd.f32 %v14762_v14, %v2804_v58 }
 0x396   :  { %v14804_v28 = vadd.f32 %v14762_v14, %v2805_v11  ;;  %v14807_v41 = vadd.f32 %v14762_v14, %v2806_v34  ;;  %v14810_v56 = vadd.f32 %v14762_v14, %v2807_v53  ;;  %v14813_v48 = vadd.f32 %v14762_v14, %v2808_v40 }
 0x397   :  { %v14816_v8 = vadd.f32 %v14762_v14, %v2809_v55  ;;  %v14819_v37 = vadd.f32 %v14762_v14, %v2810_v24  ;;  %v14822_v18 = vadd.f32 %v14762_v14, %v2811_v35  ;;  %v14825_v50 = vadd.f32 %v14762_v14, %v2812_v25 }
 0x398   :  { %v14828_v58 = vadd.f32 %v14762_v14, %v2813_v1  ;;  %v14831_v11 = vadd.f32 %v14762_v14, %v2814_v59  ;;  %v14834_v34 = vadd.f32 %v14762_v14, %v2815_v32  ;;  %v14837_v53 = vadd.f32 %v14762_v14, %v2816_v45 }
 0x399   :  { %v14840_v40 = vadd.f32 %v14762_v14, %v2817_v4  ;;  %v14843_v55 = vadd.f32 %v14762_v14, %v2818_v39  ;;  %v14846_v24 = vadd.f32 %v14762_v14, %v2819_v44  ;;  %v14849_v35 = vadd.f32 %v14762_v14, %v2820_v51 }
 0x39a   :  { %v14852_v25 = vadd.f32 %v14762_v14, %v2821_v63  ;;  %v14855_v1 = vadd.f32 %v14762_v14, %v2822_v15  ;;  %v14858_v59 = vadd.f32 %v14762_v14, %v2823_v42  ;;  %v14861_v32 = vadd.f32 %v14762_v14, %v2824_v13 }
 0x39b   :  { %v14864_v45 = vadd.f32 %v14762_v14, %v2825_v29  ;;  %v14867_v4 = vadd.f32 %v14762_v14, %v2826_v7  ;;  %v14870_v39 = vadd.f32 %v14762_v14, %v2827_v6  ;;  %v14873_v44 = vadd.f32 %v14762_v14, %v2828_v36 }
 0x39c   :  { %v14876_v51 = vadd.f32 %v14762_v14, %v2829_v43  ;;  %v14879_v63 = vadd.f32 %v14762_v14, %v2830_v12  ;;  %v14882_v15 = vadd.f32 %v14762_v14, %v2831_v9  ;;  %v14885_v42 = vadd.f32 %v14762_v14, %v2832_v5 }
 0x39d   :  { %19649 = vst [vmem:[#allocation8_spill] sm:$0xff] %v14864_v45  ;;  %19650 = vst [vmem:[#allocation7_spill] sm:$0xff] %v14867_v4  ;;  %v14888_v13 = vadd.f32 %v14762_v14, %v2833_v22  ;;  %v14891_v29 = vadd.f32 %v14762_v14, %v2834_v17  ;;  %v14894_v7 = vadd.f32 %v14762_v14, %v2835_v38  ;;  %v2897_v61 = vrot.slane %v14828_v58, 1 }
 0x39e   :  { %19651 = vst [vmem:[#allocation10_spill] sm:$0xff] %v14870_v39  ;;  %19652 = vst [vmem:[#allocation9_spill] sm:$0xff] %v14873_v44  ;;  %v14897_v6 = vadd.f32 %v14762_v14, %v2836_v47  ;;  %v14900_v36 = vadd.f32 %v14762_v14, %v2837_v23  ;;  %v14903_v43 = vadd.f32 %v14762_v14, %v2838_v10  ;;  %v2898_v23 = vrot.slane %v14831_v11, 1 }
 0x39f   :  { %19653 = vst [vmem:[#allocation12_spill] sm:$0xff] %v14876_v51  ;;  %19654 = vst [vmem:[#allocation11_spill] sm:$0xff] %v14879_v63  ;;  %v14906_v12 = vadd.f32 %v14762_v14, %v2839_v16  ;;  %v14909_v49 = vadd.f32 %v14762_v14, %v2840_v27  ;;  %v14912_v9 = vadd.f32 %v14762_v14, %v2841_v30  ;;  %v2899_v60 = vrot.slane %v14834_v34, 1 }
 0x3a0   :  { %19655 = vst [vmem:[#allocation14_spill] sm:$0xff] %v14882_v15  ;;  %19656 = vst [vmem:[#allocation13_spill] sm:$0xff] %v14885_v42  ;;  %v14915_v3 = vadd.f32 %v14762_v14, %v2842_v20  ;;  %v2896_v14 = vrot.slane %v14825_v50, 1  ;;  %v2900_v10 = vrot.slane %v14837_v53, 1  ;;  %v2901_v16 = vrot.slane %v14840_v40, 1 }
 0x3a1   :  { %19657 = vst [vmem:[#allocation16_spill] sm:$0xff] %v14888_v13  ;;  %19658 = vst [vmem:[#allocation15_spill] sm:$0xff] %v14891_v29  ;;  %v2902_v62 = vrot.slane %v14843_v55, 1  ;;  %v2903_v27 = vrot.slane %v14846_v24, 1  ;;  %v2904_v30 = vrot.slane %v14849_v35, 1  ;;  %v2905_v20 = vrot.slane %v14852_v25, 1 }
 0x3a2   :  { %19659 = vst [vmem:[#allocation18_spill] sm:$0xff] %v14894_v7  ;;  %19660 = vst [vmem:[#allocation17_spill] sm:$0xff] %v14897_v6  ;;  %v2906_v5 = vrot.slane %v14855_v1, 1  ;;  %v2907_v19 = vrot.slane %v14858_v59, 1  ;;  %v2908_v22 = vrot.slane %v14861_v32, 1  ;;  %v2909_v33 = vrot.slane %v14864_v45, 1 }
 0x3a3   :  { %19661 = vst [vmem:[#allocation20_spill] sm:$0xff] %v14900_v36  ;;  %19662 = vst [vmem:[#allocation19_spill] sm:$0xff] %v14903_v43  ;;  %v2910_v17 = vrot.slane %v14867_v4, 1  ;;  %v2911_v54 = vrot.slane %v14870_v39, 1  ;;  %v2912_v38 = vrot.slane %v14873_v44, 1  ;;  %v2913_v2 = vrot.slane %v14876_v51, 1 }
 0x3a4   :  { %19663 = vst [vmem:[#allocation22_spill] sm:$0xff] %v14906_v12  ;;  %19664 = vst [vmem:[#allocation21_spill] sm:$0xff] %v14909_v49  ;;  %v2914_v47 = vrot.slane %v14879_v63, 1  ;;  %v2915_v46 = vrot.slane %v14882_v15, 1  ;;  %v2916_v26 = vrot.slane %v14885_v42, 1  ;;  %v2917_v57 = vrot.slane %v14888_v13, 1 }
 0x3a5   :  { %19665 = vst [vmem:[#allocation25_spill] sm:$0xff] %v14912_v9  ;;  %19666 = vst [vmem:[#allocation23_spill] sm:$0xff] %v14915_v3  ;;  %v2918_v0 = vrot.slane %v14891_v29, 1  ;;  %v2919_v52 = vrot.slane %v14894_v7, 1  ;;  %v2920_v4 = vrot.slane %v14897_v6, 1  ;;  %v2921_v39 = vrot.slane %v14900_v36, 1 }
 0x3a6   :  { %v2922_v44 = vrot.slane %v14903_v43, 1  ;;  %v2923_v51 = vrot.slane %v14906_v12, 1  ;;  %v2924_v63 = vrot.slane %v14909_v49, 1  ;;  %v2925_v15 = vrot.slane %v14912_v9, 1  ;;  %v19667_v45 = vld [vmem:[#allocation5_spill] sm:$0xff] }
 0x3a7   :  { %v2926_v42 = vrot.slane %v14915_v3, 1  ;;  %v14959_v13 = vsel %vm98_vm2, %v2919_v52, %v2920_v4  ;;  %v14963_v7 = vsel %vm98_vm2, %v2918_v0, %v2919_v52  ;;  %v14979_v3 = vsel %vm98_vm2, %v2920_v4, %v2921_v39 }
 0x3a8   :  { %19668 = vst [vmem:[#allocation27_spill] sm:$0xff] %v14959_v13  ;;  %19669 = vst [vmem:[#allocation26_spill] sm:$0xff] %v14963_v7  ;;  %v14967_v36 = vsel %vm98_vm2, %v2923_v51, %v2924_v63  ;;  %v14971_v12 = vsel %vm98_vm2, %v2922_v44, %v2923_v51  ;;  %v14975_v9 = vsel %vm98_vm2, %v2921_v39, %v2922_v44  ;;  %v19694_v6 = vrot.slane %v14804_v28, 1 }
 0x3a9   :  { %19670 = vst [vmem:[#allocation29_spill] sm:$0xff] %v14967_v36  ;;  %19671 = vst [vmem:[#allocation28_spill] sm:$0xff] %v14971_v12  ;;  %v14983_v52 = vsel %vm98_vm2, %v2925_v15, %v2926_v42  ;;  %v14987_v49 = vsel %vm98_vm2, %v2924_v63, %v2925_v15  ;;  %v14991_v51 = vsel %vm98_vm2, %v2917_v57, %v2918_v0  ;;  %v19690_v12 = vrot.slane %v14810_v56, 1 }
 0x3aa   :  { %19672 = vst [vmem:[#allocation30_spill] sm:$0xff] %v14975_v9  ;;  %19673 = vst [vmem:[#allocation33_spill] sm:$0xff] %v14979_v3  ;;  %v14995_v44 = vsel %vm98_vm2, %v2916_v26, %v2917_v57  ;;  %v14999_v4 = vsel %vm98_vm2, %v2915_v46, %v2916_v26  ;;  %v15003_v39 = vsel %vm98_vm2, %v2914_v47, %v2915_v46  ;;  %v19692_v9 = vrot.slane %v14807_v41, 1 }
 0x3ab   :  { %19674 = vst [vmem:[#allocation34_spill] sm:$0xff] %v14983_v52  ;;  %19675 = vst [vmem:[#allocation35_spill] sm:$0xff] %v14987_v49  ;;  %v15007_v63 = vsel %vm98_vm2, %v2913_v2, %v2914_v47  ;;  %v15011_v0 = vsel %vm98_vm2, %v2912_v38, %v2913_v2  ;;  %v15015_v57 = vsel %vm98_vm2, %v2911_v54, %v2912_v38  ;;  %v19684_v52 = vrot.slane %v14819_v37, 1 }
 0x3ac   :  { %19676 = vst [vmem:[#allocation36_spill] sm:$0xff] %v14991_v51  ;;  %19677 = vst [vmem:[#allocation37_spill] sm:$0xff] %v14995_v44  ;;  %v15019_v26 = vsel %vm98_vm2, %v2910_v17, %v2911_v54  ;;  %v15023_v46 = vsel %vm98_vm2, %v2909_v33, %v2910_v17  ;;  %v15027_v15 = vsel %vm98_vm2, %v2908_v22, %v2909_v33  ;;  %v19686_v49 = vrot.slane %v14816_v8, 1 }
 0x3ad   :  { %19678 = vst [vmem:[#allocation38_spill] sm:$0xff] %v14999_v4  ;;  %19679 = vst [vmem:[#allocation39_spill] sm:$0xff] %v15003_v39  ;;  %v15031_v2 = vsel %vm98_vm2, %v2907_v19, %v2908_v22  ;;  %v15035_v38 = vsel %vm98_vm2, %v2906_v5, %v2907_v19  ;;  %v15039_v54 = vsel %vm98_vm2, %v2905_v20, %v2906_v5  ;;  %v19696_v3 = vrot.slane %v14801_v21, 1 }
 0x3ae   :  { %19680 = vst [vmem:[#allocation40_spill] sm:$0xff] %v15007_v63  ;;  %19681 = vst [vmem:[#allocation41_spill] sm:$0xff] %v15011_v0  ;;  %v15043_v17 = vsel %vm98_vm2, %v2904_v30, %v2905_v20  ;;  %v15047_v33 = vsel %vm98_vm2, %v2903_v27, %v2904_v30  ;;  %v15051_v22 = vsel %vm98_vm2, %v2902_v62, %v2903_v27  ;;  %v19682_v20 = vrot.slane %v14822_v18, 1 }
 0x3af   :  { %v15055_v19 = vsel %vm98_vm2, %v2901_v16, %v2902_v62  ;;  %v15059_v5 = vsel %vm98_vm2, %v2900_v10, %v2901_v16  ;;  %v15063_v47 = vsel %vm98_vm2, %v2899_v60, %v2900_v10  ;;  %v15067_v30 = vsel %vm98_vm2, %v2898_v23, %v2899_v60 }
 0x3b0   :  { %v15071_v27 = vsel %vm98_vm2, %v2897_v61, %v2898_v23  ;;  %v15075_v62 = vsel %vm98_vm2, %v2896_v14, %v2897_v61  ;;  %v15081_v16 = vsel %vm98_vm2, %v19682_v20, %v2896_v14  ;;  %v19683_v10 = vmov %v19682_v20 }
 0x3b1   :  { %v15089_v60 = vsel %vm98_vm2, %v19684_v52, %v19683_v10  ;;  %v19685_v23 = vmov %v19684_v52  ;;  %v19687_v36 = vmov %v19686_v49  ;;  %v19688_v14 = vrot.slane %v14813_v48, 1  ;;  %v19714_v0 = vld [vmem:[#allocation33_spill] sm:$0xff] }
 0x3b2   :  { %v2959_v61 = vsel %vm98_vm2, %v19686_v49, %v19685_v23  ;;  %v19691_v10 = vmov %v19690_v12  ;;  %v19693_v23 = vmov %v19692_v9  ;;  %v19698_v13 = vrot.slane %v14798_v31, 1 }
 0x3b3   :  { %v2960_v20 = vsel %vm98_vm2, %v19688_v14, %v19687_v36  ;;  %v19689_v43 = vmov %v19688_v14  ;;  %v2962_v49 = vsel %vm98_vm2, %v19692_v9, %v19691_v10  ;;  %v2963_v36 = vsel %vm98_vm2, %v19694_v6, %v19693_v23 }
 0x3b4   :  { %v2961_v52 = vsel %vm98_vm2, %v19690_v12, %v19689_v43  ;;  %v19695_v14 = vmov %v19694_v6  ;;  %v19697_v12 = vmov %v19696_v3  ;;  %v19699_v10 = vmov %v19698_v13 }
 0x3b5   :  { %v2964_v43 = vsel %vm98_vm2, %v19696_v3, %v19695_v14  ;;  %v2965_v9 = vsel %vm98_vm2, %v19698_v13, %v19697_v12  ;;  %v15137_v29 = vsel %vm98_vm2, %v2926_v42, %v19699_v10  ;;  %v2969_v23 = vmax.f32 %v14804_v28, %v2963_v36  ;;  %v19703_v36 = vld [vmem:[#allocation9_spill] sm:$0xff]  ;;  %v19726_v28 = vld [vmem:[#allocation23_spill] sm:$0xff] }
 0x3b6   :  { %v2968_v6 = vmax.f32 %v14801_v21, %v2964_v43  ;;  %v2967_v7 = vmax.f32 %v14798_v31, %v2965_v9  ;;  %v2970_v3 = vmax.f32 %v14807_v41, %v2962_v49  ;;  %v2971_v14 = vmax.f32 %v14810_v56, %v2961_v52  ;;  %v19702_v52 = vld [vmem:[#allocation10_spill] sm:$0xff]  ;;  %v19711_v49 = vld [vmem:[#allocation15_spill] sm:$0xff]  ;;  %v19715_v10 = vld [vmem:[#allocation17_spill] sm:$0xff] }
 0x3b7   :  { %v2972_v51 = vmax.f32 %v14813_v48, %v2960_v20  ;;  %v2973_v13 = vmax.f32 %v14816_v8, %v2959_v61  ;;  %v2974_v12 = vmax.f32 %v14819_v37, %v15089_v60  ;;  %v2975_v42 = vmax.f32 %v14822_v18, %v15081_v16  ;;  %v19700_v16 = vld [vmem:[#allocation8_spill] sm:$0xff]  ;;  %v19701_v61 = vld [vmem:[#allocation7_spill] sm:$0xff]  ;;  %v19721_v18 = vld [vmem:[#allocation22_spill] sm:$0xff] }
 0x3b8   :  { %v2976_v21 = vmax.f32 %v14825_v50, %v15075_v62  ;;  %v2977_v31 = vmax.f32 %v14828_v58, %v15071_v27  ;;  %v19717_v58 = vld [vmem:[#allocation20_spill] sm:$0xff]  ;;  %v19719_v50 = vld [vmem:[#allocation19_spill] sm:$0xff]  ;;  %v19720_v62 = vld [vmem:[#allocation29_spill] sm:$0xff]  ;;  %v15212_v43 = vmax.f32 %v2967_v7, 0.0  ;;  %v15214_v63 = vmax.f32 %v2968_v6, 0.0 }
 0x3b9   :  { %v19718_v27 = vld [vmem:[#allocation28_spill] sm:$0xff]  ;;  %v19723_v8 = vld [vmem:[#allocation21_spill] sm:$0xff]  ;;  %v19724_v20 = vld [vmem:[#allocation34_spill] sm:$0xff]  ;;  %v15216_v39 = vmax.f32 %v2969_v23, 0.0  ;;  %v15218_v9 = vmax.f32 %v2970_v3, 0.0  ;;  %v15220_v4 = vmax.f32 %v2971_v14, 0.0 }
 0x3ba   :  { %v19725_v56 = vld [vmem:[#allocation25_spill] sm:$0xff]  ;;  %v15222_v44 = vmax.f32 %v2972_v51, 0.0  ;;  %v19412_v37 = vrot.slane %v15212_v43, 2  ;;  %v3049_v60 = vrot.slane %v15214_v63, 2  ;;  %v15232_v23 = vmax.f32 %v2973_v13, 0.0  ;;  %v15241_v14 = vld [vmem:[%s19322_s1 + $0x38] sm:$0xff] }
 0x3bb   :  { %19727 = vst [vmem:[#allocation8_spill] sm:$0xff] %v15218_v9  ;;  %19728 = vst [vmem:[#allocation7_spill] sm:$0xff] %v15220_v4  ;;  %v3050_v48 = vrot.slane %v15216_v39, 2  ;;  %v3051_v7 = vrot.slane %v15218_v9, 2  ;;  %v3052_v3 = vrot.slane %v15220_v4, 2  ;;  %v15243_v41 = vmax.f32 %v2974_v12, 0.0 }
 0x3bc   :  { %v3126_v6 = vsel %vm958_vm3, %v19412_v37, %v3049_v60  ;;  %v3053_v37 = vrot.slane %v15222_v44, 2  ;;  %v3054_v12 = vrot.slane %v15232_v23, 2  ;;  %v15257_v9 = vmax.f32 %v2976_v21, 0.0 }
 0x3bd   :  { %11566 = vmatprep.mubr.msk.f32.mxu1 %vm3129_vm8, %v3126_v6  ;;  %v3125_v51 = vsel %vm958_vm3, %v3049_v60, %v3050_v48  ;;  %v3124_v13 = vsel %vm958_vm3, %v3050_v48, %v3051_v7  ;;  %v19729_v6 = vld [vmem:[#allocation32_spill] sm:$0xff]  ;;  %v15252_v60 = vmax.f32 %v2975_v42, 0.0  ;;  %v3123_v4 = vsel %vm958_vm3, %v3051_v7, %v3052_v3 }
 0x3be   :  { %11567 = vmatmul.mubr.msk.f32.vlgmr.msra.gmra.mrb[8].mxu1 %vm3129_vm8, %v3125_v51  ;;  %v3122_v48 = vsel %vm958_vm3, %v3052_v3, %v3053_v37  ;;  %v3055_v51 = vrot.slane %v15243_v41, 2  ;;  %v3121_v42 = vsel %vm958_vm3, %v3053_v37, %v3054_v12  ;;  %v19730_v21 = vmax.f32 %v14831_v11, %v15067_v30 }
 0x3bf   :  { %11569 = vmatprep.mubr.msk.f32.mxu1 %vm3129_vm8, %v3124_v13  ;;  %11627 = vmatpush3.msra.mxu1 %v19729_v6  ;;  %v15264_v13 = vmax.f32 %v2977_v31, 0.0  ;;  %v3056_v7 = vrot.slane %v15252_v60, 2  ;;  %v3057_v3 = vrot.slane %v15257_v9, 2  ;;  %v19731_v31 = vmax.f32 %v14834_v34, %v15063_v47 }
 0x3c0   :  { %11688 = vmatprep.subr.mxu1 %v15241_v14  ;;  %v15272_v6 = vmax.f32 %v19730_v21, 0.0  ;;  %v19732_v30 = vmax.f32 %v14837_v53, %v15059_v5  ;;  %v19733_v34 = vmax.f32 %v14840_v40, %v15055_v19  ;;  %v19734_v5 = vmax.f32 %v14843_v55, %v15051_v22 }
 0x3c1   :  { %v15282_v37 = vmax.f32 %v19731_v31, 0.0  ;;  %v3058_v11 = vrot.slane %v15264_v13, 2  ;;  %v19735_v40 = vmax.f32 %v14846_v24, %v15047_v33  ;;  %v19736_v22 = vmax.f32 %v14849_v35, %v15043_v17 }
 0x3c2   :  { %11570 = vmatmul.mubr.msk.f32.gmra.mrb[10].mxu1 %vm3129_vm8, %v3123_v4  ;;  %v3120_v4 = vsel %vm958_vm3, %v3054_v12, %v3055_v51  ;;  %v3118_v12 = vsel %vm958_vm3, %v3056_v7, %v3057_v3  ;;  %v3059_v21 = vrot.slane %v15272_v6, 2  ;;  %v15300_v47 = vmax.f32 %v19733_v34, 0.0 }
 0x3c3   :  { %11572 = vmatprep.mubr.msk.f32.mxu1 %vm3129_vm8, %v3122_v48  ;;  %v3119_v48 = vsel %vm958_vm3, %v3055_v51, %v3056_v7  ;;  %v3117_v51 = vsel %vm958_vm3, %v3057_v3, %v3058_v11  ;;  %v3060_v53 = vrot.slane %v15282_v37, 2  ;;  %v15318_v19 = vmax.f32 %v19735_v40, 0.0 }
 0x3c4   :  { %v3116_v7 = vsel %vm958_vm3, %v3058_v11, %v3059_v21  ;;  %v3062_v55 = vrot.slane %v15300_v47, 2  ;;  %v19737_v24 = vmax.f32 %v14852_v25, %v15039_v54  ;;  %v19738_v17 = vmax.f32 %v14855_v1, %v15035_v38 }
 0x3c5   :  { %v3115_v3 = vsel %vm958_vm3, %v3059_v21, %v3060_v53  ;;  %v3064_v35 = vrot.slane %v15318_v19, 2  ;;  %v19739_v25 = vmax.f32 %v14858_v59, %v15031_v2  ;;  %v19740_v38 = vmax.f32 %v14861_v32, %v15027_v15 }
 0x3c6   :  { %11573 = vmatmul.mubr.msk.f32.gmra.mrb[12].mxu1 %vm3129_vm8, %v3121_v42  ;;  %v15290_v42 = vmax.f32 %v19732_v30, 0.0  ;;  %v15336_v33 = vmax.f32 %v19737_v24, 0.0  ;;  %v15344_v21 = vmax.f32 %v19738_v17, 0.0  ;;  %v19741_v59 = vmax.f32 %v19700_v16, %v15023_v46 }
 0x3c7   :  { %11575 = vmatprep.mubr.msk.f32.mxu1 %vm3129_vm8, %v3120_v4  ;;  %v15308_v4 = vmax.f32 %v19734_v5, 0.0  ;;  %v15354_v54 = vmax.f32 %v19739_v25, 0.0  ;;  %v15362_v5 = vmax.f32 %v19740_v38, 0.0  ;;  %v19742_v15 = vmax.f32 %v19701_v61, %v15019_v26  ;;  %v19744_v61 = vld [vmem:[#allocation41_spill] sm:$0xff]  ;;  %v19749_v25 = vld [vmem:[#allocation11_spill] sm:$0xff] }
 0x3c8   :  { %v3061_v31 = vrot.slane %v15290_v42, 2  ;;  %v3066_v1 = vrot.slane %v15336_v33, 2  ;;  %v15372_v2 = vmax.f32 %v19741_v59, 0.0  ;;  %v19743_v46 = vmax.f32 %v19702_v52, %v15015_v57  ;;  %v19746_v57 = vld [vmem:[#allocation12_spill] sm:$0xff]  ;;  %v19752_v59 = vld [vmem:[#allocation14_spill] sm:$0xff] }
 0x3c9   :  { %v3063_v30 = vrot.slane %v15308_v4, 2  ;;  %v3068_v32 = vrot.slane %v15354_v54, 2  ;;  %v19747_v52 = vld [vmem:[#allocation40_spill] sm:$0xff]  ;;  %vm4446_vm9 = vcmp.lt.s32.totalorder %v19667_v45, 2 }
 0x3ca   :  { %11576 = vmatmul.mubr.msk.f32.gmra.mrb[14].mxu1 %vm3129_vm8, %v3119_v48  ;;  %v15326_v48 = vmax.f32 %v19736_v22, 0.0  ;;  %v3114_v11 = vsel %vm958_vm3, %v3060_v53, %v3061_v31  ;;  %v3069_v22 = vrot.slane %v15362_v5, 2  ;;  %v15390_v16 = vmax.f32 %v19743_v46, 0.0  ;;  %v19755_v46 = vld [vmem:[#allocation13_spill] sm:$0xff] }
 0x3cb   :  { %11578 = vmatprep.mubr.msk.f32.mxu1 %vm3129_vm8, %v3118_v12  ;;  %v3113_v12 = vsel %vm958_vm3, %v3061_v31, %v3062_v55  ;;  %v3112_v34 = vsel %vm958_vm3, %v3062_v55, %v3063_v30  ;;  %v3111_v53 = vsel %vm958_vm3, %v3063_v30, %v3064_v35  ;;  %v3067_v31 = vrot.slane %v15344_v21, 2 }
 0x3cc   :  { %v3070_v26 = vrot.slane %v15372_v2, 2  ;;  %v19745_v30 = vmax.f32 %v19703_v36, %v19744_v61  ;;  %v19748_v17 = vmax.f32 %v19746_v57, %v19747_v52  ;;  %v3072_v36 = vrot.slane %v15390_v16, 2  ;;  %v19758_v57 = vld [vmem:[#allocation16_spill] sm:$0xff] }
 0x3cd   :  { %v3108_v55 = vsel %vm958_vm3, %v3066_v1, %v3067_v31  ;;  %v19759_v52 = vld [vmem:[#allocation36_spill] sm:$0xff] }
 0x3ce   :  { %11579 = vmatmul.mubr.msk.f32.gmra.mrb[16].mxu1 %vm3129_vm8, %v3117_v51  ;;  %v3065_v51 = vrot.slane %v15326_v48, 2  ;;  %v15398_v24 = vmax.f32 %v19745_v30, 0.0 }
 0x3cf   :  { %11581 = vmatprep.mubr.msk.f32.mxu1 %vm3129_vm8, %v3116_v7 }
 0x3d0   :  { %v3110_v7 = vsel %vm958_vm3, %v3064_v35, %v3065_v51  ;;  %v3109_v40 = vsel %vm958_vm3, %v3065_v51, %v3066_v1  ;;  %v3105_v51 = vsel %vm958_vm3, %v3069_v22, %v3070_v26 }
 0x3d2   :  { %11582 = vmatmul.mubr.msk.f32.gmra.mrb[18].mxu1 %vm3129_vm8, %v3115_v3  ;;  %v15380_v3 = vmax.f32 %v19742_v15, 0.0 }
 0x3d3   :  { %11584 = vmatprep.mubr.msk.f32.mxu1 %vm3129_vm8, %v3114_v11  ;;  %v3107_v11 = vsel %vm958_vm3, %v3067_v31, %v3068_v32  ;;  %v3073_v31 = vrot.slane %v15398_v24, 2 }
 0x3d4   :  { %v3071_v35 = vrot.slane %v15380_v3, 2 }
 0x3d6   :  { %11585 = vmatmul.mubr.msk.f32.gmra.mrb[20].mxu1 %vm3129_vm8, %v3113_v12  ;;  %v3106_v12 = vsel %vm958_vm3, %v3068_v32, %v3069_v22 }
 0x3d7   :  { %11587 = vmatprep.mubr.msk.f32.mxu1 %vm3129_vm8, %v3112_v34  ;;  %v15408_v34 = vmax.f32 %v19748_v17, 0.0  ;;  %v19760_v17 = vmax.f32 %v19758_v57, %v19759_v52  ;;  %v4406_v57 = vrot.slane %v15212_v43, 6  ;;  %v19768_v52 = vld [vmem:[#allocation30_spill] sm:$0xff] }
 0x3d9   :  { %v3074_v22 = vrot.slane %v15408_v34, 2 }
 0x3da   :  { %11588 = vmatmul.mubr.msk.f32.gmra.mrb[22].mxu1 %vm3129_vm8, %v3111_v53  ;;  %v19750_v53 = vld [vmem:[#allocation39_spill] sm:$0xff] }
 0x3db   :  { %11590 = vmatprep.mubr.msk.f32.mxu1 %vm3129_vm8, %v3110_v7  ;;  %v19751_v1 = vmax.f32 %v19749_v25, %v19750_v53  ;;  %v3104_v7 = vsel %vm958_vm3, %v3070_v26, %v3071_v35  ;;  %v3102_v26 = vsel %vm958_vm3, %v3072_v36, %v3073_v31  ;;  %v19761_v53 = vld [vmem:[#allocation26_spill] sm:$0xff] }
 0x3dd   :  { %v15416_v38 = vmax.f32 %v19751_v1, 0.0  ;;  %v19762_v1 = vmax.f32 %v19711_v49, %v19761_v53 }
 0x3de   :  { %11591 = vmatmul.mubr.msk.f32.gmra.mrb[24].mxu1 %vm3129_vm8, %v3109_v40  ;;  %v19753_v40 = vld [vmem:[#allocation38_spill] sm:$0xff] }
 0x3df   :  { %11593 = vmatprep.mubr.msk.f32.mxu1 %vm3129_vm8, %v3108_v55  ;;  %v19754_v32 = vmax.f32 %v19752_v59, %v19753_v40  ;;  %v3103_v55 = vsel %vm958_vm3, %v3071_v35, %v3072_v36  ;;  %v15444_v35 = vmax.f32 %v19760_v17, 0.0  ;;  %v19763_v40 = vmax.f32 %v19726_v28, %v15137_v29 }
 0x3e1   :  { %v15426_v15 = vmax.f32 %v19754_v32, 0.0  ;;  %v19764_v32 = vld [vmem:[#allocation18_spill] sm:$0xff] }
 0x3e2   :  { %11594 = vmatmul.mubr.msk.f32.gmra.mrb[26].mxu1 %vm3129_vm8, %v3107_v11  ;;  %v19756_v11 = vld [vmem:[#allocation37_spill] sm:$0xff] }
 0x3e3   :  { %11596 = vmatprep.mubr.msk.f32.mxu1 %vm3129_vm8, %v3106_v12  ;;  %v19757_v61 = vmax.f32 %v19755_v46, %v19756_v11  ;;  %v3075_v12 = vrot.slane %v15416_v38, 2  ;;  %v3076_v25 = vrot.slane %v15426_v15, 2 }
 0x3e5   :  { %v15434_v30 = vmax.f32 %v19757_v61, 0.0  ;;  %v3100_v36 = vsel %vm958_vm3, %v3074_v22, %v3075_v12  ;;  %v3099_v11 = vsel %vm958_vm3, %v3075_v12, %v3076_v25  ;;  %v3078_v61 = vrot.slane %v15444_v35, 2 }
 0x3e6   :  { %11597 = vmatmul.mubr.msk.f32.gmra.mrb[28].mxu1 %vm3129_vm8, %v3105_v51  ;;  %v3101_v51 = vsel %vm958_vm3, %v3073_v31, %v3074_v22  ;;  %v15462_v31 = vmax.f32 %v19763_v40, 0.0  ;;  %v19767_v22 = vmax.f32 %v19715_v10, %v19714_v0  ;;  %v19769_v0 = vmax.f32 %v19717_v58, %v19768_v52 }
 0x3e7   :  { %11599 = vmatprep.mubr.msk.f32.mxu1 %vm3129_vm8, %v3104_v7  ;;  %v15452_v7 = vmax.f32 %v19762_v1, 0.0  ;;  %v3077_v59 = vrot.slane %v15434_v30, 2 }
 0x3e8   :  { %v4445_v12 = vrot.slane %v15462_v31, 6  ;;  %v15488_v10 = vmax.f32 %v19769_v0, 0.0  ;;  %v3087_v0 = vrot.slane %v15462_v31, 2 }
 0x3e9   :  { %v3098_v29 = vsel %vm958_vm3, %v3076_v25, %v3077_v59  ;;  %v3079_v28 = vrot.slane %v15452_v7, 2  ;;  %v3097_v17 = vsel %vm958_vm3, %v3077_v59, %v3078_v61  ;;  %v19770_v25 = vmax.f32 %v19719_v50, %v19718_v27 }
 0x3ea   :  { %11600 = vmatmul.mubr.msk.f32.gmra.mrb[30].mxu1 %vm3129_vm8, %v3103_v55  ;;  %v19765_v55 = vld [vmem:[#allocation27_spill] sm:$0xff]  ;;  %v15508_v58 = vsel %vm4446_vm9, %v4445_v12, %v4406_v57  ;;  %v19771_v50 = vmax.f32 %v19721_v18, %v19720_v62  ;;  %v3082_v40 = vrot.slane %v15488_v10, 2  ;;  %v19774_v18 = vmax.f32 %v19725_v56, %v19724_v20 }
 0x3eb   :  { %11602 = vmatprep.mubr.msk.f32.mxu1 %vm3129_vm8, %v3102_v26  ;;  %v19766_v46 = vmax.f32 %v19764_v32, %v19765_v55  ;;  %v15475_v26 = vmax.f32 %v19767_v22, 0.0  ;;  %v15496_v53 = vmax.f32 %v19770_v25, 0.0  ;;  %v3096_v1 = vsel %vm958_vm3, %v3078_v61, %v3079_v28  ;;  %v19772_v32 = vld [vmem:[#allocation35_spill] sm:$0xff] }
 0x3ec   :  { %v15514_v27 = vmax.f32 %v19771_v50, 0.0  ;;  %v19773_v55 = vmax.f32 %v19723_v8, %v19772_v32  ;;  %v15532_v62 = vmax.f32 %v19774_v18, 0.0  ;;  %v19775_v25 = vrot.slane %v15212_v43, 2  ;;  %v19776_v50 = vld [vmem:[#allocation8_spill] sm:$0xff] }
 0x3ed   :  { %v15467_v49 = vmax.f32 %v19766_v46, 0.0  ;;  %v3083_v61 = vrot.slane %v15496_v53, 2  ;;  %v3902_v32 = vrot.slane %v15216_v39, 4 }
 0x3ee   :  { %11603 = vmatmul.mubr.msk.f32.gmra.mrb[32].mxu1 %vm3129_vm8, %v3101_v51  ;;  %v15522_v46 = vmax.f32 %v19773_v55, 0.0  ;;  %v3084_v8 = vrot.slane %v15514_v27, 2  ;;  %v3086_v56 = vrot.slane %v15532_v62, 2 }
 0x3ef   :  { %11605 = vmatprep.mubr.msk.f32.mxu1 %vm3129_vm8, %v3100_v36  ;;  %v3080_v51 = vrot.slane %v15467_v49, 2  ;;  %v3081_v36 = vrot.slane %v15475_v26, 2 }
 0x3f0   :  { %v3091_v52 = vsel %vm958_vm3, %v3083_v61, %v3084_v8 }
 0x3f1   :  { %v3095_v59 = vsel %vm958_vm3, %v3079_v28, %v3080_v51  ;;  %v3093_v22 = vsel %vm958_vm3, %v3081_v36, %v3082_v40  ;;  %v3085_v28 = vrot.slane %v15522_v46, 2 }
 0x3f2   :  { %11606 = vmatmul.mubr.msk.f32.gmra.mrb[34].mxu1 %vm3129_vm8, %v3099_v11  ;;  %v3094_v11 = vsel %vm958_vm3, %v3080_v51, %v3081_v36  ;;  %v3088_v51 = vsel %vm958_vm3, %v3086_v56, %v3087_v0  ;;  %v4487_v36 = vld [vmem:[%s19322_s1 + $0x40] sm:$0xff] }
 0x3f3   :  { %11608 = vmatprep.mubr.msk.f32.mxu1 %vm3129_vm8, %v3098_v29  ;;  %v3092_v29 = vsel %vm958_vm3, %v3082_v40, %v3083_v61  ;;  %v3090_v20 = vsel %vm958_vm3, %v3084_v8, %v3085_v28  ;;  %v3901_v40 = vrot.slane %v15214_v63, 4 }
 0x3f5   :  { %v3977_v61 = vsel %vm1978_vm5, %v3901_v40, %v3902_v32 }
 0x3f6   :  { %11609 = vmatmul.mubr.msk.f32.gmra.mrb[36].mxu1 %vm3129_vm8, %v3097_v17  ;;  %v3089_v17 = vsel %vm958_vm3, %v3085_v28, %v3086_v56 }
 0x3f7   :  { %11611 = vmatprep.mubr.msk.f32.mxu1 %vm3129_vm8, %v3096_v1  ;;  %v3127_v1 = vsel %vm958_vm3, %v3087_v0, %v19775_v25  ;;  %v3909_v25 = vrot.slane %v15257_v9, 4 }
 0x3fa   :  { %11612 = vmatmul.mubr.msk.f32.gmra.mrb[38].mxu1 %vm3129_vm8, %v3095_v59  ;;  %v19777_v59 = vld [vmem:[#allocation7_spill] sm:$0xff] }
 0x3fb   :  { %11614 = vmatprep.mubr.msk.f32.mxu1 %vm3129_vm8, %v3094_v11  ;;  %v3903_v11 = vrot.slane %v19776_v50, 4  ;;  %v3904_v18 = vrot.slane %v19777_v59, 4 }
 0x3fd   :  { %v3976_v8 = vsel %vm1978_vm5, %v3902_v32, %v3903_v11  ;;  %v3975_v28 = vsel %vm1978_vm5, %v3903_v11, %v3904_v18  ;;  %v3911_v32 = vrot.slane %v15272_v6, 4  ;;  %v3912_v11 = vrot.slane %v15282_v37, 4 }
 0x3fe   :  { %11615 = vmatmul.mubr.msk.f32.gmra.mrb[40].mxu1 %vm3129_vm8, %v3093_v22  ;;  %v15660_v22 = vld [vmem:[%s19322_s1 + $0x48] sm:$0xff] }
 0x3ff   :  { %11617 = vmatprep.mubr.msk.f32.mxu1 %vm3129_vm8, %v3092_v29  ;;  %v3905_v29 = vrot.slane %v15222_v44, 4 }
 0x401   :  { %v3974_v56 = vsel %vm1978_vm5, %v3904_v18, %v3905_v29  ;;  %v3913_v18 = vrot.slane %v15290_v42, 4 }
 0x402   :  { %11618 = vmatmul.mubr.msk.f32.gmra.mrb[42].mxu1 %vm3129_vm8, %v3091_v52  ;;  %v3906_v52 = vrot.slane %v15232_v23, 4 }
 0x403   :  { %11620 = vmatprep.mubr.msk.f32.mxu1 %vm3129_vm8, %v3090_v20  ;;  %v3907_v20 = vrot.slane %v15243_v41, 4 }
 0x404   :  { %v3973_v0 = vsel %vm1978_vm5, %v3905_v29, %v3906_v52  ;;  %v3914_v29 = vrot.slane %v15300_v47, 4 }
 0x406   :  { %11621 = vmatmul.mubr.msk.f32.gmra.mrb[44].mxu1 %vm3129_vm8, %v3089_v17  ;;  %v3908_v17 = vrot.slane %v15252_v60, 4 }
 0x407   :  { %11623 = vmatprep.mubr.msk.f32.mxu1 %vm3129_vm8, %v3088_v51  ;;  %v3972_v51 = vsel %vm1978_vm5, %v3906_v52, %v3907_v20  ;;  %v3915_v52 = vrot.slane %v15308_v4, 4 }
 0x40a   :  { %11624 = vmatmul.mubr.msk.f32.gmra.mrb[46].mxu1 %vm3129_vm8, %v3127_v1  ;;  %v3971_v1 = vsel %vm1978_vm5, %v3907_v20, %v3908_v17  ;;  %v3916_v20 = vrot.slane %v15318_v19, 4 }
 0x40b   :  { %11628 = vmatprep.mubr.msk.f32.mxu1 %vm3129_vm8, %v15212_v43 }
 0x40e   :  { %11629 = vmatmul.mubr.msk.f32.vlgmr.msra.gmra.mrb[8].mxu1 %vm3129_vm8, %v15214_v63 }
 0x40f   :  { %11631 = vmatprep.mubr.msk.f32.mxu1 %vm3129_vm8, %v15216_v39  ;;  %11689 = vmatpush3.msra.mxu1 %v15241_v14  ;;  %v3900_v14 = vrot.slane %v15212_v43, 4 }
 0x410   :  { %11750 = vmatprep.subr.mxu1 %v4487_v36 }
 0x411   :  { %v3978_v55 = vsel %vm1978_vm5, %v3900_v14, %v3901_v40  ;;  %v3970_v40 = vsel %vm1978_vm5, %v3908_v17, %v3909_v25  ;;  %v3917_v17 = vrot.slane %v15326_v48, 4 }
 0x412   :  { %11632 = vmatmul.mubr.msk.f32.gmra.mrb[10].mxu1 %vm3129_vm8, %v19776_v50 }
 0x413   :  { %11634 = vmatprep.mubr.msk.f32.mxu1 %vm3129_vm8, %v19777_v59 }
 0x416   :  { %11635 = vmatmul.mubr.msk.f32.gmra.mrb[12].mxu1 %vm3129_vm8, %v15222_v44 }
 0x417   :  { %11637 = vmatprep.mubr.msk.f32.mxu1 %vm3129_vm8, %v15232_v23 }
 0x41a   :  { %11638 = vmatmul.mubr.msk.f32.gmra.mrb[14].mxu1 %vm3129_vm8, %v15243_v41 }
 0x41b   :  { %11640 = vmatprep.mubr.msk.f32.mxu1 %vm3129_vm8, %v15252_v60 }
 0x41e   :  { %11641 = vmatmul.mubr.msk.f32.gmra.mrb[16].mxu1 %vm3129_vm8, %v15257_v9 }
 0x41f   :  { %11643 = vmatprep.mubr.msk.f32.mxu1 %vm3129_vm8, %v15264_v13 }
 0x422   :  { %11644 = vmatmul.mubr.msk.f32.gmra.mrb[18].mxu1 %vm3129_vm8, %v15272_v6 }
 0x423   :  { %11646 = vmatprep.mubr.msk.f32.mxu1 %vm3129_vm8, %v15282_v37 }
 0x426   :  { %11647 = vmatmul.mubr.msk.f32.gmra.mrb[20].mxu1 %vm3129_vm8, %v15290_v42 }
 0x427   :  { %11649 = vmatprep.mubr.msk.f32.mxu1 %vm3129_vm8, %v15300_v47 }
 0x42a   :  { %11650 = vmatmul.mubr.msk.f32.gmra.mrb[22].mxu1 %vm3129_vm8, %v15308_v4 }
 0x42b   :  { %11652 = vmatprep.mubr.msk.f32.mxu1 %vm3129_vm8, %v15318_v19 }
 0x42e   :  { %11653 = vmatmul.mubr.msk.f32.gmra.mrb[24].mxu1 %vm3129_vm8, %v15326_v48 }
 0x42f   :  { %11655 = vmatprep.mubr.msk.f32.mxu1 %vm3129_vm8, %v15336_v33 }
 0x432   :  { %11656 = vmatmul.mubr.msk.f32.gmra.mrb[26].mxu1 %vm3129_vm8, %v15344_v21 }
 0x433   :  { %11658 = vmatprep.mubr.msk.f32.mxu1 %vm3129_vm8, %v15354_v54 }
 0x436   :  { %11659 = vmatmul.mubr.msk.f32.gmra.mrb[28].mxu1 %vm3129_vm8, %v15362_v5 }
 0x437   :  { %11661 = vmatprep.mubr.msk.f32.mxu1 %vm3129_vm8, %v15372_v2 }
 0x43a   :  { %11662 = vmatmul.mubr.msk.f32.gmra.mrb[30].mxu1 %vm3129_vm8, %v15380_v3 }
 0x43b   :  { %11664 = vmatprep.mubr.msk.f32.mxu1 %vm3129_vm8, %v15390_v16 }
 0x43e   :  { %11665 = vmatmul.mubr.msk.f32.gmra.mrb[32].mxu1 %vm3129_vm8, %v15398_v24 }
 0x43f   :  { %11667 = vmatprep.mubr.msk.f32.mxu1 %vm3129_vm8, %v15408_v34 }
 0x442   :  { %11668 = vmatmul.mubr.msk.f32.gmra.mrb[34].mxu1 %vm3129_vm8, %v15416_v38 }
 0x443   :  { %11670 = vmatprep.mubr.msk.f32.mxu1 %vm3129_vm8, %v15426_v15 }
 0x446   :  { %11671 = vmatmul.mubr.msk.f32.gmra.mrb[36].mxu1 %vm3129_vm8, %v15434_v30 }
 0x447   :  { %11673 = vmatprep.mubr.msk.f32.mxu1 %vm3129_vm8, %v15444_v35 }
 0x44a   :  { %11674 = vmatmul.mubr.msk.f32.gmra.mrb[38].mxu1 %vm3129_vm8, %v15452_v7 }
 0x44b   :  { %11676 = vmatprep.mubr.msk.f32.mxu1 %vm3129_vm8, %v15467_v49 }
 0x44e   :  { %11677 = vmatmul.mubr.msk.f32.gmra.mrb[40].mxu1 %vm3129_vm8, %v15475_v26 }
 0x44f   :  { %11679 = vmatprep.mubr.msk.f32.mxu1 %vm3129_vm8, %v15488_v10 }
 0x452   :  { %11680 = vmatmul.mubr.msk.f32.gmra.mrb[42].mxu1 %vm3129_vm8, %v15496_v53 }
 0x453   :  { %11682 = vmatprep.mubr.msk.f32.mxu1 %vm3129_vm8, %v15514_v27 }
 0x456   :  { %11683 = vmatmul.mubr.msk.f32.gmra.mrb[44].mxu1 %vm3129_vm8, %v15522_v46 }
 0x457   :  { %11685 = vmatprep.mubr.msk.f32.mxu1 %vm3129_vm8, %v15532_v62 }
 0x45a   :  { %11686 = vmatmul.mubr.msk.f32.gmra.mrb[46].mxu1 %vm3129_vm8, %v15462_v31 }
 0x45b   :  { %11690 = vmatprep.mubr.msk.f32.mxu1 %vm3129_vm8, %v3978_v55 }
 0x45e   :  { %11691 = vmatmul.mubr.msk.f32.vlgmr.msra.gmra.mrb[8].mxu1 %vm3129_vm8, %v3977_v61 }
 0x45f   :  { %11693 = vmatprep.mubr.msk.f32.mxu1 %vm3129_vm8, %v3976_v8  ;;  %11751 = vmatpush3.msra.mxu1 %v4487_v36  ;;  %v3910_v36 = vrot.slane %v15264_v13, 4  ;;  %v3967_v8 = vsel %vm1978_vm5, %v3911_v32, %v3912_v11 }
 0x460   :  { %11812 = vmatprep.subr.mxu1 %v15660_v22 }
 0x461   :  { %v3969_v55 = vsel %vm1978_vm5, %v3909_v25, %v3910_v36  ;;  %v3968_v61 = vsel %vm1978_vm5, %v3910_v36, %v3911_v32  ;;  %v3918_v25 = vrot.slane %v15336_v33, 4  ;;  %v3919_v36 = vrot.slane %v15344_v21, 4 }
 0x462   :  { %11694 = vmatmul.mubr.msk.f32.gmra.mrb[10].mxu1 %vm3129_vm8, %v3975_v28  ;;  %v3966_v28 = vsel %vm1978_vm5, %v3912_v11, %v3913_v18  ;;  %v3920_v32 = vrot.slane %v15354_v54, 4  ;;  %v3921_v11 = vrot.slane %v15362_v5, 4 }
 0x463   :  { %11696 = vmatprep.mubr.msk.f32.mxu1 %vm3129_vm8, %v3974_v56  ;;  %v3965_v56 = vsel %vm1978_vm5, %v3913_v18, %v3914_v29  ;;  %v3922_v18 = vrot.slane %v15372_v2, 4 }
 0x466   :  { %11697 = vmatmul.mubr.msk.f32.gmra.mrb[12].mxu1 %vm3129_vm8, %v3973_v0  ;;  %v3964_v0 = vsel %vm1978_vm5, %v3914_v29, %v3915_v52  ;;  %v3923_v29 = vrot.slane %v15380_v3, 4 }
 0x467   :  { %11699 = vmatprep.mubr.msk.f32.mxu1 %vm3129_vm8, %v3972_v51  ;;  %v3963_v51 = vsel %vm1978_vm5, %v3915_v52, %v3916_v20  ;;  %v3924_v52 = vrot.slane %v15390_v16, 4 }
 0x46a   :  { %11700 = vmatmul.mubr.msk.f32.gmra.mrb[14].mxu1 %vm3129_vm8, %v3971_v1  ;;  %v3962_v1 = vsel %vm1978_vm5, %v3916_v20, %v3917_v17  ;;  %v3925_v20 = vrot.slane %v15398_v24, 4 }
 0x46b   :  { %11702 = vmatprep.mubr.msk.f32.mxu1 %vm3129_vm8, %v3970_v40  ;;  %v3961_v40 = vsel %vm1978_vm5, %v3917_v17, %v3918_v25  ;;  %v3926_v17 = vrot.slane %v15408_v34, 4 }
 0x46e   :  { %11703 = vmatmul.mubr.msk.f32.gmra.mrb[16].mxu1 %vm3129_vm8, %v3969_v55  ;;  %v3960_v55 = vsel %vm1978_vm5, %v3918_v25, %v3919_v36  ;;  %v3927_v25 = vrot.slane %v15416_v38, 4 }
 0x46f   :  { %11705 = vmatprep.mubr.msk.f32.mxu1 %vm3129_vm8, %v3968_v61  ;;  %v3959_v61 = vsel %vm1978_vm5, %v3919_v36, %v3920_v32  ;;  %v3928_v36 = vrot.slane %v15426_v15, 4 }
 0x472   :  { %11706 = vmatmul.mubr.msk.f32.gmra.mrb[18].mxu1 %vm3129_vm8, %v3967_v8  ;;  %v3958_v8 = vsel %vm1978_vm5, %v3920_v32, %v3921_v11  ;;  %v3929_v32 = vrot.slane %v15434_v30, 4 }
 0x473   :  { %11708 = vmatprep.mubr.msk.f32.mxu1 %vm3129_vm8, %v3966_v28  ;;  %v3957_v28 = vsel %vm1978_vm5, %v3921_v11, %v3922_v18  ;;  %v3930_v11 = vrot.slane %v15444_v35, 4 }
 0x476   :  { %11709 = vmatmul.mubr.msk.f32.gmra.mrb[20].mxu1 %vm3129_vm8, %v3965_v56  ;;  %v3956_v56 = vsel %vm1978_vm5, %v3922_v18, %v3923_v29  ;;  %v3931_v18 = vrot.slane %v15452_v7, 4 }
 0x477   :  { %11711 = vmatprep.mubr.msk.f32.mxu1 %vm3129_vm8, %v3964_v0  ;;  %v3955_v0 = vsel %vm1978_vm5, %v3923_v29, %v3924_v52  ;;  %v3932_v29 = vrot.slane %v15467_v49, 4 }
 0x47a   :  { %11712 = vmatmul.mubr.msk.f32.gmra.mrb[22].mxu1 %vm3129_vm8, %v3963_v51  ;;  %v3954_v51 = vsel %vm1978_vm5, %v3924_v52, %v3925_v20  ;;  %v3933_v52 = vrot.slane %v15475_v26, 4 }
 0x47b   :  { %11714 = vmatprep.mubr.msk.f32.mxu1 %vm3129_vm8, %v3962_v1  ;;  %v3953_v1 = vsel %vm1978_vm5, %v3925_v20, %v3926_v17  ;;  %v3934_v20 = vrot.slane %v15488_v10, 4 }
 0x47e   :  { %11715 = vmatmul.mubr.msk.f32.gmra.mrb[24].mxu1 %vm3129_vm8, %v3961_v40  ;;  %v3952_v40 = vsel %vm1978_vm5, %v3926_v17, %v3927_v25  ;;  %v3935_v17 = vrot.slane %v15496_v53, 4 }
 0x47f   :  { %11717 = vmatprep.mubr.msk.f32.mxu1 %vm3129_vm8, %v3960_v55  ;;  %v3951_v55 = vsel %vm1978_vm5, %v3927_v25, %v3928_v36  ;;  %v3936_v25 = vrot.slane %v15514_v27, 4 }
 0x482   :  { %11718 = vmatmul.mubr.msk.f32.gmra.mrb[26].mxu1 %vm3129_vm8, %v3959_v61  ;;  %v3950_v61 = vsel %vm1978_vm5, %v3928_v36, %v3929_v32  ;;  %v3937_v36 = vrot.slane %v15522_v46, 4 }
 0x483   :  { %11720 = vmatprep.mubr.msk.f32.mxu1 %vm3129_vm8, %v3958_v8  ;;  %v3949_v8 = vsel %vm1978_vm5, %v3929_v32, %v3930_v11  ;;  %v3938_v32 = vrot.slane %v15532_v62, 4 }
 0x486   :  { %11721 = vmatmul.mubr.msk.f32.gmra.mrb[28].mxu1 %vm3129_vm8, %v3957_v28  ;;  %v3948_v28 = vsel %vm1978_vm5, %v3930_v11, %v3931_v18  ;;  %v3939_v11 = vrot.slane %v15462_v31, 4 }
 0x487   :  { %11723 = vmatprep.mubr.msk.f32.mxu1 %vm3129_vm8, %v3956_v56  ;;  %v3947_v56 = vsel %vm1978_vm5, %v3931_v18, %v3932_v29 }
 0x488   :  { %v3940_v18 = vsel %vm1978_vm5, %v3938_v32, %v3939_v11 }
 0x48a   :  { %11724 = vmatmul.mubr.msk.f32.gmra.mrb[30].mxu1 %vm3129_vm8, %v3955_v0  ;;  %v3946_v0 = vsel %vm1978_vm5, %v3932_v29, %v3933_v52  ;;  %v3979_v29 = vsel %vm1978_vm5, %v3939_v11, %v3900_v14  ;;  %v4416_v11 = vrot.slane %v15264_v13, 6 }
 0x48b   :  { %11726 = vmatprep.mubr.msk.f32.mxu1 %vm3129_vm8, %v3954_v51  ;;  %v3945_v51 = vsel %vm1978_vm5, %v3933_v52, %v3934_v20 }
 0x48e   :  { %11727 = vmatmul.mubr.msk.f32.gmra.mrb[32].mxu1 %vm3129_vm8, %v3953_v1  ;;  %v3944_v1 = vsel %vm1978_vm5, %v3934_v20, %v3935_v17 }
 0x48f   :  { %11729 = vmatprep.mubr.msk.f32.mxu1 %vm3129_vm8, %v3952_v40  ;;  %v3943_v40 = vsel %vm1978_vm5, %v3935_v17, %v3936_v25  ;;  %v4411_v17 = vrot.slane %v15222_v44, 6 }
 0x492   :  { %11730 = vmatmul.mubr.msk.f32.gmra.mrb[34].mxu1 %vm3129_vm8, %v3951_v55  ;;  %v3942_v55 = vsel %vm1978_vm5, %v3936_v25, %v3937_v36 }
 0x493   :  { %11732 = vmatprep.mubr.msk.f32.mxu1 %vm3129_vm8, %v3950_v61  ;;  %v3941_v61 = vsel %vm1978_vm5, %v3937_v36, %v3938_v32  ;;  %v4415_v32 = vrot.slane %v15257_v9, 6 }
 0x496   :  { %11733 = vmatmul.mubr.msk.f32.gmra.mrb[36].mxu1 %vm3129_vm8, %v3949_v8  ;;  %v4407_v8 = vrot.slane %v15214_v63, 6 }
 0x497   :  { %11735 = vmatprep.mubr.msk.f32.mxu1 %vm3129_vm8, %v3948_v28  ;;  %v4408_v28 = vrot.slane %v15216_v39, 6 }
 0x498   :  { %v4485_v52 = vsel %vm4446_vm9, %v4406_v57, %v4407_v8 }
 0x499   :  { %v4484_v20 = vsel %vm4446_vm9, %v4407_v8, %v4408_v28  ;;  %v4476_v8 = vsel %vm4446_vm9, %v4415_v32, %v4416_v11 }
 0x49a   :  { %11736 = vmatmul.mubr.msk.f32.gmra.mrb[38].mxu1 %vm3129_vm8, %v3947_v56  ;;  %v4409_v56 = vrot.slane %v19776_v50, 6 }
 0x49b   :  { %11738 = vmatprep.mubr.msk.f32.mxu1 %vm3129_vm8, %v3946_v0  ;;  %v4410_v0 = vrot.slane %v19777_v59, 6 }
 0x49c   :  { %v4483_v14 = vsel %vm4446_vm9, %v4408_v28, %v4409_v56 }
 0x49d   :  { %v4482_v57 = vsel %vm4446_vm9, %v4409_v56, %v4410_v0  ;;  %v4481_v25 = vsel %vm4446_vm9, %v4410_v0, %v4411_v17 }
 0x49e   :  { %11739 = vmatmul.mubr.msk.f32.gmra.mrb[40].mxu1 %vm3129_vm8, %v3945_v51  ;;  %v4412_v51 = vrot.slane %v15232_v23, 6 }
 0x49f   :  { %11741 = vmatprep.mubr.msk.f32.mxu1 %vm3129_vm8, %v3944_v1  ;;  %v4413_v1 = vrot.slane %v15243_v41, 6 }
 0x4a0   :  { %v4480_v36 = vsel %vm4446_vm9, %v4411_v17, %v4412_v51 }
 0x4a2   :  { %11742 = vmatmul.mubr.msk.f32.gmra.mrb[42].mxu1 %vm3129_vm8, %v3943_v40  ;;  %v4414_v40 = vrot.slane %v15252_v60, 6 }
 0x4a3   :  { %11744 = vmatprep.mubr.msk.f32.mxu1 %vm3129_vm8, %v3942_v55 }
 0x4a4   :  { %v4478_v55 = vsel %vm4446_vm9, %v4413_v1, %v4414_v40 }
 0x4a6   :  { %11745 = vmatmul.mubr.msk.f32.gmra.mrb[44].mxu1 %vm3129_vm8, %v3941_v61  ;;  %v4477_v61 = vsel %vm4446_vm9, %v4414_v40, %v4415_v32 }
 0x4a7   :  { %11747 = vmatprep.mubr.msk.f32.mxu1 %vm3129_vm8, %v3940_v18  ;;  %v4417_v18 = vrot.slane %v15272_v6, 6 }
 0x4a9   :  { %v4475_v28 = vsel %vm4446_vm9, %v4416_v11, %v4417_v18 }
 0x4aa   :  { %11748 = vmatmul.mubr.msk.f32.gmra.mrb[46].mxu1 %vm3129_vm8, %v3979_v29  ;;  %v4418_v29 = vrot.slane %v15282_v37, 6 }
 0x4ab   :  { %11752 = vmatprep.mubr.msk.f32.mxu1 %vm3129_vm8, %v4485_v52  ;;  %v4419_v52 = vrot.slane %v15290_v42, 6 }
 0x4ac   :  { %v4474_v56 = vsel %vm4446_vm9, %v4417_v18, %v4418_v29 }
 0x4ad   :  { %v4473_v0 = vsel %vm4446_vm9, %v4418_v29, %v4419_v52 }
 0x4ae   :  { %11753 = vmatmul.mubr.msk.f32.vlgmr.msra.gmra.mrb[8].mxu1 %vm3129_vm8, %v4484_v20  ;;  %v4420_v20 = vrot.slane %v15300_v47, 6 }
 0x4af   :  { %11755 = vmatprep.mubr.msk.f32.mxu1 %vm3129_vm8, %v4483_v14  ;;  %11813 = vmatpush3.msra.mxu1 %v15660_v22  ;;  %v4479_v22 = vsel %vm4446_vm9, %v4412_v51, %v4413_v1  ;;  %v4421_v14 = vrot.slane %v15308_v4, 6 }
 0x4b0   :  { %v4472_v17 = vsel %vm4446_vm9, %v4419_v52, %v4420_v20 }
 0x4b1   :  { %v4471_v51 = vsel %vm4446_vm9, %v4420_v20, %v4421_v14 }
 0x4b2   :  { %11756 = vmatmul.mubr.msk.f32.gmra.mrb[10].mxu1 %vm3129_vm8, %v4482_v57  ;;  %v4422_v57 = vrot.slane %v15318_v19, 6 }
 0x4b3   :  { %11758 = vmatprep.mubr.msk.f32.mxu1 %vm3129_vm8, %v4481_v25  ;;  %v4423_v25 = vrot.slane %v15326_v48, 6 }
 0x4b4   :  { %v4470_v1 = vsel %vm4446_vm9, %v4421_v14, %v4422_v57 }
 0x4b5   :  { %v4469_v40 = vsel %vm4446_vm9, %v4422_v57, %v4423_v25 }
 0x4b6   :  { %11759 = vmatmul.mubr.msk.f32.gmra.mrb[12].mxu1 %vm3129_vm8, %v4480_v36  ;;  %v4424_v36 = vrot.slane %v15336_v33, 6 }
 0x4b7   :  { %11761 = vmatprep.mubr.msk.f32.mxu1 %vm3129_vm8, %v4479_v22  ;;  %v4425_v22 = vrot.slane %v15344_v21, 6 }
 0x4b8   :  { %v4468_v32 = vsel %vm4446_vm9, %v4423_v25, %v4424_v36 }
 0x4b9   :  { %v4467_v11 = vsel %vm4446_vm9, %v4424_v36, %v4425_v22 }
 0x4ba   :  { %11762 = vmatmul.mubr.msk.f32.gmra.mrb[14].mxu1 %vm3129_vm8, %v4478_v55  ;;  %v4426_v55 = vrot.slane %v15354_v54, 6 }
 0x4bb   :  { %11764 = vmatprep.mubr.msk.f32.mxu1 %vm3129_vm8, %v4477_v61  ;;  %v4427_v61 = vrot.slane %v15362_v5, 6 }
 0x4bc   :  { %v4466_v18 = vsel %vm4446_vm9, %v4425_v22, %v4426_v55 }
 0x4bd   :  { %v4465_v29 = vsel %vm4446_vm9, %v4426_v55, %v4427_v61 }
 0x4be   :  { %11765 = vmatmul.mubr.msk.f32.gmra.mrb[16].mxu1 %vm3129_vm8, %v4476_v8  ;;  %v4428_v8 = vrot.slane %v15372_v2, 6 }
 0x4bf   :  { %11767 = vmatprep.mubr.msk.f32.mxu1 %vm3129_vm8, %v4475_v28  ;;  %v4429_v28 = vrot.slane %v15380_v3, 6 }
 0x4c0   :  { %v4464_v52 = vsel %vm4446_vm9, %v4427_v61, %v4428_v8 }
 0x4c1   :  { %v4463_v20 = vsel %vm4446_vm9, %v4428_v8, %v4429_v28 }
 0x4c2   :  { %11768 = vmatmul.mubr.msk.f32.gmra.mrb[18].mxu1 %vm3129_vm8, %v4474_v56  ;;  %v4430_v56 = vrot.slane %v15390_v16, 6 }
 0x4c3   :  { %11770 = vmatprep.mubr.msk.f32.mxu1 %vm3129_vm8, %v4473_v0  ;;  %v4431_v0 = vrot.slane %v15398_v24, 6 }
 0x4c4   :  { %v4462_v14 = vsel %vm4446_vm9, %v4429_v28, %v4430_v56 }
 0x4c5   :  { %v4461_v57 = vsel %vm4446_vm9, %v4430_v56, %v4431_v0 }
 0x4c6   :  { %11771 = vmatmul.mubr.msk.f32.gmra.mrb[20].mxu1 %vm3129_vm8, %v4472_v17  ;;  %v4432_v17 = vrot.slane %v15408_v34, 6 }
 0x4c7   :  { %11773 = vmatprep.mubr.msk.f32.mxu1 %vm3129_vm8, %v4471_v51  ;;  %v4433_v51 = vrot.slane %v15416_v38, 6 }
 0x4c8   :  { %v4460_v25 = vsel %vm4446_vm9, %v4431_v0, %v4432_v17 }
 0x4c9   :  { %v4459_v36 = vsel %vm4446_vm9, %v4432_v17, %v4433_v51 }
 0x4ca   :  { %11774 = vmatmul.mubr.msk.f32.gmra.mrb[22].mxu1 %vm3129_vm8, %v4470_v1  ;;  %v4434_v1 = vrot.slane %v15426_v15, 6 }
 0x4cb   :  { %11776 = vmatprep.mubr.msk.f32.mxu1 %vm3129_vm8, %v4469_v40  ;;  %v4435_v40 = vrot.slane %v15434_v30, 6 }
 0x4cc   :  { %v4458_v22 = vsel %vm4446_vm9, %v4433_v51, %v4434_v1 }
 0x4cd   :  { %v4457_v55 = vsel %vm4446_vm9, %v4434_v1, %v4435_v40 }
 0x4ce   :  { %11777 = vmatmul.mubr.msk.f32.gmra.mrb[24].mxu1 %vm3129_vm8, %v4468_v32  ;;  %v4436_v32 = vrot.slane %v15444_v35, 6 }
 0x4cf   :  { %11779 = vmatprep.mubr.msk.f32.mxu1 %vm3129_vm8, %v4467_v11  ;;  %v4437_v11 = vrot.slane %v15452_v7, 6 }
 0x4d0   :  { %v4456_v61 = vsel %vm4446_vm9, %v4435_v40, %v4436_v32 }
 0x4d1   :  { %v4455_v8 = vsel %vm4446_vm9, %v4436_v32, %v4437_v11 }
 0x4d2   :  { %11780 = vmatmul.mubr.msk.f32.gmra.mrb[26].mxu1 %vm3129_vm8, %v4466_v18  ;;  %v4438_v18 = vrot.slane %v15467_v49, 6 }
 0x4d3   :  { %11782 = vmatprep.mubr.msk.f32.mxu1 %vm3129_vm8, %v4465_v29  ;;  %v4439_v29 = vrot.slane %v15475_v26, 6 }
 0x4d4   :  { %v4454_v28 = vsel %vm4446_vm9, %v4437_v11, %v4438_v18 }
 0x4d5   :  { %v4453_v56 = vsel %vm4446_vm9, %v4438_v18, %v4439_v29 }
 0x4d6   :  { %11783 = vmatmul.mubr.msk.f32.gmra.mrb[28].mxu1 %vm3129_vm8, %v4464_v52  ;;  %v4440_v52 = vrot.slane %v15488_v10, 6 }
 0x4d7   :  { %11785 = vmatprep.mubr.msk.f32.mxu1 %vm3129_vm8, %v4463_v20  ;;  %v4441_v20 = vrot.slane %v15496_v53, 6 }
 0x4d8   :  { %v4452_v0 = vsel %vm4446_vm9, %v4439_v29, %v4440_v52 }
 0x4d9   :  { %v4451_v17 = vsel %vm4446_vm9, %v4440_v52, %v4441_v20 }
 0x4da   :  { %11786 = vmatmul.mubr.msk.f32.gmra.mrb[30].mxu1 %vm3129_vm8, %v4462_v14  ;;  %v4442_v14 = vrot.slane %v15514_v27, 6 }
 0x4db   :  { %11788 = vmatprep.mubr.msk.f32.mxu1 %vm3129_vm8, %v4461_v57  ;;  %v4443_v57 = vrot.slane %v15522_v46, 6 }
 0x4dc   :  { %v4450_v51 = vsel %vm4446_vm9, %v4441_v20, %v4442_v14 }
 0x4dd   :  { %v4449_v1 = vsel %vm4446_vm9, %v4442_v14, %v4443_v57 }
 0x4de   :  { %11789 = vmatmul.mubr.msk.f32.gmra.mrb[32].mxu1 %vm3129_vm8, %v4460_v25  ;;  %v4444_v25 = vrot.slane %v15532_v62, 6 }
 0x4df   :  { %11791 = vmatprep.mubr.msk.f32.mxu1 %vm3129_vm8, %v4459_v36 }
 0x4e0   :  { %v4448_v36 = vsel %vm4446_vm9, %v4443_v57, %v4444_v25  ;;  %v4447_v40 = vsel %vm4446_vm9, %v4444_v25, %v4445_v12 }
 0x4e2   :  { %11792 = vmatmul.mubr.msk.f32.gmra.mrb[34].mxu1 %vm3129_vm8, %v4458_v22 }
 0x4e3   :  { %11794 = vmatprep.mubr.msk.f32.mxu1 %vm3129_vm8, %v4457_v55 }
 0x4e6   :  { %11795 = vmatmul.mubr.msk.f32.gmra.mrb[36].mxu1 %vm3129_vm8, %v4456_v61 }
 0x4e7   :  { %11797 = vmatprep.mubr.msk.f32.mxu1 %vm3129_vm8, %v4455_v8 }
 0x4ea   :  { %11798 = vmatmul.mubr.msk.f32.gmra.mrb[38].mxu1 %vm3129_vm8, %v4454_v28 }
 0x4eb   :  { %11800 = vmatprep.mubr.msk.f32.mxu1 %vm3129_vm8, %v4453_v56 }
 0x4ee   :  { %11801 = vmatmul.mubr.msk.f32.gmra.mrb[40].mxu1 %vm3129_vm8, %v4452_v0 }
 0x4ef   :  { %11803 = vmatprep.mubr.msk.f32.mxu1 %vm3129_vm8, %v4451_v17 }
 0x4f2   :  { %11804 = vmatmul.mubr.msk.f32.gmra.mrb[42].mxu1 %vm3129_vm8, %v4450_v51 }
 0x4f3   :  { %11806 = vmatprep.mubr.msk.f32.mxu1 %vm3129_vm8, %v4449_v1 }
 0x4f6   :  { %11807 = vmatmul.mubr.msk.f32.gmra.mrb[44].mxu1 %vm3129_vm8, %v4448_v36 }
 0x4f7   :  { %11809 = vmatprep.mubr.msk.f32.mxu1 %vm3129_vm8, %v4447_v40 }
 0x4fa   :  { %11810 = vmatmul.mubr.msk.f32.gmra.mrb[46].mxu1 %vm3129_vm8, %v15508_v58 }
 0x4fb   :  { %11814 = vmatprep.mubr.msk.f32.mxu1 %vm3129_vm8, %v15214_v63 }
 0x4fe   :  { %11815 = vmatmul.mubr.msk.f32.vlgmr.msra.gmra.mrb[8].mxu1 %vm3129_vm8, %v15216_v39  ;;  %v19778_v39 = vld [vmem:[#allocation6_spill] sm:$0xff] }
 0x4ff   :  { %11817 = vmatprep.mubr.msk.f32.mxu1 %vm3129_vm8, %v19776_v50 }
 0x502   :  { %11818 = vmatmul.mubr.msk.f32.gmra.mrb[10].mxu1 %vm3129_vm8, %v19777_v59 }
 0x503   :  { %11820 = vmatprep.mubr.msk.f32.mxu1 %vm3129_vm8, %v15222_v44  ;;  %v16060_v44 = vld [vmem:[%s19323_s2 + $0x1] ss:$8 sm:$0x7] }
 0x504   :  { %v16064_v63 = vrot.slane %v16060_v44, %v19778_v39 }
 0x506   :  { %11821 = vmatmul.mubr.msk.f32.gmra.mrb[12].mxu1 %vm3129_vm8, %v15232_v23  ;;  %5302 = vmatprep.mubr.f32.mxu0 %v16064_v63 }
 0x507   :  { %11823 = vmatprep.mubr.msk.f32.mxu1 %vm3129_vm8, %v15243_v41 }
 0x50a   :  { %11824 = vmatmul.mubr.msk.f32.gmra.mrb[14].mxu1 %vm3129_vm8, %v15252_v60 }
 0x50b   :  { %11826 = vmatprep.mubr.msk.f32.mxu1 %vm3129_vm8, %v15257_v9 }
 0x50e   :  { %11827 = vmatmul.mubr.msk.f32.gmra.mrb[16].mxu1 %vm3129_vm8, %v15264_v13 }
 0x50f   :  { %11829 = vmatprep.mubr.msk.f32.mxu1 %vm3129_vm8, %v15272_v6 }
 0x512   :  { %11830 = vmatmul.mubr.msk.f32.gmra.mrb[18].mxu1 %vm3129_vm8, %v15282_v37 }
 0x513   :  { %11832 = vmatprep.mubr.msk.f32.mxu1 %vm3129_vm8, %v15290_v42 }
 0x516   :  { %11833 = vmatmul.mubr.msk.f32.gmra.mrb[20].mxu1 %vm3129_vm8, %v15300_v47 }
 0x517   :  { %11835 = vmatprep.mubr.msk.f32.mxu1 %vm3129_vm8, %v15308_v4 }
 0x51a   :  { %11836 = vmatmul.mubr.msk.f32.gmra.mrb[22].mxu1 %vm3129_vm8, %v15318_v19 }
 0x51b   :  { %11838 = vmatprep.mubr.msk.f32.mxu1 %vm3129_vm8, %v15326_v48 }
 0x51e   :  { %11839 = vmatmul.mubr.msk.f32.gmra.mrb[24].mxu1 %vm3129_vm8, %v15336_v33 }
 0x51f   :  { %11841 = vmatprep.mubr.msk.f32.mxu1 %vm3129_vm8, %v15344_v21 }
 0x522   :  { %11842 = vmatmul.mubr.msk.f32.gmra.mrb[26].mxu1 %vm3129_vm8, %v15354_v54 }
 0x523   :  { %11844 = vmatprep.mubr.msk.f32.mxu1 %vm3129_vm8, %v15362_v5 }
 0x526   :  { %11845 = vmatmul.mubr.msk.f32.gmra.mrb[28].mxu1 %vm3129_vm8, %v15372_v2 }
 0x527   :  { %11847 = vmatprep.mubr.msk.f32.mxu1 %vm3129_vm8, %v15380_v3 }
 0x52a   :  { %11848 = vmatmul.mubr.msk.f32.gmra.mrb[30].mxu1 %vm3129_vm8, %v15390_v16 }
 0x52b   :  { %11850 = vmatprep.mubr.msk.f32.mxu1 %vm3129_vm8, %v15398_v24 }
 0x52e   :  { %11851 = vmatmul.mubr.msk.f32.gmra.mrb[32].mxu1 %vm3129_vm8, %v15408_v34 }
 0x52f   :  { %11853 = vmatprep.mubr.msk.f32.mxu1 %vm3129_vm8, %v15416_v38 }
 0x532   :  { %11854 = vmatmul.mubr.msk.f32.gmra.mrb[34].mxu1 %vm3129_vm8, %v15426_v15 }
 0x533   :  { %11856 = vmatprep.mubr.msk.f32.mxu1 %vm3129_vm8, %v15434_v30 }
 0x536   :  { %11857 = vmatmul.mubr.msk.f32.gmra.mrb[36].mxu1 %vm3129_vm8, %v15444_v35 }
 0x537   :  { %11859 = vmatprep.mubr.msk.f32.mxu1 %vm3129_vm8, %v15452_v7 }
 0x53a   :  { %11860 = vmatmul.mubr.msk.f32.gmra.mrb[38].mxu1 %vm3129_vm8, %v15467_v49 }
 0x53b   :  { %11862 = vmatprep.mubr.msk.f32.mxu1 %vm3129_vm8, %v15475_v26 }
 0x53e   :  { %11863 = vmatmul.mubr.msk.f32.gmra.mrb[40].mxu1 %vm3129_vm8, %v15488_v10 }
 0x53f   :  { %11865 = vmatprep.mubr.msk.f32.mxu1 %vm3129_vm8, %v15496_v53 }
 0x542   :  { %11866 = vmatmul.mubr.msk.f32.gmra.mrb[42].mxu1 %vm3129_vm8, %v15514_v27 }
 0x543   :  { %11868 = vmatprep.mubr.msk.f32.mxu1 %vm3129_vm8, %v15522_v46 }
 0x546   :  { %11869 = vmatmul.mubr.msk.f32.gmra.mrb[44].mxu1 %vm3129_vm8, %v15532_v62 }
 0x547   :  { %11871 = vmatprep.mubr.msk.f32.mxu1 %vm3129_vm8, %v15462_v31 }
 0x54a   :  { %11872 = vmatmul.mubr.msk.f32.gmra.mrb[46].mxu1 %vm3129_vm8, %v15212_v43 }
 0x5d1   :  { %v16067_v41 = vpop.f32.mrb[8].mxu1 }
 0x5d2   :  { %v16071_v9 = vmul.f32 %v16067_v41, %v16067_v41  ;;  %v16073_v23 = vpop.f32.mrb[9].mxu1 }
 0x5d3   :  { %v12500_v43 = vpack.c.bf16 %v16067_v41, %v16073_v23  ;;  %v16079_v60 = vmul.f32 %v16073_v23, %v16073_v23 }
 0x5d5   :  { %v16083_v6 = vpop.f32.mrb[10].mxu1 }
 0x5d6   :  { %v16087_v37 = vmul.f32 %v16083_v6, %v16083_v6  ;;  %v16089_v42 = vpop.f32.mrb[11].mxu1 }
 0x5d7   :  { %v12504_v47 = vpack.c.bf16 %v16083_v6, %v16089_v42  ;;  %v16095_v4 = vmul.f32 %v16089_v42, %v16089_v42 }
 0x5d9   :  { %v16099_v48 = vpop.f32.mrb[12].mxu1 }
 0x5da   :  { %v16103_v33 = vmul.f32 %v16099_v48, %v16099_v48  ;;  %v16105_v21 = vpop.f32.mrb[13].mxu1 }
 0x5db   :  { %v12508_v54 = vpack.c.bf16 %v16099_v48, %v16105_v21  ;;  %v16111_v5 = vmul.f32 %v16105_v21, %v16105_v21 }
 0x5dd   :  { %v16115_v3 = vpop.f32.mrb[14].mxu1 }
 0x5de   :  { %v16119_v16 = vmul.f32 %v16115_v3, %v16115_v3  ;;  %v16121_v24 = vpop.f32.mrb[15].mxu1 }
 0x5df   :  { %v12512_v34 = vpack.c.bf16 %v16115_v3, %v16121_v24  ;;  %v16127_v38 = vmul.f32 %v16121_v24, %v16121_v24 }
 0x5e1   :  { %v16131_v30 = vpop.f32.mrb[16].mxu1 }
 0x5e2   :  { %v16135_v35 = vmul.f32 %v16131_v30, %v16131_v30  ;;  %v16137_v7 = vpop.f32.mrb[17].mxu1 }
 0x5e3   :  { %v12516_v31 = vpack.c.bf16 %v16131_v30, %v16137_v7  ;;  %v16143_v49 = vmul.f32 %v16137_v7, %v16137_v7 }
 0x5e5   :  { %v16147_v12 = vpop.f32.mrb[18].mxu1 }
 0x5e6   :  { %v16151_v10 = vmul.f32 %v16147_v12, %v16147_v12  ;;  %v16153_v53 = vpop.f32.mrb[19].mxu1 }
 0x5e7   :  { %v16159_v27 = vmul.f32 %v16153_v53, %v16153_v53 }
 0x5e9   :  { %v16163_v62 = vpop.f32.mrb[20].mxu1 }
 0x5ea   :  { %v16167_v50 = vmul.f32 %v16163_v62, %v16163_v62  ;;  %v16169_v59 = vpop.f32.mrb[21].mxu1 }
 0x5eb   :  { %v16175_v32 = vmul.f32 %v16169_v59, %v16169_v59 }
 0x5ed   :  { %v16179_v11 = vpop.f32.mrb[22].mxu1 }
 0x5ee   :  { %19779 = vst [vmem:[#allocation10_spill] sm:$0xff] %v16179_v11  ;;  %v16183_v61 = vmul.f32 %v16179_v11, %v16179_v11  ;;  %v16185_v18 = vpop.f32.mrb[23].mxu1 }
 0x5ef   :  { %v16191_v29 = vmul.f32 %v16185_v18, %v16185_v18 }
 0x5f1   :  { %v16195_v52 = vpop.f32.mrb[24].mxu1 }
 0x5f2   :  { %19780 = vst [vmem:[#allocation9_spill] sm:$0xff] %v16195_v52  ;;  %v16199_v56 = vmul.f32 %v16195_v52, %v16195_v52  ;;  %v16201_v20 = vpop.f32.mrb[25].mxu1 }
 0x5f3   :  { %19781 = vst [vmem:[#allocation15_spill] sm:$0xff] %v16201_v20  ;;  %v12498_v0 = vpack.c.bf16 %v16195_v52, %v16201_v20  ;;  %v16207_v14 = vmul.f32 %v16201_v20, %v16201_v20 }
 0x5f5   :  { %v16209_v17 = vpop.f32.mrb[26].mxu1  ;;  %12499 = vmatprep.subr.bf16.mxu0 %v12498_v0 }
 0x5f6   :  { %19782 = vst [vmem:[#allocation33_spill] sm:$0xff] %v16209_v17  ;;  %v16215_v51 = vmul.f32 %v16209_v17, %v16209_v17  ;;  %v16217_v25 = vpop.f32.mrb[27].mxu1  ;;  %12501 = vmatpush3.bf16.msra.mxu0 %v12500_v43 }
 0x5f7   :  { %19783 = vst [vmem:[#allocation17_spill] sm:$0xff] %v16217_v25  ;;  %v12502_v1 = vpack.c.bf16 %v16209_v17, %v16217_v25  ;;  %v16223_v36 = vmul.f32 %v16217_v25, %v16217_v25  ;;  %v19805_v25 = vmov 0.0  }
 0x5f9   :  { %v16225_v40 = vpop.f32.mrb[28].mxu1  ;;  %12503 = vmatprep.subr.bf16.mxu0 %v12502_v1 }
 0x5fa   :  { %19784 = vst [vmem:[#allocation20_spill] sm:$0xff] %v16225_v40  ;;  %v16231_v28 = vmul.f32 %v16225_v40, %v16225_v40  ;;  %v16233_v55 = vpop.f32.mrb[29].mxu1  ;;  %12505 = vmatpush3.bf16.msra.mxu0 %v12504_v47 }
 0x5fb   :  { %19785 = vst [vmem:[#allocation28_spill] sm:$0xff] %v16233_v55  ;;  %v12506_v43 = vpack.c.bf16 %v16225_v40, %v16233_v55  ;;  %v16239_v46 = vmul.f32 %v16233_v55, %v16233_v55 }
 0x5fd   :  { %v16241_v26 = vpop.f32.mrb[30].mxu1  ;;  %12507 = vmatprep.subr.bf16.mxu0 %v12506_v43 }
 0x5fe   :  { %19786 = vst [vmem:[#allocation19_spill] sm:$0xff] %v16241_v26  ;;  %v16247_v15 = vmul.f32 %v16241_v26, %v16241_v26  ;;  %v16249_v2 = vpop.f32.mrb[31].mxu1  ;;  %12509 = vmatpush3.bf16.msra.mxu0 %v12508_v54 }
 0x5ff   :  { %19787 = vst [vmem:[#allocation29_spill] sm:$0xff] %v16249_v2  ;;  %v12510_v47 = vpack.c.bf16 %v16241_v26, %v16249_v2  ;;  %v16255_v19 = vmul.f32 %v16249_v2, %v16249_v2  ;;  %v19797_v26 = vpack.c.bf16 %v16163_v62, %v16169_v59 }
 0x601   :  { %v16257_v0 = vpop.f32.mrb[32].mxu1  ;;  %12511 = vmatprep.subr.bf16.mxu0 %v12510_v47 }
 0x602   :  { %19788 = vst [vmem:[#allocation22_spill] sm:$0xff] %v16257_v0  ;;  %v16263_v1 = vmul.f32 %v16257_v0, %v16257_v0  ;;  %v16265_v13 = vpop.f32.mrb[33].mxu1  ;;  %12513 = vmatpush3.bf16.msra.mxu0 %v12512_v34 }
 0x603   :  { %19789 = vst [vmem:[#allocation21_spill] sm:$0xff] %v16265_v13  ;;  %v12514_v54 = vpack.c.bf16 %v16257_v0, %v16265_v13  ;;  %v16271_v57 = vmul.f32 %v16265_v13, %v16265_v13 }
 0x605   :  { %v16273_v8 = vpop.f32.mrb[34].mxu1  ;;  %12515 = vmatprep.subr.bf16.mxu0 %v12514_v54 }
 0x606   :  { %19790 = vst [vmem:[#allocation34_spill] sm:$0xff] %v16273_v8  ;;  %v16279_v43 = vmul.f32 %v16273_v8, %v16273_v8  ;;  %v16281_v22 = vpop.f32.mrb[35].mxu1  ;;  %12517 = vmatpush3.bf16.msra.mxu0 %v12516_v31  ;;  %v19794_v31 = vpack.c.bf16 %v16147_v12, %v16153_v53 }
 0x607   :  { %19791 = vst [vmem:[#allocation25_spill] sm:$0xff] %v16281_v22  ;;  %v12518_v34 = vpack.c.bf16 %v16273_v8, %v16281_v22  ;;  %v16287_v58 = vmul.f32 %v16281_v22, %v16281_v22 }
 0x609   :  { %v16289_v39 = vpop.f32.mrb[36].mxu1  ;;  %12519 = vmatprep.subr.bf16.mxu0 %v12518_v34 }
 0x60a   :  { %19792 = vst [vmem:[#allocation23_spill] sm:$0xff] %v16289_v39  ;;  %v16295_v47 = vmul.f32 %v16289_v39, %v16289_v39  ;;  %v16297_v45 = vpop.f32.mrb[37].mxu1  ;;  %12521 = vmatpush3.bf16.msra.mxu0 %v19794_v31 }
 0x60b   :  { %19793 = vst [vmem:[#allocation32_spill] sm:$0xff] %v16297_v45  ;;  %v12522_v8 = vpack.c.bf16 %v16289_v39, %v16297_v45  ;;  %v5406_v22 = vmul.f32 %v16297_v45, %v16297_v45 }
 0x60d   :  { %v16306_v34 = vpop.f32.mrb[38].mxu1  ;;  %12523 = vmatprep.subr.bf16.mxu0 %v12522_v8  ;;  %v12566_v54 = vpack.c.bf16 %v16295_v47, %v5406_v22  ;;  %v19799_v8 = vld [vmem:[#allocation24_spill] sm:$0xff] }
 0x60e   :  { %19795 = vst [vmem:[#allocation41_spill] sm:$0xff] %v16306_v34  ;;  %v5409_v0 = vmul.f32 %v16306_v34, %v16306_v34  ;;  %v16311_v13 = vpop.f32.mrb[39].mxu1  ;;  %12525 = vmatpush3.bf16.msra.mxu0 %v19797_v26  ;;  %v5225_v22 = vrot.slane %v16060_v44, %v19799_v8  ;;  %v19801_v26 = vpack.c.bf16 %v16179_v11, %v16185_v18 }
 0x60f   :  { %19796 = vst [vmem:[#allocation12_spill] sm:$0xff] %v16311_v13  ;;  %v12526_v31 = vpack.c.bf16 %v16306_v34, %v16311_v13  ;;  %v5408_v39 = vmul.f32 %v16311_v13, %v16311_v13 }
 0x611   :  { %v16320_v45 = vpop.f32.mrb[40].mxu1  ;;  %12527 = vmatprep.subr.bf16.mxu0 %v12526_v31  ;;  %v12570_v47 = vpack.c.bf16 %v5409_v0, %v5408_v39  ;;  %v19802_v31 = vmov 0.0|0.0  }
 0x612   :  { %19798 = vst [vmem:[#allocation40_spill] sm:$0xff] %v16320_v45  ;;  %v5411_v2 = vmul.f32 %v16320_v45, %v16320_v45  ;;  %v16326_v40 = vpop.f32.mrb[41].mxu1  ;;  %12529 = vmatpush3.bf16.msra.mxu0 %v19801_v26 }
 0x613   :  { %19800 = vst [vmem:[#allocation11_spill] sm:$0xff] %v16326_v40  ;;  %v12531_v34 = vpack.c.bf16 %v16320_v45, %v16326_v40  ;;  %v5410_v13 = vmul.f32 %v16326_v40, %v16326_v40  ;;  %12530 = vmatprep.subr.bf16.mxu0 %v19802_v31 }
 0x615   :  { %v12575_v55 = vpack.c.bf16 %v5411_v2, %v5410_v13  ;;  %v16336_v17 = vpop.f32.mrb[42].mxu1  ;;  %5303 = vmatmul.mubr.f32.vlgmr.msra.gmra.mrb[40].mxu0 %v5225_v22 }
 0x616   :  { %19803 = vst [vmem:[#allocation39_spill] sm:$0xff] %v16336_v17  ;;  %v5413_v39 = vmul.f32 %v16336_v17, %v16336_v17  ;;  %v16340_v0 = vpop.f32.mrb[43].mxu1  ;;  %12532 = vmatpush3.bf16.msra.mxu0 %v12531_v34  ;;  %11890 = vmatprep.mubr.msk.f32.mxu0 %vm13354_vm6, %v19805_v25 }
 0x617   :  { %19804 = vst [vmem:[#allocation14_spill] sm:$0xff] %v16340_v0  ;;  %v12534_v26 = vpack.c.bf16 %v16336_v17, %v16340_v0  ;;  %v5412_v45 = vmul.f32 %v16340_v0, %v16340_v0  ;;  %12533 = vmatprep.subr.bf16.mxu0 %v19802_v31 }
 0x619   :  { %v12578_v13 = vpack.c.bf16 %v5413_v39, %v5412_v45  ;;  %v16349_v2 = vpop.f32.mrb[44].mxu1 }
 0x61a   :  { %19806 = vst [vmem:[#allocation38_spill] sm:$0xff] %v16349_v2  ;;  %v5415_v40 = vmul.f32 %v16349_v2, %v16349_v2  ;;  %v16353_v52 = vpop.f32.mrb[45].mxu1  ;;  %12535 = vmatpush3.bf16.msra.mxu0 %v12534_v26 }
 0x61b   :  { %19807 = vst [vmem:[#allocation13_spill] sm:$0xff] %v16353_v52  ;;  %v12537_v34 = vpack.c.bf16 %v16349_v2, %v16353_v52  ;;  %v5414_v17 = vmul.f32 %v16353_v52, %v16353_v52  ;;  %12536 = vmatprep.subr.bf16.mxu0 %v19802_v31  ;;  %v19809_v52 = vld [vmem:[#allocation31_spill] sm:$0xff] }
 0x61c   :  { %v5233_v11 = vrot.slane %v16060_v44, %v19809_v52  ;;  %v19813_v44 = vpack.c.bf16 %v16087_v37, %v16095_v4  ;;  %v19819_v37 = vpack.c.bf16 %v16135_v35, %v16143_v49  ;;  %v19820_v4 = vpack.c.bf16 %v16279_v43, %v16287_v58  ;;  %v5899_v35 = vld [vmem:[%s19322_s1 + $0x58] sm:$0xff] }
 0x61d   :  { %v12581_v0 = vpack.c.bf16 %v5415_v40, %v5414_v17  ;;  %v16360_v20 = vpop.f32.mrb[46].mxu1  ;;  %v19810_v40 = vpack.c.bf16 %v16199_v56, %v16207_v14  ;;  %v19814_v56 = vpack.c.bf16 %v16231_v28, %v16239_v46  ;;  %v19815_v14 = vpack.c.bf16 %v16103_v33, %v16111_v5 }
 0x61e   :  { %19808 = vst [vmem:[#allocation37_spill] sm:$0xff] %v16360_v20  ;;  %v5417_v45 = vmul.f32 %v16360_v20, %v16360_v20  ;;  %v16364_v39 = vpop.f32.mrb[47].mxu1  ;;  %12538 = vmatpush3.bf16.msra.mxu0 %v12537_v34  ;;  %v19811_v34 = vpack.c.bf16 %v16071_v9, %v16079_v60  ;;  %v19816_v9 = vpack.c.bf16 %v16247_v15, %v16255_v19 }
 0x61f   :  { %v12540_v26 = vpack.c.bf16 %v16360_v20, %v16364_v39  ;;  %v5416_v2 = vmul.f32 %v16364_v39, %v16364_v39  ;;  %12539 = vmatprep.subr.bf16.mxu0 %v19802_v31  ;;  %v19812_v20 = vpack.c.bf16 %v16215_v51, %v16223_v36  ;;  %v19818_v60 = vpack.c.bf16 %v16263_v1, %v16271_v57  ;;  %v5563_v1 = vld [vmem:[%s19322_s1 + $0x99] sm:$0x1] }
 0x620   :  { %v19821_v19 = vpack.c.bf16 %v16151_v10, %v16159_v27  ;;  %v19822_v33 = vpack.c.bf16 %v16167_v50, %v16175_v32  ;;  %v19823_v5 = vpack.c.bf16 %v16183_v61, %v16191_v29 }
 0x621   :  { %v12584_v17 = vpack.c.bf16 %v5417_v45, %v5416_v2 }
 0x622   :  { %12541 = vmatpush3.bf16.msra.mxu0 %v12540_v26 }
 0x623   :  { %12543 = vmatprep.subr.bf16.mxu0 %v19810_v40 }
 0x625   :  { %11891 = vmatmul.mubr.msk.f32.vlgmr.msra.gmra.mrb[42].mxu0 %vm2464_vm7, %v5233_v11 }
 0x626   :  { %12545 = vmatpush3.bf16.msra.mxu0 %v19811_v34  ;;  %5482 = vmatprep.mubr.f32.mxu0 %v16064_v63  ;;  %v19817_v63 = vpack.c.bf16 %v16119_v16, %v16127_v38 }
 0x627   :  { %12547 = vmatprep.subr.bf16.mxu0 %v19812_v20 }
 0x62a   :  { %12549 = vmatpush3.bf16.msra.mxu0 %v19813_v44 }
 0x62b   :  { %12551 = vmatprep.subr.bf16.mxu0 %v19814_v56 }
 0x62e   :  { %12553 = vmatpush3.bf16.msra.mxu0 %v19815_v14 }
 0x62f   :  { %12555 = vmatprep.subr.bf16.mxu0 %v19816_v9 }
 0x632   :  { %12557 = vmatpush3.bf16.msra.mxu0 %v19817_v63 }
 0x633   :  { %12559 = vmatprep.subr.bf16.mxu0 %v19818_v60  ;;  %v19826_v60 = vld [vmem:[#allocation15_spill] sm:$0xff] }
 0x636   :  { %12561 = vmatpush3.bf16.msra.mxu0 %v19819_v37 }
 0x637   :  { %12563 = vmatprep.subr.bf16.mxu0 %v19820_v4  ;;  %v19827_v4 = vld [vmem:[#allocation9_spill] sm:$0xff] }
 0x63a   :  { %12565 = vmatpush3.bf16.msra.mxu0 %v19821_v19  ;;  %v19828_v19 = vld [vmem:[#allocation17_spill] sm:$0xff] }
 0x63b   :  { %12567 = vmatprep.subr.bf16.mxu0 %v12566_v54 }
 0x63e   :  { %12569 = vmatpush3.bf16.msra.mxu0 %v19822_v33  ;;  %v19829_v33 = vld [vmem:[#allocation33_spill] sm:$0xff] }
 0x63f   :  { %12571 = vmatprep.subr.bf16.mxu0 %v12570_v47 }
 0x642   :  { %12573 = vmatpush3.bf16.msra.mxu0 %v19823_v5  ;;  %v19830_v5 = vld [vmem:[#allocation28_spill] sm:$0xff] }
 0x643   :  { %12574 = vmatprep.subr.bf16.mxu0 %v19802_v31 }
 0x645   :  { %5483 = vmatmul.mubr.f32.vlgmr.msra.gmra.mrb[44].mxu0 %v5225_v22  ;;  %v5564_v22 = vld [vmem:[%s19322_s1 + $0x9d] sm:$0x1] }
 0x646   :  { %12576 = vmatpush3.bf16.msra.mxu0 %v12575_v55  ;;  %11909 = vmatprep.mubr.msk.f32.mxu0 %vm13354_vm6, %v19805_v25 }
 0x647   :  { %12577 = vmatprep.subr.bf16.mxu0 %v19802_v31 }
 0x64a   :  { %12579 = vmatpush3.bf16.msra.mxu0 %v12578_v13 }
 0x64b   :  { %12580 = vmatprep.subr.bf16.mxu0 %v19802_v31 }
 0x64e   :  { %12582 = vmatpush3.bf16.msra.mxu0 %v12581_v0 }
 0x64f   :  { %12583 = vmatprep.subr.bf16.mxu0 %v19802_v31 }
 0x652   :  { %12585 = vmatpush3.bf16.msra.mxu0 %v12584_v17 }
 0x653   :  { %11912 = vmatprep.subr.mxu0 %v5899_v35 }
 0x655   :  { %11910 = vmatmul.mubr.msk.f32.vlgmr.msra.gmra.mrb[46].mxu0 %vm2464_vm7, %v5233_v11  ;;  %v16430_v11 = vld [vmem:[%s19322_s1 + $0x50] sm:$0xff] }
 0x656   :  { %11913 = vmatpush3.msra.mxu0 %v5899_v35  ;;  %19824 = vst [vmem:[#allocation16_spill] sm:$0xff] %v16430_v11  ;;  %v19834_v35 = vld [vmem:[#allocation21_spill] sm:$0xff] }
 0x657   :  { %11974 = vmatprep.subr.mxu0 %v16430_v11 }
 0x6e8   :  { %v10675_v16 = vpop.f32.mrb[40].mxu0 }
 0x6e9   :  { %v10676_v38 = vpop.f32.mrb[41].mxu0 }
 0x6ea   :  { %v10677_v15 = vadd.f32 %v10676_v38, %v10675_v16  ;;  %v19831_v16 = vld [vmem:[#allocation20_spill] sm:$0xff]  ;;  %v19832_v38 = vld [vmem:[#allocation29_spill] sm:$0xff] }
 0x6f8   :  { %v5374_v49 = vpop.f32.mrb[42].mxu0 }
 0x6f9   :  { %v5375_v10 = vadd.f32 %v10677_v15, %v5374_v49  ;;  %v11892_v58 = vpop.f32.mrb[43].mxu0  ;;  %v19833_v15 = vld [vmem:[#allocation19_spill] sm:$0xff]  ;;  %v19835_v49 = vld [vmem:[#allocation22_spill] sm:$0xff] }
 0x6fa   :  { %v19836_v58 = vld [vmem:[#allocation25_spill] sm:$0xff] }
 0x6fb   :  { %v5558_v32 = vmul.f32 0.008333334, %v5375_v10 }
 0x6fd   :  { %v5560_v28 = vmul.f32 %v5558_v32, %v5558_v32 }
 0x718   :  { %v10719_v27 = vpop.f32.mrb[44].mxu0 }
 0x719   :  { %v10720_v46 = vpop.f32.mrb[45].mxu0 }
 0x71a   :  { %v10721_v50 = vadd.f32 %v10720_v46, %v10719_v27  ;;  %v19837_v46 = vld [vmem:[#allocation34_spill] sm:$0xff] }
 0x728   :  { %v5554_v55 = vpop.f32.mrb[46].mxu0 }
 0x729   :  { %v5555_v61 = vadd.f32 %v10721_v50, %v5554_v55  ;;  %v11911_v29 = vpop.f32.mrb[47].mxu0 }
 0x72b   :  { %v5559_v20 = vmul.f32 0.008333334, %v5555_v61  ;;  %v19839_v61 = vld [vmem:[#allocation23_spill] sm:$0xff] }
 0x72d   :  { %v5561_v57 = vsub.f32 %v5559_v20, %v5560_v28  ;;  %v19840_v28 = vld [vmem:[#allocation12_spill] sm:$0xff] }
 0x72f   :  { %v5562_v51 = vmax.f32 %v5561_v57, 0.0  ;;  %v19841_v57 = vld [vmem:[#allocation41_spill] sm:$0xff] }
 0x731   :  { %v5565_v36 = vadd.f32 1e-05, %v5562_v51 }
 0x733   :  { %13323 = vrsqrt.f32 %v5565_v36  ;;  %v19842_v36 = vld [vmem:[#allocation11_spill] sm:$0xff] }
 0x73d   :  { %v13324_v43 = vpop.eup %13323 }
 0x73e   :  { %v5567_v54 = vmul.f32 %v13324_v43, %v5563_v1  ;;  %v19843_v43 = vld [vmem:[#allocation40_spill] sm:$0xff] }
 0x740   :  { %v5568_v47 = vmul.f32 %v5567_v54, %v5558_v32  ;;  %v5573_v0 = vrot.slane %v5567_v54, %v19799_v8  ;;  %v19838_v32 = vld [vmem:[#allocation32_spill] sm:$0xff] }
 0x742   :  { %v5569_v13 = vsub.f32 %v5564_v22, %v5568_v47  ;;  %v5574_v2 = vmul.f32 %v5573_v0, %v16073_v23  ;;  %v5575_v45 = vmul.f32 %v16067_v41, %v5573_v0  ;;  %v5576_v26 = vmul.f32 %v5573_v0, %v16089_v42  ;;  %v19844_v22 = vld [vmem:[#allocation14_spill] sm:$0xff] }
 0x743   :  { %v5577_v17 = vmul.f32 %v16083_v6, %v5573_v0  ;;  %v5578_v40 = vmul.f32 %v5573_v0, %v16105_v21  ;;  %v5579_v34 = vmul.f32 %v16099_v48, %v5573_v0  ;;  %v5580_v44 = vmul.f32 %v5573_v0, %v16121_v24  ;;  %v19825_v24 = vld [vmem:[#allocation10_spill] sm:$0xff] }
 0x744   :  { %v16448_v56 = vrot.slane %v5569_v13, %v19799_v8  ;;  %v5581_v14 = vmul.f32 %v16115_v3, %v5573_v0  ;;  %v5582_v9 = vmul.f32 %v5573_v0, %v16137_v7  ;;  %v5583_v23 = vmul.f32 %v16131_v30, %v5573_v0  ;;  %v19845_v13 = vld [vmem:[#allocation39_spill] sm:$0xff] }
 0x745   :  { %v5584_v41 = vmul.f32 %v5573_v0, %v16153_v53  ;;  %v5585_v42 = vmul.f32 %v16147_v12, %v5573_v0  ;;  %v5586_v6 = vmul.f32 %v5573_v0, %v16169_v59  ;;  %v5587_v21 = vmul.f32 %v16163_v62, %v5573_v0 }
 0x746   :  { %v5588_v48 = vmul.f32 %v5573_v0, %v16185_v18  ;;  %v5589_v63 = vmul.f32 %v19825_v24, %v5573_v0  ;;  %v5590_v37 = vmul.f32 %v5573_v0, %v19826_v60  ;;  %v5591_v3 = vmul.f32 %v19827_v4, %v5573_v0  ;;  %v19846_v60 = vld [vmem:[#allocation13_spill] sm:$0xff] }
 0x747   :  { %v5592_v7 = vmul.f32 %v5573_v0, %v19828_v19  ;;  %v5593_v30 = vmul.f32 %v19829_v33, %v5573_v0  ;;  %v5594_v53 = vmul.f32 %v5573_v0, %v19830_v5  ;;  %v5595_v12 = vmul.f32 %v19831_v16, %v5573_v0  ;;  %v19847_v19 = vld [vmem:[#allocation38_spill] sm:$0xff]  ;;  %v19848_v16 = vld [vmem:[#allocation37_spill] sm:$0xff] }
 0x748   :  { %v5596_v59 = vmul.f32 %v5573_v0, %v19832_v38  ;;  %v5597_v62 = vmul.f32 %v19833_v15, %v5573_v0  ;;  %v5598_v18 = vmul.f32 %v5573_v0, %v19834_v35  ;;  %v5599_v10 = vmul.f32 %v19835_v49, %v5573_v0 }
 0x749   :  { %v5600_v27 = vmul.f32 %v5573_v0, %v19836_v58  ;;  %v5601_v50 = vmul.f32 %v19837_v46, %v5573_v0  ;;  %v5602_v55 = vmul.f32 %v5573_v0, %v19838_v32  ;;  %v5603_v29 = vmul.f32 %v19839_v61, %v5573_v0 }
 0x74a   :  { %v5604_v20 = vmul.f32 %v5573_v0, %v19840_v28  ;;  %v5605_v51 = vmul.f32 %v19841_v57, %v5573_v0  ;;  %v5606_v1 = vmul.f32 %v5573_v0, %v19842_v36  ;;  %v5607_v54 = vmul.f32 %v19843_v43, %v5573_v0 }
 0x74b   :  { %v5608_v47 = vmul.f32 %v5573_v0, %v19844_v22  ;;  %v5609_v24 = vmul.f32 %v19845_v13, %v5573_v0  ;;  %v5610_v4 = vmul.f32 %v5573_v0, %v19846_v60  ;;  %v5611_v33 = vmul.f32 %v19847_v19, %v5573_v0 }
 0x74c   :  { %v5612_v5 = vmul.f32 %v5573_v0, %v16364_v39  ;;  %v5613_v38 = vmul.f32 %v19848_v16, %v5573_v0  ;;  %v16484_v15 = vadd.f32 %v16448_v56, %v5574_v2  ;;  %v16487_v35 = vadd.f32 %v16448_v56, %v5575_v45 }
 0x74d   :  { %v16490_v49 = vadd.f32 %v16448_v56, %v5576_v26  ;;  %v16493_v58 = vadd.f32 %v16448_v56, %v5577_v17  ;;  %v16496_v46 = vadd.f32 %v16448_v56, %v5578_v40  ;;  %v16499_v32 = vadd.f32 %v16448_v56, %v5579_v34 }
 0x74e   :  { %v16502_v39 = vadd.f32 %v16448_v56, %v5580_v44  ;;  %v16505_v0 = vadd.f32 %v16448_v56, %v5581_v14  ;;  %v16508_v2 = vadd.f32 %v16448_v56, %v5582_v9  ;;  %v16511_v45 = vadd.f32 %v16448_v56, %v5583_v23 }
 0x74f   :  { %v16514_v26 = vadd.f32 %v16448_v56, %v5584_v41  ;;  %v16517_v17 = vadd.f32 %v16448_v56, %v5585_v42  ;;  %v16520_v40 = vadd.f32 %v16448_v56, %v5586_v6  ;;  %v16523_v34 = vadd.f32 %v16448_v56, %v5587_v21 }
 0x750   :  { %v16526_v44 = vadd.f32 %v16448_v56, %v5588_v48  ;;  %v16529_v14 = vadd.f32 %v16448_v56, %v5589_v63  ;;  %v16532_v9 = vadd.f32 %v16448_v56, %v5590_v37  ;;  %v16535_v23 = vadd.f32 %v16448_v56, %v5591_v3 }
 0x751   :  { %19849 = vst [vmem:[#allocation36_spill] sm:$0xff] %v16517_v17  ;;  %19850 = vst [vmem:[#allocation26_spill] sm:$0xff] %v16523_v34  ;;  %v16538_v41 = vadd.f32 %v16448_v56, %v5592_v7  ;;  %v16541_v42 = vadd.f32 %v16448_v56, %v5593_v30  ;;  %v16544_v6 = vadd.f32 %v16448_v56, %v5594_v53  ;;  %v5668_v13 = vrot.slane %v16514_v26, 2 }
 0x752   :  { %19851 = vst [vmem:[#allocation18_spill] sm:$0xff] %v16529_v14  ;;  %19852 = vst [vmem:[#allocation27_spill] sm:$0xff] %v16535_v23  ;;  %v16547_v21 = vadd.f32 %v16448_v56, %v5595_v12  ;;  %v16550_v48 = vadd.f32 %v16448_v56, %v5596_v59  ;;  %v16553_v63 = vadd.f32 %v16448_v56, %v5597_v62  ;;  %v5670_v60 = vrot.slane %v16520_v40, 2 }
 0x753   :  { %19853 = vst [vmem:[#allocation30_spill] sm:$0xff] %v16541_v42  ;;  %v16556_v37 = vadd.f32 %v16448_v56, %v5598_v18  ;;  %v16559_v3 = vadd.f32 %v16448_v56, %v5599_v10  ;;  %v16562_v7 = vadd.f32 %v16448_v56, %v5600_v27  ;;  %v16565_v30 = vadd.f32 %v16448_v56, %v5601_v50 }
 0x754   :  { %19854 = vst [vmem:[#allocation35_spill] sm:$0xff] %v16547_v21  ;;  %19855 = vst [vmem:[#allocation8_spill] sm:$0xff] %v16553_v63  ;;  %v16568_v53 = vadd.f32 %v16448_v56, %v5602_v55  ;;  %v16571_v12 = vadd.f32 %v16448_v56, %v5603_v29  ;;  %v16574_v59 = vadd.f32 %v16448_v56, %v5604_v20  ;;  %v5672_v19 = vrot.slane %v16526_v44, 2 }
 0x755   :  { %19856 = vst [vmem:[#allocation7_spill] sm:$0xff] %v16559_v3  ;;  %19857 = vst [vmem:[#allocation10_spill] sm:$0xff] %v16565_v30  ;;  %v16577_v62 = vadd.f32 %v16448_v56, %v5605_v51  ;;  %v16580_v18 = vadd.f32 %v16448_v56, %v5606_v1  ;;  %v16583_v10 = vadd.f32 %v16448_v56, %v5607_v54  ;;  %v5675_v16 = vrot.slane %v16535_v23, 2 }
 0x756   :  { %19858 = vst [vmem:[#allocation15_spill] sm:$0xff] %v16571_v12  ;;  %v16586_v27 = vadd.f32 %v16448_v56, %v5608_v47  ;;  %v16589_v50 = vadd.f32 %v16448_v56, %v5609_v24  ;;  %v16592_v55 = vadd.f32 %v16448_v56, %v5610_v4  ;;  %v16595_v61 = vadd.f32 %v16448_v56, %v5611_v33 }
 0x757   :  { %19859 = vst [vmem:[#allocation9_spill] sm:$0xff] %v16577_v62  ;;  %19860 = vst [vmem:[#allocation17_spill] sm:$0xff] %v16583_v10  ;;  %v16598_v29 = vadd.f32 %v16448_v56, %v5612_v5  ;;  %v16601_v28 = vadd.f32 %v16448_v56, %v5613_v38  ;;  %v5667_v56 = vrot.slane %v16511_v45, 2  ;;  %v5669_v24 = vrot.slane %v16517_v17, 2 }
 0x758   :  { %19861 = vst [vmem:[#allocation33_spill] sm:$0xff] %v16589_v50  ;;  %19862 = vst [vmem:[#allocation28_spill] sm:$0xff] %v16595_v61  ;;  %v5671_v4 = vrot.slane %v16523_v34, 2  ;;  %v5673_v33 = vrot.slane %v16529_v14, 2  ;;  %v5674_v5 = vrot.slane %v16532_v9, 2  ;;  %v5676_v38 = vrot.slane %v16538_v41, 2 }
 0x759   :  { %v5677_v20 = vrot.slane %v16541_v42, 2  ;;  %v5678_v57 = vrot.slane %v16544_v6, 2  ;;  %v5679_v51 = vrot.slane %v16547_v21, 2  ;;  %v5680_v36 = vrot.slane %v16550_v48, 2 }
 0x75a   :  { %v5681_v1 = vrot.slane %v16553_v63, 2  ;;  %v5682_v43 = vrot.slane %v16556_v37, 2  ;;  %v5683_v54 = vrot.slane %v16559_v3, 2  ;;  %v5684_v22 = vrot.slane %v16562_v7, 2 }
 0x75b   :  { %v5685_v47 = vrot.slane %v16565_v30, 2  ;;  %v5686_v52 = vrot.slane %v16568_v53, 2  ;;  %v5687_v25 = vrot.slane %v16571_v12, 2  ;;  %v5688_v31 = vrot.slane %v16574_v59, 2 }
 0x75c   :  { %v5689_v8 = vrot.slane %v16577_v62, 2  ;;  %v5690_v21 = vrot.slane %v16580_v18, 2  ;;  %v5691_v63 = vrot.slane %v16583_v10, 2  ;;  %v5692_v42 = vrot.slane %v16586_v27, 2 }
 0x75d   :  { %v5693_v3 = vrot.slane %v16589_v50, 2  ;;  %v5694_v11 = vrot.slane %v16592_v55, 2  ;;  %v5695_v30 = vrot.slane %v16595_v61, 2  ;;  %v5696_v23 = vrot.slane %v16598_v29, 2 }
 0x75e   :  { %v5697_v12 = vrot.slane %v16601_v28, 2  ;;  %v16645_v34 = vsel %vm958_vm3, %v5690_v21, %v5691_v63  ;;  %v16649_v62 = vsel %vm958_vm3, %v5689_v8, %v5690_v21  ;;  %v16665_v17 = vsel %vm958_vm3, %v5691_v63, %v5692_v42 }
 0x75f   :  { %19864 = vst [vmem:[#allocation20_spill] sm:$0xff] %v16649_v62  ;;  %v16653_v10 = vsel %vm958_vm3, %v5694_v11, %v5695_v30  ;;  %v16657_v50 = vsel %vm958_vm3, %v5693_v3, %v5694_v11  ;;  %v16661_v61 = vsel %vm958_vm3, %v5692_v42, %v5693_v3  ;;  %19866 = vst [vmem:[#allocation19_spill] sm:$0xff] %v16665_v17 }
 0x760   :  { %19865 = vst [vmem:[#allocation29_spill] sm:$0xff] %v16657_v50  ;;  %v16669_v21 = vsel %vm958_vm3, %v5696_v23, %v5697_v12  ;;  %v16673_v62 = vsel %vm958_vm3, %v5695_v30, %v5696_v23  ;;  %v16677_v11 = vsel %vm958_vm3, %v5688_v31, %v5689_v8  ;;  %v16681_v3 = vsel %vm958_vm3, %v5687_v25, %v5688_v31 }
 0x761   :  { %19867 = vst [vmem:[#allocation21_spill] sm:$0xff] %v16673_v62  ;;  %19868 = vst [vmem:[#allocation22_spill] sm:$0xff] %v16681_v3  ;;  %v16685_v42 = vsel %vm958_vm3, %v5686_v52, %v5687_v25  ;;  %v16689_v63 = vsel %vm958_vm3, %v5685_v47, %v5686_v52  ;;  %v16693_v23 = vsel %vm958_vm3, %v5684_v22, %v5685_v47  ;;  %v19879_v62 = vrot.slane %v16505_v0, 2 }
 0x762   :  { %19869 = vst [vmem:[#allocation25_spill] sm:$0xff] %v16689_v63  ;;  %v16697_v8 = vsel %vm958_vm3, %v5683_v54, %v5684_v22  ;;  %v16701_v31 = vsel %vm958_vm3, %v5682_v43, %v5683_v54  ;;  %v16705_v25 = vsel %vm958_vm3, %v5681_v1, %v5682_v43  ;;  %v16709_v52 = vsel %vm958_vm3, %v5680_v36, %v5681_v1 }
 0x763   :  { %19870 = vst [vmem:[#allocation34_spill] sm:$0xff] %v16697_v8  ;;  %19871 = vst [vmem:[#allocation32_spill] sm:$0xff] %v16705_v25  ;;  %v16713_v30 = vsel %vm958_vm3, %v5679_v51, %v5680_v36  ;;  %v16717_v22 = vsel %vm958_vm3, %v5678_v57, %v5679_v51  ;;  %v16721_v54 = vsel %vm958_vm3, %v5677_v20, %v5678_v57  ;;  %v19880_v50 = vmov %v19879_v62 }
 0x764   :  { %19872 = vst [vmem:[#allocation23_spill] sm:$0xff] %v16713_v30  ;;  %19873 = vst [vmem:[#allocation12_spill] sm:$0xff] %v16721_v54  ;;  %v16725_v43 = vsel %vm958_vm3, %v5676_v38, %v5677_v20  ;;  %v16729_v1 = vsel %vm958_vm3, %v5675_v16, %v5676_v38  ;;  %v16733_v36 = vsel %vm958_vm3, %v5674_v5, %v5675_v16  ;;  %v19877_v38 = vrot.slane %v16508_v2, 2 }
 0x765   :  { %19874 = vst [vmem:[#allocation41_spill] sm:$0xff] %v16729_v1  ;;  %v16737_v51 = vsel %vm958_vm3, %v5673_v33, %v5674_v5  ;;  %v16741_v57 = vsel %vm958_vm3, %v5672_v19, %v5673_v33  ;;  %v16745_v20 = vsel %vm958_vm3, %v5671_v4, %v5672_v19  ;;  %v16749_v47 = vsel %vm958_vm3, %v5670_v60, %v5671_v4 }
 0x766   :  { %19875 = vst [vmem:[#allocation11_spill] sm:$0xff] %v16737_v51  ;;  %19876 = vst [vmem:[#allocation40_spill] sm:$0xff] %v16745_v20  ;;  %v16753_v16 = vsel %vm958_vm3, %v5669_v24, %v5670_v60  ;;  %v16757_v5 = vsel %vm958_vm3, %v5668_v13, %v5669_v24  ;;  %v16761_v33 = vsel %vm958_vm3, %v5667_v56, %v5668_v13  ;;  %v19878_v4 = vmov %v19877_v38 }
 0x767   :  { %v5728_v19 = vsel %vm958_vm3, %v19877_v38, %v5667_v56  ;;  %v5729_v60 = vsel %vm958_vm3, %v19879_v62, %v19878_v4  ;;  %v19881_v24 = vrot.slane %v16502_v39, 2  ;;  %v19883_v3 = vrot.slane %v16499_v32, 2 }
 0x768   :  { %v19885_v63 = vrot.slane %v16496_v46, 2  ;;  %v19887_v8 = vrot.slane %v16493_v58, 2  ;;  %v19889_v25 = vrot.slane %v16490_v49, 2  ;;  %v19891_v30 = vrot.slane %v16487_v35, 2 }
 0x769   :  { %v5730_v13 = vsel %vm958_vm3, %v19881_v24, %v19880_v50  ;;  %v19882_v17 = vmov %v19881_v24  ;;  %v19884_v38 = vmov %v19883_v3  ;;  %v19893_v54 = vrot.slane %v16484_v15, 2 }
 0x76a   :  { %v5731_v56 = vsel %vm958_vm3, %v19883_v3, %v19882_v17  ;;  %v5732_v62 = vsel %vm958_vm3, %v19885_v63, %v19884_v38  ;;  %v19886_v4 = vmov %v19885_v63  ;;  %v19888_v24 = vmov %v19887_v8 }
 0x76b   :  { %v5733_v50 = vsel %vm958_vm3, %v19887_v8, %v19886_v4  ;;  %v5734_v17 = vsel %vm958_vm3, %v19889_v25, %v19888_v24  ;;  %v19890_v3 = vmov %v19889_v25  ;;  %v19892_v38 = vmov %v19891_v30 }
 0x76c   :  { %v5735_v63 = vsel %vm958_vm3, %v19891_v30, %v19890_v3  ;;  %v5736_v8 = vsel %vm958_vm3, %v19893_v54, %v19892_v38  ;;  %v19894_v4 = vmov %v19893_v54  ;;  %v5740_v25 = vmax.f32 %v16490_v49, %v5734_v17 }
 0x76d   :  { %v16819_v1 = vsel %vm958_vm3, %v5697_v12, %v19894_v4  ;;  %v5742_v24 = vmax.f32 %v16496_v46, %v5732_v62  ;;  %v5738_v51 = vmax.f32 %v16484_v15, %v5736_v8  ;;  %v5744_v30 = vmax.f32 %v16502_v39, %v5730_v13  ;;  %v19907_v8 = vld [vmem:[#allocation16_spill] sm:$0xff]  ;;  %v19911_v46 = vld [vmem:[#allocation30_spill] sm:$0xff] }
 0x76e   :  { %v5746_v3 = vmax.f32 %v16508_v2, %v5728_v19  ;;  %v5748_v20 = vmax.f32 %v16514_v26, %v16757_v5  ;;  %v16860_v5 = vmax.f32 %v5740_v25, 0.0  ;;  %v5739_v19 = vmax.f32 %v16487_v35, %v5735_v63  ;;  %v19897_v35 = vld [vmem:[#allocation36_spill] sm:$0xff] }
 0x76f   :  { %v16858_v4 = vmax.f32 %v5738_v51, 0.0  ;;  %v5741_v13 = vmax.f32 %v16493_v58, %v5733_v50  ;;  %v5743_v62 = vmax.f32 %v16499_v32, %v5731_v56  ;;  %v5745_v17 = vmax.f32 %v16505_v0, %v5729_v60  ;;  %v19899_v0 = vld [vmem:[#allocation40_spill] sm:$0xff]  ;;  %v19900_v60 = vld [vmem:[#allocation26_spill] sm:$0xff] }
 0x770   :  { %v16867_v2 = vmax.f32 %v5739_v19, 0.0  ;;  %v5821_v38 = vrot.slane %v16860_v5, 4  ;;  %v5747_v51 = vmax.f32 %v16511_v45, %v16761_v33  ;;  %v16874_v25 = vmax.f32 %v5742_v24, 0.0  ;;  %v16897_v24 = vld [vmem:[%s19322_s1 + $0x60] sm:$0xff] }
 0x771   :  { %v19474_v26 = vrot.slane %v16858_v4, 4  ;;  %v16870_v39 = vmax.f32 %v5741_v13, 0.0  ;;  %v5749_v58 = vmax.f32 %v19897_v35, %v16753_v16  ;;  %v16880_v56 = vmax.f32 %v5743_v62, 0.0  ;;  %v19915_v12 = vld [vmem:[#allocation8_spill] sm:$0xff] }
 0x772   :  { %19896 = vst [vmem:[#allocation39_spill] sm:$0xff] %v16874_v25  ;;  %v5820_v50 = vrot.slane %v16867_v2, 4  ;;  %v5751_v63 = vmax.f32 %v19900_v60, %v19899_v0  ;;  %v16890_v33 = vmax.f32 %v5744_v30, 0.0  ;;  %v5823_v16 = vrot.slane %v16874_v25, 4  ;;  %v19903_v30 = vld [vmem:[#allocation11_spill] sm:$0xff]  ;;  %v19905_v60 = vld [vmem:[#allocation41_spill] sm:$0xff] }
 0x773   :  { %19895 = vst [vmem:[#allocation14_spill] sm:$0xff] %v16870_v39  ;;  %v5822_v32 = vrot.slane %v16870_v39, 4  ;;  %19898 = vst [vmem:[#allocation13_spill] sm:$0xff] %v16880_v56  ;;  %v5824_v62 = vrot.slane %v16880_v56, 4  ;;  %v16903_v35 = vmax.f32 %v5745_v17, 0.0  ;;  %v16911_v15 = vmax.f32 %v5746_v3, 0.0 }
 0x774   :  { %v5897_v19 = vsel %vm1978_vm5, %v19474_v26, %v5820_v50  ;;  %v5896_v45 = vsel %vm1978_vm5, %v5820_v50, %v5821_v38  ;;  %19901 = vst [vmem:[#allocation38_spill] sm:$0xff] %v16890_v33  ;;  %v19904_v50 = vld [vmem:[#allocation18_spill] sm:$0xff]  ;;  %v5825_v17 = vrot.slane %v16890_v33, 4  ;;  %v19922_v33 = vld [vmem:[#allocation15_spill] sm:$0xff]  ;;  %v19930_v25 = vld [vmem:[#allocation33_spill] sm:$0xff] }
 0x775   :  { %11914 = vmatprep.mubr.msk.f32.mxu0 %vm3129_vm8, %v5897_v19  ;;  %v5895_v13 = vsel %vm1978_vm5, %v5821_v38, %v5822_v32  ;;  %19902 = vst [vmem:[#allocation37_spill] sm:$0xff] %v16903_v35  ;;  %v5753_v0 = vmax.f32 %v19904_v50, %v19903_v30  ;;  %v19906_v19 = vld [vmem:[#allocation27_spill] sm:$0xff]  ;;  %19908 = vst [vmem:[#allocation36_spill] sm:$0xff] %v16911_v15  ;;  %v5894_v38 = vsel %vm1978_vm5, %v5822_v32, %v5823_v16 }
 0x776   :  { %11915 = vmatmul.mubr.msk.f32.vlgmr.msra.gmra.mrb[48].mxu0 %vm3129_vm8, %v5896_v45  ;;  %v5755_v26 = vmax.f32 %v19906_v19, %v19905_v60  ;;  %v16917_v45 = vmax.f32 %v5747_v51, 0.0  ;;  %v5893_v30 = vsel %vm1978_vm5, %v5823_v16, %v5824_v62  ;;  %v5826_v3 = vrot.slane %v16903_v35, 4  ;;  %v19913_v50 = vld [vmem:[#allocation35_spill] sm:$0xff]  ;;  %v19914_v19 = vld [vmem:[#allocation32_spill] sm:$0xff]  ;;  %v19926_v35 = vld [vmem:[#allocation9_spill] sm:$0xff] }
 0x777   :  { %11917 = vmatprep.mubr.msk.f32.mxu0 %vm3129_vm8, %v5895_v13  ;;  %11975 = vmatpush3.msra.mxu0 %v19907_v8  ;;  %v19910_v13 = vld [vmem:[#allocation12_spill] sm:$0xff]  ;;  %v19912_v8 = vld [vmem:[#allocation23_spill] sm:$0xff]  ;;  %v16930_v51 = vmax.f32 %v5748_v20, 0.0  ;;  %v19919_v20 = vld [vmem:[#allocation25_spill] sm:$0xff] }
 0x778   :  { %12036 = vmatprep.subr.mxu0 %v16897_v24  ;;  %19909 = vst [vmem:[#allocation40_spill] sm:$0xff] %v16917_v45  ;;  %v5757_v49 = vmax.f32 %v19911_v46, %v19910_v13  ;;  %v5759_v60 = vmax.f32 %v19913_v50, %v19912_v8  ;;  %v5892_v46 = vsel %vm1978_vm5, %v5824_v62, %v5825_v17  ;;  %v5828_v13 = vrot.slane %v16917_v45, 4  ;;  %v19917_v50 = vld [vmem:[#allocation34_spill] sm:$0xff]  ;;  %v19918_v32 = vld [vmem:[#allocation7_spill] sm:$0xff] }
 0x779   :  { %19916 = vst [vmem:[#allocation26_spill] sm:$0xff] %v16930_v51  ;;  %v5891_v16 = vsel %vm1978_vm5, %v5825_v17, %v5826_v3  ;;  %v16939_v8 = vmax.f32 %v5749_v58, 0.0  ;;  %v5763_v54 = vmax.f32 %v19918_v32, %v19917_v50  ;;  %v19921_v62 = vld [vmem:[#allocation22_spill] sm:$0xff]  ;;  %v5829_v17 = vrot.slane %v16930_v51, 4  ;;  %v19932_v51 = vld [vmem:[#allocation21_spill] sm:$0xff] }
 0x77a   :  { %11918 = vmatmul.mubr.msk.f32.gmra.mrb[50].mxu0 %vm3129_vm8, %v5894_v38  ;;  %v5827_v38 = vrot.slane %v16911_v15, 4  ;;  %v16960_v50 = vmax.f32 %v5751_v63, 0.0  ;;  %v19925_v15 = vld [vmem:[#allocation20_spill] sm:$0xff]  ;;  %v16981_v45 = vmax.f32 %v5753_v0, 0.0 }
 0x77b   :  { %11920 = vmatprep.mubr.msk.f32.mxu0 %vm3129_vm8, %v5893_v30  ;;  %v19920_v30 = vld [vmem:[#allocation10_spill] sm:$0xff]  ;;  %v5888_v63 = vsel %vm1978_vm5, %v5828_v13, %v5829_v17 }
 0x77c   :  { %v5890_v58 = vsel %vm1978_vm5, %v5826_v3, %v5827_v38  ;;  %v5889_v32 = vsel %vm1978_vm5, %v5827_v38, %v5828_v13  ;;  %v19929_v3 = vld [vmem:[#allocation29_spill] sm:$0xff] }
 0x77e   :  { %11921 = vmatmul.mubr.msk.f32.gmra.mrb[52].mxu0 %vm3129_vm8, %v5892_v46  ;;  %v19923_v46 = vmax.f32 %v16520_v40, %v16749_v47  ;;  %v19927_v40 = vld [vmem:[#allocation19_spill] sm:$0xff]  ;;  %v19928_v47 = vld [vmem:[#allocation17_spill] sm:$0xff] }
 0x77f   :  { %11923 = vmatprep.mubr.msk.f32.mxu0 %vm3129_vm8, %v5891_v16  ;;  %v5830_v16 = vrot.slane %v16939_v8, 4 }
 0x780   :  { %v16951_v56 = vmax.f32 %v19923_v46, 0.0  ;;  %v5832_v46 = vrot.slane %v16960_v50, 4 }
 0x782   :  { %19924 = vst [vmem:[#allocation11_spill] sm:$0xff] %v16951_v56  ;;  %11924 = vmatmul.mubr.msk.f32.gmra.mrb[54].mxu0 %vm3129_vm8, %v5890_v58  ;;  %v19931_v58 = vmax.f32 %v16526_v44, %v16741_v57  ;;  %v5831_v38 = vrot.slane %v16951_v56, 4  ;;  %v19933_v44 = vld [vmem:[#allocation28_spill] sm:$0xff] }
 0x783   :  { %11926 = vmatprep.mubr.msk.f32.mxu0 %vm3129_vm8, %v5889_v32  ;;  %v5887_v32 = vsel %vm1978_vm5, %v5829_v17, %v5830_v16  ;;  %v5775_v57 = vmax.f32 %v19933_v44, %v19932_v51  ;;  %v5834_v17 = vrot.slane %v16981_v45, 4 }
 0x784   :  { %v16972_v39 = vmax.f32 %v19931_v58, 0.0  ;;  %v19934_v58 = vmax.f32 %v16532_v9, %v16733_v36  ;;  %v5885_v0 = vsel %vm1978_vm5, %v5831_v38, %v5832_v46  ;;  %v19935_v9 = vmax.f32 %v16538_v41, %v16725_v43 }
 0x785   :  { %v19936_v41 = vmax.f32 %v16544_v6, %v16717_v22  ;;  %v19937_v6 = vmax.f32 %v16550_v48, %v16709_v52  ;;  %v19939_v48 = vmax.f32 %v16556_v37, %v16701_v31  ;;  %v19940_v37 = vmax.f32 %v16562_v7, %v16693_v23 }
 0x786   :  { %11927 = vmatmul.mubr.msk.f32.gmra.mrb[56].mxu0 %vm3129_vm8, %v5888_v63  ;;  %v16989_v13 = vmax.f32 %v19934_v58, 0.0  ;;  %v5886_v63 = vsel %vm1978_vm5, %v5830_v16, %v5831_v38  ;;  %v5833_v56 = vrot.slane %v16972_v39, 4  ;;  %v17004_v36 = vmax.f32 %v19935_v9, 0.0 }
 0x787   :  { %11929 = vmatprep.mubr.msk.f32.mxu0 %vm3129_vm8, %v5887_v32  ;;  %v16998_v32 = vmax.f32 %v5755_v26, 0.0  ;;  %v17019_v43 = vmax.f32 %v19936_v41, 0.0  ;;  %v17028_v9 = vmax.f32 %v5759_v60, 0.0  ;;  %v17034_v22 = vmax.f32 %v19937_v6, 0.0 }
 0x788   :  { %v5884_v16 = vsel %vm1978_vm5, %v5832_v46, %v5833_v56  ;;  %v5835_v58 = vrot.slane %v16989_v13, 4  ;;  %v5883_v38 = vsel %vm1978_vm5, %v5833_v56, %v5834_v17  ;;  %v17052_v52 = vmax.f32 %v19939_v48, 0.0 }
 0x789   :  { %v5836_v26 = vrot.slane %v16998_v32, 4  ;;  %v5840_v60 = vrot.slane %v17028_v9, 4  ;;  %v17067_v31 = vmax.f32 %v19940_v37, 0.0  ;;  %v19942_v7 = vmax.f32 %v16568_v53, %v16685_v42 }
 0x78a   :  { %11930 = vmatmul.mubr.msk.f32.gmra.mrb[58].mxu0 %vm3129_vm8, %v5886_v63  ;;  %v17013_v63 = vmax.f32 %v5757_v49, 0.0  ;;  %v5882_v46 = vsel %vm1978_vm5, %v5834_v17, %v5835_v58  ;;  %v19944_v53 = vmax.f32 %v16574_v59, %v16677_v11  ;;  %v19946_v59 = vmax.f32 %v16580_v18, %v16645_v34 }
 0x78b   :  { %11932 = vmatprep.mubr.msk.f32.mxu0 %vm3129_vm8, %v5885_v0  ;;  %v5837_v0 = vrot.slane %v17004_v36, 4  ;;  %v5881_v56 = vsel %vm1978_vm5, %v5835_v58, %v5836_v26  ;;  %v17085_v23 = vmax.f32 %v19942_v7, 0.0  ;;  %v19948_v34 = vmax.f32 %v16586_v27, %v16661_v61 }
 0x78c   :  { %v5838_v49 = vrot.slane %v17013_v63, 4  ;;  %v17103_v42 = vmax.f32 %v19944_v53, 0.0  ;;  %v17121_v11 = vmax.f32 %v19946_v59, 0.0  ;;  %v19950_v27 = vmax.f32 %v16592_v55, %v16653_v10  ;;  %v19954_v59 = vld [vmem:[#allocation14_spill] sm:$0xff] }
 0x78d   :  { %v5880_v17 = vsel %vm1978_vm5, %v5836_v26, %v5837_v0  ;;  %v17139_v18 = vmax.f32 %v19948_v34, 0.0  ;;  %v19951_v10 = vmax.f32 %v16598_v29, %v16669_v21  ;;  %v19960_v34 = vld [vmem:[#allocation40_spill] sm:$0xff] }
 0x78e   :  { %11933 = vmatmul.mubr.msk.f32.gmra.mrb[60].mxu0 %vm3129_vm8, %v5884_v16  ;;  %v5839_v16 = vrot.slane %v17019_v43, 4  ;;  %v5879_v58 = vsel %vm1978_vm5, %v5837_v0, %v5838_v49  ;;  %v17157_v61 = vmax.f32 %v19950_v27, 0.0 }
 0x78f   :  { %11935 = vmatprep.mubr.msk.f32.mxu0 %vm3129_vm8, %v5883_v38  ;;  %v19938_v38 = vmax.f32 %v19915_v12, %v19914_v19  ;;  %v17061_v19 = vmax.f32 %v5763_v54, 0.0  ;;  %v17175_v55 = vmax.f32 %v19951_v10, 0.0 }
 0x790   :  { %v5878_v26 = vsel %vm1978_vm5, %v5838_v49, %v5839_v16  ;;  %v5877_v0 = vsel %vm1978_vm5, %v5839_v16, %v5840_v60  ;;  %v5843_v49 = vrot.slane %v17052_v52, 4  ;;  %v5855_v53 = vrot.slane %v17157_v61, 4 }
 0x791   :  { %v17046_v41 = vmax.f32 %v19938_v38, 0.0  ;;  %v5844_v54 = vrot.slane %v17061_v19, 4  ;;  %v5857_v21 = vrot.slane %v17175_v55, 4 }
 0x792   :  { %11936 = vmatmul.mubr.msk.f32.gmra.mrb[62].mxu0 %vm3129_vm8, %v5882_v46  ;;  %v5841_v46 = vrot.slane %v17034_v22, 4 }
 0x793   :  { %11938 = vmatprep.mubr.msk.f32.mxu0 %vm3129_vm8, %v5881_v56  ;;  %v5842_v12 = vrot.slane %v17046_v41, 4  ;;  %v5873_v38 = vsel %vm1978_vm5, %v5843_v49, %v5844_v54 }
 0x794   :  { %v5876_v56 = vsel %vm1978_vm5, %v5840_v60, %v5841_v46  ;;  %v5845_v60 = vrot.slane %v17067_v31, 4 }
 0x795   :  { %v5875_v6 = vsel %vm1978_vm5, %v5841_v46, %v5842_v12  ;;  %v5847_v46 = vrot.slane %v17085_v23, 4 }
 0x796   :  { %11939 = vmatmul.mubr.msk.f32.gmra.mrb[64].mxu0 %vm3129_vm8, %v5880_v17  ;;  %v19941_v17 = vmax.f32 %v19920_v30, %v19919_v20  ;;  %v19943_v30 = vmax.f32 %v19922_v33, %v19921_v62  ;;  %v19945_v62 = vmax.f32 %v19926_v35, %v19925_v15  ;;  %v19947_v35 = vmax.f32 %v19928_v47, %v19927_v40 }
 0x797   :  { %11941 = vmatprep.mubr.msk.f32.mxu0 %vm3129_vm8, %v5879_v58  ;;  %v5874_v58 = vsel %vm1978_vm5, %v5842_v12, %v5843_v49  ;;  %v19949_v47 = vmax.f32 %v19930_v25, %v19929_v3  ;;  %v17169_v3 = vmax.f32 %v5775_v57, 0.0 }
 0x798   :  { %v17079_v16 = vmax.f32 %v19941_v17, 0.0  ;;  %v17097_v48 = vmax.f32 %v19943_v30, 0.0  ;;  %v17115_v12 = vmax.f32 %v19945_v62, 0.0  ;;  %v5851_v17 = vrot.slane %v17121_v11, 4 }
 0x799   :  { %v5856_v44 = vrot.slane %v17169_v3, 4 }
 0x79a   :  { %11942 = vmatmul.mubr.msk.f32.gmra.mrb[66].mxu0 %vm3129_vm8, %v5878_v26  ;;  %v5846_v20 = vrot.slane %v17079_v16, 4  ;;  %v5872_v26 = vsel %vm1978_vm5, %v5844_v54, %v5845_v60  ;;  %v5848_v33 = vrot.slane %v17097_v48, 4  ;;  %v5850_v15 = vrot.slane %v17115_v12, 4 }
 0x79b   :  { %11944 = vmatprep.mubr.msk.f32.mxu0 %vm3129_vm8, %v5877_v0  ;;  %v5860_v57 = vsel %vm1978_vm5, %v5856_v44, %v5857_v21 }
 0x79c   :  { %v5871_v0 = vsel %vm1978_vm5, %v5845_v60, %v5846_v20  ;;  %v5870_v37 = vsel %vm1978_vm5, %v5846_v20, %v5847_v46  ;;  %v5869_v49 = vsel %vm1978_vm5, %v5847_v46, %v5848_v33  ;;  %v5866_v60 = vsel %vm1978_vm5, %v5850_v15, %v5851_v17 }
 0x79e   :  { %11945 = vmatmul.mubr.msk.f32.gmra.mrb[68].mxu0 %vm3129_vm8, %v5876_v56  ;;  %v5849_v56 = vrot.slane %v17103_v42, 4 }
 0x79f   :  { %11947 = vmatprep.mubr.msk.f32.mxu0 %vm3129_vm8, %v5875_v6  ;;  %v17133_v6 = vmax.f32 %v19947_v35, 0.0  ;;  %v19959_v35 = vld [vmem:[#allocation36_spill] sm:$0xff] }
 0x7a0   :  { %v5868_v54 = vsel %vm1978_vm5, %v5848_v33, %v5849_v56  ;;  %v5867_v7 = vsel %vm1978_vm5, %v5849_v56, %v5850_v15  ;;  %v19953_v33 = vrot.slane %v16858_v4, 4  ;;  %v19956_v56 = vld [vmem:[#allocation13_spill] sm:$0xff] }
 0x7a1   :  { %v5852_v40 = vrot.slane %v17133_v6, 4  ;;  %v19958_v15 = vld [vmem:[#allocation37_spill] sm:$0xff] }
 0x7a2   :  { %11948 = vmatmul.mubr.msk.f32.gmra.mrb[70].mxu0 %vm3129_vm8, %v5874_v58  ;;  %v17151_v58 = vmax.f32 %v19949_v47, 0.0 }
 0x7a3   :  { %11950 = vmatprep.mubr.msk.f32.mxu0 %vm3129_vm8, %v5873_v38  ;;  %v5853_v38 = vrot.slane %v17139_v18, 4  ;;  %v5865_v20 = vsel %vm1978_vm5, %v5851_v17, %v5852_v40 }
 0x7a4   :  { %v5854_v25 = vrot.slane %v17151_v58, 4 }
 0x7a5   :  { %v5864_v30 = vsel %vm1978_vm5, %v5852_v40, %v5853_v38 }
 0x7a6   :  { %11951 = vmatmul.mubr.msk.f32.gmra.mrb[72].mxu0 %vm3129_vm8, %v5872_v26  ;;  %v19952_v26 = vmax.f32 %v16601_v28, %v16819_v1  ;;  %v5863_v51 = vsel %vm1978_vm5, %v5853_v38, %v5854_v25  ;;  %v5862_v29 = vsel %vm1978_vm5, %v5854_v25, %v5855_v53  ;;  %v5861_v28 = vsel %vm1978_vm5, %v5855_v53, %v5856_v44 }
 0x7a7   :  { %11953 = vmatprep.mubr.msk.f32.mxu0 %vm3129_vm8, %v5871_v0 }
 0x7a8   :  { %v17183_v46 = vmax.f32 %v19952_v26, 0.0 }
 0x7aa   :  { %11954 = vmatmul.mubr.msk.f32.gmra.mrb[74].mxu0 %vm3129_vm8, %v5870_v37  ;;  %v5858_v1 = vrot.slane %v17183_v46, 4  ;;  %v19955_v37 = vld [vmem:[#allocation39_spill] sm:$0xff] }
 0x7ab   :  { %11956 = vmatprep.mubr.msk.f32.mxu0 %vm3129_vm8, %v5869_v49  ;;  %v19957_v49 = vld [vmem:[#allocation38_spill] sm:$0xff] }
 0x7ac   :  { %v5859_v0 = vsel %vm1978_vm5, %v5857_v21, %v5858_v1  ;;  %v5898_v62 = vsel %vm1978_vm5, %v5858_v1, %v19953_v33 }
 0x7ae   :  { %11957 = vmatmul.mubr.msk.f32.gmra.mrb[76].mxu0 %vm3129_vm8, %v5868_v54  ;;  %v19962_v54 = vld [vmem:[#allocation11_spill] sm:$0xff] }
 0x7af   :  { %11959 = vmatprep.mubr.msk.f32.mxu0 %vm3129_vm8, %v5867_v7 }
 0x7b2   :  { %11960 = vmatmul.mubr.msk.f32.gmra.mrb[78].mxu0 %vm3129_vm8, %v5866_v60 }
 0x7b3   :  { %11962 = vmatprep.mubr.msk.f32.mxu0 %vm3129_vm8, %v5865_v20 }
 0x7b6   :  { %11963 = vmatmul.mubr.msk.f32.gmra.mrb[80].mxu0 %vm3129_vm8, %v5864_v30 }
 0x7b7   :  { %11965 = vmatprep.mubr.msk.f32.mxu0 %vm3129_vm8, %v5863_v51 }
 0x7ba   :  { %11966 = vmatmul.mubr.msk.f32.gmra.mrb[82].mxu0 %vm3129_vm8, %v5862_v29 }
 0x7bb   :  { %11968 = vmatprep.mubr.msk.f32.mxu0 %vm3129_vm8, %v5861_v28 }
 0x7be   :  { %11969 = vmatmul.mubr.msk.f32.gmra.mrb[84].mxu0 %vm3129_vm8, %v5860_v57 }
 0x7bf   :  { %11971 = vmatprep.mubr.msk.f32.mxu0 %vm3129_vm8, %v5859_v0 }
 0x7c2   :  { %11972 = vmatmul.mubr.msk.f32.gmra.mrb[86].mxu0 %vm3129_vm8, %v5898_v62 }
 0x7c3   :  { %11976 = vmatprep.mubr.msk.f32.mxu0 %vm3129_vm8, %v16858_v4 }
 0x7c6   :  { %11977 = vmatmul.mubr.msk.f32.vlgmr.msra.gmra.mrb[48].mxu0 %vm3129_vm8, %v16867_v2 }
 0x7c7   :  { %11979 = vmatprep.mubr.msk.f32.mxu0 %vm3129_vm8, %v16860_v5  ;;  %12037 = vmatpush3.msra.mxu0 %v16897_v24  ;;  %v19961_v24 = vld [vmem:[#allocation26_spill] sm:$0xff] }
 0x7ca   :  { %11980 = vmatmul.mubr.msk.f32.gmra.mrb[50].mxu0 %vm3129_vm8, %v19954_v59 }
 0x7cb   :  { %11982 = vmatprep.mubr.msk.f32.mxu0 %vm3129_vm8, %v19955_v37 }
 0x7ce   :  { %11983 = vmatmul.mubr.msk.f32.gmra.mrb[52].mxu0 %vm3129_vm8, %v19956_v56 }
 0x7cf   :  { %11985 = vmatprep.mubr.msk.f32.mxu0 %vm3129_vm8, %v19957_v49 }
 0x7d2   :  { %11986 = vmatmul.mubr.msk.f32.gmra.mrb[54].mxu0 %vm3129_vm8, %v19958_v15 }
 0x7d3   :  { %11988 = vmatprep.mubr.msk.f32.mxu0 %vm3129_vm8, %v19959_v35 }
 0x7d6   :  { %11989 = vmatmul.mubr.msk.f32.gmra.mrb[56].mxu0 %vm3129_vm8, %v19960_v34 }
 0x7d7   :  { %11991 = vmatprep.mubr.msk.f32.mxu0 %vm3129_vm8, %v19961_v24 }
 0x7da   :  { %11992 = vmatmul.mubr.msk.f32.gmra.mrb[58].mxu0 %vm3129_vm8, %v16939_v8 }
 0x7db   :  { %11994 = vmatprep.mubr.msk.f32.mxu0 %vm3129_vm8, %v19962_v54 }
 0x7de   :  { %11995 = vmatmul.mubr.msk.f32.gmra.mrb[60].mxu0 %vm3129_vm8, %v16960_v50 }
 0x7df   :  { %11997 = vmatprep.mubr.msk.f32.mxu0 %vm3129_vm8, %v16972_v39 }
 0x7e2   :  { %11998 = vmatmul.mubr.msk.f32.gmra.mrb[62].mxu0 %vm3129_vm8, %v16981_v45 }
 0x7e3   :  { %12000 = vmatprep.mubr.msk.f32.mxu0 %vm3129_vm8, %v16989_v13 }
 0x7e6   :  { %12001 = vmatmul.mubr.msk.f32.gmra.mrb[64].mxu0 %vm3129_vm8, %v16998_v32 }
 0x7e7   :  { %12003 = vmatprep.mubr.msk.f32.mxu0 %vm3129_vm8, %v17004_v36 }
 0x7ea   :  { %12004 = vmatmul.mubr.msk.f32.gmra.mrb[66].mxu0 %vm3129_vm8, %v17013_v63 }
 0x7eb   :  { %12006 = vmatprep.mubr.msk.f32.mxu0 %vm3129_vm8, %v17019_v43 }
 0x7ee   :  { %12007 = vmatmul.mubr.msk.f32.gmra.mrb[68].mxu0 %vm3129_vm8, %v17028_v9 }
 0x7ef   :  { %12009 = vmatprep.mubr.msk.f32.mxu0 %vm3129_vm8, %v17034_v22 }
 0x7f2   :  { %12010 = vmatmul.mubr.msk.f32.gmra.mrb[70].mxu0 %vm3129_vm8, %v17046_v41 }
 0x7f3   :  { %12012 = vmatprep.mubr.msk.f32.mxu0 %vm3129_vm8, %v17052_v52 }
 0x7f6   :  { %12013 = vmatmul.mubr.msk.f32.gmra.mrb[72].mxu0 %vm3129_vm8, %v17061_v19 }
 0x7f7   :  { %12015 = vmatprep.mubr.msk.f32.mxu0 %vm3129_vm8, %v17067_v31 }
 0x7fa   :  { %12016 = vmatmul.mubr.msk.f32.gmra.mrb[74].mxu0 %vm3129_vm8, %v17079_v16 }
 0x7fb   :  { %12018 = vmatprep.mubr.msk.f32.mxu0 %vm3129_vm8, %v17085_v23 }
 0x7fe   :  { %12019 = vmatmul.mubr.msk.f32.gmra.mrb[76].mxu0 %vm3129_vm8, %v17097_v48 }
 0x7ff   :  { %12021 = vmatprep.mubr.msk.f32.mxu0 %vm3129_vm8, %v17103_v42 }
 0x802   :  { %12022 = vmatmul.mubr.msk.f32.gmra.mrb[78].mxu0 %vm3129_vm8, %v17115_v12 }
 0x803   :  { %12024 = vmatprep.mubr.msk.f32.mxu0 %vm3129_vm8, %v17121_v11 }
 0x806   :  { %12025 = vmatmul.mubr.msk.f32.gmra.mrb[80].mxu0 %vm3129_vm8, %v17133_v6 }
 0x807   :  { %12027 = vmatprep.mubr.msk.f32.mxu0 %vm3129_vm8, %v17139_v18 }
 0x80a   :  { %12028 = vmatmul.mubr.msk.f32.gmra.mrb[82].mxu0 %vm3129_vm8, %v17151_v58 }
 0x80b   :  { %12030 = vmatprep.mubr.msk.f32.mxu0 %vm3129_vm8, %v17157_v61 }
 0x80e   :  { %12031 = vmatmul.mubr.msk.f32.gmra.mrb[84].mxu0 %vm3129_vm8, %v17169_v3 }
 0x80f   :  { %12033 = vmatprep.mubr.msk.f32.mxu0 %vm3129_vm8, %v17175_v55 }
 0x812   :  { %12034 = vmatmul.mubr.msk.f32.gmra.mrb[86].mxu0 %vm3129_vm8, %v17183_v46 }
 0x813   :  { %12038 = vmatprep.mubr.msk.f32.mxu0 %vm3129_vm8, %v16867_v2  ;;  %v19963_v2 = vld [vmem:[#allocation6_spill] sm:$0xff] }
 0x816   :  { %12039 = vmatmul.mubr.msk.f32.vlgmr.msra.gmra.mrb[48].mxu0 %vm3129_vm8, %v16860_v5 }
 0x817   :  { %12041 = vmatprep.mubr.msk.f32.mxu0 %vm3129_vm8, %v19954_v59 }
 0x81a   :  { %12042 = vmatmul.mubr.msk.f32.gmra.mrb[50].mxu0 %vm3129_vm8, %v19955_v37 }
 0x81b   :  { %12044 = vmatprep.mubr.msk.f32.mxu0 %vm3129_vm8, %v19956_v56 }
 0x81e   :  { %12045 = vmatmul.mubr.msk.f32.gmra.mrb[52].mxu0 %vm3129_vm8, %v19957_v49 }
 0x81f   :  { %12047 = vmatprep.mubr.msk.f32.mxu0 %vm3129_vm8, %v19958_v15 }
 0x822   :  { %12048 = vmatmul.mubr.msk.f32.gmra.mrb[54].mxu0 %vm3129_vm8, %v19959_v35 }
 0x823   :  { %12050 = vmatprep.mubr.msk.f32.mxu0 %vm3129_vm8, %v19960_v34 }
 0x826   :  { %12051 = vmatmul.mubr.msk.f32.gmra.mrb[56].mxu0 %vm3129_vm8, %v19961_v24 }
 0x827   :  { %12053 = vmatprep.mubr.msk.f32.mxu0 %vm3129_vm8, %v16939_v8 }
 0x82a   :  { %12054 = vmatmul.mubr.msk.f32.gmra.mrb[58].mxu0 %vm3129_vm8, %v19962_v54 }
 0x82b   :  { %12056 = vmatprep.mubr.msk.f32.mxu0 %vm3129_vm8, %v16960_v50 }
 0x82e   :  { %12057 = vmatmul.mubr.msk.f32.gmra.mrb[60].mxu0 %vm3129_vm8, %v16972_v39  ;;  %v17373_v39 = vld [vmem:[%s19323_s2 + $0x2] ss:$8 sm:$0x7] }
 0x82f   :  { %12059 = vmatprep.mubr.msk.f32.mxu0 %vm3129_vm8, %v16981_v45  ;;  %v17377_v5 = vrot.slane %v17373_v39, %v19963_v2 }
 0x831   :  { %7059 = vmatprep.mubr.f32.mxu1 %v17377_v5 }
 0x832   :  { %12060 = vmatmul.mubr.msk.f32.gmra.mrb[62].mxu0 %vm3129_vm8, %v16989_v13 }
 0x833   :  { %12062 = vmatprep.mubr.msk.f32.mxu0 %vm3129_vm8, %v16998_v32 }
 0x836   :  { %12063 = vmatmul.mubr.msk.f32.gmra.mrb[64].mxu0 %vm3129_vm8, %v17004_v36 }
 0x837   :  { %12065 = vmatprep.mubr.msk.f32.mxu0 %vm3129_vm8, %v17013_v63 }
 0x83a   :  { %12066 = vmatmul.mubr.msk.f32.gmra.mrb[66].mxu0 %vm3129_vm8, %v17019_v43 }
 0x83b   :  { %12068 = vmatprep.mubr.msk.f32.mxu0 %vm3129_vm8, %v17028_v9 }
 0x83e   :  { %12069 = vmatmul.mubr.msk.f32.gmra.mrb[68].mxu0 %vm3129_vm8, %v17034_v22 }
 0x83f   :  { %12071 = vmatprep.mubr.msk.f32.mxu0 %vm3129_vm8, %v17046_v41 }
 0x842   :  { %12072 = vmatmul.mubr.msk.f32.gmra.mrb[70].mxu0 %vm3129_vm8, %v17052_v52 }
 0x843   :  { %12074 = vmatprep.mubr.msk.f32.mxu0 %vm3129_vm8, %v17061_v19 }
 0x846   :  { %12075 = vmatmul.mubr.msk.f32.gmra.mrb[72].mxu0 %vm3129_vm8, %v17067_v31 }
 0x847   :  { %12077 = vmatprep.mubr.msk.f32.mxu0 %vm3129_vm8, %v17079_v16 }
 0x84a   :  { %12078 = vmatmul.mubr.msk.f32.gmra.mrb[74].mxu0 %vm3129_vm8, %v17085_v23 }
 0x84b   :  { %12080 = vmatprep.mubr.msk.f32.mxu0 %vm3129_vm8, %v17097_v48 }
 0x84e   :  { %12081 = vmatmul.mubr.msk.f32.gmra.mrb[76].mxu0 %vm3129_vm8, %v17103_v42 }
 0x84f   :  { %12083 = vmatprep.mubr.msk.f32.mxu0 %vm3129_vm8, %v17115_v12 }
 0x852   :  { %12084 = vmatmul.mubr.msk.f32.gmra.mrb[78].mxu0 %vm3129_vm8, %v17121_v11 }
 0x853   :  { %12086 = vmatprep.mubr.msk.f32.mxu0 %vm3129_vm8, %v17133_v6 }
 0x856   :  { %12087 = vmatmul.mubr.msk.f32.gmra.mrb[80].mxu0 %vm3129_vm8, %v17139_v18 }
 0x857   :  { %12089 = vmatprep.mubr.msk.f32.mxu0 %vm3129_vm8, %v17151_v58 }
 0x85a   :  { %12090 = vmatmul.mubr.msk.f32.gmra.mrb[82].mxu0 %vm3129_vm8, %v17157_v61 }
 0x85b   :  { %12092 = vmatprep.mubr.msk.f32.mxu0 %vm3129_vm8, %v17169_v3 }
 0x85e   :  { %12093 = vmatmul.mubr.msk.f32.gmra.mrb[84].mxu0 %vm3129_vm8, %v17175_v55 }
 0x85f   :  { %12095 = vmatprep.mubr.msk.f32.mxu0 %vm3129_vm8, %v17183_v46 }
 0x862   :  { %12096 = vmatmul.mubr.msk.f32.gmra.mrb[86].mxu0 %vm3129_vm8, %v16858_v4 }
 0x8e9   :  { %v17380_v45 = vpop.f32.mrb[48].mxu0 }
 0x8ea   :  { %v17384_v8 = vmul.f32 %v17380_v45, %v17380_v45  ;;  %v17386_v50 = vpop.f32.mrb[49].mxu0 }
 0x8eb   :  { %v12588_v4 = vpack.c.bf16 %v17380_v45, %v17386_v50  ;;  %v17392_v13 = vmul.f32 %v17386_v50, %v17386_v50 }
 0x8ed   :  { %v17396_v36 = vpop.f32.mrb[50].mxu0 }
 0x8ee   :  { %v17400_v63 = vmul.f32 %v17396_v36, %v17396_v36  ;;  %v17402_v43 = vpop.f32.mrb[51].mxu0 }
 0x8ef   :  { %v12592_v9 = vpack.c.bf16 %v17396_v36, %v17402_v43  ;;  %v17408_v22 = vmul.f32 %v17402_v43, %v17402_v43 }
 0x8f1   :  { %v17412_v52 = vpop.f32.mrb[52].mxu0 }
 0x8f2   :  { %v17416_v19 = vmul.f32 %v17412_v52, %v17412_v52  ;;  %v17418_v31 = vpop.f32.mrb[53].mxu0 }
 0x8f3   :  { %v12596_v16 = vpack.c.bf16 %v17412_v52, %v17418_v31  ;;  %v17424_v23 = vmul.f32 %v17418_v31, %v17418_v31 }
 0x8f5   :  { %v17428_v42 = vpop.f32.mrb[54].mxu0 }
 0x8f6   :  { %v17432_v12 = vmul.f32 %v17428_v42, %v17428_v42  ;;  %v17434_v11 = vpop.f32.mrb[55].mxu0 }
 0x8f7   :  { %v12600_v6 = vpack.c.bf16 %v17428_v42, %v17434_v11  ;;  %v17440_v18 = vmul.f32 %v17434_v11, %v17434_v11 }
 0x8f9   :  { %v17444_v7 = vpop.f32.mrb[56].mxu0 }
 0x8fa   :  { %v17448_v40 = vmul.f32 %v17444_v7, %v17444_v7  ;;  %v17450_v47 = vpop.f32.mrb[57].mxu0 }
 0x8fb   :  { %v12604_v58 = vpack.c.bf16 %v17444_v7, %v17450_v47  ;;  %v17456_v27 = vmul.f32 %v17450_v47, %v17450_v47 }
 0x8fd   :  { %v17460_v60 = vpop.f32.mrb[58].mxu0 }
 0x8fe   :  { %v17464_v38 = vmul.f32 %v17460_v60, %v17460_v60  ;;  %v17466_v20 = vpop.f32.mrb[59].mxu0 }
 0x8ff   :  { %v17472_v3 = vmul.f32 %v17466_v20, %v17466_v20 }
 0x901   :  { %v17476_v55 = vpop.f32.mrb[60].mxu0 }
 0x902   :  { %v17480_v30 = vmul.f32 %v17476_v55, %v17476_v55  ;;  %v17482_v53 = vpop.f32.mrb[61].mxu0 }
 0x903   :  { %v17488_v46 = vmul.f32 %v17482_v53, %v17482_v53 }
 0x905   :  { %v17492_v44 = vpop.f32.mrb[62].mxu0 }
 0x906   :  { %19964 = vst [vmem:[#allocation18_spill] sm:$0xff] %v17492_v44  ;;  %v17496_v29 = vmul.f32 %v17492_v44, %v17492_v44  ;;  %v17498_v21 = vpop.f32.mrb[63].mxu0 }
 0x907   :  { %v17504_v1 = vmul.f32 %v17498_v21, %v17498_v21 }
 0x909   :  { %v17508_v0 = vpop.f32.mrb[64].mxu0 }
 0x90a   :  { %19965 = vst [vmem:[#allocation41_spill] sm:$0xff] %v17508_v0  ;;  %v17512_v33 = vmul.f32 %v17508_v0, %v17508_v0  ;;  %v17514_v62 = vpop.f32.mrb[65].mxu0 }
 0x90b   :  { %19966 = vst [vmem:[#allocation27_spill] sm:$0xff] %v17514_v62  ;;  %v12586_v59 = vpack.c.bf16 %v17508_v0, %v17514_v62  ;;  %v17520_v37 = vmul.f32 %v17514_v62, %v17514_v62 }
 0x90d   :  { %v17522_v56 = vpop.f32.mrb[66].mxu0  ;;  %12587 = vmatprep.subr.bf16.mxu1 %v12586_v59 }
 0x90e   :  { %19967 = vst [vmem:[#allocation16_spill] sm:$0xff] %v17522_v56  ;;  %v17528_v15 = vmul.f32 %v17522_v56, %v17522_v56  ;;  %v17530_v35 = vpop.f32.mrb[67].mxu0  ;;  %12589 = vmatpush3.bf16.msra.mxu1 %v12588_v4 }
 0x90f   :  { %19968 = vst [vmem:[#allocation12_spill] sm:$0xff] %v17530_v35  ;;  %v12590_v34 = vpack.c.bf16 %v17522_v56, %v17530_v35  ;;  %v17536_v24 = vmul.f32 %v17530_v35, %v17530_v35  ;;  %v19990_v35 = vmov 0.0  }
 0x911   :  { %v17538_v54 = vpop.f32.mrb[68].mxu0  ;;  %12591 = vmatprep.subr.bf16.mxu1 %v12590_v34 }
 0x912   :  { %19969 = vst [vmem:[#allocation30_spill] sm:$0xff] %v17538_v54  ;;  %v17544_v57 = vmul.f32 %v17538_v54, %v17538_v54  ;;  %v17546_v51 = vpop.f32.mrb[69].mxu0  ;;  %12593 = vmatpush3.bf16.msra.mxu1 %v12592_v9 }
 0x913   :  { %19970 = vst [vmem:[#allocation23_spill] sm:$0xff] %v17546_v51  ;;  %v12594_v4 = vpack.c.bf16 %v17538_v54, %v17546_v51  ;;  %v17552_v10 = vmul.f32 %v17546_v51, %v17546_v51 }
 0x915   :  { %v17554_v61 = vpop.f32.mrb[70].mxu0  ;;  %12595 = vmatprep.subr.bf16.mxu1 %v12594_v4 }
 0x916   :  { %19971 = vst [vmem:[#allocation35_spill] sm:$0xff] %v17554_v61  ;;  %v17560_v17 = vmul.f32 %v17554_v61, %v17554_v61  ;;  %v17562_v48 = vpop.f32.mrb[71].mxu0  ;;  %12597 = vmatpush3.bf16.msra.mxu1 %v12596_v16 }
 0x917   :  { %19972 = vst [vmem:[#allocation32_spill] sm:$0xff] %v17562_v48  ;;  %v12598_v9 = vpack.c.bf16 %v17554_v61, %v17562_v48  ;;  %v17568_v41 = vmul.f32 %v17562_v48, %v17562_v48  ;;  %v19982_v61 = vpack.c.bf16 %v17476_v55, %v17482_v53 }
 0x919   :  { %v17570_v59 = vpop.f32.mrb[72].mxu0  ;;  %12599 = vmatprep.subr.bf16.mxu1 %v12598_v9 }
 0x91a   :  { %19973 = vst [vmem:[#allocation8_spill] sm:$0xff] %v17570_v59  ;;  %v17576_v34 = vmul.f32 %v17570_v59, %v17570_v59  ;;  %v17578_v32 = vpop.f32.mrb[73].mxu0  ;;  %12601 = vmatpush3.bf16.msra.mxu1 %v12600_v6 }
 0x91b   :  { %19974 = vst [vmem:[#allocation34_spill] sm:$0xff] %v17578_v32  ;;  %v12602_v16 = vpack.c.bf16 %v17570_v59, %v17578_v32  ;;  %v17584_v49 = vmul.f32 %v17578_v32, %v17578_v32 }
 0x91d   :  { %v17586_v28 = vpop.f32.mrb[74].mxu0  ;;  %12603 = vmatprep.subr.bf16.mxu1 %v12602_v16 }
 0x91e   :  { %19975 = vst [vmem:[#allocation7_spill] sm:$0xff] %v17586_v28  ;;  %v17592_v4 = vmul.f32 %v17586_v28, %v17586_v28  ;;  %v17594_v26 = vpop.f32.mrb[75].mxu0  ;;  %12605 = vmatpush3.bf16.msra.mxu1 %v12604_v58  ;;  %v19979_v58 = vpack.c.bf16 %v17460_v60, %v17466_v20 }
 0x91f   :  { %19976 = vst [vmem:[#allocation25_spill] sm:$0xff] %v17594_v26  ;;  %v12606_v6 = vpack.c.bf16 %v17586_v28, %v17594_v26  ;;  %v17600_v25 = vmul.f32 %v17594_v26, %v17594_v26 }
 0x921   :  { %v17602_v2 = vpop.f32.mrb[76].mxu0  ;;  %12607 = vmatprep.subr.bf16.mxu1 %v12606_v6 }
 0x922   :  { %19977 = vst [vmem:[#allocation10_spill] sm:$0xff] %v17602_v2  ;;  %v17608_v9 = vmul.f32 %v17602_v2, %v17602_v2  ;;  %v17610_v14 = vpop.f32.mrb[77].mxu0  ;;  %12609 = vmatpush3.bf16.msra.mxu1 %v19979_v58 }
 0x923   :  { %19978 = vst [vmem:[#allocation22_spill] sm:$0xff] %v17610_v14  ;;  %v12610_v28 = vpack.c.bf16 %v17602_v2, %v17610_v14  ;;  %v7163_v26 = vmul.f32 %v17610_v14, %v17610_v14 }
 0x925   :  { %v17619_v6 = vpop.f32.mrb[78].mxu0  ;;  %12611 = vmatprep.subr.bf16.mxu1 %v12610_v28  ;;  %v12654_v16 = vpack.c.bf16 %v17608_v9, %v7163_v26  ;;  %v19984_v28 = vld [vmem:[#allocation24_spill] sm:$0xff] }
 0x926   :  { %19980 = vst [vmem:[#allocation15_spill] sm:$0xff] %v17619_v6  ;;  %v7166_v59 = vmul.f32 %v17619_v6, %v17619_v6  ;;  %v17624_v32 = vpop.f32.mrb[79].mxu0  ;;  %12613 = vmatpush3.bf16.msra.mxu1 %v19982_v61  ;;  %v6982_v26 = vrot.slane %v17373_v39, %v19984_v28  ;;  %v19986_v61 = vpack.c.bf16 %v17492_v44, %v17498_v21 }
 0x927   :  { %19981 = vst [vmem:[#allocation20_spill] sm:$0xff] %v17624_v32  ;;  %v12614_v58 = vpack.c.bf16 %v17619_v6, %v17624_v32  ;;  %v7165_v2 = vmul.f32 %v17624_v32, %v17624_v32 }
 0x929   :  { %v17633_v14 = vpop.f32.mrb[80].mxu0  ;;  %12615 = vmatprep.subr.bf16.mxu1 %v12614_v58  ;;  %v12658_v9 = vpack.c.bf16 %v7166_v59, %v7165_v2  ;;  %v19987_v58 = vmov 0.0|0.0  }
 0x92a   :  { %19983 = vst [vmem:[#allocation9_spill] sm:$0xff] %v17633_v14  ;;  %v7168_v48 = vmul.f32 %v17633_v14, %v17633_v14  ;;  %v17639_v54 = vpop.f32.mrb[81].mxu0  ;;  %12617 = vmatpush3.bf16.msra.mxu1 %v19986_v61 }
 0x92b   :  { %19985 = vst [vmem:[#allocation19_spill] sm:$0xff] %v17639_v54  ;;  %v12619_v6 = vpack.c.bf16 %v17633_v14, %v17639_v54  ;;  %v7167_v32 = vmul.f32 %v17639_v54, %v17639_v54  ;;  %12618 = vmatprep.subr.bf16.mxu1 %v19987_v58 }
 0x92d   :  { %v12663_v51 = vpack.c.bf16 %v7168_v48, %v7167_v32  ;;  %v17649_v56 = vpop.f32.mrb[82].mxu0  ;;  %7060 = vmatmul.mubr.f32.vlgmr.msra.gmra.mrb[48].mxu1 %v6982_v26 }
 0x92e   :  { %19988 = vst [vmem:[#allocation17_spill] sm:$0xff] %v17649_v56  ;;  %v7170_v2 = vmul.f32 %v17649_v56, %v17649_v56  ;;  %v17653_v59 = vpop.f32.mrb[83].mxu0  ;;  %12620 = vmatpush3.bf16.msra.mxu1 %v12619_v6  ;;  %12114 = vmatprep.mubr.msk.f32.mxu1 %vm13354_vm6, %v19990_v35 }
 0x92f   :  { %19989 = vst [vmem:[#allocation29_spill] sm:$0xff] %v17653_v59  ;;  %v12622_v61 = vpack.c.bf16 %v17649_v56, %v17653_v59  ;;  %v7169_v14 = vmul.f32 %v17653_v59, %v17653_v59  ;;  %12621 = vmatprep.subr.bf16.mxu1 %v19987_v58 }
 0x931   :  { %v12666_v32 = vpack.c.bf16 %v7170_v2, %v7169_v14  ;;  %v17662_v48 = vpop.f32.mrb[84].mxu0 }
 0x932   :  { %19991 = vst [vmem:[#allocation33_spill] sm:$0xff] %v17662_v48  ;;  %v7172_v54 = vmul.f32 %v17662_v48, %v17662_v48  ;;  %v17666_v0 = vpop.f32.mrb[85].mxu0  ;;  %12623 = vmatpush3.bf16.msra.mxu1 %v12622_v61 }
 0x933   :  { %19992 = vst [vmem:[#allocation21_spill] sm:$0xff] %v17666_v0  ;;  %v12625_v6 = vpack.c.bf16 %v17662_v48, %v17666_v0  ;;  %v7171_v56 = vmul.f32 %v17666_v0, %v17666_v0  ;;  %12624 = vmatprep.subr.bf16.mxu1 %v19987_v58  ;;  %v19994_v0 = vld [vmem:[#allocation31_spill] sm:$0xff] }
 0x934   :  { %v6990_v44 = vrot.slane %v17373_v39, %v19994_v0  ;;  %v19998_v39 = vpack.c.bf16 %v17400_v63, %v17408_v22  ;;  %v20004_v63 = vpack.c.bf16 %v17448_v40, %v17456_v27  ;;  %v20005_v22 = vpack.c.bf16 %v17592_v4, %v17600_v25 }
 0x935   :  { %v12669_v59 = vpack.c.bf16 %v7172_v54, %v7171_v56  ;;  %v17673_v62 = vpop.f32.mrb[86].mxu0  ;;  %v19995_v54 = vpack.c.bf16 %v17512_v33, %v17520_v37  ;;  %v19999_v33 = vpack.c.bf16 %v17544_v57, %v17552_v10  ;;  %v20000_v37 = vpack.c.bf16 %v17416_v19, %v17424_v23 }
 0x936   :  { %19993 = vst [vmem:[#allocation28_spill] sm:$0xff] %v17673_v62  ;;  %v7174_v14 = vmul.f32 %v17673_v62, %v17673_v62  ;;  %v17677_v2 = vpop.f32.mrb[87].mxu0  ;;  %12626 = vmatpush3.bf16.msra.mxu1 %v12625_v6  ;;  %v19996_v6 = vpack.c.bf16 %v17384_v8, %v17392_v13  ;;  %v20001_v8 = vpack.c.bf16 %v17560_v17, %v17568_v41  ;;  %v7578_v17 = vld [vmem:[%s19322_s1 + $0x80] sm:$0xff] }
 0x937   :  { %v12628_v61 = vpack.c.bf16 %v17673_v62, %v17677_v2  ;;  %v7173_v48 = vmul.f32 %v17677_v2, %v17677_v2  ;;  %12627 = vmatprep.subr.bf16.mxu1 %v19987_v58  ;;  %v19997_v62 = vpack.c.bf16 %v17528_v15, %v17536_v24  ;;  %v20003_v13 = vpack.c.bf16 %v17576_v34, %v17584_v49 }
 0x938   :  { %v20006_v41 = vpack.c.bf16 %v17464_v38, %v17472_v3  ;;  %v20007_v19 = vpack.c.bf16 %v17480_v30, %v17488_v46  ;;  %v20008_v23 = vpack.c.bf16 %v17496_v29, %v17504_v1  ;;  %v7576_v29 = vld [vmem:[%s19322_s1 + $0x70] sm:$0xff] }
 0x939   :  { %v12672_v56 = vpack.c.bf16 %v7174_v14, %v7173_v48  ;;  %v7321_v48 = vld [vmem:[%s19322_s1 + $0x9e] sm:$0x1] }
 0x93a   :  { %12629 = vmatpush3.bf16.msra.mxu1 %v12628_v61 }
 0x93b   :  { %12631 = vmatprep.subr.bf16.mxu1 %v19995_v54 }
 0x93d   :  { %12115 = vmatmul.mubr.msk.f32.vlgmr.msra.gmra.mrb[50].mxu1 %vm2464_vm7, %v6990_v44 }
 0x93e   :  { %12633 = vmatpush3.bf16.msra.mxu1 %v19996_v6  ;;  %7239 = vmatprep.mubr.f32.mxu1 %v17377_v5  ;;  %v20002_v5 = vpack.c.bf16 %v17432_v12, %v17440_v18  ;;  %v7577_v18 = vld [vmem:[%s19322_s1 + $0x78] sm:$0xff] }
 0x93f   :  { %12635 = vmatprep.subr.bf16.mxu1 %v19997_v62  ;;  %v12674_v27 = vpack.c.bf16 %v7578_v17, %v7577_v18  ;;  %v20012_v18 = vld [vmem:[#allocation12_spill] sm:$0xff] }
 0x940   :  { %v20013_v17 = vld [vmem:[#allocation16_spill] sm:$0xff] }
 0x942   :  { %12637 = vmatpush3.bf16.msra.mxu1 %v19998_v39 }
 0x943   :  { %12639 = vmatprep.subr.bf16.mxu1 %v19999_v33 }
 0x946   :  { %12641 = vmatpush3.bf16.msra.mxu1 %v20000_v37 }
 0x947   :  { %12643 = vmatprep.subr.bf16.mxu1 %v20001_v8 }
 0x94a   :  { %12645 = vmatpush3.bf16.msra.mxu1 %v20002_v5 }
 0x94b   :  { %12647 = vmatprep.subr.bf16.mxu1 %v20003_v13 }
 0x94e   :  { %12649 = vmatpush3.bf16.msra.mxu1 %v20004_v63 }
 0x94f   :  { %12651 = vmatprep.subr.bf16.mxu1 %v20005_v22 }
 0x952   :  { %12653 = vmatpush3.bf16.msra.mxu1 %v20006_v41 }
 0x953   :  { %12655 = vmatprep.subr.bf16.mxu1 %v12654_v16 }
 0x956   :  { %12657 = vmatpush3.bf16.msra.mxu1 %v20007_v19  ;;  %v20010_v19 = vld [vmem:[#allocation27_spill] sm:$0xff] }
 0x957   :  { %12659 = vmatprep.subr.bf16.mxu1 %v12658_v9  ;;  %v7320_v9 = vld [vmem:[%s19322_s1 + $0x9a] sm:$0x1] }
 0x95a   :  { %12661 = vmatpush3.bf16.msra.mxu1 %v20008_v23 }
 0x95b   :  { %12662 = vmatprep.subr.bf16.mxu1 %v19987_v58 }
 0x95d   :  { %7240 = vmatmul.mubr.f32.vlgmr.msra.gmra.mrb[52].mxu1 %v6982_v26 }
 0x95e   :  { %12664 = vmatpush3.bf16.msra.mxu1 %v12663_v51  ;;  %12133 = vmatprep.mubr.msk.f32.mxu1 %vm13354_vm6, %v19990_v35 }
 0x95f   :  { %12665 = vmatprep.subr.bf16.mxu1 %v19987_v58 }
 0x962   :  { %12667 = vmatpush3.bf16.msra.mxu1 %v12666_v32 }
 0x963   :  { %12668 = vmatprep.subr.bf16.mxu1 %v19987_v58 }
 0x966   :  { %12670 = vmatpush3.bf16.msra.mxu1 %v12669_v59 }
 0x967   :  { %12671 = vmatprep.subr.bf16.mxu1 %v19987_v58 }
 0x96a   :  { %12673 = vmatpush3.bf16.msra.mxu1 %v12672_v56 }
 0x96b   :  { %12675 = vmatprep.subr.bf16.mxu1 %v12674_v27 }
 0x96d   :  { %12134 = vmatmul.mubr.msk.f32.vlgmr.msra.gmra.mrb[54].mxu1 %vm2464_vm7, %v6990_v44  ;;  %v7575_v44 = vld [vmem:[%s19322_s1 + $0x68] sm:$0xff] }
 0x96e   :  { %12677 = vmatpush3.bf16.msra.mxu1 %v12674_v27  ;;  %v17749_v1 = vpack.c.bf16 %v7576_v29, %v7575_v44  ;;  %v20015_v27 = vld [vmem:[#allocation30_spill] sm:$0xff]  ;;  %v20021_v44 = vld [vmem:[#allocation7_spill] sm:$0xff] }
 0x970   :  { %12679 = vmatprep.subr.bf16.mxu1 %v17749_v1 }
 0xa00   :  { %v10886_v12 = vpop.f32.mrb[48].mxu1 }
 0xa01   :  { %v10887_v40 = vpop.f32.mrb[49].mxu1 }
 0xa02   :  { %v10888_v38 = vadd.f32 %v10887_v40, %v10886_v12  ;;  %v20011_v12 = vld [vmem:[#allocation41_spill] sm:$0xff]  ;;  %v20014_v40 = vld [vmem:[#allocation23_spill] sm:$0xff] }
 0xa10   :  { %v7131_v25 = vpop.f32.mrb[50].mxu1 }
 0xa11   :  { %v7132_v3 = vadd.f32 %v10888_v38, %v7131_v25  ;;  %v12116_v10 = vpop.f32.mrb[51].mxu1  ;;  %v20016_v38 = vld [vmem:[#allocation32_spill] sm:$0xff]  ;;  %v20017_v25 = vld [vmem:[#allocation35_spill] sm:$0xff] }
 0xa12   :  { %v20019_v10 = vld [vmem:[#allocation8_spill] sm:$0xff] }
 0xa13   :  { %v7315_v57 = vmul.f32 0.017857144, %v7132_v3  ;;  %v20018_v3 = vld [vmem:[#allocation34_spill] sm:$0xff] }
 0xa15   :  { %v7317_v24 = vmul.f32 %v7315_v57, %v7315_v57 }
 0xa30   :  { %v10930_v30 = vpop.f32.mrb[52].mxu1 }
 0xa31   :  { %v10931_v46 = vpop.f32.mrb[53].mxu1 }
 0xa32   :  { %v10932_v51 = vadd.f32 %v10931_v46, %v10930_v30  ;;  %v20020_v46 = vld [vmem:[#allocation25_spill] sm:$0xff] }
 0xa40   :  { %v7311_v62 = vpop.f32.mrb[54].mxu1 }
 0xa41   :  { %v7312_v49 = vadd.f32 %v10932_v51, %v7311_v62  ;;  %v12135_v15 = vpop.f32.mrb[55].mxu1 }
 0xa43   :  { %v7316_v34 = vmul.f32 0.017857144, %v7312_v49  ;;  %v20023_v49 = vld [vmem:[#allocation10_spill] sm:$0xff] }
 0xa45   :  { %v7318_v4 = vsub.f32 %v7316_v34, %v7317_v24  ;;  %v20024_v24 = vld [vmem:[#allocation20_spill] sm:$0xff] }
 0xa47   :  { %v7319_v16 = vmax.f32 %v7318_v4, 0.0  ;;  %v20025_v4 = vld [vmem:[#allocation15_spill] sm:$0xff] }
 0xa49   :  { %v7322_v26 = vadd.f32 1e-05, %v7319_v16 }
 0xa4b   :  { %13325 = vrsqrt.f32 %v7322_v26  ;;  %v20026_v26 = vld [vmem:[#allocation19_spill] sm:$0xff] }
 0xa55   :  { %v13326_v59 = vpop.eup %13325 }
 0xa56   :  { %v7324_v32 = vmul.f32 %v13326_v59, %v7320_v9  ;;  %v20027_v59 = vld [vmem:[#allocation9_spill] sm:$0xff] }
 0xa58   :  { %v7325_v14 = vmul.f32 %v7324_v32, %v7315_v57  ;;  %v7330_v61 = vrot.slane %v7324_v32, %v19984_v28  ;;  %v20022_v57 = vld [vmem:[#allocation22_spill] sm:$0xff] }
 0xa5a   :  { %v7326_v56 = vsub.f32 %v7321_v48, %v7325_v14  ;;  %v7331_v54 = vmul.f32 %v7330_v61, %v17386_v50  ;;  %v7332_v6 = vmul.f32 %v17380_v45, %v7330_v61  ;;  %v7333_v39 = vmul.f32 %v7330_v61, %v17402_v43  ;;  %v20028_v48 = vld [vmem:[#allocation29_spill] sm:$0xff] }
 0xa5b   :  { %v7334_v33 = vmul.f32 %v17396_v36, %v7330_v61  ;;  %v7335_v37 = vmul.f32 %v7330_v61, %v17418_v31  ;;  %v7336_v8 = vmul.f32 %v17412_v52, %v7330_v61  ;;  %v7337_v5 = vmul.f32 %v7330_v61, %v17434_v11  ;;  %v20009_v11 = vld [vmem:[#allocation18_spill] sm:$0xff] }
 0xa5c   :  { %v17767_v13 = vrot.slane %v7326_v56, %v19984_v28  ;;  %v7338_v63 = vmul.f32 %v17428_v42, %v7330_v61  ;;  %v7339_v22 = vmul.f32 %v7330_v61, %v17450_v47  ;;  %v7340_v50 = vmul.f32 %v17444_v7, %v7330_v61  ;;  %v20029_v56 = vld [vmem:[#allocation17_spill] sm:$0xff] }
 0xa5d   :  { %v7341_v45 = vmul.f32 %v7330_v61, %v17466_v20  ;;  %v7342_v43 = vmul.f32 %v17460_v60, %v7330_v61  ;;  %v7343_v36 = vmul.f32 %v7330_v61, %v17482_v53  ;;  %v7344_v31 = vmul.f32 %v17476_v55, %v7330_v61 }
 0xa5e   :  { %v7345_v52 = vmul.f32 %v7330_v61, %v17498_v21  ;;  %v7346_v41 = vmul.f32 %v20009_v11, %v7330_v61  ;;  %v7347_v23 = vmul.f32 %v7330_v61, %v20010_v19  ;;  %v7348_v42 = vmul.f32 %v20011_v12, %v7330_v61  ;;  %v20030_v19 = vld [vmem:[#allocation21_spill] sm:$0xff] }
 0xa5f   :  { %v7349_v47 = vmul.f32 %v7330_v61, %v20012_v18  ;;  %v7350_v7 = vmul.f32 %v20013_v17, %v7330_v61  ;;  %v7351_v20 = vmul.f32 %v7330_v61, %v20014_v40  ;;  %v7352_v60 = vmul.f32 %v20015_v27, %v7330_v61  ;;  %v20031_v18 = vld [vmem:[#allocation33_spill] sm:$0xff]  ;;  %v20032_v27 = vld [vmem:[#allocation28_spill] sm:$0xff] }
 0xa60   :  { %v7353_v53 = vmul.f32 %v7330_v61, %v20016_v38  ;;  %v7354_v55 = vmul.f32 %v20017_v25, %v7330_v61  ;;  %v7355_v21 = vmul.f32 %v7330_v61, %v20018_v3  ;;  %v7356_v30 = vmul.f32 %v20019_v10, %v7330_v61 }
 0xa61   :  { %v7357_v51 = vmul.f32 %v7330_v61, %v20020_v46  ;;  %v7358_v29 = vmul.f32 %v20021_v44, %v7330_v61  ;;  %v7359_v62 = vmul.f32 %v7330_v61, %v20022_v57  ;;  %v7360_v15 = vmul.f32 %v20023_v49, %v7330_v61 }
 0xa62   :  { %v7361_v34 = vmul.f32 %v7330_v61, %v20024_v24  ;;  %v7362_v16 = vmul.f32 %v20025_v4, %v7330_v61  ;;  %v7363_v9 = vmul.f32 %v7330_v61, %v20026_v26  ;;  %v7364_v32 = vmul.f32 %v20027_v59, %v7330_v61 }
 0xa63   :  { %v7365_v14 = vmul.f32 %v7330_v61, %v20028_v48  ;;  %v7366_v11 = vmul.f32 %v20029_v56, %v7330_v61  ;;  %v7367_v12 = vmul.f32 %v7330_v61, %v20030_v19  ;;  %v7368_v17 = vmul.f32 %v20031_v18, %v7330_v61 }
 0xa64   :  { %v7369_v40 = vmul.f32 %v7330_v61, %v17677_v2  ;;  %v7370_v38 = vmul.f32 %v20032_v27, %v7330_v61  ;;  %v17803_v25 = vadd.f32 %v17767_v13, %v7331_v54  ;;  %v17806_v3 = vadd.f32 %v17767_v13, %v7332_v6 }
 0xa65   :  { %v17809_v10 = vadd.f32 %v17767_v13, %v7333_v39  ;;  %v17812_v46 = vadd.f32 %v17767_v13, %v7334_v33  ;;  %v17815_v44 = vadd.f32 %v17767_v13, %v7335_v37  ;;  %v17818_v57 = vadd.f32 %v17767_v13, %v7336_v8 }
 0xa66   :  { %20033 = vst [vmem:[#allocation14_spill] sm:$0xff] %v17803_v25  ;;  %v17821_v2 = vadd.f32 %v17767_v13, %v7337_v5  ;;  %v17824_v61 = vadd.f32 %v17767_v13, %v7338_v63  ;;  %v17827_v54 = vadd.f32 %v17767_v13, %v7339_v22  ;;  %v17830_v6 = vadd.f32 %v17767_v13, %v7340_v50 }
 0xa67   :  { %v17833_v39 = vadd.f32 %v17767_v13, %v7341_v45  ;;  %v17836_v33 = vadd.f32 %v17767_v13, %v7342_v43  ;;  %v17839_v37 = vadd.f32 %v17767_v13, %v7343_v36  ;;  %v17842_v8 = vadd.f32 %v17767_v13, %v7344_v31 }
 0xa68   :  { %v17845_v5 = vadd.f32 %v17767_v13, %v7345_v52  ;;  %v17848_v63 = vadd.f32 %v17767_v13, %v7346_v41  ;;  %v17851_v22 = vadd.f32 %v17767_v13, %v7347_v23  ;;  %v17854_v50 = vadd.f32 %v17767_v13, %v7348_v42 }
 0xa69   :  { %v17857_v45 = vadd.f32 %v17767_v13, %v7349_v47  ;;  %v17860_v43 = vadd.f32 %v17767_v13, %v7350_v7  ;;  %v17863_v36 = vadd.f32 %v17767_v13, %v7351_v20  ;;  %v17866_v31 = vadd.f32 %v17767_v13, %v7352_v60 }
 0xa6a   :  { %v17869_v52 = vadd.f32 %v17767_v13, %v7353_v53  ;;  %v17872_v41 = vadd.f32 %v17767_v13, %v7354_v55  ;;  %v17875_v23 = vadd.f32 %v17767_v13, %v7355_v21  ;;  %v17878_v42 = vadd.f32 %v17767_v13, %v7356_v30 }
 0xa6b   :  { %v17881_v47 = vadd.f32 %v17767_v13, %v7357_v51  ;;  %v17884_v7 = vadd.f32 %v17767_v13, %v7358_v29  ;;  %v17887_v20 = vadd.f32 %v17767_v13, %v7359_v62  ;;  %v17890_v60 = vadd.f32 %v17767_v13, %v7360_v15 }
 0xa6c   :  { %20034 = vst [vmem:[#allocation39_spill] sm:$0xff] %v17878_v42  ;;  %v17893_v53 = vadd.f32 %v17767_v13, %v7361_v34  ;;  %v17896_v55 = vadd.f32 %v17767_v13, %v7362_v16  ;;  %v17899_v21 = vadd.f32 %v17767_v13, %v7363_v9  ;;  %v17902_v30 = vadd.f32 %v17767_v13, %v7364_v32 }
 0xa6d   :  { %20035 = vst [vmem:[#allocation13_spill] sm:$0xff] %v17884_v7  ;;  %20036 = vst [vmem:[#allocation38_spill] sm:$0xff] %v17890_v60  ;;  %v17905_v51 = vadd.f32 %v17767_v13, %v7365_v14  ;;  %v17908_v29 = vadd.f32 %v17767_v13, %v7366_v11  ;;  %v17911_v62 = vadd.f32 %v17767_v13, %v7367_v12  ;;  %v7415_v34 = vrot.slane %v17803_v25, 4 }
 0xa6e   :  { %20037 = vst [vmem:[#allocation37_spill] sm:$0xff] %v17896_v55  ;;  %20038 = vst [vmem:[#allocation36_spill] sm:$0xff] %v17902_v30  ;;  %v17914_v49 = vadd.f32 %v17767_v13, %v7368_v17  ;;  %v17917_v15 = vadd.f32 %v17767_v13, %v7369_v40  ;;  %v17920_v24 = vadd.f32 %v17767_v13, %v7370_v38  ;;  %v19530_v14 = vrot.slane %v17881_v47, 4 }
 0xa6f   :  { %20039 = vst [vmem:[#allocation40_spill] sm:$0xff] %v17908_v29  ;;  %v19527_v13 = vrot.slane %v17884_v7, 4  ;;  %v19528_v56 = vrot.slane %v17887_v20, 4  ;;  %v19525_v11 = vrot.slane %v17890_v60, 4  ;;  %v19526_v19 = vrot.slane %v17893_v53, 4 }
 0xa70   :  { %20040 = vst [vmem:[#allocation26_spill] sm:$0xff] %v17914_v49  ;;  %v19519_v12 = vrot.slane %v17896_v55, 4  ;;  %v19524_v18 = vrot.slane %v17899_v21, 4  ;;  %v19518_v17 = vrot.slane %v17902_v30, 4  ;;  %v19523_v40 = vrot.slane %v17905_v51, 4 }
 0xa71   :  { %v19521_v27 = vrot.slane %v17908_v29, 4  ;;  %v19522_v38 = vrot.slane %v17911_v62, 4  ;;  %v19520_v4 = vrot.slane %v17914_v49, 4  ;;  %v19529_v16 = vrot.slane %v17917_v15, 4 }
 0xa72   :  { %v7454_v26 = vrot.slane %v17920_v24, 4  ;;  %v17968_v59 = vsel %vm1978_vm5, %v19524_v18, %v19518_v17  ;;  %v17976_v32 = vsel %vm1978_vm5, %v19526_v19, %v19519_v12  ;;  %v18000_v12 = vsel %vm1978_vm5, %v19528_v56, %v19525_v11 }
 0xa73   :  { %v17984_v48 = vsel %vm1978_vm5, %v19522_v38, %v19520_v4  ;;  %v17992_v17 = vsel %vm1978_vm5, %v19523_v40, %v19521_v27  ;;  %v18008_v4 = vsel %vm1978_vm5, %v19530_v14, %v19527_v13  ;;  %v20042_v38 = vrot.slane %v17878_v42, 4 }
 0xa74   :  { %v18014_v27 = vsel %vm1978_vm5, %v19529_v16, %v7454_v26  ;;  %v20043_v40 = vrot.slane %v17875_v23, 4  ;;  %v20044_v11 = vrot.slane %v17872_v41, 4  ;;  %v20045_v19 = vrot.slane %v17869_v52, 4 }
 0xa75   :  { %v20046_v56 = vrot.slane %v17866_v31, 4  ;;  %v20047_v16 = vrot.slane %v17863_v36, 4  ;;  %v20048_v0 = vrot.slane %v17860_v43, 4  ;;  %v20050_v35 = vrot.slane %v17854_v50, 4 }
 0xa76   :  { %v18022_v18 = vsel %vm1978_vm5, %v20043_v40, %v20042_v38  ;;  %v18030_v13 = vsel %vm1978_vm5, %v20045_v19, %v20044_v11  ;;  %v20049_v40 = vrot.slane %v17857_v45, 4  ;;  %v20051_v11 = vrot.slane %v17851_v22, 4 }
 0xa77   :  { %v18038_v14 = vsel %vm1978_vm5, %v20047_v16, %v20046_v56  ;;  %v20052_v58 = vrot.slane %v17848_v63, 4  ;;  %v20053_v16 = vrot.slane %v17845_v5, 4  ;;  %v20054_v28 = vrot.slane %v17842_v8, 4 }
 0xa78   :  { %v18046_v38 = vsel %vm1978_vm5, %v20049_v40, %v20048_v0  ;;  %v18054_v19 = vsel %vm1978_vm5, %v20051_v11, %v20050_v35  ;;  %v20055_v0 = vrot.slane %v17839_v37, 4  ;;  %v20056_v49 = vrot.slane %v17836_v33, 4 }
 0xa79   :  { %v18062_v56 = vsel %vm1978_vm5, %v20053_v16, %v20052_v58  ;;  %v20057_v35 = vrot.slane %v17833_v39, 4  ;;  %v20058_v29 = vrot.slane %v17830_v6, 4  ;;  %v20059_v58 = vrot.slane %v17827_v54, 4 }
 0xa7a   :  { %v18070_v40 = vsel %vm1978_vm5, %v20055_v0, %v20054_v28  ;;  %v20060_v30 = vrot.slane %v17824_v61, 4  ;;  %v20061_v28 = vrot.slane %v17821_v2, 4  ;;  %v20062_v55 = vrot.slane %v17818_v57, 4 }
 0xa7b   :  { %v18078_v11 = vsel %vm1978_vm5, %v20057_v35, %v20056_v49  ;;  %v18086_v16 = vsel %vm1978_vm5, %v20059_v58, %v20058_v29  ;;  %v20063_v49 = vrot.slane %v17815_v44, 4  ;;  %v20064_v60 = vrot.slane %v17812_v46, 4 }
 0xa7c   :  { %v18094_v0 = vsel %vm1978_vm5, %v20061_v28, %v20060_v30  ;;  %v20065_v29 = vrot.slane %v17809_v10, 4  ;;  %v20066_v7 = vrot.slane %v17806_v3, 4  ;;  %v18116_v28 = vsel %vm1978_vm5, %v7454_v26, %v7415_v34 }
 0xa7d   :  { %v7489_v35 = vsel %vm1978_vm5, %v20063_v49, %v20062_v55  ;;  %v20117_v9 = vmax.f32 %v17839_v37, %v18070_v40 }
 0xa7e   :  { %v7491_v58 = vsel %vm1978_vm5, %v20065_v29, %v20064_v60  ;;  %v18112_v30 = vsel %vm1978_vm5, %v7415_v34, %v20066_v7  ;;  %v7499_v42 = vmax.f32 %v17815_v44, %v7489_v35  ;;  %v7501_v60 = vmax.f32 %v17821_v2, %v18094_v0 }
 0xa7f   :  { %20067 = vst [vmem:[#allocation11_spill] sm:$0xff] %v18112_v30  ;;  %v7497_v49 = vmax.f32 %v17809_v10, %v7491_v58  ;;  %v20068_v26 = vmov %v20065_v29  ;;  %v20069_v29 = vmov %v20066_v7  ;;  %v20070_v58 = vrot.slane %v17815_v44, 4 }
 0xa80   :  { %v7492_v35 = vsel %vm1978_vm5, %v20069_v29, %v20068_v26  ;;  %v20071_v0 = vrot.slane %v17812_v46, 4  ;;  %v20072_v34 = vrot.slane %v17821_v2, 4  ;;  %v20073_v10 = vrot.slane %v17818_v57, 4 }
 0xa81   :  { %v7496_v30 = vmax.f32 %v17806_v3, %v7492_v35  ;;  %v18178_v29 = vmax.f32 %v7497_v49, 0.0  ;;  %v20074_v26 = vrot.slane %v17827_v54, 4  ;;  %v20077_v2 = vrot.slane %v17830_v6, 4 }
 0xa82   :  { %v7490_v55 = vsel %vm1978_vm5, %v20071_v0, %v20070_v58  ;;  %v7488_v25 = vsel %vm1978_vm5, %v20073_v10, %v20072_v34  ;;  %v20075_v58 = vrot.slane %v17824_v61, 4  ;;  %v20079_v34 = vrot.slane %v17836_v33, 4 }
 0xa83   :  { %v7498_v7 = vmax.f32 %v17812_v46, %v7490_v55  ;;  %v7500_v44 = vmax.f32 %v17818_v57, %v7488_v25  ;;  %v20076_v46 = vrot.slane %v17833_v39, 4  ;;  %v18193_v35 = vmax.f32 %v7496_v30, 0.0 }
 0xa84   :  { %v7486_v3 = vsel %vm1978_vm5, %v20075_v58, %v20074_v26  ;;  %v20078_v57 = vrot.slane %v17839_v37, 4  ;;  %v20080_v30 = vrot.slane %v17845_v5, 4  ;;  %v20119_v37 = vmax.f32 %v17851_v22, %v18054_v19 }
 0xa85   :  { %v7484_v55 = vsel %vm1978_vm5, %v20077_v2, %v20076_v46  ;;  %v7502_v49 = vmax.f32 %v17824_v61, %v7486_v3  ;;  %12140 = vmatprep.mubr.msk.f32.mxu1 %vm7579_vm10, %v18193_v35  ;;  %v18205_v10 = vmax.f32 %v7498_v7, 0.0  ;;  %v20081_v61 = vrot.slane %v17842_v8, 4 }
 0xa86   :  { %v7504_v25 = vmax.f32 %v17830_v6, %v7484_v55  ;;  %v7482_v0 = vsel %vm1978_vm5, %v20079_v34, %v20078_v57  ;;  %12141 = vmatmul.mubr.msk.f32.vlgmr.msra.gmra.mrb[56].mxu1 %vm7579_vm10, %v18178_v29  ;;  %v20082_v3 = vrot.slane %v17851_v22, 4  ;;  %v20083_v46 = vrot.slane %v17848_v63, 4 }
 0xa87   :  { %v7506_v26 = vmax.f32 %v17836_v33, %v7482_v0  ;;  %v7480_v6 = vsel %vm1978_vm5, %v20081_v61, %v20080_v30  ;;  %12143 = vmatprep.mubr.msk.f32.mxu1 %vm7579_vm10, %v18205_v10  ;;  %v20084_v2 = vrot.slane %v17857_v45, 4  ;;  %v20085_v55 = vrot.slane %v17854_v50, 4  ;;  %12681 = vmatpush3.bf16.msra.mxu1 %v17749_v1 }
 0xa88   :  { %v7508_v58 = vmax.f32 %v17842_v8, %v7480_v6  ;;  %v7478_v7 = vsel %vm1978_vm5, %v20083_v46, %v20082_v3  ;;  %v18233_v8 = vmax.f32 %v7499_v42, 0.0  ;;  %v20086_v0 = vrot.slane %v17863_v36, 4 }
 0xa89   :  { %v7510_v33 = vmax.f32 %v17848_v63, %v7478_v7  ;;  %v7476_v57 = vsel %vm1978_vm5, %v20085_v55, %v20084_v2  ;;  %v20087_v30 = vrot.slane %v17860_v43, 4  ;;  %v18242_v61 = vmax.f32 %v7500_v44, 0.0  ;;  %v20094_v55 = vld [vmem:[#allocation39_spill] sm:$0xff] }
 0xa8a   :  { %v7512_v34 = vmax.f32 %v17854_v50, %v7476_v57  ;;  %v20089_v3 = vrot.slane %v17869_v52, 4  ;;  %v20090_v46 = vrot.slane %v17866_v31, 4  ;;  %12144 = vmatmul.mubr.msk.f32.gmra.mrb[58].mxu1 %vm7579_vm10, %v18233_v8  ;;  %v20091_v42 = vrot.slane %v17875_v23, 4 }
 0xa8b   :  { %v7474_v63 = vsel %vm1978_vm5, %v20087_v30, %v20086_v0  ;;  %20088 = vst [vmem:[#allocation18_spill] sm:$0xff] %v18242_v61  ;;  %v20092_v7 = vrot.slane %v17872_v41, 4  ;;  %12146 = vmatprep.mubr.msk.f32.mxu1 %vm7579_vm10, %v18242_v61  ;;  %v20093_v2 = vrot.slane %v17881_v47, 4  ;;  %v20095_v57 = vrot.slane %v20094_v55, 4 }
 0xa8c   :  { %v7514_v6 = vmax.f32 %v17860_v43, %v7474_v63  ;;  %v7472_v1 = vsel %vm1978_vm5, %v20090_v46, %v20089_v3  ;;  %v20096_v63 = vrot.slane %v17887_v20, 4  ;;  %v20097_v3 = vld [vmem:[#allocation13_spill] sm:$0xff]  ;;  %v18376_v40 = vmax.f32 %v20119_v37, 0.0 }
 0xa8d   :  { %v7516_v50 = vmax.f32 %v17866_v31, %v7472_v1  ;;  %v7470_v44 = vsel %vm1978_vm5, %v20092_v7, %v20091_v42  ;;  %v7468_v0 = vsel %vm1978_vm5, %v20095_v57, %v20093_v2  ;;  %v18269_v31 = vmax.f32 %v7501_v60, 0.0  ;;  %v20104_v57 = vld [vmem:[#allocation37_spill] sm:$0xff] }
 0xa8e   :  { %v7518_v43 = vmax.f32 %v17872_v41, %v7470_v44  ;;  %v7520_v30 = vmax.f32 %v20094_v55, %v7468_v0  ;;  %v20098_v46 = vrot.slane %v20097_v3, 4  ;;  %v18278_v42 = vmax.f32 %v7502_v49, 0.0  ;;  %v20101_v44 = vld [vmem:[#allocation38_spill] sm:$0xff] }
 0xa8f   :  { %v20100_v7 = vrot.slane %v17893_v53, 4  ;;  %v20102_v61 = vrot.slane %v20101_v44, 4  ;;  %12147 = vmatmul.mubr.msk.f32.gmra.mrb[60].mxu1 %vm7579_vm10, %v18269_v31  ;;  %v20103_v55 = vrot.slane %v17899_v21, 4  ;;  %v20105_v0 = vrot.slane %v20104_v57, 4 }
 0xa90   :  { %v7466_v1 = vsel %vm1978_vm5, %v20098_v46, %v20096_v63  ;;  %20099 = vst [vmem:[#allocation27_spill] sm:$0xff] %v18278_v42  ;;  %12149 = vmatprep.mubr.msk.f32.mxu1 %vm7579_vm10, %v18278_v42  ;;  %v20121_v22 = vmax.f32 %v17863_v36, %v18038_v14  ;;  %v20123_v36 = vmax.f32 %v17875_v23, %v18022_v18 }
 0xa91   :  { %v7522_v41 = vmax.f32 %v20097_v3, %v7466_v1  ;;  %v7464_v60 = vsel %vm1978_vm5, %v20102_v61, %v20100_v7  ;;  %v7462_v49 = vsel %vm1978_vm5, %v20105_v0, %v20103_v55  ;;  %v20106_v3 = vrot.slane %v17905_v51, 4  ;;  %v20107_v61 = vld [vmem:[#allocation36_spill] sm:$0xff] }
 0xa92   :  { %v7524_v2 = vmax.f32 %v20101_v44, %v7464_v60  ;;  %v7526_v63 = vmax.f32 %v20104_v57, %v7462_v49  ;;  %v20108_v46 = vrot.slane %v20107_v61, 4  ;;  %v20109_v7 = vmax.f32 %v17827_v54, %v18086_v16  ;;  %v20111_v0 = vld [vmem:[#allocation40_spill] sm:$0xff]  ;;  %v8230_v49 = vld [vmem:[%s19322_s1 + $0x88] sm:$0xff] }
 0xa93   :  { %v20110_v55 = vrot.slane %v17911_v62, 4  ;;  %v20112_v42 = vrot.slane %v20111_v0, 4  ;;  %v18323_v54 = vmax.f32 %v7504_v25, 0.0  ;;  %v20116_v25 = vmax.f32 %v17833_v39, %v18078_v11 }
 0xa94   :  { %v7460_v1 = vsel %vm1978_vm5, %v20108_v46, %v20106_v3  ;;  %v18308_v44 = vmax.f32 %v20109_v7, 0.0  ;;  %v8231_v3 = vld [vmem:[%s19322_s1 + $0x90] sm:$0xff]  ;;  %v20118_v39 = vmax.f32 %v17845_v5, %v18062_v56  ;;  %v20120_v5 = vmax.f32 %v17857_v45, %v18046_v38 }
 0xa95   :  { %v7528_v60 = vmax.f32 %v20107_v61, %v7460_v1  ;;  %v7458_v57 = vsel %vm1978_vm5, %v20112_v42, %v20110_v55  ;;  %v20113_v61 = vrot.slane %v17917_v15, 4  ;;  %v20114_v46 = vld [vmem:[#allocation26_spill] sm:$0xff]  ;;  %v18337_v55 = vpack.c.bf16 %v8231_v3, %v8230_v49 }
 0xa96   :  { %v7530_v16 = vmax.f32 %v20111_v0, %v7458_v57  ;;  %v20115_v1 = vrot.slane %v20114_v46, 4  ;;  %12150 = vmatmul.mubr.msk.f32.gmra.mrb[62].mxu1 %vm7579_vm10, %v18308_v44  ;;  %v18342_v0 = vmax.f32 %v20116_v25, 0.0  ;;  %v18344_v57 = vmax.f32 %v7506_v26, 0.0 }
 0xa97   :  { %12152 = vmatprep.mubr.msk.f32.mxu1 %vm7579_vm10, %v18323_v54  ;;  %12683 = vmatprep.subr.bf16.mxu1 %v18337_v55  ;;  %v18354_v49 = vmax.f32 %v20117_v9, 0.0  ;;  %v18356_v3 = vmax.f32 %v7508_v58, 0.0  ;;  %v18365_v11 = vmax.f32 %v20118_v39, 0.0  ;;  %v18367_v26 = vmax.f32 %v7510_v33, 0.0 }
 0xa98   :  { %v7456_v7 = vsel %vm1978_vm5, %v20115_v1, %v20113_v61  ;;  %v18378_v58 = vmax.f32 %v7512_v34, 0.0  ;;  %v18387_v56 = vmax.f32 %v20120_v5, 0.0  ;;  %v18389_v33 = vmax.f32 %v7514_v6, 0.0 }
 0xa99   :  { %v7532_v42 = vmax.f32 %v20114_v46, %v7456_v7  ;;  %v18398_v19 = vmax.f32 %v20121_v22, 0.0  ;;  %v18400_v34 = vmax.f32 %v7516_v50, 0.0  ;;  %v20122_v45 = vmax.f32 %v17869_v52, %v18030_v13 }
 0xa9a   :  { %12153 = vmatmul.mubr.msk.f32.gmra.mrb[64].mxu1 %vm7579_vm10, %v18342_v0  ;;  %v18411_v6 = vmax.f32 %v7518_v43, 0.0  ;;  %v18420_v14 = vmax.f32 %v20123_v36, 0.0  ;;  %v18422_v50 = vmax.f32 %v7520_v30, 0.0  ;;  %v20124_v52 = vmax.f32 %v17881_v47, %v18008_v4 }
 0xa9b   :  { %12155 = vmatprep.mubr.msk.f32.mxu1 %vm7579_vm10, %v18344_v57  ;;  %v18409_v38 = vmax.f32 %v20122_v45, 0.0  ;;  %v18433_v43 = vmax.f32 %v7522_v41, 0.0  ;;  %v20125_v23 = vmax.f32 %v17887_v20, %v18000_v12  ;;  %v18444_v30 = vmax.f32 %v7524_v2, 0.0 }
 0xa9c   :  { %v18431_v13 = vmax.f32 %v20124_v52, 0.0  ;;  %v20126_v47 = vmax.f32 %v17893_v53, %v17976_v32  ;;  %v18455_v41 = vmax.f32 %v7526_v63, 0.0  ;;  %v20127_v20 = vmax.f32 %v17899_v21, %v17968_v59 }
 0xa9d   :  { %v18442_v18 = vmax.f32 %v20125_v23, 0.0  ;;  %v18466_v2 = vmax.f32 %v7528_v60, 0.0  ;;  %v20128_v53 = vmax.f32 %v17905_v51, %v17992_v17  ;;  %v18477_v63 = vmax.f32 %v7530_v16, 0.0 }
 0xa9e   :  { %12156 = vmatmul.mubr.msk.f32.gmra.mrb[66].mxu1 %vm7579_vm10, %v18354_v49  ;;  %v18453_v4 = vmax.f32 %v20126_v47, 0.0  ;;  %v18464_v12 = vmax.f32 %v20127_v20, 0.0  ;;  %v20129_v21 = vmax.f32 %v17911_v62, %v17984_v48  ;;  %v18488_v60 = vmax.f32 %v7532_v42, 0.0  ;;  %v20132_v62 = vld [vmem:[#allocation14_spill] sm:$0xff]  ;;  %v20133_v48 = vld [vmem:[#allocation11_spill] sm:$0xff] }
 0xa9f   :  { %12158 = vmatprep.mubr.msk.f32.mxu1 %vm7579_vm10, %v18356_v3  ;;  %v18475_v32 = vmax.f32 %v20128_v53, 0.0  ;;  %v20130_v51 = vmax.f32 %v17917_v15, %v18014_v27  ;;  %v20131_v16 = vmax.f32 %v17920_v24, %v18116_v28  ;;  %v20134_v46 = vmax.f32 %v20132_v62, %v20133_v48  ;;  %v20135_v15 = vld [vmem:[#allocation18_spill] sm:$0xff]  ;;  %v20136_v24 = vld [vmem:[#allocation27_spill] sm:$0xff] }
 0xaa0   :  { %v18486_v59 = vmax.f32 %v20129_v21, 0.0  ;;  %v18679_v27 = vld [vmem:[%s19323_s2 + $0x3] ss:$8 sm:$0x7] }
 0xaa1   :  { %v18497_v17 = vmax.f32 %v20130_v51, 0.0  ;;  %v18502_v61 = vmax.f32 %v20131_v16, 0.0  ;;  %v18511_v1 = vmax.f32 %v20134_v46, 0.0  ;;  %v20137_v28 = vld [vmem:[#allocation6_spill] sm:$0xff] }
 0xaa2   :  { %12159 = vmatmul.mubr.msk.f32.gmra.mrb[68].mxu1 %vm7579_vm10, %v18365_v11 }
 0xaa3   :  { %12161 = vmatprep.mubr.msk.f32.mxu1 %vm7579_vm10, %v18367_v26 }
 0xaa6   :  { %12162 = vmatmul.mubr.msk.f32.gmra.mrb[70].mxu1 %vm7579_vm10, %v18376_v40 }
 0xaa7   :  { %12164 = vmatprep.mubr.msk.f32.mxu1 %vm7579_vm10, %v18378_v58 }
 0xaaa   :  { %12165 = vmatmul.mubr.msk.f32.gmra.mrb[72].mxu1 %vm7579_vm10, %v18387_v56 }
 0xaab   :  { %12167 = vmatprep.mubr.msk.f32.mxu1 %vm7579_vm10, %v18389_v33 }
 0xaae   :  { %12168 = vmatmul.mubr.msk.f32.gmra.mrb[74].mxu1 %vm7579_vm10, %v18398_v19 }
 0xaaf   :  { %12170 = vmatprep.mubr.msk.f32.mxu1 %vm7579_vm10, %v18400_v34 }
 0xab2   :  { %12171 = vmatmul.mubr.msk.f32.gmra.mrb[76].mxu1 %vm7579_vm10, %v18409_v38 }
 0xab3   :  { %12173 = vmatprep.mubr.msk.f32.mxu1 %vm7579_vm10, %v18411_v6 }
 0xab6   :  { %12174 = vmatmul.mubr.msk.f32.gmra.mrb[78].mxu1 %vm7579_vm10, %v18420_v14 }
 0xab7   :  { %12176 = vmatprep.mubr.msk.f32.mxu1 %vm7579_vm10, %v18422_v50 }
 0xaba   :  { %12177 = vmatmul.mubr.msk.f32.gmra.mrb[80].mxu1 %vm7579_vm10, %v18431_v13 }
 0xabb   :  { %12179 = vmatprep.mubr.msk.f32.mxu1 %vm7579_vm10, %v18433_v43 }
 0xabe   :  { %12180 = vmatmul.mubr.msk.f32.gmra.mrb[82].mxu1 %vm7579_vm10, %v18442_v18 }
 0xabf   :  { %12182 = vmatprep.mubr.msk.f32.mxu1 %vm7579_vm10, %v18444_v30 }
 0xac2   :  { %12183 = vmatmul.mubr.msk.f32.gmra.mrb[84].mxu1 %vm7579_vm10, %v18453_v4 }
 0xac3   :  { %12185 = vmatprep.mubr.msk.f32.mxu1 %vm7579_vm10, %v18455_v41 }
 0xac6   :  { %12186 = vmatmul.mubr.msk.f32.gmra.mrb[86].mxu1 %vm7579_vm10, %v18464_v12 }
 0xac7   :  { %12188 = vmatprep.mubr.msk.f32.mxu1 %vm7579_vm10, %v18466_v2 }
 0xaca   :  { %12189 = vmatmul.mubr.msk.f32.gmra.mrb[88].mxu1 %vm7579_vm10, %v18475_v32 }
 0xacb   :  { %12191 = vmatprep.mubr.msk.f32.mxu1 %vm7579_vm10, %v18477_v63 }
 0xace   :  { %12192 = vmatmul.mubr.msk.f32.gmra.mrb[90].mxu1 %vm7579_vm10, %v18486_v59 }
 0xacf   :  { %12194 = vmatprep.mubr.msk.f32.mxu1 %vm7579_vm10, %v18488_v60 }
 0xad2   :  { %12195 = vmatmul.mubr.msk.f32.gmra.mrb[92].mxu1 %vm7579_vm10, %v18497_v17 }
 0xad3   :  { %12197 = vmatprep.mubr.msk.f32.mxu1 %vm7579_vm10, %v18502_v61 }
 0xad6   :  { %12198 = vmatmul.mubr.msk.f32.gmra.mrb[94].mxu1 %vm7579_vm10, %v18511_v1 }
 0xad7   :  { %12204 = vmatprep.mubr.msk.f32.mxu1 %vm7579_vm10, %v18511_v1 }
 0xada   :  { %12205 = vmatmul.mubr.msk.f32.vlgmr.msra.gmra.mrb[56].mxu1 %vm7579_vm10, %v18193_v35 }
 0xadb   :  { %12207 = vmatprep.mubr.msk.f32.mxu1 %vm7579_vm10, %v18178_v29  ;;  %12685 = vmatpush3.bf16.msra.mxu1 %v18337_v55 }
 0xade   :  { %12208 = vmatmul.mubr.msk.f32.gmra.mrb[58].mxu1 %vm7579_vm10, %v18205_v10 }
 0xadf   :  { %12210 = vmatprep.mubr.msk.f32.mxu1 %vm7579_vm10, %v18233_v8 }
 0xae2   :  { %12211 = vmatmul.mubr.msk.f32.gmra.mrb[60].mxu1 %vm7579_vm10, %v20135_v15 }
 0xae3   :  { %12213 = vmatprep.mubr.msk.f32.mxu1 %vm7579_vm10, %v18269_v31 }
 0xae6   :  { %12214 = vmatmul.mubr.msk.f32.gmra.mrb[62].mxu1 %vm7579_vm10, %v20136_v24 }
 0xae7   :  { %12216 = vmatprep.mubr.msk.f32.mxu1 %vm7579_vm10, %v18308_v44 }
 0xaea   :  { %12217 = vmatmul.mubr.msk.f32.gmra.mrb[64].mxu1 %vm7579_vm10, %v18323_v54 }
 0xaeb   :  { %12219 = vmatprep.mubr.msk.f32.mxu1 %vm7579_vm10, %v18342_v0 }
 0xaee   :  { %12220 = vmatmul.mubr.msk.f32.gmra.mrb[66].mxu1 %vm7579_vm10, %v18344_v57 }
 0xaef   :  { %12222 = vmatprep.mubr.msk.f32.mxu1 %vm7579_vm10, %v18354_v49 }
 0xaf2   :  { %12223 = vmatmul.mubr.msk.f32.gmra.mrb[68].mxu1 %vm7579_vm10, %v18356_v3 }
 0xaf3   :  { %12225 = vmatprep.mubr.msk.f32.mxu1 %vm7579_vm10, %v18365_v11 }
 0xaf6   :  { %12226 = vmatmul.mubr.msk.f32.gmra.mrb[70].mxu1 %vm7579_vm10, %v18367_v26 }
 0xaf7   :  { %12228 = vmatprep.mubr.msk.f32.mxu1 %vm7579_vm10, %v18376_v40 }
 0xafa   :  { %12229 = vmatmul.mubr.msk.f32.gmra.mrb[72].mxu1 %vm7579_vm10, %v18378_v58 }
 0xafb   :  { %12231 = vmatprep.mubr.msk.f32.mxu1 %vm7579_vm10, %v18387_v56 }
 0xafe   :  { %12232 = vmatmul.mubr.msk.f32.gmra.mrb[74].mxu1 %vm7579_vm10, %v18389_v33 }
 0xaff   :  { %12234 = vmatprep.mubr.msk.f32.mxu1 %vm7579_vm10, %v18398_v19 }
 0xb02   :  { %12235 = vmatmul.mubr.msk.f32.gmra.mrb[76].mxu1 %vm7579_vm10, %v18400_v34 }
 0xb03   :  { %12237 = vmatprep.mubr.msk.f32.mxu1 %vm7579_vm10, %v18409_v38 }
 0xb06   :  { %12238 = vmatmul.mubr.msk.f32.gmra.mrb[78].mxu1 %vm7579_vm10, %v18411_v6 }
 0xb07   :  { %12240 = vmatprep.mubr.msk.f32.mxu1 %vm7579_vm10, %v18420_v14 }
 0xb0a   :  { %12241 = vmatmul.mubr.msk.f32.gmra.mrb[80].mxu1 %vm7579_vm10, %v18422_v50 }
 0xb0b   :  { %12243 = vmatprep.mubr.msk.f32.mxu1 %vm7579_vm10, %v18431_v13 }
 0xb0e   :  { %12244 = vmatmul.mubr.msk.f32.gmra.mrb[82].mxu1 %vm7579_vm10, %v18433_v43 }
 0xb0f   :  { %12246 = vmatprep.mubr.msk.f32.mxu1 %vm7579_vm10, %v18442_v18 }
 0xb12   :  { %12247 = vmatmul.mubr.msk.f32.gmra.mrb[84].mxu1 %vm7579_vm10, %v18444_v30 }
 0xb13   :  { %12249 = vmatprep.mubr.msk.f32.mxu1 %vm7579_vm10, %v18453_v4 }
 0xb16   :  { %12250 = vmatmul.mubr.msk.f32.gmra.mrb[86].mxu1 %vm7579_vm10, %v18455_v41 }
 0xb17   :  { %12252 = vmatprep.mubr.msk.f32.mxu1 %vm7579_vm10, %v18464_v12 }
 0xb1a   :  { %12253 = vmatmul.mubr.msk.f32.gmra.mrb[88].mxu1 %vm7579_vm10, %v18466_v2 }
 0xb1b   :  { %12255 = vmatprep.mubr.msk.f32.mxu1 %vm7579_vm10, %v18475_v32 }
 0xb1e   :  { %12256 = vmatmul.mubr.msk.f32.gmra.mrb[90].mxu1 %vm7579_vm10, %v18477_v63 }
 0xb1f   :  { %12258 = vmatprep.mubr.msk.f32.mxu1 %vm7579_vm10, %v18486_v59 }
 0xb22   :  { %12259 = vmatmul.mubr.msk.f32.gmra.mrb[92].mxu1 %vm7579_vm10, %v18488_v60 }
 0xb23   :  { %12261 = vmatprep.mubr.msk.f32.mxu1 %vm7579_vm10, %v18497_v17 }
 0xb26   :  { %12262 = vmatmul.mubr.msk.f32.gmra.mrb[94].mxu1 %vm7579_vm10, %v18502_v61 }
 0xb27   :  { %12268 = vmatprep.mubr.msk.f32.mxu1 %vm7579_vm10, %v18178_v29  ;;  %v18683_v29 = vrot.slane %v18679_v27, %v20137_v28 }
 0xb29   :  { %8620 = vmatprep.mubr.f32.mxu0 %v18683_v29 }
 0xb2a   :  { %12269 = vmatmul.mubr.msk.f32.vlgmr.msra.gmra.mrb[56].mxu1 %vm7579_vm10, %v18205_v10 }
 0xb2b   :  { %12271 = vmatprep.mubr.msk.f32.mxu1 %vm7579_vm10, %v18233_v8 }
 0xb2e   :  { %12272 = vmatmul.mubr.msk.f32.gmra.mrb[58].mxu1 %vm7579_vm10, %v20135_v15 }
 0xb2f   :  { %12274 = vmatprep.mubr.msk.f32.mxu1 %vm7579_vm10, %v18269_v31 }
 0xb32   :  { %12275 = vmatmul.mubr.msk.f32.gmra.mrb[60].mxu1 %vm7579_vm10, %v20136_v24 }
 0xb33   :  { %12277 = vmatprep.mubr.msk.f32.mxu1 %vm7579_vm10, %v18308_v44 }
 0xb36   :  { %12278 = vmatmul.mubr.msk.f32.gmra.mrb[62].mxu1 %vm7579_vm10, %v18323_v54 }
 0xb37   :  { %12280 = vmatprep.mubr.msk.f32.mxu1 %vm7579_vm10, %v18342_v0 }
 0xb3a   :  { %12281 = vmatmul.mubr.msk.f32.gmra.mrb[64].mxu1 %vm7579_vm10, %v18344_v57 }
 0xb3b   :  { %12283 = vmatprep.mubr.msk.f32.mxu1 %vm7579_vm10, %v18354_v49 }
 0xb3e   :  { %12284 = vmatmul.mubr.msk.f32.gmra.mrb[66].mxu1 %vm7579_vm10, %v18356_v3 }
 0xb3f   :  { %12286 = vmatprep.mubr.msk.f32.mxu1 %vm7579_vm10, %v18365_v11 }
 0xb42   :  { %12287 = vmatmul.mubr.msk.f32.gmra.mrb[68].mxu1 %vm7579_vm10, %v18367_v26 }
 0xb43   :  { %12289 = vmatprep.mubr.msk.f32.mxu1 %vm7579_vm10, %v18376_v40 }
 0xb46   :  { %12290 = vmatmul.mubr.msk.f32.gmra.mrb[70].mxu1 %vm7579_vm10, %v18378_v58 }
 0xb47   :  { %12292 = vmatprep.mubr.msk.f32.mxu1 %vm7579_vm10, %v18387_v56 }
 0xb4a   :  { %12293 = vmatmul.mubr.msk.f32.gmra.mrb[72].mxu1 %vm7579_vm10, %v18389_v33 }
 0xb4b   :  { %12295 = vmatprep.mubr.msk.f32.mxu1 %vm7579_vm10, %v18398_v19 }
 0xb4e   :  { %12296 = vmatmul.mubr.msk.f32.gmra.mrb[74].mxu1 %vm7579_vm10, %v18400_v34 }
 0xb4f   :  { %12298 = vmatprep.mubr.msk.f32.mxu1 %vm7579_vm10, %v18409_v38 }
 0xb52   :  { %12299 = vmatmul.mubr.msk.f32.gmra.mrb[76].mxu1 %vm7579_vm10, %v18411_v6 }
 0xb53   :  { %12301 = vmatprep.mubr.msk.f32.mxu1 %vm7579_vm10, %v18420_v14 }
 0xb56   :  { %12302 = vmatmul.mubr.msk.f32.gmra.mrb[78].mxu1 %vm7579_vm10, %v18422_v50 }
 0xb57   :  { %12304 = vmatprep.mubr.msk.f32.mxu1 %vm7579_vm10, %v18431_v13 }
 0xb5a   :  { %12305 = vmatmul.mubr.msk.f32.gmra.mrb[80].mxu1 %vm7579_vm10, %v18433_v43 }
 0xb5b   :  { %12307 = vmatprep.mubr.msk.f32.mxu1 %vm7579_vm10, %v18442_v18 }
 0xb5e   :  { %12308 = vmatmul.mubr.msk.f32.gmra.mrb[82].mxu1 %vm7579_vm10, %v18444_v30 }
 0xb5f   :  { %12310 = vmatprep.mubr.msk.f32.mxu1 %vm7579_vm10, %v18453_v4 }
 0xb62   :  { %12311 = vmatmul.mubr.msk.f32.gmra.mrb[84].mxu1 %vm7579_vm10, %v18455_v41 }
 0xb63   :  { %12313 = vmatprep.mubr.msk.f32.mxu1 %vm7579_vm10, %v18464_v12 }
 0xb66   :  { %12314 = vmatmul.mubr.msk.f32.gmra.mrb[86].mxu1 %vm7579_vm10, %v18466_v2 }
 0xb67   :  { %12316 = vmatprep.mubr.msk.f32.mxu1 %vm7579_vm10, %v18475_v32 }
 0xb6a   :  { %12317 = vmatmul.mubr.msk.f32.gmra.mrb[88].mxu1 %vm7579_vm10, %v18477_v63 }
 0xb6b   :  { %12319 = vmatprep.mubr.msk.f32.mxu1 %vm7579_vm10, %v18486_v59 }
 0xb6e   :  { %12320 = vmatmul.mubr.msk.f32.gmra.mrb[90].mxu1 %vm7579_vm10, %v18488_v60 }
 0xb6f   :  { %12322 = vmatprep.mubr.msk.f32.mxu1 %vm7579_vm10, %v18497_v17 }
 0xb72   :  { %12323 = vmatmul.mubr.msk.f32.gmra.mrb[92].mxu1 %vm7579_vm10, %v18502_v61 }
 0xb73   :  { %12325 = vmatprep.mubr.msk.f32.mxu1 %vm7579_vm10, %v18511_v1 }
 0xb76   :  { %12326 = vmatmul.mubr.msk.f32.gmra.mrb[94].mxu1 %vm7579_vm10, %v18193_v35 }
 0xbfd   :  { %v18686_v10 = vpop.f32.mrb[56].mxu1 }
 0xbfe   :  { %v18690_v8 = vmul.f32 %v18686_v10, %v18686_v10  ;;  %v18692_v31 = vpop.f32.mrb[57].mxu1 }
 0xbff   :  { %v12688_v35 = vpack.c.bf16 %v18686_v10, %v18692_v31  ;;  %v18698_v44 = vmul.f32 %v18692_v31, %v18692_v31 }
 0xc01   :  { %v18702_v7 = vpop.f32.mrb[58].mxu1 }
 0xc02   :  { %v18706_v42 = vmul.f32 %v18702_v7, %v18702_v7  ;;  %v18708_v55 = vpop.f32.mrb[59].mxu1 }
 0xc03   :  { %v12692_v25 = vpack.c.bf16 %v18702_v7, %v18708_v55  ;;  %v18714_v0 = vmul.f32 %v18708_v55, %v18708_v55 }
 0xc05   :  { %v18718_v9 = vpop.f32.mrb[60].mxu1 }
 0xc06   :  { %v18722_v49 = vmul.f32 %v18718_v9, %v18718_v9  ;;  %v18724_v3 = vpop.f32.mrb[61].mxu1 }
 0xc07   :  { %v12696_v39 = vpack.c.bf16 %v18718_v9, %v18724_v3  ;;  %v18730_v11 = vmul.f32 %v18724_v3, %v18724_v3 }
 0xc09   :  { %v18734_v37 = vpop.f32.mrb[62].mxu1 }
 0xc0a   :  { %v18738_v40 = vmul.f32 %v18734_v37, %v18734_v37  ;;  %v18740_v58 = vpop.f32.mrb[63].mxu1 }
 0xc0b   :  { %v12700_v5 = vpack.c.bf16 %v18734_v37, %v18740_v58  ;;  %v18746_v56 = vmul.f32 %v18740_v58, %v18740_v58 }
 0xc0d   :  { %v18750_v22 = vpop.f32.mrb[64].mxu1 }
 0xc0e   :  { %v18754_v19 = vmul.f32 %v18750_v22, %v18750_v22  ;;  %v18756_v34 = vpop.f32.mrb[65].mxu1 }
 0xc0f   :  { %v12704_v45 = vpack.c.bf16 %v18750_v22, %v18756_v34  ;;  %v18762_v38 = vmul.f32 %v18756_v34, %v18756_v34 }
 0xc11   :  { %v18766_v36 = vpop.f32.mrb[66].mxu1 }
 0xc12   :  { %v18770_v14 = vmul.f32 %v18766_v36, %v18766_v36  ;;  %v18772_v50 = vpop.f32.mrb[67].mxu1 }
 0xc13   :  { %v18778_v13 = vmul.f32 %v18772_v50, %v18772_v50 }
 0xc15   :  { %v18782_v23 = vpop.f32.mrb[68].mxu1 }
 0xc16   :  { %v18786_v18 = vmul.f32 %v18782_v23, %v18782_v23  ;;  %v18788_v30 = vpop.f32.mrb[69].mxu1 }
 0xc17   :  { %v18794_v4 = vmul.f32 %v18788_v30, %v18788_v30 }
 0xc19   :  { %v18798_v20 = vpop.f32.mrb[70].mxu1 }
 0xc1a   :  { %20138 = vst [vmem:[#allocation41_spill] sm:$0xff] %v18798_v20  ;;  %v18802_v12 = vmul.f32 %v18798_v20, %v18798_v20  ;;  %v18804_v2 = vpop.f32.mrb[71].mxu1 }
 0xc1b   :  { %v18810_v32 = vmul.f32 %v18804_v2, %v18804_v2 }
 0xc1d   :  { %v18814_v21 = vpop.f32.mrb[72].mxu1 }
 0xc1e   :  { %20139 = vst [vmem:[#allocation12_spill] sm:$0xff] %v18814_v21  ;;  %v18818_v59 = vmul.f32 %v18814_v21, %v18814_v21  ;;  %v18820_v60 = vpop.f32.mrb[73].mxu1 }
 0xc1f   :  { %20140 = vst [vmem:[#allocation16_spill] sm:$0xff] %v18820_v60  ;;  %v12686_v51 = vpack.c.bf16 %v18814_v21, %v18820_v60  ;;  %v18826_v17 = vmul.f32 %v18820_v60, %v18820_v60 }
 0xc21   :  { %v18828_v16 = vpop.f32.mrb[74].mxu1  ;;  %12687 = vmatprep.subr.bf16.mxu0 %v12686_v51 }
 0xc22   :  { %20141 = vst [vmem:[#allocation23_spill] sm:$0xff] %v18828_v16  ;;  %v18834_v62 = vmul.f32 %v18828_v16, %v18828_v16  ;;  %v18836_v48 = vpop.f32.mrb[75].mxu1  ;;  %12689 = vmatpush3.bf16.msra.mxu0 %v12688_v35 }
 0xc23   :  { %20142 = vst [vmem:[#allocation30_spill] sm:$0xff] %v18836_v48  ;;  %v12690_v46 = vpack.c.bf16 %v18828_v16, %v18836_v48  ;;  %v18842_v1 = vmul.f32 %v18836_v48, %v18836_v48  ;;  %v20164_v48 = vmov 0.0  }
 0xc25   :  { %v18844_v15 = vpop.f32.mrb[76].mxu1  ;;  %12691 = vmatprep.subr.bf16.mxu0 %v12690_v46 }
 0xc26   :  { %20143 = vst [vmem:[#allocation32_spill] sm:$0xff] %v18844_v15  ;;  %v18850_v28 = vmul.f32 %v18844_v15, %v18844_v15  ;;  %v18852_v51 = vpop.f32.mrb[77].mxu1  ;;  %12693 = vmatpush3.bf16.msra.mxu0 %v12692_v25 }
 0xc27   :  { %20144 = vst [vmem:[#allocation35_spill] sm:$0xff] %v18852_v51  ;;  %v12694_v35 = vpack.c.bf16 %v18844_v15, %v18852_v51  ;;  %v18858_v63 = vmul.f32 %v18852_v51, %v18852_v51 }
 0xc29   :  { %v18860_v41 = vpop.f32.mrb[78].mxu1  ;;  %12695 = vmatprep.subr.bf16.mxu0 %v12694_v35 }
 0xc2a   :  { %20145 = vst [vmem:[#allocation34_spill] sm:$0xff] %v18860_v41  ;;  %v18866_v43 = vmul.f32 %v18860_v41, %v18860_v41  ;;  %v18868_v6 = vpop.f32.mrb[79].mxu1  ;;  %12697 = vmatpush3.bf16.msra.mxu0 %v12696_v39 }
 0xc2b   :  { %20146 = vst [vmem:[#allocation8_spill] sm:$0xff] %v18868_v6  ;;  %v12698_v25 = vpack.c.bf16 %v18860_v41, %v18868_v6  ;;  %v18874_v33 = vmul.f32 %v18868_v6, %v18868_v6  ;;  %v20156_v41 = vpack.c.bf16 %v18782_v23, %v18788_v30 }
 0xc2d   :  { %v18876_v26 = vpop.f32.mrb[80].mxu1  ;;  %12699 = vmatprep.subr.bf16.mxu0 %v12698_v25 }
 0xc2e   :  { %20147 = vst [vmem:[#allocation25_spill] sm:$0xff] %v18876_v26  ;;  %v18882_v46 = vmul.f32 %v18876_v26, %v18876_v26  ;;  %v18884_v57 = vpop.f32.mrb[81].mxu1  ;;  %12701 = vmatpush3.bf16.msra.mxu0 %v12700_v5 }
 0xc2f   :  { %20148 = vst [vmem:[#allocation7_spill] sm:$0xff] %v18884_v57  ;;  %v12702_v39 = vpack.c.bf16 %v18876_v26, %v18884_v57  ;;  %v18890_v24 = vmul.f32 %v18884_v57, %v18884_v57 }
 0xc31   :  { %v18892_v54 = vpop.f32.mrb[82].mxu1  ;;  %12703 = vmatprep.subr.bf16.mxu0 %v12702_v39 }
 0xc32   :  { %20149 = vst [vmem:[#allocation22_spill] sm:$0xff] %v18892_v54  ;;  %v18898_v35 = vmul.f32 %v18892_v54, %v18892_v54  ;;  %v18900_v61 = vpop.f32.mrb[83].mxu1  ;;  %12705 = vmatpush3.bf16.msra.mxu0 %v12704_v45  ;;  %v20153_v45 = vpack.c.bf16 %v18766_v36, %v18772_v50 }
 0xc33   :  { %20150 = vst [vmem:[#allocation10_spill] sm:$0xff] %v18900_v61  ;;  %v12706_v5 = vpack.c.bf16 %v18892_v54, %v18900_v61  ;;  %v18906_v53 = vmul.f32 %v18900_v61, %v18900_v61 }
 0xc35   :  { %v18908_v47 = vpop.f32.mrb[84].mxu1  ;;  %12707 = vmatprep.subr.bf16.mxu0 %v12706_v5 }
 0xc36   :  { %20151 = vst [vmem:[#allocation20_spill] sm:$0xff] %v18908_v47  ;;  %v18914_v25 = vmul.f32 %v18908_v47, %v18908_v47  ;;  %v18916_v52 = vpop.f32.mrb[85].mxu1  ;;  %12709 = vmatpush3.bf16.msra.mxu0 %v20153_v45 }
 0xc37   :  { %20152 = vst [vmem:[#allocation15_spill] sm:$0xff] %v18916_v52  ;;  %v12710_v54 = vpack.c.bf16 %v18908_v47, %v18916_v52  ;;  %v8724_v61 = vmul.f32 %v18916_v52, %v18916_v52 }
 0xc39   :  { %v18925_v5 = vpop.f32.mrb[86].mxu1  ;;  %12711 = vmatprep.subr.bf16.mxu0 %v12710_v54  ;;  %v12754_v39 = vpack.c.bf16 %v18914_v25, %v8724_v61  ;;  %v20158_v54 = vld [vmem:[#allocation24_spill] sm:$0xff] }
 0xc3a   :  { %20154 = vst [vmem:[#allocation19_spill] sm:$0xff] %v18925_v5  ;;  %v8727_v26 = vmul.f32 %v18925_v5, %v18925_v5  ;;  %v18930_v57 = vpop.f32.mrb[87].mxu1  ;;  %12713 = vmatpush3.bf16.msra.mxu0 %v20156_v41  ;;  %v8543_v61 = vrot.slane %v18679_v27, %v20158_v54  ;;  %v20160_v41 = vpack.c.bf16 %v18798_v20, %v18804_v2 }
 0xc3b   :  { %20155 = vst [vmem:[#allocation9_spill] sm:$0xff] %v18930_v57  ;;  %v12714_v45 = vpack.c.bf16 %v18925_v5, %v18930_v57  ;;  %v8726_v47 = vmul.f32 %v18930_v57, %v18930_v57 }
 0xc3d   :  { %v18939_v52 = vpop.f32.mrb[88].mxu1  ;;  %12715 = vmatprep.subr.bf16.mxu0 %v12714_v45  ;;  %v12758_v25 = vpack.c.bf16 %v8727_v26, %v8726_v47  ;;  %v20161_v45 = vmov 0.0|0.0  }
 0xc3e   :  { %20157 = vst [vmem:[#allocation29_spill] sm:$0xff] %v18939_v52  ;;  %v8729_v6 = vmul.f32 %v18939_v52, %v18939_v52  ;;  %v18945_v15 = vpop.f32.mrb[89].mxu1  ;;  %12717 = vmatpush3.bf16.msra.mxu0 %v20160_v41 }
 0xc3f   :  { %20159 = vst [vmem:[#allocation17_spill] sm:$0xff] %v18945_v15  ;;  %v12719_v5 = vpack.c.bf16 %v18939_v52, %v18945_v15  ;;  %v8728_v57 = vmul.f32 %v18945_v15, %v18945_v15  ;;  %12718 = vmatprep.subr.bf16.mxu0 %v20161_v45 }
 0xc41   :  { %v12763_v51 = vpack.c.bf16 %v8729_v6, %v8728_v57  ;;  %v18955_v16 = vpop.f32.mrb[90].mxu1  ;;  %8621 = vmatmul.mubr.f32.vlgmr.msra.gmra.mrb[88].mxu0 %v8543_v61 }
 0xc42   :  { %20162 = vst [vmem:[#allocation21_spill] sm:$0xff] %v18955_v16  ;;  %v8731_v26 = vmul.f32 %v18955_v16, %v18955_v16  ;;  %v18959_v47 = vpop.f32.mrb[91].mxu1  ;;  %12720 = vmatpush3.bf16.msra.mxu0 %v12719_v5  ;;  %12344 = vmatprep.mubr.msk.f32.mxu0 %vm13354_vm6, %v20164_v48 }
 0xc43   :  { %20163 = vst [vmem:[#allocation33_spill] sm:$0xff] %v18959_v47  ;;  %v12722_v41 = vpack.c.bf16 %v18955_v16, %v18959_v47  ;;  %v8730_v52 = vmul.f32 %v18959_v47, %v18959_v47  ;;  %12721 = vmatprep.subr.bf16.mxu0 %v20161_v45 }
 0xc45   :  { %v12766_v57 = vpack.c.bf16 %v8731_v26, %v8730_v52  ;;  %v18968_v6 = vpop.f32.mrb[92].mxu1 }
 0xc46   :  { %20165 = vst [vmem:[#allocation28_spill] sm:$0xff] %v18968_v6  ;;  %v8733_v15 = vmul.f32 %v18968_v6, %v18968_v6  ;;  %v18972_v21 = vpop.f32.mrb[93].mxu1  ;;  %12723 = vmatpush3.bf16.msra.mxu0 %v12722_v41 }
 0xc47   :  { %20166 = vst [vmem:[#allocation5_spill] sm:$0xff] %v18972_v21  ;;  %v12725_v5 = vpack.c.bf16 %v18968_v6, %v18972_v21  ;;  %v8732_v16 = vmul.f32 %v18972_v21, %v18972_v21  ;;  %12724 = vmatprep.subr.bf16.mxu0 %v20161_v45  ;;  %v20168_v21 = vld [vmem:[#allocation31_spill] sm:$0xff] }
 0xc48   :  { %v8551_v20 = vrot.slane %v18679_v27, %v20168_v21  ;;  %v20172_v27 = vpack.c.bf16 %v18706_v42, %v18714_v0  ;;  %v20173_v21 = vpack.c.bf16 %v18850_v28, %v18858_v63  ;;  %v20178_v42 = vpack.c.bf16 %v18754_v19, %v18762_v38 }
 0xc49   :  { %v12769_v47 = vpack.c.bf16 %v8733_v15, %v8732_v16  ;;  %v18979_v60 = vpop.f32.mrb[94].mxu1  ;;  %v20169_v15 = vpack.c.bf16 %v18818_v59, %v18826_v17  ;;  %v20174_v59 = vpack.c.bf16 %v18722_v49, %v18730_v11  ;;  %v20179_v0 = vpack.c.bf16 %v18898_v35, %v18906_v53 }
 0xc4a   :  { %20167 = vst [vmem:[#allocation39_spill] sm:$0xff] %v18979_v60  ;;  %v8735_v52 = vmul.f32 %v18979_v60, %v18979_v60  ;;  %v18983_v26 = vpop.f32.mrb[95].mxu1  ;;  %12726 = vmatpush3.bf16.msra.mxu0 %v12725_v5  ;;  %v20170_v5 = vpack.c.bf16 %v18690_v8, %v18698_v44  ;;  %v20175_v8 = vpack.c.bf16 %v18866_v43, %v18874_v33  ;;  %v9057_v43 = vld [vmem:[%s19323_s2 + $0x20] sm:$0xff] }
 0xc4b   :  { %v12728_v41 = vpack.c.bf16 %v18979_v60, %v18983_v26  ;;  %v8734_v6 = vmul.f32 %v18983_v26, %v18983_v26  ;;  %12727 = vmatprep.subr.bf16.mxu0 %v20161_v45  ;;  %v20171_v60 = vpack.c.bf16 %v18834_v62, %v18842_v1  ;;  %v20177_v44 = vpack.c.bf16 %v18882_v46, %v18890_v24 }
 0xc4c   :  { %v20180_v49 = vpack.c.bf16 %v18770_v14, %v18778_v13  ;;  %v20181_v11 = vpack.c.bf16 %v18786_v18, %v18794_v4  ;;  %v9058_v18 = vld [vmem:[%s19323_s2 + $0x28] sm:$0xff] }
 0xc4d   :  { %v12772_v16 = vpack.c.bf16 %v8735_v52, %v8734_v6  ;;  %12382 = vmatprep.mubr.msk.f32.mxu1 %vm2464_vm7, %v9058_v18 }
 0xc4e   :  { %12729 = vmatpush3.bf16.msra.mxu0 %v12728_v41 }
 0xc4f   :  { %12731 = vmatprep.subr.bf16.mxu0 %v20169_v15 }
 0xc51   :  { %12345 = vmatmul.mubr.msk.f32.vlgmr.msra.gmra.mrb[90].mxu0 %vm2464_vm7, %v8551_v20 }
 0xc52   :  { %12733 = vmatpush3.bf16.msra.mxu0 %v20170_v5  ;;  %8800 = vmatprep.mubr.f32.mxu0 %v18683_v29  ;;  %v20176_v29 = vpack.c.bf16 %v18738_v40, %v18746_v56  ;;  %v20182_v40 = vpack.c.bf16 %v18802_v12, %v18810_v32 }
 0xc53   :  { %12735 = vmatprep.subr.bf16.mxu0 %v20171_v60 }
 0xc56   :  { %12737 = vmatpush3.bf16.msra.mxu0 %v20172_v27 }
 0xc57   :  { %12739 = vmatprep.subr.bf16.mxu0 %v20173_v21 }
 0xc5a   :  { %12741 = vmatpush3.bf16.msra.mxu0 %v20174_v59 }
 0xc5b   :  { %12743 = vmatprep.subr.bf16.mxu0 %v20175_v8 }
 0xc5e   :  { %12745 = vmatpush3.bf16.msra.mxu0 %v20176_v29 }
 0xc5f   :  { %12747 = vmatprep.subr.bf16.mxu0 %v20177_v44  ;;  %v20185_v44 = vld [vmem:[#allocation12_spill] sm:$0xff] }
 0xc62   :  { %12749 = vmatpush3.bf16.msra.mxu0 %v20178_v42  ;;  %v20186_v42 = vld [vmem:[#allocation30_spill] sm:$0xff] }
 0xc63   :  { %12751 = vmatprep.subr.bf16.mxu0 %v20179_v0  ;;  %v20187_v0 = vld [vmem:[#allocation23_spill] sm:$0xff] }
 0xc66   :  { %12753 = vmatpush3.bf16.msra.mxu0 %v20180_v49  ;;  %v20188_v49 = vld [vmem:[#allocation35_spill] sm:$0xff] }
 0xc67   :  { %12755 = vmatprep.subr.bf16.mxu0 %v12754_v39  ;;  %v8882_v39 = vld [vmem:[%s19322_s1 + $0x9f] sm:$0x1] }
 0xc6a   :  { %12757 = vmatpush3.bf16.msra.mxu0 %v20181_v11  ;;  %v20189_v11 = vld [vmem:[#allocation32_spill] sm:$0xff] }
 0xc6b   :  { %12759 = vmatprep.subr.bf16.mxu0 %v12758_v25 }
 0xc6e   :  { %12761 = vmatpush3.bf16.msra.mxu0 %v20182_v40  ;;  %v20190_v40 = vld [vmem:[#allocation8_spill] sm:$0xff] }
 0xc6f   :  { %12762 = vmatprep.subr.bf16.mxu0 %v20161_v45 }
 0xc71   :  { %8801 = vmatmul.mubr.f32.vlgmr.msra.gmra.mrb[92].mxu0 %v8543_v61 }
 0xc72   :  { %12764 = vmatpush3.bf16.msra.mxu0 %v12763_v51  ;;  %12363 = vmatprep.mubr.msk.f32.mxu0 %vm13354_vm6, %v20164_v48  ;;  %v8881_v51 = vld [vmem:[%s19322_s1 + $0x9b] sm:$0x1] }
 0xc73   :  { %12765 = vmatprep.subr.bf16.mxu0 %v20161_v45 }
 0xc76   :  { %12767 = vmatpush3.bf16.msra.mxu0 %v12766_v57 }
 0xc77   :  { %12768 = vmatprep.subr.bf16.mxu0 %v20161_v45 }
 0xc7a   :  { %12770 = vmatpush3.bf16.msra.mxu0 %v12769_v47 }
 0xc7b   :  { %12771 = vmatprep.subr.bf16.mxu0 %v20161_v45 }
 0xc7e   :  { %12773 = vmatpush3.bf16.msra.mxu0 %v12772_v16 }
 0xc81   :  { %12364 = vmatmul.mubr.msk.f32.vlgmr.msra.gmra.mrb[94].mxu0 %vm2464_vm7, %v8551_v20 }
 0xc82   :  { %9132 = vmatprep.mubr.f32.mxu0 %v9057_v43  ;;  %v20195_v43 = vld [vmem:[#allocation22_spill] sm:$0xff] }
 0xd14   :  { %v11100_v56 = vpop.f32.mrb[88].mxu0 }
 0xd15   :  { %v11101_v33 = vpop.f32.mrb[89].mxu0 }
 0xd16   :  { %v11102_v19 = vadd.f32 %v11101_v33, %v11100_v56  ;;  %v20191_v56 = vld [vmem:[#allocation34_spill] sm:$0xff]  ;;  %v20192_v33 = vld [vmem:[#allocation7_spill] sm:$0xff] }
 0xd24   :  { %v8692_v38 = vpop.f32.mrb[90].mxu0 }
 0xd25   :  { %v8693_v14 = vadd.f32 %v11102_v19, %v8692_v38  ;;  %v12346_v13 = vpop.f32.mrb[91].mxu0  ;;  %v20193_v19 = vld [vmem:[#allocation25_spill] sm:$0xff] }
 0xd27   :  { %v8876_v53 = vmul.f32 0.041666668, %v8693_v14  ;;  %v20194_v14 = vld [vmem:[#allocation10_spill] sm:$0xff] }
 0xd29   :  { %v8878_v17 = vmul.f32 %v8876_v53, %v8876_v53 }
 0xd44   :  { %v11144_v4 = vpop.f32.mrb[92].mxu0 }
 0xd45   :  { %v11145_v12 = vpop.f32.mrb[93].mxu0 }
 0xd46   :  { %v11146_v20 = vadd.f32 %v11145_v12, %v11144_v4  ;;  %v20196_v4 = vld [vmem:[#allocation15_spill] sm:$0xff] }
 0xd54   :  { %v8872_v32 = vpop.f32.mrb[94].mxu0 }
 0xd55   :  { %v8873_v63 = vadd.f32 %v11146_v20, %v8872_v32  ;;  %v12365_v60 = vpop.f32.mrb[95].mxu0  ;;  %v20197_v20 = vld [vmem:[#allocation20_spill] sm:$0xff]  ;;  %v20198_v32 = vld [vmem:[#allocation9_spill] sm:$0xff] }
 0xd56   :  { %v20199_v60 = vld [vmem:[#allocation19_spill] sm:$0xff] }
 0xd57   :  { %v8877_v62 = vmul.f32 0.041666668, %v8873_v63 }
 0xd59   :  { %v8879_v1 = vsub.f32 %v8877_v62, %v8878_v17  ;;  %v20200_v62 = vld [vmem:[#allocation17_spill] sm:$0xff] }
 0xd5b   :  { %v8880_v24 = vmax.f32 %v8879_v1, 0.0 }
 0xd5d   :  { %v8883_v28 = vadd.f32 1e-05, %v8880_v24  ;;  %v20201_v24 = vld [vmem:[#allocation29_spill] sm:$0xff] }
 0xd5f   :  { %13327 = vrsqrt.f32 %v8883_v28 }
 0xd69   :  { %v13328_v46 = vpop.eup %13327 }
 0xd6a   :  { %v8885_v35 = vmul.f32 %v13328_v46, %v8881_v51  ;;  %v20202_v51 = vld [vmem:[#allocation33_spill] sm:$0xff] }
 0xd6c   :  { %v8886_v61 = vmul.f32 %v8885_v35, %v8876_v53  ;;  %v8891_v25 = vrot.slane %v8885_v35, %v20158_v54  ;;  %v20203_v35 = vld [vmem:[#allocation21_spill] sm:$0xff] }
 0xd6e   :  { %v8887_v47 = vsub.f32 %v8882_v39, %v8886_v61  ;;  %v8892_v57 = vmul.f32 %v8891_v25, %v18692_v31  ;;  %v8893_v6 = vmul.f32 %v18686_v10, %v8891_v25  ;;  %v8894_v52 = vmul.f32 %v8891_v25, %v18708_v55  ;;  %v20204_v61 = vld [vmem:[#allocation5_spill] sm:$0xff] }
 0xd6f   :  { %v8895_v41 = vmul.f32 %v18702_v7, %v8891_v25  ;;  %v8896_v16 = vmul.f32 %v8891_v25, %v18724_v3  ;;  %v8897_v15 = vmul.f32 %v18718_v9, %v8891_v25  ;;  %v8898_v5 = vmul.f32 %v8891_v25, %v18740_v58  ;;  %v20183_v58 = vld [vmem:[#allocation41_spill] sm:$0xff] }
 0xd70   :  { %v19065_v27 = vrot.slane %v8887_v47, %v20158_v54  ;;  %v8899_v21 = vmul.f32 %v18734_v37, %v8891_v25  ;;  %v8900_v59 = vmul.f32 %v8891_v25, %v18756_v34  ;;  %v8901_v31 = vmul.f32 %v18750_v22, %v8891_v25  ;;  %v20184_v54 = vld [vmem:[#allocation16_spill] sm:$0xff] }
 0xd71   :  { %v8902_v10 = vmul.f32 %v8891_v25, %v18772_v50  ;;  %v8903_v55 = vmul.f32 %v18766_v36, %v8891_v25  ;;  %v8904_v7 = vmul.f32 %v8891_v25, %v18788_v30  ;;  %v8905_v3 = vmul.f32 %v18782_v23, %v8891_v25 }
 0xd72   :  { %v8906_v9 = vmul.f32 %v8891_v25, %v18804_v2  ;;  %v8907_v8 = vmul.f32 %v20183_v58, %v8891_v25  ;;  %v8908_v29 = vmul.f32 %v8891_v25, %v20184_v54  ;;  %v8909_v37 = vmul.f32 %v20185_v44, %v8891_v25  ;;  %v20205_v58 = vld [vmem:[#allocation28_spill] sm:$0xff] }
 0xd73   :  { %v8910_v34 = vmul.f32 %v8891_v25, %v20186_v42  ;;  %v8911_v22 = vmul.f32 %v20187_v0, %v8891_v25  ;;  %v8912_v50 = vmul.f32 %v8891_v25, %v20188_v49  ;;  %v8913_v36 = vmul.f32 %v20189_v11, %v8891_v25  ;;  %v20206_v42 = vld [vmem:[#allocation39_spill] sm:$0xff] }
 0xd74   :  { %v8914_v30 = vmul.f32 %v8891_v25, %v20190_v40  ;;  %v8915_v23 = vmul.f32 %v20191_v56, %v8891_v25  ;;  %v8916_v2 = vmul.f32 %v8891_v25, %v20192_v33  ;;  %v8917_v38 = vmul.f32 %v20193_v19, %v8891_v25 }
 0xd75   :  { %v8918_v13 = vmul.f32 %v8891_v25, %v20194_v14  ;;  %v8919_v18 = vmul.f32 %v20195_v43, %v8891_v25  ;;  %v8920_v12 = vmul.f32 %v8891_v25, %v20196_v4  ;;  %v8921_v53 = vmul.f32 %v20197_v20, %v8891_v25 }
 0xd76   :  { %v8922_v63 = vmul.f32 %v8891_v25, %v20198_v32  ;;  %v8923_v17 = vmul.f32 %v20199_v60, %v8891_v25  ;;  %v8924_v1 = vmul.f32 %v8891_v25, %v20200_v62  ;;  %v8925_v28 = vmul.f32 %v20201_v24, %v8891_v25 }
 0xd77   :  { %v8926_v46 = vmul.f32 %v8891_v25, %v20202_v51  ;;  %v8927_v39 = vmul.f32 %v20203_v35, %v8891_v25  ;;  %v8928_v47 = vmul.f32 %v8891_v25, %v20204_v61  ;;  %v8929_v54 = vmul.f32 %v20205_v58, %v8891_v25 }
 0xd78   :  { %v8930_v44 = vmul.f32 %v8891_v25, %v18983_v26  ;;  %v8931_v0 = vmul.f32 %v20206_v42, %v8891_v25  ;;  %v19101_v49 = vadd.f32 %v19065_v27, %v8892_v57  ;;  %v8937_v11 = vadd.f32 %v19065_v27, %v8893_v6 }
 0xd79   :  { %v8938_v40 = vadd.f32 %v19065_v27, %v8894_v52  ;;  %v8939_v56 = vadd.f32 %v19065_v27, %v8895_v41  ;;  %v8940_v33 = vadd.f32 %v19065_v27, %v8896_v16  ;;  %v8941_v19 = vadd.f32 %v19065_v27, %v8897_v15 }
 0xd7a   :  { %v8942_v14 = vadd.f32 %v19065_v27, %v8898_v5  ;;  %v8943_v43 = vadd.f32 %v19065_v27, %v8899_v21  ;;  %v8944_v26 = vadd.f32 %v19065_v27, %v8900_v59  ;;  %v8945_v25 = vadd.f32 %v19065_v27, %v8901_v31 }
 0xd7b   :  { %v8946_v57 = vadd.f32 %v19065_v27, %v8902_v10  ;;  %v8947_v6 = vadd.f32 %v19065_v27, %v8903_v55  ;;  %v8948_v52 = vadd.f32 %v19065_v27, %v8904_v7  ;;  %v8949_v41 = vadd.f32 %v19065_v27, %v8905_v3 }
 0xd7c   :  { %v8950_v16 = vadd.f32 %v19065_v27, %v8906_v9  ;;  %v8951_v15 = vadd.f32 %v19065_v27, %v8907_v8  ;;  %v8952_v5 = vadd.f32 %v19065_v27, %v8908_v29  ;;  %v8953_v21 = vadd.f32 %v19065_v27, %v8909_v37 }
 0xd7d   :  { %v19121_v59 = vadd.f32 %v19065_v27, %v8910_v34  ;;  %v19124_v31 = vadd.f32 %v19065_v27, %v8911_v22  ;;  %v19127_v10 = vadd.f32 %v19065_v27, %v8912_v50  ;;  %v19130_v55 = vadd.f32 %v19065_v27, %v8913_v36 }
 0xd7e   :  { %v19133_v7 = vadd.f32 %v19065_v27, %v8914_v30  ;;  %v19136_v3 = vadd.f32 %v19065_v27, %v8915_v23  ;;  %v19139_v9 = vadd.f32 %v19065_v27, %v8916_v2  ;;  %v19142_v8 = vadd.f32 %v19065_v27, %v8917_v38 }
 0xd7f   :  { %v19145_v29 = vadd.f32 %v19065_v27, %v8918_v13  ;;  %v19148_v37 = vadd.f32 %v19065_v27, %v8919_v18  ;;  %v19151_v34 = vadd.f32 %v19065_v27, %v8920_v12  ;;  %v19154_v22 = vadd.f32 %v19065_v27, %v8921_v53 }
 0xd80   :  { %v19157_v50 = vadd.f32 %v19065_v27, %v8922_v63  ;;  %v19160_v36 = vadd.f32 %v19065_v27, %v8923_v17  ;;  %v19163_v30 = vadd.f32 %v19065_v27, %v8924_v1  ;;  %v8969_v23 = vadd.f32 %v19065_v27, %v8925_v28 }
 0xd81   :  { %v8970_v2 = vadd.f32 %v19065_v27, %v8926_v46  ;;  %v8971_v38 = vadd.f32 %v19065_v27, %v8927_v39  ;;  %v19169_v13 = vadd.f32 %v19065_v27, %v8928_v47  ;;  %v19172_v18 = vadd.f32 %v19065_v27, %v8929_v54 }
 0xd82   :  { %v19175_v4 = vadd.f32 %v19065_v27, %v8930_v44  ;;  %v19178_v12 = vadd.f32 %v19065_v27, %v8931_v0  ;;  %v8976_v20 = vmax.f32 %v19101_v49, %v8937_v11  ;;  %v8977_v53 = vmax.f32 %v8937_v11, %v8938_v40 }
 0xd83   :  { %v8978_v32 = vmax.f32 %v8938_v40, %v8939_v56  ;;  %v8979_v63 = vmax.f32 %v8939_v56, %v8940_v33  ;;  %v8980_v60 = vmax.f32 %v8940_v33, %v8941_v19  ;;  %v8981_v17 = vmax.f32 %v8941_v19, %v8942_v14 }
 0xd84   :  { %v8982_v62 = vmax.f32 %v8942_v14, %v8943_v43  ;;  %v8983_v1 = vmax.f32 %v8943_v43, %v8944_v26  ;;  %v8984_v24 = vmax.f32 %v8944_v26, %v8945_v25  ;;  %v8985_v28 = vmax.f32 %v8945_v25, %v8946_v57 }
 0xd85   :  { %v8986_v51 = vmax.f32 %v8946_v57, %v8947_v6  ;;  %v8987_v46 = vmax.f32 %v8947_v6, %v8948_v52  ;;  %v8988_v35 = vmax.f32 %v8948_v52, %v8949_v41  ;;  %v8989_v39 = vmax.f32 %v8949_v41, %v8950_v16 }
 0xd86   :  { %v8990_v61 = vmax.f32 %v8950_v16, %v8951_v15  ;;  %v8991_v47 = vmax.f32 %v8951_v15, %v8952_v5  ;;  %v8992_v58 = vmax.f32 %v8952_v5, %v8953_v21  ;;  %v8993_v27 = vmax.f32 %v8953_v21, %v19121_v59 }
 0xd87   :  { %v9016_v54 = vmax.f32 %v8976_v20, 0.0  ;;  %v9017_v44 = vmax.f32 %v8977_v53, 0.0  ;;  %v9018_v42 = vmax.f32 %v8978_v32, 0.0  ;;  %v9019_v0 = vmax.f32 %v8979_v63, 0.0 }
 0xd88   :  { %v19182_v11 = vmax.f32 %v8980_v60, 0.0  ;;  %v19184_v40 = vmax.f32 %v8981_v17, 0.0  ;;  %v19186_v56 = vmax.f32 %v8982_v62, 0.0  ;;  %v19188_v33 = vmax.f32 %v8983_v1, 0.0 }
 0xd89   :  { %v19190_v19 = vmax.f32 %v8984_v24, 0.0  ;;  %v19192_v14 = vmax.f32 %v8985_v28, 0.0  ;;  %v19194_v43 = vmax.f32 %v8986_v51, 0.0  ;;  %v19196_v26 = vmax.f32 %v8987_v46, 0.0 }
 0xd8a   :  { %v19198_v25 = vmax.f32 %v8988_v35, 0.0  ;;  %v19200_v57 = vmax.f32 %v8989_v39, 0.0  ;;  %v19202_v6 = vmax.f32 %v8990_v61, 0.0  ;;  %v19204_v52 = vmax.f32 %v8991_v47, 0.0 }
 0xd8b   :  { %v9032_v41 = vmax.f32 %v8992_v58, 0.0  ;;  %v9033_v16 = vmax.f32 %v8993_v27, 0.0  ;;  %v9008_v15 = vmax.f32 %v19163_v30, %v8969_v23  ;;  %v9009_v5 = vmax.f32 %v8969_v23, %v8970_v2 }
 0xd8c   :  { %v12776_v21 = vpack.c.bf16 %v9017_v44, %v9016_v54  ;;  %v8994_v20 = vmax.f32 %v19121_v59, %v19124_v31  ;;  %v8995_v53 = vmax.f32 %v19124_v31, %v19127_v10  ;;  %v9010_v32 = vmax.f32 %v8970_v2, %v8971_v38 }
 0xd8d   :  { %v12774_v63 = vpack.c.bf16 %v9033_v16, %v9032_v41  ;;  %v9048_v60 = vmax.f32 %v9008_v15, 0.0  ;;  %v9049_v17 = vmax.f32 %v9009_v5, 0.0  ;;  %v9011_v62 = vmax.f32 %v8971_v38, %v19169_v13 }
 0xd8e   :  { %v9034_v1 = vmax.f32 %v8994_v20, 0.0  ;;  %v9035_v24 = vmax.f32 %v8995_v53, 0.0  ;;  %v9050_v28 = vmax.f32 %v9010_v32, 0.0  ;;  %v12780_v51 = vpack.c.bf16 %v9019_v0, %v9018_v42 }
 0xd8f   :  { %12775 = vmatprep.subr.bf16.mxu0 %v12774_v63  ;;  %v12806_v46 = vpack.c.bf16 %v9049_v17, %v9048_v60  ;;  %v9051_v23 = vmax.f32 %v9011_v62, 0.0  ;;  %v8996_v35 = vmax.f32 %v19127_v10, %v19130_v55  ;;  %v8997_v59 = vmax.f32 %v19130_v55, %v19133_v7  ;;  %v9219_v60 = vld [vmem:[%s19322_s1 + $0xa8] sm:$0xff] }
 0xd90   :  { %12777 = vmatpush3.bf16.msra.mxu0 %v12776_v21  ;;  %v12778_v31 = vpack.c.bf16 %v9035_v24, %v9034_v1  ;;  %v9012_v2 = vmax.f32 %v19169_v13, %v19172_v18  ;;  %v9013_v38 = vmax.f32 %v19172_v18, %v19175_v4  ;;  %v12784_v39 = vpack.c.bf16 %v19184_v40, %v19182_v11 }
 0xd91   :  { %12807 = vmatprep.subr.bf16.mxu1 %v12806_v46  ;;  %v12810_v61 = vpack.c.bf16 %v9051_v23, %v9050_v28  ;;  %v9036_v47 = vmax.f32 %v8996_v35, 0.0  ;;  %v9037_v58 = vmax.f32 %v8997_v59, 0.0  ;;  %v8998_v10 = vmax.f32 %v19133_v7, %v19136_v3 }
 0xd92   :  { %12809 = vmatpush3.bf16.msra.mxu1 %v12806_v46  ;;  %12779 = vmatprep.subr.bf16.mxu0 %v12778_v31  ;;  %v9052_v55 = vmax.f32 %v9012_v2, 0.0  ;;  %v9053_v27 = vmax.f32 %v9013_v38, 0.0  ;;  %v8999_v13 = vmax.f32 %v19136_v3, %v19139_v9  ;;  %v9014_v18 = vmax.f32 %v19175_v4, %v19178_v12  ;;  %v9223_v2 = vld [vmem:[%s19322_s1 + $0xc8] sm:$0xff]  ;;  %v9224_v38 = vld [vmem:[%s19322_s1 + $0xd0] sm:$0xff] }
 0xd93   :  { %12811 = vmatprep.subr.bf16.mxu1 %v12810_v61  ;;  %v12782_v54 = vpack.c.bf16 %v9037_v58, %v9036_v47  ;;  %v9038_v44 = vmax.f32 %v8998_v10, 0.0  ;;  %v9015_v42 = vmax.f32 %v19178_v12, %v19101_v49  ;;  %v12788_v0 = vpack.c.bf16 %v19188_v33, %v19186_v56  ;;  %v9226_v47 = vld [vmem:[%s19322_s1 + $0xe0] sm:$0x3f]  ;;  %v9221_v58 = vld [vmem:[%s19322_s1 + $0xb8] sm:$0xff]  ;;  %v9220_v10 = vld [vmem:[%s19322_s1 + $0xb0] sm:$0xff] }
 0xd94   :  { %12781 = vmatpush3.bf16.msra.mxu0 %v12780_v51  ;;  %v12814_v7 = vpack.c.bf16 %v9053_v27, %v9052_v55  ;;  %v9039_v11 = vmax.f32 %v8999_v13, 0.0  ;;  %v9054_v40 = vmax.f32 %v9014_v18, 0.0  ;;  %v9000_v41 = vmax.f32 %v19139_v9, %v19142_v8 }
 0xd95   :  { %12783 = vmatprep.subr.bf16.mxu0 %v12782_v54  ;;  %v9055_v3 = vmax.f32 %v9015_v42, 0.0  ;;  %v9001_v4 = vmax.f32 %v19142_v8, %v19145_v29  ;;  %v12792_v16 = vpack.c.bf16 %v19192_v14, %v19190_v19  ;;  %v9002_v49 = vmax.f32 %v19145_v29, %v19148_v37 }
 0xd96   :  { %12813 = vmatpush3.bf16.msra.mxu1 %v12810_v61  ;;  %v12786_v12 = vpack.c.bf16 %v9039_v11, %v9038_v44  ;;  %v9040_v56 = vmax.f32 %v9000_v41, 0.0  ;;  %v9003_v33 = vmax.f32 %v19148_v37, %v19151_v34  ;;  %v12796_v9 = vpack.c.bf16 %v19196_v26, %v19194_v43 }
 0xd97   :  { %12815 = vmatprep.subr.bf16.mxu1 %v12814_v7  ;;  %v12818_v15 = vpack.c.bf16 %v9055_v3, %v9054_v40  ;;  %v9041_v5 = vmax.f32 %v9001_v4, 0.0  ;;  %v9042_v21 = vmax.f32 %v9002_v49, 0.0  ;;  %v9004_v8 = vmax.f32 %v19151_v34, %v19154_v22 }
 0xd98   :  { %12785 = vmatpush3.bf16.msra.mxu0 %v12784_v39  ;;  %v9043_v19 = vmax.f32 %v9003_v33, 0.0  ;;  %v9005_v29 = vmax.f32 %v19154_v22, %v19157_v50  ;;  %v12800_v14 = vpack.c.bf16 %v19200_v57, %v19198_v25  ;;  %v9006_v37 = vmax.f32 %v19157_v50, %v19160_v36  ;;  %v9061_v50 = vld [vmem:[%s19323_s2 + $0x40] sm:$0xff]  ;;  %v9225_v39 = vld [vmem:[%s19322_s1 + $0xd8] sm:$0xff] }
 0xd99   :  { %12787 = vmatprep.subr.bf16.mxu0 %v12786_v12  ;;  %v12790_v43 = vpack.c.bf16 %v9041_v5, %v9040_v56  ;;  %v9044_v26 = vmax.f32 %v9004_v8, 0.0  ;;  %v9007_v20 = vmax.f32 %v19160_v36, %v19163_v30  ;;  %v12804_v34 = vpack.c.bf16 %v19204_v52, %v19202_v6  ;;  %v9056_v36 = vld [vmem:[%s19323_s2 + $0x18] sm:$0xff]  ;;  %v9059_v6 = vld [vmem:[%s19323_s2 + $0x30] sm:$0xff]  ;;  %v9218_v52 = vld [vmem:[%s19322_s1 + $0xa0] sm:$0xff] }
 0xd9a   :  { %12817 = vmatpush3.bf16.msra.mxu1 %v12814_v7  ;;  %v12794_v53 = vpack.c.bf16 %v9043_v19, %v9042_v21  ;;  %v9045_v32 = vmax.f32 %v9005_v29, 0.0  ;;  %v9046_v63 = vmax.f32 %v9006_v37, 0.0  ;;  %v9060_v30 = vld [vmem:[%s19323_s2 + $0x38] sm:$0xff]  ;;  %v12822_v17 = vpack.c.bf16 %v9219_v60, %v9218_v52 }
 0xd9b   :  { %12819 = vmatprep.subr.bf16.mxu1 %v12818_v15  ;;  %v9047_v22 = vmax.f32 %v9007_v20, 0.0  ;;  %v12830_v61 = vpack.c.bf16 %v9224_v38, %v9223_v2 }
 0xd9c   :  { %12789 = vmatpush3.bf16.msra.mxu0 %v12788_v0  ;;  %v12798_v25 = vpack.c.bf16 %v9045_v32, %v9044_v26  ;;  %v10142_v0 = vld [vmem:[%s19322_s1 + $0xe8] ss:$0 sm:$0xff] }
 0xd9d   :  { %12791 = vmatprep.subr.bf16.mxu0 %v12790_v43  ;;  %v12802_v57 = vpack.c.bf16 %v9047_v22, %v9046_v63 }
 0xd9e   :  { %12821 = vmatpush3.bf16.msra.mxu1 %v12818_v15 }
 0xd9f   :  { %12829 = vmatprep.subr.bf16.mxu1 %v20161_v45 }
 0xda0   :  { %12793 = vmatpush3.bf16.msra.mxu0 %v12792_v16 }
 0xda1   :  { %12795 = vmatprep.subr.bf16.mxu0 %v12794_v53  ;;  %12383 = vmatmul.mubr.msk.f32.vlgmr.msra.gmra.mrb[96].mxu1 %vm2464_vm7, %v9061_v50 }
 0xda2   :  { %12407 = vmatprep.mubr.msk.f32.mxu1 %vm13354_vm6, %v20164_v48  ;;  %12831 = vmatpush3.bf16.msra.mxu1 %v12830_v61 }
 0xda3   :  { %12832 = vmatprep.subr.bf16.mxu1 %v20161_v45 }
 0xda4   :  { %12797 = vmatpush3.bf16.msra.mxu0 %v12796_v9 }
 0xda5   :  { %12799 = vmatprep.subr.bf16.mxu0 %v12798_v25 }
 0xda8   :  { %12801 = vmatpush3.bf16.msra.mxu0 %v12800_v14 }
 0xda9   :  { %12803 = vmatprep.subr.bf16.mxu0 %v12802_v57 }
 0xdac   :  { %12805 = vmatpush3.bf16.msra.mxu0 %v12804_v34 }
 0xdad   :  { %12823 = vmatprep.subr.bf16.mxu0 %v12822_v17 }
 0xdaf   :  { %9133 = vmatmul.mubr.f32.vlgmr.msra.gmra.mrb[96].mxu0 %v9056_v36 }
 0xdb0   :  { %9137 = vmatprep.mubr.f32.mxu0 %v9060_v30  ;;  %12825 = vmatpush3.bf16.msra.mxu0 %v12822_v17 }
 0xdb1   :  { %12826 = vmatprep.subr.bf16.mxu0 %v20161_v45  ;;  %v9222_v45 = vld [vmem:[%s19322_s1 + $0xc0] sm:$0x3] }
 0xdb3   :  { %9138 = vmatmul.mubr.f32.gmra.mrb[98].mxu0 %v9059_v6 }
 0xe74   :  { %v12384_v62 = vpop.f32.mrb[96].mxu1 }
 0xe75   :  { %v9209_v1 = vpop.f32.mrb[97].mxu1 }
 0xe82   :  { %v11188_v24 = vpop.f32.mrb[96].mxu0 }
 0xe83   :  { %v11189_v28 = vpop.f32.mrb[97].mxu0 }
 0xe84   :  { %v11190_v51 = vadd.f32 %v11189_v28, %v11188_v24 }
 0xe86   :  { %v11191_v46 = vpop.f32.mrb[98].mxu0  ;;  %v9210_v23 = vadd.f32 %v11190_v51, %v9209_v1 }
 0xe87   :  { %v11192_v35 = vpop.f32.mrb[99].mxu0 }
 0xe88   :  { %v11193_v59 = vadd.f32 %v11192_v35, %v11191_v46  ;;  %12389 = vmatprep.mubr.msk.f32.mxu0 %vm7579_vm10, %v9210_v23 }
 0xe8a   :  { %v9215_v31 = vadd.f32 %v12384_v62, %v11193_v59 }
 0xe8c   :  { %12390 = vmatmul.mubr.msk.f32.vlgmr.msra.gmra.mrb[100].mxu0 %vm7579_vm10, %v9215_v31 }
 0xe8d   :  { %12396 = vmatprep.mubr.msk.f32.mxu0 %vm13354_vm6, %v20164_v48  ;;  %v12833_v48 = vpack.c.bf16 %v9226_v47, %v9225_v39 }
 0xe8f   :  { %12835 = vmatpush3.bf16.msk.msra.mxu1 %vm12834_vm13, %v12833_v48 }
 0xf5f   :  { %v12391_v55 = vpop.f32.mrb[100].mxu0 }
 0xf60   :  { %v9310_v27 = vmul.f32 %v12391_v55, %v9221_v58  ;;  %v9300_v13 = vpop.f32.mrb[101].mxu0 }
 0xf61   :  { %v9309_v18 = vmul.f32 %v9300_v13, %v9220_v10 }
 0xf63   :  { %v12827_v54 = vpack.c.bf16 %v9310_v27, %v9309_v18 }
 0xf65   :  { %12828 = vmatpush3.bf16.msra.mxu0 %v12827_v54 }
 0xf68   :  { %12397 = vmatmul.mubr.msk.f32.vlgmr.msra.gmra.mrb[102].mxu0 %vm7579_vm10, %v9222_v45 }
0x103b   :  { %v9380_v44 = vpop.f32.mrb[102].mxu0 }
0x103c   :  { %v12398_v42 = vpop.f32.mrb[103].mxu0  ;;  %12408 = vmatmul.mubr.msk.f32.vlgmr.msra.gmra.mrb[98].mxu1 %vm9388_vm14, %v9380_v44 }
0x110f   :  { %v9462_v7 = vpop.f32.mrb[98].mxu1 }
0x1110   :  { %v9463_v11 = vadd.f32 %v10142_v0, %v9462_v7  ;;  %v12409_v40 = vpop.f32.mrb[99].mxu1 }
0x1112   :  { %9466 = vst [vmem:[#allocation2] sm:$0x3] %v9463_v11 }
0x1113   :  { %13340 = shalt.err (!%p13337_p4)
}
0x1114   :  { %s13341_s24 = scalar_lea.hbm %s19324_s3, 32 }
0x1115   :  { %p13342_p5 = scmp.ne.s32.totalorder %s19324_s3, %s13341_s24  ;;  %p13345_p6 = scmp.lt.u32.totalorder %s13341_s24, %s19324_s3 }
0x1117   :  { %p13347_p7 = pnand %p13345_p6, %p13342_p5 }
0x1119   :  { %13350 = shalt.err (!%p13347_p7)
}
0x111a   :  { %9476 = dma.vmem_to_hbm [thread:$0]  %s9474_s20, 32, %s19324_s3, [#allocation3]  }
0x111b   :  { %13351 = dma.done.wait [#allocation3], 32  }
0x111c   :  { %13352 = vsyncadd [#allocation3], 4294967264 }
0x111d   :  { %9480 = vsyncpa [#allocation3], 1 }

</bundles_post_ra>
